<compile_context>
chip_gen: v5e
topology: v5e:2x2
jax: 0.10.0
libtpu: 0.0.40
codegen_flags: <defaults>
</compile_context>

<pallas_src>
import jax
import jax.numpy as jnp
from jax.experimental import pallas as pl
from jax.experimental.pallas import tpu as pltpu

# ---- dimensions fixed by the PyTorch module ---------------------------------
K1, N1 = 3 * 32 * 32, 1280      # Linear(3072, 1280)
K2, N2 = 1280, 1024             # Linear(1280, 1024)

# ---- layer-1 weight-streaming tile (full-N contiguous slabs) -----------------
TK1 = 1024                      # -> 3 grid steps, 5.2 MB per slab
assert K1 % TK1 == 0
K1_TILES = K1 // TK1            # 3


def _encoder_kernel(x_ref, w1_ref, b1_ref, w2_ref, b2_ref, o_ref, h_ref):
    """Fused Linear -> ReLU -> Linear.

    Grid = (K1_TILES,), marked "arbitrary" (h is carried across steps).
      every step t : h (+)= x_block @ w1_block          (layer-1 K reduction)
      last step    : h  = relu(h + b1)
                     o  = h @ w2 + b2                   (single lane-dense store)
    Only the w1 slabs (and tiny x blocks) actually change per step; w2, the
    biases and the output block are VMEM-resident with constant index maps.
    """
    t = pl.program_id(0)
    last = pl.num_programs(0) - 1

    part = jnp.dot(x_ref[...], w1_ref[...], preferred_element_type=jnp.float32)

    @pl.when(t == 0)
    def _first():
        h_ref[...] = part            # direct write: no zero-init pass needed

    @pl.when(t > 0)
    def _accum():
        h_ref[...] += part

    @pl.when(t == last)
    def _finish():
        h = jnp.maximum(h_ref[...] + b1_ref[...], 0.0)
        o_ref[...] = (
            jnp.dot(h, w2_ref[...], preferred_element_type=jnp.float32)
            + b2_ref[...]
        ).astype(o_ref.dtype)


def encoder_forward(x, params):
    """Forward pass of Encoder: Linear(3072,1280) -> ReLU -> Linear(1280,1024)."""
    w1, b1, w2, b2 = params
    assert x.ndim == 2 and x.shape[1] == K1, x.shape
    assert x.dtype == jnp.float32
    assert w1.shape == (K1, N1) and b1.shape == (N1,)
    assert w2.shape == (K2, N2) and b2.shape == (N2,)

    m = x.shape[0]
    m_pad = ((m + 7) // 8) * 8          # full sublane group -> unmasked stores
    if m_pad != m:
        x = jnp.pad(x, ((0, m_pad - m), (0, 0)))

    # TODO(synk): on v7x a 2-way "parallel" split of the output-N axis could let
    # both TensorCores share the weight stream; kept single-core fused here.
    out = pl.pallas_call(
        _encoder_kernel,
        out_shape=jax.ShapeDtypeStruct((m_pad, N2), jnp.float32),
        grid_spec=pltpu.PrefetchScalarGridSpec(
            num_scalar_prefetch=0,
            grid=(K1_TILES,),
            in_specs=[
                # x: streamed in tiny (m_pad, TK1) blocks alongside the w1 slab.
                pl.BlockSpec((m_pad, TK1), lambda t: (0, t)),
                # w1: contiguous (TK1, N1) slabs -- the only heavy stream.
                pl.BlockSpec((TK1, N1), lambda t: (t, 0)),
                # b1: resident.
                pl.BlockSpec((1, N1), lambda t: (0, 0)),
                # w2: fully resident (fetched once, overlaps with w1 streaming).
                pl.BlockSpec((K2, N2), lambda t: (0, 0)),
                # b2: resident.
                pl.BlockSpec((1, N2), lambda t: (0, 0)),
            ],
            # Output block is resident across the grid; written once on the
            # last step (single full (8, 1024) lane-dense store).
            out_specs=pl.BlockSpec((m_pad, N2), lambda t: (0, 0)),
            # Only scratch: the intermediate h = relu(x @ w1 + b1) accumulator.
            scratch_shapes=[pltpu.VMEM((m_pad, N1), jnp.float32)],
        ),
        compiler_params=pltpu.CompilerParams(
            # Reduction-carrying sequential axis.
            dimension_semantics=("arbitrary",),
            # ~21 MB live (2x5.2 MB w1 slabs + 2x5.2 MB resident w2 + small
            # residents): raise the scoped limit past v5e's 16 MiB default.
            vmem_limit_bytes=32 * 1024 * 1024,
        ),
    )(x, w1, b1.reshape(1, N1), w2, b2.reshape(1, N2))

    return out[:m]


def init_encoder_params(key, dtype=jnp.float32):
    """Deterministic init mimicking nn.Linear defaults: U(-1/sqrt(fan_in), ...)."""
    k1, k2, k3, k4 = jax.random.split(key, 4)
    s1 = 1.0 / jnp.sqrt(K1)
    s2 = 1.0 / jnp.sqrt(K2)
    w1 = jax.random.uniform(k1, (K1, N1), dtype, minval=-s1, maxval=s1)
    b1 = jax.random.uniform(k2, (N1,), dtype, minval=-s1, maxval=s1)
    w2 = jax.random.uniform(k3, (K2, N2), dtype, minval=-s2, maxval=s2)
    b2 = jax.random.uniform(k4, (N2,), dtype, minval=-s2, maxval=s2)
    return w1, b1, w2, b2


if __name__ == "__main__":
    key = jax.random.PRNGKey(0)
    pkey, xkey = jax.random.split(key)

    params = init_encoder_params(pkey)

    batch = 2  # small batch; feature dim 3072 = flattened 3x32x32 CIFAR-10 image
    x = jax.random.normal(xkey, (batch, K1), dtype=jnp.float32)

    y = jax.jit(encoder_forward)(x, params)
    y = jax.block_until_ready(y)

    # Reference check in plain JAX.
    w1, b1, w2, b2 = params
    ref = jnp.maximum(x @ w1 + b1, 0.0) @ w2 + b2
    assert y.shape == (batch, N2), y.shape
    assert jnp.allclose(y, ref, atol=1e-3, rtol=1e-3), "mismatch vs reference"

    print("KERNEL_OK")
</pallas_src>

<mosaic_0001>
module attributes {stable_mosaic.version = 11 : i64} {
  func.func @_encoder_kernel(%arg0: i32, %arg1: memref<8x1024xf32, #tpu.memory_space<vmem>>, %arg2: memref<1024x1280xf32, #tpu.memory_space<vmem>>, %arg3: memref<1x1280xf32, #tpu.memory_space<vmem>>, %arg4: memref<1280x1024xf32, #tpu.memory_space<vmem>>, %arg5: memref<1x1024xf32, #tpu.memory_space<vmem>>, %arg6: memref<8x1024xf32, #tpu.memory_space<vmem>>, %arg7: memref<8x1280xf32, #tpu.memory_space<vmem>>) attributes {dimension_semantics = [#tpu.dimension_semantics<arbitrary>], iteration_bounds = array<i64: 3>, scalar_prefetch = 0 : i64, scratch_operands = 1 : i64, tpu.core_type = #tpu.core_type<tc>, window_params = [{transform_indices = @transform_0, window_bounds = array<i64: 8, 1024>}, {transform_indices = @transform_1, window_bounds = array<i64: 1024, 1280>}, {pipeline_mode = #tpu.pipeline_mode<synchronous>, transform_indices = @transform_2, window_bounds = array<i64: 1, 1280>}, {pipeline_mode = #tpu.pipeline_mode<synchronous>, transform_indices = @transform_3, window_bounds = array<i64: 1280, 1024>}, {pipeline_mode = #tpu.pipeline_mode<synchronous>, transform_indices = @transform_4, window_bounds = array<i64: 1, 1024>}, {pipeline_mode = #tpu.pipeline_mode<synchronous>, transform_indices = @transform_5, window_bounds = array<i64: 8, 1024>}]} {
    %c0 = arith.constant 0 : index
    %c0_0 = arith.constant 0 : index
    %0 = vector.load %arg1[%c0, %c0_0] : memref<8x1024xf32, #tpu.memory_space<vmem>>, vector<8x1024xf32>
    %c0_1 = arith.constant 0 : index
    %c0_2 = arith.constant 0 : index
    %1 = vector.load %arg2[%c0_1, %c0_2] : memref<1024x1280xf32, #tpu.memory_space<vmem>>, vector<1024x1280xf32>
    %cst = arith.constant dense<0.000000e+00> : vector<8x1280xf32>
    %2 = tpu.matmul %0, %1, %cst {dimension_numbers = #tpu.dot_dimension_numbers<[1], [0], [0], [1], [0, 0, 1, 1], [], []>} : vector<8x1024xf32>, vector<1024x1280xf32>, vector<8x1280xf32> -> vector<8x1280xf32>
    %c0_i32 = arith.constant 0 : i32
    %3 = arith.cmpi eq, %arg0, %c0_i32 : i32
    %4 = arith.extui %3 : i1 to i32
    %c0_i32_3 = arith.constant 0 : i32
    %5 = arith.cmpi ne, %4, %c0_i32_3 : i32
    scf.if %5 {
      %c0_7 = arith.constant 0 : index
      %c0_8 = arith.constant 0 : index
      %12 = vector.load %arg7[%c0_7, %c0_8] : memref<8x1280xf32, #tpu.memory_space<vmem>>, vector<8x1280xf32>
      tpu.vector_store %arg7[%c0_7, %c0_8], %2 {strides = array<i32>} : memref<8x1280xf32, #tpu.memory_space<vmem>>, vector<8x1280xf32>,
    } else {
    }
    %c0_i32_4 = arith.constant 0 : i32
    %6 = arith.cmpi sgt, %arg0, %c0_i32_4 : i32
    %7 = arith.extui %6 : i1 to i32
    %c0_i32_5 = arith.constant 0 : i32
    %8 = arith.cmpi ne, %7, %c0_i32_5 : i32
    scf.if %8 {
      %c0_7 = arith.constant 0 : index
      %c0_8 = arith.constant 0 : index
      %12 = vector.load %arg7[%c0_7, %c0_8] : memref<8x1280xf32, #tpu.memory_space<vmem>>, vector<8x1280xf32>
      %13 = arith.addf %12, %2 : vector<8x1280xf32>
      %c0_9 = arith.constant 0 : index
      %c0_10 = arith.constant 0 : index
      %14 = vector.load %arg7[%c0_9, %c0_10] : memref<8x1280xf32, #tpu.memory_space<vmem>>, vector<8x1280xf32>
      tpu.vector_store %arg7[%c0_9, %c0_10], %13 {strides = array<i32>} : memref<8x1280xf32, #tpu.memory_space<vmem>>, vector<8x1280xf32>,
    } else {
    }
    %c2_i32 = arith.constant 2 : i32
    %9 = arith.cmpi eq, %arg0, %c2_i32 : i32
    %10 = arith.extui %9 : i1 to i32
    %c0_i32_6 = arith.constant 0 : i32
    %11 = arith.cmpi ne, %10, %c0_i32_6 : i32
    scf.if %11 {
      %c0_7 = arith.constant 0 : index
      %c0_8 = arith.constant 0 : index
      %12 = vector.load %arg7[%c0_7, %c0_8] : memref<8x1280xf32, #tpu.memory_space<vmem>>, vector<8x1280xf32>
      %c0_9 = arith.constant 0 : index
      %c0_10 = arith.constant 0 : index
      %13 = vector.load %arg3[%c0_9, %c0_10] : memref<1x1280xf32, #tpu.memory_space<vmem>>, vector<1x1280xf32>
      %14 = vector.broadcast %13 : vector<1x1280xf32> to vector<8x1280xf32>
      %15 = arith.addf %12, %14 : vector<8x1280xf32>
      %cst_11 = arith.constant 0.000000e+00 : f32
      %16 = vector.broadcast %cst_11 : f32 to vector<8x1280xf32>
      %17 = arith.maximumf %15, %16 : vector<8x1280xf32>
      %c0_12 = arith.constant 0 : index
      %c0_13 = arith.constant 0 : index
      %18 = vector.load %arg4[%c0_12, %c0_13] : memref<1280x1024xf32, #tpu.memory_space<vmem>>, vector<1280x1024xf32>
      %cst_14 = arith.constant dense<0.000000e+00> : vector<8x1024xf32>
      %19 = tpu.matmul %17, %18, %cst_14 {dimension_numbers = #tpu.dot_dimension_numbers<[1], [0], [0], [1], [0, 0, 1, 1], [], []>} : vector<8x1280xf32>, vector<1280x1024xf32>, vector<8x1024xf32> -> vector<8x1024xf32>
      %c0_15 = arith.constant 0 : index
      %c0_16 = arith.constant 0 : index
      %20 = vector.load %arg5[%c0_15, %c0_16] : memref<1x1024xf32, #tpu.memory_space<vmem>>, vector<1x1024xf32>
      %21 = vector.broadcast %20 : vector<1x1024xf32> to vector<8x1024xf32>
      %22 = arith.addf %19, %21 : vector<8x1024xf32>
      %c0_17 = arith.constant 0 : index
      %c0_18 = arith.constant 0 : index
      %23 = vector.load %arg6[%c0_17, %c0_18] : memref<8x1024xf32, #tpu.memory_space<vmem>>, vector<8x1024xf32>
      tpu.vector_store %arg6[%c0_17, %c0_18], %22 {strides = array<i32>} : memref<8x1024xf32, #tpu.memory_space<vmem>>, vector<8x1024xf32>,
    } else {
    }
    return
  }
  func.func @transform_0(%arg0: i32) -> (i32, i32) {
    %c0_i32 = arith.constant 0 : i32
    %c0_i32_0 = arith.constant 0 : i32
    return %c0_i32, %arg0 : i32, i32
  }
  func.func @transform_1(%arg0: i32) -> (i32, i32) {
    %c0_i32 = arith.constant 0 : i32
    %c0_i32_0 = arith.constant 0 : i32
    return %arg0, %c0_i32 : i32, i32
  }
  func.func @transform_2(%arg0: i32) -> (i32, i32) {
    %c0_i32 = arith.constant 0 : i32
    %c0_i32_0 = arith.constant 0 : i32
    %c0_i32_1 = arith.constant 0 : i32
    return %c0_i32, %c0_i32_0 : i32, i32
  }
  func.func @transform_3(%arg0: i32) -> (i32, i32) {
    %c0_i32 = arith.constant 0 : i32
    %c0_i32_0 = arith.constant 0 : i32
    %c0_i32_1 = arith.constant 0 : i32
    return %c0_i32, %c0_i32_0 : i32, i32
  }
  func.func @transform_4(%arg0: i32) -> (i32, i32) {
    %c0_i32 = arith.constant 0 : i32
    %c0_i32_0 = arith.constant 0 : i32
    %c0_i32_1 = arith.constant 0 : i32
    return %c0_i32, %c0_i32_0 : i32, i32
  }
  func.func @transform_5(%arg0: i32) -> (i32, i32) {
    %c0_i32 = arith.constant 0 : i32
    %c0_i32_0 = arith.constant 0 : i32
    %c0_i32_1 = arith.constant 0 : i32
    return %c0_i32, %c0_i32_0 : i32, i32
  }
}

</mosaic_0001>

<bundles_post_ra>
// kernel: encoder_forward.1
= control target key start
LH: loop header
LB: loop body
LE: loop exit
PB: predicated region body
PF: predicated region fallthrough
CT: control target
= control target key end

     0   :  { %10 = vsyncpa [#allocation4], 0  ;;  %s8334_s0 = inlined_call_operand.vmem [shape: f32[8,3072], index: 0, kind: input, shape index: {}]   ;;  %s8335_s1 = inlined_call_operand.hbm [shape: f32[3072,1280], index: 1, kind: input, shape index: {}]   ;;  %s8336_s2 = inlined_call_operand.vmem [shape: f32[1,1280], index: 2, kind: input, shape index: {}]   ;;  %s8337_s3 = inlined_call_operand.hbm [shape: f32[1280,1024], index: 3, kind: input, shape index: {}]   ;;  %s8338_s4 = inlined_call_operand.hbm [shape: f32[1,1024], index: 4, kind: input, shape index: {}]   ;;  %s8339_s5 = inlined_call_operand.vmem [shape: f32[8,1024], index: 5, kind: output, shape index: {}]  }
   0x1   :  { %12 = vsyncpa [#allocation4 + $0x1], 0 }
   0x2   :  { %13 = vsyncpa [#allocation6], 0  ;;  %s6543_s18 = smov 0   ;;  %s6545_s19 = smov 0  }
   0x3   :  { %s6547_s20 = smov 0   ;;  %s6549_s21 = smov 0  }
   0x4 LB: > { %s6562_s22 = sadd.s32 4294967295, %s6505_s21   ;;  %p65_p0 = scmp.ne.s32.totalorder %s6497_s19, %s6493_s18  ;;  %s6505_s21 = sphi %s6549_s21, %s8347_s21   ;;  %s6501_s20 = sphi %s6547_s20, %s8346_s20   ;;  %s6497_s19 = sphi %s6545_s19, %s8345_s19   ;;  %s6493_s18 = sphi %s6543_s18, %s8344_s18  }
   0x5   : > { %p66_p1 = scmp.eq.s32.totalorder %s6562_s22, 0  ;;  %p6258_p2 = scmp.ge.s32.totalorder %s6505_s21, 1 }
   0x6   : > { %p160_p3 = scmp.lt.s32.totalorder %s6505_s21, 4  ;;  %p6259_p4 = scmp.ne.s32.totalorder %s6562_s22, 0 }
   0x7   : > { %p6571_p5 = por %p66_p1, %p65_p0  ;;  %s174_s26 = sshll.u32 %s8337_s3, 4  ;;  %s175_s26 = int_to_ptr.hbm [resolvable:$true] %s174_s26 }
   0x8   : > { %p6578_p6 = pnand %p6258_p2, %p160_p3  ;;  %s6507_s28 = smov [#allocation5]  }
   0x9   : > { %s176_s29 = sshll.u32 %s6507_s28, 4  ;;  %s189_s7 = sshll.u32 %s8338_s4, 4  ;;  %s177_s29 = int_to_ptr.vmem [resolvable:$true] %s176_s29  ;;  %s190_s7 = int_to_ptr.hbm [resolvable:$true] %s189_s7 }
   0xa   : > { %p6288_p7 = pneg %p6578_p6  ;;  %s6508_s8 = smov 1024  }
   0xb   : > { %s6509_s9 = smov 64   ;;  %s6510_s10 = smov [#allocation7]  }
   0xc   : > { %p6289_p8 = pnand %p6288_p7, %p66_p1  ;;  %s191_s11 = sshll.u32 %s6510_s10, 4  ;;  %s192_s11 = int_to_ptr.vmem [resolvable:$true] %s191_s11 }
   0xd   : > { %s6590_s12 = sadd.s32 1, %s6505_s21   ;;  %s52_s13 = sadd.s32 1, %s6501_s20 }
   0xe   : > { %6291 = dma.hbm_to_vmem [thread:$0]  (!%p6289_p8), %s175_s26, 163840, %s177_s29, [#allocation6], %s6508_s8, %s6508_s8, %s6509_s9  }
   0xf   : > { %6294 = dma.hbm_to_vmem [thread:$0]  (!%p6289_p8), %s190_s7, 128, %s192_s11, [#allocation6]  }
  0x10   : > { %s49_s14 = ssub.s32 %s6505_s21, %s6590_s12  ;;  %p59_p9 = scmp.ne.s32.totalorder %s6501_s20, %s6497_s19 }
  0x11   : > { %p50_p10 = scmp.eq.s32.totalorder %s49_s14, 0  ;;  %p60_p11 = scmp.eq.s32.totalorder %s6505_s21, 0 }
  0x12   : > { %p6301_p12 = scmp.lt.s32.totalorder %s6505_s21, 3  ;;  %s211_s15 = sand.u32 1, %s6501_s20  }
  0x13   : > { %s6601_s16 = scalar_select %p50_p10, %s6501_s20, %s52_s13  }
  0x14   : > { %p61_p13 = por %p60_p11, %p59_p9  ;;  %s6275_s17 = smul.u32 10240, %s211_s15 }
  0x15   : > { %s6276_s18 = smul.u32 10240, %s6505_s21  ;;  %s212_s7 = scalar_lea.sflag [#allocation4], %s211_s15 }
  0x16   : > { %p6604_p0 = pnand %p6301_p12, %p61_p13  ;;  %s215_s29 = scalar_lea.vmem [#allocation3], %s6275_s17 }
  0x17   : > { %s221_s28 = scalar_lea.hbm %s8335_s1, %s6276_s18  ;;  %s224_s30 = sshll.u32 %s215_s29, 4  ;;  %s225_s30 = int_to_ptr.vmem [resolvable:$true] %s224_s30 }
  0x18   : > { %s222_s6 = sshll.u32 %s221_s28, 4  ;;  %p6441_p3 = pneg %p6604_p0  ;;  %s223_s6 = int_to_ptr.hbm [resolvable:$true] %s222_s6 }
  0x19   : > { %s6437_s8 = sshra.s32 %s223_s6, 4  ;;  %s6444_s11 = scalar_lea.hbm %s8335_s1, 30720  ;;  %s6438_s8 = int_to_ptr.hbm [resolvable:$true] %s6437_s8 }
  0x1a   : > { %s6439_s9 = scalar_lea.hbm %s6438_s8, 10240  ;;  %p6445_p9 = scmp.lt.s32.totalorder %s6438_s8, %s8335_s1 }
  0x1b   : > { %p6440_p2 = scmp.ne.s32.totalorder %s6438_s8, %s6439_s9  ;;  %p6446_p10 = scmp.lt.s32.totalorder %s6444_s11, %s6439_s9 }
  0x1d   : > { %p6442_p7 = pnand %p6441_p3, %p6440_p2  ;;  %p6447_p11 = por %p6446_p10, %p6445_p9 }
  0x1f   : > { %p6443_p8 = pneg %p6442_p7 }
  0x21   : > { %p6448_p12 = pnand %p6447_p11, %p6443_p8 }
  0x23   : > { %6451 = shalt.err (!%p6448_p12)
}
  0x24   : > { %s6511_s15 = smov 1280   ;;  %s6512_s17 = smov 80  }
  0x25   : > { %6298 = dma.hbm_to_vmem [thread:$0]  (!%p6604_p0), %s223_s6, 163840, %s225_s30, %s212_s7, %s6511_s15, %s6511_s15, %s6512_s17  }
  0x26   : > { %236 = sbr.rel (%p6578_p6) target bundleno = 1931 (0x78b), region = 40  ;;  %s238_s18 = sand.u32 (!%p6578_p6), 1, %s6497_s19  }
  0x27   : > { %s6277_s25 = smul.u32 (!%p6578_p6), 10240, %s238_s18  ;;  %s239_s26 = scalar_lea.sflag (!%p6578_p6), [#allocation4], %s238_s18 }
  0x29   : > { %s6624_s28 = scalar_lea.vmem (!%p6578_p6), [#allocation3], %s6277_s25 }
  0x2b   : > { %6484 = dma.done.wait (%p6571_p5), %s239_s26, 163840  }
  0x2c   : > { %6486 = vsyncadd (%p6571_p5), %s239_s26, 4294803456 }
  0x2d   : > { %6488 = dma.done.wait (%p66_p1), [#allocation6], 163968  }
  0x2e   : > { %6490 = vsyncadd (%p66_p1), [#allocation6], 4294803328  ;;  %v445_v0 = vld [vmem:[%s6624_s28 + $0x4b0] sm:$0xff]  ;;  %v435_v2 = vld [vmem:[%s6624_s28 + $0x460] sm:$0xff]  ;;  %s6268_s23 = sshll.u32 %s6562_s22, 3 }
  0x2f   : > { %v765_v1 = vld [vmem:[%s6624_s28 + $0xeb0] sm:$0xff]  ;;  %1575 = vmatpush.msra.mxu0 %v445_v0  ;;  %v755_v4 = vld [vmem:[%s6624_s28 + $0xe60] sm:$0xff]  ;;  %p6733_p1 = scmp.lt.s32.totalorder %s6268_s23, 23 }
  0x30   : > { %1615 = vmatpush.msra.mxu2 %v765_v1  ;;  %v605_v3 = vld [vmem:[%s6624_s28 + $0x9b0] sm:$0xff]  ;;  %v595_v7 = vld [vmem:[%s6624_s28 + $0x960] sm:$0xff] }
  0x31   : > { %v925_v5 = vld [vmem:[%s6624_s28 + $0x13b0] sm:$0xff]  ;;  %1595 = vmatpush.msra.mxu1 %v605_v3  ;;  %1576 = vmatpush.msra.mxu0 %v435_v2  ;;  %v915_v9 = vld [vmem:[%s6624_s28 + $0x1360] sm:$0xff]  ;;  %s8349_s23 = smov (!%p6733_p1, %s6268_s23), 23 }
  0x32   : > { %1635 = vmatpush.msra.mxu3 %v925_v5  ;;  %v425_v6 = vld [vmem:[%s6624_s28 + $0x410] sm:$0xff]  ;;  %1616 = vmatpush.msra.mxu2 %v755_v4  ;;  %v415_v11 = vld [vmem:[%s6624_s28 + $0x3c0] sm:$0xff]  ;;  %s6269_s24 = sshll.u32 %s8349_s23, 3 }
  0x33   : > { %v745_v8 = vld [vmem:[%s6624_s28 + $0xe10] sm:$0xff]  ;;  %1596 = vmatpush.msra.mxu1 %v595_v7  ;;  %v735_v12 = vld [vmem:[%s6624_s28 + $0xdc0] sm:$0xff]  ;;  %1577 = vmatpush.msra.mxu0 %v425_v6  ;;  %s6769_s6 = scalar_lea.vmem %s8334_s0, %s6269_s24 }
  0x34   : > { %v585_v10 = vld [vmem:[%s6624_s28 + $0x910] sm:$0xff]  ;;  %1636 = vmatpush.msra.mxu3 %v915_v9  ;;  %1617 = vmatpush.msra.mxu2 %v745_v8  ;;  %v575_v14 = vld [vmem:[%s6624_s28 + $0x8c0] sm:$0xff] }
  0x35   : > { %v905_v13 = vld [vmem:[%s6624_s28 + $0x1310] sm:$0xff]  ;;  %v895_v15 = vld [vmem:[%s6624_s28 + $0x12c0] sm:$0xff]  ;;  %1597 = vmatpush.msra.mxu1 %v585_v10  ;;  %1578 = vmatpush.msra.mxu0 %v415_v11 }
  0x36   : > { %1637 = vmatpush.msra.mxu3 %v905_v13  ;;  %v405_v16 = vld [vmem:[%s6624_s28 + $0x370] sm:$0xff]  ;;  %1618 = vmatpush.msra.mxu2 %v735_v12  ;;  %v395_v20 = vld [vmem:[%s6624_s28 + $0x320] sm:$0xff] }
  0x37   : > { %v725_v17 = vld [vmem:[%s6624_s28 + $0xd70] sm:$0xff]  ;;  %1598 = vmatpush.msra.mxu1 %v575_v14  ;;  %v715_v21 = vld [vmem:[%s6624_s28 + $0xd20] sm:$0xff]  ;;  %1579 = vmatpush.msra.mxu0 %v405_v16 }
  0x38   : > { %v565_v18 = vld [vmem:[%s6624_s28 + $0x870] sm:$0xff]  ;;  %1638 = vmatpush.msra.mxu3 %v895_v15  ;;  %1619 = vmatpush.msra.mxu2 %v725_v17  ;;  %v555_v22 = vld [vmem:[%s6624_s28 + $0x820] sm:$0xff] }
  0x39   : > { %v885_v19 = vld [vmem:[%s6624_s28 + $0x1270] sm:$0xff]  ;;  %v875_v23 = vld [vmem:[%s6624_s28 + $0x1220] sm:$0xff]  ;;  %1599 = vmatpush.msra.mxu1 %v565_v18  ;;  %1580 = vmatpush.msra.mxu0 %v395_v20 }
  0x3a   : > { %1639 = vmatpush.msra.mxu3 %v885_v19  ;;  %v385_v24 = vld [vmem:[%s6624_s28 + $0x2d0] sm:$0xff]  ;;  %1620 = vmatpush.msra.mxu2 %v715_v21  ;;  %v375_v28 = vld [vmem:[%s6624_s28 + $0x280] sm:$0xff] }
  0x3b   : > { %v705_v25 = vld [vmem:[%s6624_s28 + $0xcd0] sm:$0xff]  ;;  %1600 = vmatpush.msra.mxu1 %v555_v22  ;;  %v695_v29 = vld [vmem:[%s6624_s28 + $0xc80] sm:$0xff]  ;;  %1581 = vmatpush.msra.mxu0 %v385_v24 }
  0x3c   : > { %v545_v26 = vld [vmem:[%s6624_s28 + $0x7d0] sm:$0xff]  ;;  %1640 = vmatpush.msra.mxu3 %v875_v23  ;;  %1621 = vmatpush.msra.mxu2 %v705_v25  ;;  %v535_v30 = vld [vmem:[%s6624_s28 + $0x780] sm:$0xff] }
  0x3d   : > { %v865_v27 = vld [vmem:[%s6624_s28 + $0x11d0] sm:$0xff]  ;;  %v855_v31 = vld [vmem:[%s6624_s28 + $0x1180] sm:$0xff]  ;;  %1601 = vmatpush.msra.mxu1 %v545_v26  ;;  %1582 = vmatpush.msra.mxu0 %v375_v28 }
  0x3e   : > { %1641 = vmatpush.msra.mxu3 %v865_v27  ;;  %v365_v32 = vld [vmem:[%s6624_s28 + $0x230] sm:$0xff]  ;;  %1622 = vmatpush.msra.mxu2 %v695_v29  ;;  %v355_v36 = vld [vmem:[%s6624_s28 + $0x1e0] sm:$0xff] }
  0x3f   : > { %v685_v33 = vld [vmem:[%s6624_s28 + $0xc30] sm:$0xff]  ;;  %1602 = vmatpush.msra.mxu1 %v535_v30  ;;  %v675_v37 = vld [vmem:[%s6624_s28 + $0xbe0] sm:$0xff]  ;;  %1583 = vmatpush.msra.mxu0 %v365_v32 }
  0x40   : > { %v525_v34 = vld [vmem:[%s6624_s28 + $0x730] sm:$0xff]  ;;  %1642 = vmatpush.msra.mxu3 %v855_v31  ;;  %1623 = vmatpush.msra.mxu2 %v685_v33  ;;  %v515_v38 = vld [vmem:[%s6624_s28 + $0x6e0] sm:$0xff] }
  0x41   : > { %v845_v35 = vld [vmem:[%s6624_s28 + $0x1130] sm:$0xff]  ;;  %v835_v39 = vld [vmem:[%s6624_s28 + $0x10e0] sm:$0xff]  ;;  %1603 = vmatpush.msra.mxu1 %v525_v34  ;;  %1584 = vmatpush.msra.mxu0 %v355_v36 }
  0x42   : > { %1643 = vmatpush.msra.mxu3 %v845_v35  ;;  %v345_v40 = vld [vmem:[%s6624_s28 + $0x190] sm:$0xff]  ;;  %1624 = vmatpush.msra.mxu2 %v675_v37  ;;  %v335_v44 = vld [vmem:[%s6624_s28 + $0x140] sm:$0xff] }
  0x43   : > { %v665_v41 = vld [vmem:[%s6624_s28 + $0xb90] sm:$0xff]  ;;  %1604 = vmatpush.msra.mxu1 %v515_v38  ;;  %v655_v45 = vld [vmem:[%s6624_s28 + $0xb40] sm:$0xff]  ;;  %1585 = vmatpush.msra.mxu0 %v345_v40 }
  0x44   : > { %v505_v42 = vld [vmem:[%s6624_s28 + $0x690] sm:$0xff]  ;;  %1644 = vmatpush.msra.mxu3 %v835_v39  ;;  %1625 = vmatpush.msra.mxu2 %v665_v41  ;;  %v495_v46 = vld [vmem:[%s6624_s28 + $0x640] sm:$0xff] }
  0x45   : > { %v825_v43 = vld [vmem:[%s6624_s28 + $0x1090] sm:$0xff]  ;;  %v815_v47 = vld [vmem:[%s6624_s28 + $0x1040] sm:$0xff]  ;;  %1605 = vmatpush.msra.mxu1 %v505_v42  ;;  %1586 = vmatpush.msra.mxu0 %v335_v44 }
  0x46   : > { %1645 = vmatpush.msra.mxu3 %v825_v43  ;;  %v325_v48 = vld [vmem:[%s6624_s28 + $0xf0] sm:$0xff]  ;;  %1626 = vmatpush.msra.mxu2 %v655_v45  ;;  %v315_v52 = vld [vmem:[%s6624_s28 + $0xa0] sm:$0xff] }
  0x47   : > { %v645_v49 = vld [vmem:[%s6624_s28 + $0xaf0] sm:$0xff]  ;;  %1606 = vmatpush.msra.mxu1 %v495_v46  ;;  %v635_v53 = vld [vmem:[%s6624_s28 + $0xaa0] sm:$0xff]  ;;  %1587 = vmatpush.msra.mxu0 %v325_v48 }
  0x48   : > { %v485_v50 = vld [vmem:[%s6624_s28 + $0x5f0] sm:$0xff]  ;;  %1646 = vmatpush.msra.mxu3 %v815_v47  ;;  %1627 = vmatpush.msra.mxu2 %v645_v49  ;;  %v475_v54 = vld [vmem:[%s6624_s28 + $0x5a0] sm:$0xff] }
  0x49   : > { %v805_v51 = vld [vmem:[%s6624_s28 + $0xff0] sm:$0xff]  ;;  %v795_v55 = vld [vmem:[%s6624_s28 + $0xfa0] sm:$0xff]  ;;  %1607 = vmatpush.msra.mxu1 %v485_v50  ;;  %1588 = vmatpush.msra.mxu0 %v315_v52 }
  0x4a   : > { %1647 = vmatpush.msra.mxu3 %v805_v51  ;;  %v305_v56 = vld [vmem:[%s6624_s28 + $0x50] sm:$0xff]  ;;  %1628 = vmatpush.msra.mxu2 %v635_v53  ;;  %v295_v60 = vld [vmem:[%s6624_s28] sm:$0xff] }
  0x4b   : > { %v625_v57 = vld [vmem:[%s6624_s28 + $0xa50] sm:$0xff]  ;;  %1608 = vmatpush.msra.mxu1 %v475_v54  ;;  %v615_v61 = vld [vmem:[%s6624_s28 + $0xa00] sm:$0xff]  ;;  %1589 = vmatpush.msra.mxu0 %v305_v56 }
  0x4c   : > { %v465_v58 = vld [vmem:[%s6624_s28 + $0x550] sm:$0xff]  ;;  %1648 = vmatpush.msra.mxu3 %v795_v55  ;;  %1629 = vmatpush.msra.mxu2 %v625_v57  ;;  %v455_v0 = vld [vmem:[%s6624_s28 + $0x500] sm:$0xff] }
  0x4d   : > { %v785_v59 = vld [vmem:[%s6624_s28 + $0xf50] sm:$0xff]  ;;  %1609 = vmatpush.msra.mxu1 %v465_v58  ;;  %v775_v1 = vld [vmem:[%s6624_s28 + $0xf00] sm:$0xff]  ;;  %1590 = vmatpush.msra.mxu0 %v295_v60 }
  0x4e   : > { %v1085_v62 = vld [vmem:[%s6624_s28 + $0x18b0] sm:$0xff]  ;;  %1649 = vmatpush.msra.mxu3 %v785_v59  ;;  %1630 = vmatpush.msra.mxu2 %v615_v61  ;;  %v1075_v2 = vld [vmem:[%s6624_s28 + $0x1860] sm:$0xff] }
  0x4f   : > { %v1405_v63 = vld [vmem:[%s6624_s28 + $0x22b0] sm:$0xff]  ;;  %1655 = vmatpush.msrb.mxu0 %v1085_v62  ;;  %v1395_v4 = vld [vmem:[%s6624_s28 + $0x2260] sm:$0xff]  ;;  %1610 = vmatpush.msra.mxu1 %v455_v0  ;;  %v6787_v0 = vld [vmem:[%s6769_s6 + $0x18] sm:$0xff] }
  0x50   : > { %v1245_v3 = vld [vmem:[%s6624_s28 + $0x1db0] sm:$0xff]  ;;  %1695 = vmatpush.msrb.mxu2 %v1405_v63  ;;  %1650 = vmatpush.msra.mxu3 %v775_v1  ;;  %v1235_v7 = vld [vmem:[%s6624_s28 + $0x1d60] sm:$0xff]  ;;  %v446_v1 = vld [vmem:[%s6624_s28 + $0x4b8] sm:$0xff] }
  0x51   : > { %v1565_v5 = vld [vmem:[%s6624_s28 + $0x27b0] sm:$0xff]  ;;  %1656 = vmatpush.msrb.mxu0 %v1075_v2  ;;  %1675 = vmatpush.msrb.mxu1 %v1245_v3  ;;  %v1555_v9 = vld [vmem:[%s6624_s28 + $0x2760] sm:$0xff]  ;;  %v766_v2 = vld [vmem:[%s6624_s28 + $0xeb8] sm:$0xff] }
  0x52   : > { %v1065_v6 = vld [vmem:[%s6624_s28 + $0x1810] sm:$0xff]  ;;  %1696 = vmatpush.msrb.mxu2 %v1395_v4  ;;  %1715 = vmatpush.msrb.mxu3 %v1565_v5  ;;  %v1055_v10 = vld [vmem:[%s6624_s28 + $0x17c0] sm:$0xff]  ;;  %v6795_v5 = vld [vmem:[%s6769_s6 + $0x8] sm:$0xff] }
  0x53   : > { %v1385_v8 = vld [vmem:[%s6624_s28 + $0x2210] sm:$0xff]  ;;  %1657 = vmatpush.msrb.mxu0 %v1065_v6  ;;  %1676 = vmatpush.msrb.mxu1 %v1235_v7  ;;  %v1375_v12 = vld [vmem:[%s6624_s28 + $0x21c0] sm:$0xff]  ;;  %v436_v6 = vld [vmem:[%s6624_s28 + $0x468] sm:$0xff] }
  0x54   : > { %v1225_v11 = vld [vmem:[%s6624_s28 + $0x1d10] sm:$0xff]  ;;  %1697 = vmatpush.msrb.mxu2 %v1385_v8  ;;  %1716 = vmatpush.msrb.mxu3 %v1555_v9  ;;  %v1215_v15 = vld [vmem:[%s6624_s28 + $0x1cc0] sm:$0xff]  ;;  %v606_v7 = vld [vmem:[%s6624_s28 + $0x9b8] sm:$0xff] }
  0x55   : > { %v1545_v13 = vld [vmem:[%s6624_s28 + $0x2710] sm:$0xff]  ;;  %1658 = vmatpush.msrb.mxu0 %v1055_v10  ;;  %1677 = vmatpush.msrb.mxu1 %v1225_v11  ;;  %v1535_v17 = vld [vmem:[%s6624_s28 + $0x26c0] sm:$0xff]  ;;  %v756_v8 = vld [vmem:[%s6624_s28 + $0xe68] sm:$0xff] }
  0x56   : > { %v1045_v14 = vld [vmem:[%s6624_s28 + $0x1770] sm:$0xff]  ;;  %1698 = vmatpush.msrb.mxu2 %v1375_v12  ;;  %1717 = vmatpush.msrb.mxu3 %v1545_v13  ;;  %v1035_v18 = vld [vmem:[%s6624_s28 + $0x1720] sm:$0xff]  ;;  %v926_v9 = vld [vmem:[%s6624_s28 + $0x13b8] sm:$0xff] }
  0x57   : > { %v1365_v16 = vld [vmem:[%s6624_s28 + $0x2170] sm:$0xff]  ;;  %1659 = vmatpush.msrb.mxu0 %v1045_v14  ;;  %1678 = vmatpush.msrb.mxu1 %v1215_v15  ;;  %v1355_v20 = vld [vmem:[%s6624_s28 + $0x2120] sm:$0xff]  ;;  %v426_v10 = vld [vmem:[%s6624_s28 + $0x418] sm:$0xff] }
  0x58   : > { %v1205_v19 = vld [vmem:[%s6624_s28 + $0x1c70] sm:$0xff]  ;;  %1699 = vmatpush.msrb.mxu2 %v1365_v16  ;;  %1718 = vmatpush.msrb.mxu3 %v1535_v17  ;;  %v1195_v23 = vld [vmem:[%s6624_s28 + $0x1c20] sm:$0xff]  ;;  %v596_v11 = vld [vmem:[%s6624_s28 + $0x968] sm:$0xff] }
  0x59   : > { %v1525_v21 = vld [vmem:[%s6624_s28 + $0x2670] sm:$0xff]  ;;  %1660 = vmatpush.msrb.mxu0 %v1035_v18  ;;  %1679 = vmatpush.msrb.mxu1 %v1205_v19  ;;  %v1515_v25 = vld [vmem:[%s6624_s28 + $0x2620] sm:$0xff]  ;;  %v746_v12 = vld [vmem:[%s6624_s28 + $0xe18] sm:$0xff] }
  0x5a   : > { %v1025_v22 = vld [vmem:[%s6624_s28 + $0x16d0] sm:$0xff]  ;;  %1700 = vmatpush.msrb.mxu2 %v1355_v20  ;;  %1719 = vmatpush.msrb.mxu3 %v1525_v21  ;;  %v1015_v26 = vld [vmem:[%s6624_s28 + $0x1680] sm:$0xff]  ;;  %v916_v13 = vld [vmem:[%s6624_s28 + $0x1368] sm:$0xff] }
  0x5b   : > { %v1345_v24 = vld [vmem:[%s6624_s28 + $0x20d0] sm:$0xff]  ;;  %1661 = vmatpush.msrb.mxu0 %v1025_v22  ;;  %1680 = vmatpush.msrb.mxu1 %v1195_v23  ;;  %v1335_v28 = vld [vmem:[%s6624_s28 + $0x2080] sm:$0xff]  ;;  %v416_v15 = vld [vmem:[%s6624_s28 + $0x3c8] sm:$0xff] }
  0x5c   : > { %v1185_v27 = vld [vmem:[%s6624_s28 + $0x1bd0] sm:$0xff]  ;;  %1701 = vmatpush.msrb.mxu2 %v1345_v24  ;;  %1720 = vmatpush.msrb.mxu3 %v1515_v25  ;;  %v1175_v31 = vld [vmem:[%s6624_s28 + $0x1b80] sm:$0xff]  ;;  %v586_v16 = vld [vmem:[%s6624_s28 + $0x918] sm:$0xff] }
  0x5d   : > { %v1505_v29 = vld [vmem:[%s6624_s28 + $0x25d0] sm:$0xff]  ;;  %1662 = vmatpush.msrb.mxu0 %v1015_v26  ;;  %1681 = vmatpush.msrb.mxu1 %v1185_v27  ;;  %v1495_v33 = vld [vmem:[%s6624_s28 + $0x2580] sm:$0xff]  ;;  %v736_v17 = vld [vmem:[%s6624_s28 + $0xdc8] sm:$0xff] }
  0x5e   : > { %v1005_v30 = vld [vmem:[%s6624_s28 + $0x1630] sm:$0xff]  ;;  %1702 = vmatpush.msrb.mxu2 %v1335_v28  ;;  %1721 = vmatpush.msrb.mxu3 %v1505_v29  ;;  %v995_v34 = vld [vmem:[%s6624_s28 + $0x15e0] sm:$0xff]  ;;  %v906_v18 = vld [vmem:[%s6624_s28 + $0x1318] sm:$0xff] }
  0x5f   : > { %v1325_v32 = vld [vmem:[%s6624_s28 + $0x2030] sm:$0xff]  ;;  %1663 = vmatpush.msrb.mxu0 %v1005_v30  ;;  %1682 = vmatpush.msrb.mxu1 %v1175_v31  ;;  %v1315_v36 = vld [vmem:[%s6624_s28 + $0x1fe0] sm:$0xff]  ;;  %v6819_v20 = vld [vmem:[%s6769_s6 + $0x38] sm:$0xff] }
  0x60   : > { %v1165_v35 = vld [vmem:[%s6624_s28 + $0x1b30] sm:$0xff]  ;;  %1703 = vmatpush.msrb.mxu2 %v1325_v32  ;;  %1722 = vmatpush.msrb.mxu3 %v1495_v33  ;;  %v1155_v39 = vld [vmem:[%s6624_s28 + $0x1ae0] sm:$0xff]  ;;  %v406_v21 = vld [vmem:[%s6624_s28 + $0x378] sm:$0xff] }
  0x61   : > { %v1485_v37 = vld [vmem:[%s6624_s28 + $0x2530] sm:$0xff]  ;;  %1664 = vmatpush.msrb.mxu0 %v995_v34  ;;  %1683 = vmatpush.msrb.mxu1 %v1165_v35  ;;  %v1475_v41 = vld [vmem:[%s6624_s28 + $0x24e0] sm:$0xff]  ;;  %v576_v22 = vld [vmem:[%s6624_s28 + $0x8c8] sm:$0xff] }
  0x62   : > { %v985_v38 = vld [vmem:[%s6624_s28 + $0x1590] sm:$0xff]  ;;  %1704 = vmatpush.msrb.mxu2 %v1315_v36  ;;  %1723 = vmatpush.msrb.mxu3 %v1485_v37  ;;  %v975_v42 = vld [vmem:[%s6624_s28 + $0x1540] sm:$0xff]  ;;  %v726_v23 = vld [vmem:[%s6624_s28 + $0xd78] sm:$0xff] }
  0x63   : > { %v1305_v40 = vld [vmem:[%s6624_s28 + $0x1f90] sm:$0xff]  ;;  %1665 = vmatpush.msrb.mxu0 %v985_v38  ;;  %1684 = vmatpush.msrb.mxu1 %v1155_v39  ;;  %v1295_v44 = vld [vmem:[%s6624_s28 + $0x1f40] sm:$0xff]  ;;  %v896_v24 = vld [vmem:[%s6624_s28 + $0x12c8] sm:$0xff] }
  0x64   : > { %v1145_v43 = vld [vmem:[%s6624_s28 + $0x1a90] sm:$0xff]  ;;  %1705 = vmatpush.msrb.mxu2 %v1305_v40  ;;  %1724 = vmatpush.msrb.mxu3 %v1475_v41  ;;  %v1135_v47 = vld [vmem:[%s6624_s28 + $0x1a40] sm:$0xff]  ;;  %v6827_v25 = vld [vmem:[%s6769_s6 + $0x28] sm:$0xff] }
  0x65   : > { %v1465_v45 = vld [vmem:[%s6624_s28 + $0x2490] sm:$0xff]  ;;  %1666 = vmatpush.msrb.mxu0 %v975_v42  ;;  %1685 = vmatpush.msrb.mxu1 %v1145_v43  ;;  %v1455_v49 = vld [vmem:[%s6624_s28 + $0x2440] sm:$0xff]  ;;  %v396_v26 = vld [vmem:[%s6624_s28 + $0x328] sm:$0xff] }
  0x66   : > { %v965_v46 = vld [vmem:[%s6624_s28 + $0x14f0] sm:$0xff]  ;;  %1706 = vmatpush.msrb.mxu2 %v1295_v44  ;;  %1725 = vmatpush.msrb.mxu3 %v1465_v45  ;;  %v955_v50 = vld [vmem:[%s6624_s28 + $0x14a0] sm:$0xff]  ;;  %v566_v27 = vld [vmem:[%s6624_s28 + $0x878] sm:$0xff] }
  0x67   : > { %v1285_v48 = vld [vmem:[%s6624_s28 + $0x1ef0] sm:$0xff]  ;;  %1667 = vmatpush.msrb.mxu0 %v965_v46  ;;  %1686 = vmatpush.msrb.mxu1 %v1135_v47  ;;  %v1275_v52 = vld [vmem:[%s6624_s28 + $0x1ea0] sm:$0xff]  ;;  %v716_v28 = vld [vmem:[%s6624_s28 + $0xd28] sm:$0xff] }
  0x68   : > { %v1125_v51 = vld [vmem:[%s6624_s28 + $0x19f0] sm:$0xff]  ;;  %1707 = vmatpush.msrb.mxu2 %v1285_v48  ;;  %1726 = vmatpush.msrb.mxu3 %v1455_v49  ;;  %v1115_v55 = vld [vmem:[%s6624_s28 + $0x19a0] sm:$0xff]  ;;  %v886_v29 = vld [vmem:[%s6624_s28 + $0x1278] sm:$0xff] }
  0x69   : > { %v1445_v53 = vld [vmem:[%s6624_s28 + $0x23f0] sm:$0xff]  ;;  %1668 = vmatpush.msrb.mxu0 %v955_v50  ;;  %1687 = vmatpush.msrb.mxu1 %v1125_v51  ;;  %v1435_v57 = vld [vmem:[%s6624_s28 + $0x23a0] sm:$0xff]  ;;  %v386_v30 = vld [vmem:[%s6624_s28 + $0x2d8] sm:$0xff] }
  0x6a   : > { %v945_v54 = vld [vmem:[%s6624_s28 + $0x1450] sm:$0xff]  ;;  %1708 = vmatpush.msrb.mxu2 %v1275_v52  ;;  %1727 = vmatpush.msrb.mxu3 %v1445_v53  ;;  %v6776_v58 = vld [vmem:[%s6769_s6 + $0x10] sm:$0xff]  ;;  %v556_v31 = vld [vmem:[%s6624_s28 + $0x828] sm:$0xff] }
  0x6b   : > { %v1265_v56 = vld [vmem:[%s6624_s28 + $0x1e50] sm:$0xff]  ;;  %v935_v59 = vld [vmem:[%s6624_s28 + $0x1400] sm:$0xff]  ;;  %1669 = vmatpush.msrb.mxu0 %v945_v54  ;;  %1688 = vmatpush.msrb.mxu1 %v1115_v55  ;;  %v706_v32 = vld [vmem:[%s6624_s28 + $0xcd8] sm:$0xff] }
  0x6c   : > { %v1105_v60 = vld [vmem:[%s6624_s28 + $0x1950] sm:$0xff]  ;;  %v1255_v61 = vld [vmem:[%s6624_s28 + $0x1e00] sm:$0xff]  ;;  %1709 = vmatpush.msrb.mxu2 %v1265_v56  ;;  %1728 = vmatpush.msrb.mxu3 %v1435_v57  ;;  %v876_v33 = vld [vmem:[%s6624_s28 + $0x1228] sm:$0xff] }
  0x6d   : > { %v1425_v62 = vld [vmem:[%s6624_s28 + $0x2350] sm:$0xff]  ;;  %1631 = vmatmul.f32.vlgmr.msra.gmra.mxu2 %v6776_v58  ;;  %1670 = vmatpush.msrb.mxu0 %v935_v59  ;;  %v1095_v3 = vld [vmem:[%s6624_s28 + $0x1900] sm:$0xff]  ;;  %v376_v34 = vld [vmem:[%s6624_s28 + $0x288] sm:$0xff] }
  0x6e   : > { %v6783_v63 = vld [vmem:[%s6769_s6] sm:$0xff]  ;;  %1689 = vmatpush.msrb.mxu1 %v1105_v60  ;;  %1710 = vmatpush.msrb.mxu2 %v1255_v61  ;;  %v1415_v4 = vld [vmem:[%s6624_s28 + $0x2300] sm:$0xff]  ;;  %v546_v35 = vld [vmem:[%s6624_s28 + $0x7d8] sm:$0xff] }
  0x6f   : > { %1729 = vmatpush.msrb.mxu3 %v1425_v62  ;;  %1591 = vmatmul.f32.vlgmr.msra.gmra.mxu0 %v6783_v63  ;;  %v6808_v14 = vld [vmem:[%s6769_s6 + $0x30] sm:$0xff]  ;;  %v6815_v19 = vld [vmem:[%s6769_s6 + $0x20] sm:$0xff]  ;;  %v696_v36 = vld [vmem:[%s6624_s28 + $0xc88] sm:$0xff] }
  0x70   : > { %1651 = vmatmul.f32.vlgmr.msra.gmra.mxu3 %v6787_v0  ;;  %1735 = vmatpush.msra.mxu0 %v446_v1  ;;  %v866_v37 = vld [vmem:[%s6624_s28 + $0x11d8] sm:$0xff]  ;;  %v536_v39 = vld [vmem:[%s6624_s28 + $0x788] sm:$0xff] }
  0x71   : > { %1775 = vmatpush.msra.mxu2 %v766_v2  ;;  %1690 = vmatpush.msrb.mxu1 %v1095_v3  ;;  %v366_v38 = vld [vmem:[%s6624_s28 + $0x238] sm:$0xff]  ;;  %v856_v41 = vld [vmem:[%s6624_s28 + $0x1188] sm:$0xff] }
  0x72   : > { %1730 = vmatpush.msrb.mxu3 %v1415_v4  ;;  %1611 = vmatmul.f32.vlgmr.msra.gmra.mxu1 %v6795_v5  ;;  %v686_v40 = vld [vmem:[%s6624_s28 + $0xc38] sm:$0xff]  ;;  %v356_v42 = vld [vmem:[%s6624_s28 + $0x1e8] sm:$0xff] }
  0x73   : > { %1736 = vmatpush.msra.mxu0 %v436_v6  ;;  %1755 = vmatpush.msra.mxu1 %v606_v7  ;;  %v526_v43 = vld [vmem:[%s6624_s28 + $0x738] sm:$0xff]  ;;  %v676_v44 = vld [vmem:[%s6624_s28 + $0xbe8] sm:$0xff] }
  0x74   : > { %1776 = vmatpush.msra.mxu2 %v756_v8  ;;  %1795 = vmatpush.msra.mxu3 %v926_v9  ;;  %v846_v45 = vld [vmem:[%s6624_s28 + $0x1138] sm:$0xff]  ;;  %v516_v47 = vld [vmem:[%s6624_s28 + $0x6e8] sm:$0xff] }
  0x75   : > { %1737 = vmatpush.msra.mxu0 %v426_v10  ;;  %1756 = vmatpush.msra.mxu1 %v596_v11  ;;  %v346_v46 = vld [vmem:[%s6624_s28 + $0x198] sm:$0xff]  ;;  %v836_v49 = vld [vmem:[%s6624_s28 + $0x10e8] sm:$0xff] }
  0x76   : > { %1777 = vmatpush.msra.mxu2 %v746_v12  ;;  %1796 = vmatpush.msra.mxu3 %v916_v13  ;;  %v666_v48 = vld [vmem:[%s6624_s28 + $0xb98] sm:$0xff]  ;;  %v336_v50 = vld [vmem:[%s6624_s28 + $0x148] sm:$0xff] }
  0x77   : > { %1711 = vmatmul.f32.vlgmr.msrb.gmra.mxu2 %v6808_v14  ;;  %1738 = vmatpush.msra.mxu0 %v416_v15  ;;  %v506_v51 = vld [vmem:[%s6624_s28 + $0x698] sm:$0xff]  ;;  %v656_v52 = vld [vmem:[%s6624_s28 + $0xb48] sm:$0xff] }
  0x78   : > { %1757 = vmatpush.msra.mxu1 %v586_v16  ;;  %1778 = vmatpush.msra.mxu2 %v736_v17  ;;  %v826_v53 = vld [vmem:[%s6624_s28 + $0x1098] sm:$0xff]  ;;  %v496_v55 = vld [vmem:[%s6624_s28 + $0x648] sm:$0xff] }
  0x79   : > { %1797 = vmatpush.msra.mxu3 %v906_v18  ;;  %1671 = vmatmul.f32.vlgmr.msrb.gmra.mxu0 %v6815_v19  ;;  %v326_v54 = vld [vmem:[%s6624_s28 + $0xf8] sm:$0xff]  ;;  %v816_v57 = vld [vmem:[%s6624_s28 + $0x1048] sm:$0xff] }
  0x7a   : > { %1731 = vmatmul.f32.vlgmr.msrb.gmra.mxu3 %v6819_v20  ;;  %1739 = vmatpush.msra.mxu0 %v406_v21  ;;  %v646_v56 = vld [vmem:[%s6624_s28 + $0xaf8] sm:$0xff]  ;;  %v316_v59 = vld [vmem:[%s6624_s28 + $0xa8] sm:$0xff] }
  0x7b   : > { %1758 = vmatpush.msra.mxu1 %v576_v22  ;;  %1779 = vmatpush.msra.mxu2 %v726_v23  ;;  %v486_v60 = vld [vmem:[%s6624_s28 + $0x5f8] sm:$0xff]  ;;  %v636_v61 = vld [vmem:[%s6624_s28 + $0xaa8] sm:$0xff] }
  0x7c   : > { %1798 = vmatpush.msra.mxu3 %v896_v24  ;;  %1691 = vmatmul.f32.vlgmr.msrb.gmra.mxu1 %v6827_v25  ;;  %v806_v62 = vld [vmem:[%s6624_s28 + $0xff8] sm:$0xff]  ;;  %v476_v2 = vld [vmem:[%s6624_s28 + $0x5a8] sm:$0xff] }
  0x7d   : > { %1740 = vmatpush.msra.mxu0 %v396_v26  ;;  %1759 = vmatpush.msra.mxu1 %v566_v27  ;;  %v306_v1 = vld [vmem:[%s6624_s28 + $0x58] sm:$0xff]  ;;  %v796_v4 = vld [vmem:[%s6624_s28 + $0xfa8] sm:$0xff] }
  0x7e   : > { %1780 = vmatpush.msra.mxu2 %v716_v28  ;;  %1799 = vmatpush.msra.mxu3 %v886_v29  ;;  %v626_v3 = vld [vmem:[%s6624_s28 + $0xa58] sm:$0xff]  ;;  %v296_v6 = vld [vmem:[%s6624_s28 + $0x8] sm:$0xff] }
  0x7f   : > { %1741 = vmatpush.msra.mxu0 %v386_v30  ;;  %1760 = vmatpush.msra.mxu1 %v556_v31  ;;  %v466_v7 = vld [vmem:[%s6624_s28 + $0x558] sm:$0xff]  ;;  %v616_v8 = vld [vmem:[%s6624_s28 + $0xa08] sm:$0xff] }
  0x80   : > { %1781 = vmatpush.msra.mxu2 %v706_v32  ;;  %1800 = vmatpush.msra.mxu3 %v876_v33  ;;  %v786_v9 = vld [vmem:[%s6624_s28 + $0xf58] sm:$0xff]  ;;  %v456_v12 = vld [vmem:[%s6624_s28 + $0x508] sm:$0xff] }
  0x81   : > { %1742 = vmatpush.msra.mxu0 %v376_v34  ;;  %1761 = vmatpush.msra.mxu1 %v546_v35  ;;  %v1086_v10 = vld [vmem:[%s6624_s28 + $0x18b8] sm:$0xff]  ;;  %v776_v13 = vld [vmem:[%s6624_s28 + $0xf08] sm:$0xff] }
  0x82   : > { %1782 = vmatpush.msra.mxu2 %v696_v36  ;;  %1801 = vmatpush.msra.mxu3 %v866_v37  ;;  %v1406_v11 = vld [vmem:[%s6624_s28 + $0x22b8] sm:$0xff]  ;;  %v1076_v15 = vld [vmem:[%s6624_s28 + $0x1868] sm:$0xff] }
  0x83   : > { %1743 = vmatpush.msra.mxu0 %v366_v38  ;;  %1762 = vmatpush.msra.mxu1 %v536_v39  ;;  %v1246_v16 = vld [vmem:[%s6624_s28 + $0x1db8] sm:$0xff]  ;;  %v1396_v17 = vld [vmem:[%s6624_s28 + $0x2268] sm:$0xff] }
  0x84   : > { %1783 = vmatpush.msra.mxu2 %v686_v40  ;;  %1802 = vmatpush.msra.mxu3 %v856_v41  ;;  %v1566_v18 = vld [vmem:[%s6624_s28 + $0x27b8] sm:$0xff]  ;;  %v1236_v22 = vld [vmem:[%s6624_s28 + $0x1d68] sm:$0xff] }
  0x85   : > { %1744 = vmatpush.msra.mxu0 %v356_v42  ;;  %1763 = vmatpush.msra.mxu1 %v526_v43  ;;  %v1066_v21 = vld [vmem:[%s6624_s28 + $0x1818] sm:$0xff]  ;;  %v1556_v24 = vld [vmem:[%s6624_s28 + $0x2768] sm:$0xff] }
  0x86   : > { %1784 = vmatpush.msra.mxu2 %v676_v44  ;;  %1803 = vmatpush.msra.mxu3 %v846_v45  ;;  %v1386_v23 = vld [vmem:[%s6624_s28 + $0x2218] sm:$0xff]  ;;  %v1056_v26 = vld [vmem:[%s6624_s28 + $0x17c8] sm:$0xff] }
  0x87   : > { %1745 = vmatpush.msra.mxu0 %v346_v46  ;;  %1764 = vmatpush.msra.mxu1 %v516_v47  ;;  %v1226_v27 = vld [vmem:[%s6624_s28 + $0x1d18] sm:$0xff]  ;;  %v1376_v28 = vld [vmem:[%s6624_s28 + $0x21c8] sm:$0xff] }
  0x88   : > { %1785 = vmatpush.msra.mxu2 %v666_v48  ;;  %1804 = vmatpush.msra.mxu3 %v836_v49  ;;  %v1546_v29 = vld [vmem:[%s6624_s28 + $0x2718] sm:$0xff]  ;;  %v1216_v31 = vld [vmem:[%s6624_s28 + $0x1cc8] sm:$0xff] }
  0x89   : > { %1746 = vmatpush.msra.mxu0 %v336_v50  ;;  %1765 = vmatpush.msra.mxu1 %v506_v51  ;;  %v1046_v30 = vld [vmem:[%s6624_s28 + $0x1778] sm:$0xff]  ;;  %v1536_v33 = vld [vmem:[%s6624_s28 + $0x26c8] sm:$0xff] }
  0x8a   : > { %1786 = vmatpush.msra.mxu2 %v656_v52  ;;  %1805 = vmatpush.msra.mxu3 %v826_v53  ;;  %v1366_v32 = vld [vmem:[%s6624_s28 + $0x2178] sm:$0xff]  ;;  %v1036_v34 = vld [vmem:[%s6624_s28 + $0x1728] sm:$0xff] }
  0x8b   : > { %1747 = vmatpush.msra.mxu0 %v326_v54  ;;  %1766 = vmatpush.msra.mxu1 %v496_v55  ;;  %v1206_v35 = vld [vmem:[%s6624_s28 + $0x1c78] sm:$0xff]  ;;  %v1356_v36 = vld [vmem:[%s6624_s28 + $0x2128] sm:$0xff] }
  0x8c   : > { %1787 = vmatpush.msra.mxu2 %v646_v56  ;;  %1806 = vmatpush.msra.mxu3 %v816_v57  ;;  %v1526_v37 = vld [vmem:[%s6624_s28 + $0x2678] sm:$0xff]  ;;  %v1196_v39 = vld [vmem:[%s6624_s28 + $0x1c28] sm:$0xff] }
  0x8d   : > { %1748 = vmatpush.msra.mxu0 %v316_v59  ;;  %1767 = vmatpush.msra.mxu1 %v486_v60  ;;  %v1026_v38 = vld [vmem:[%s6624_s28 + $0x16d8] sm:$0xff]  ;;  %v1516_v41 = vld [vmem:[%s6624_s28 + $0x2628] sm:$0xff] }
  0x8e   : > { %1788 = vmatpush.msra.mxu2 %v636_v61  ;;  %1807 = vmatpush.msra.mxu3 %v806_v62  ;;  %v1346_v40 = vld [vmem:[%s6624_s28 + $0x20d8] sm:$0xff]  ;;  %v1016_v42 = vld [vmem:[%s6624_s28 + $0x1688] sm:$0xff] }
  0x8f   : > { %1749 = vmatpush.msra.mxu0 %v306_v1  ;;  %1768 = vmatpush.msra.mxu1 %v476_v2  ;;  %v1186_v43 = vld [vmem:[%s6624_s28 + $0x1bd8] sm:$0xff]  ;;  %v1336_v44 = vld [vmem:[%s6624_s28 + $0x2088] sm:$0xff] }
  0x90   : > { %1789 = vmatpush.msra.mxu2 %v626_v3  ;;  %1808 = vmatpush.msra.mxu3 %v796_v4  ;;  %v1506_v45 = vld [vmem:[%s6624_s28 + $0x25d8] sm:$0xff]  ;;  %v1176_v47 = vld [vmem:[%s6624_s28 + $0x1b88] sm:$0xff] }
  0x91   : > { %1750 = vmatpush.msra.mxu0 %v296_v6  ;;  %1769 = vmatpush.msra.mxu1 %v466_v7  ;;  %v1006_v46 = vld [vmem:[%s6624_s28 + $0x1638] sm:$0xff]  ;;  %v1496_v49 = vld [vmem:[%s6624_s28 + $0x2588] sm:$0xff] }
  0x92   : > { %1790 = vmatpush.msra.mxu2 %v616_v8  ;;  %1809 = vmatpush.msra.mxu3 %v786_v9  ;;  %v1326_v48 = vld [vmem:[%s6624_s28 + $0x2038] sm:$0xff]  ;;  %v996_v50 = vld [vmem:[%s6624_s28 + $0x15e8] sm:$0xff] }
  0x93   : > { %1815 = vmatpush.msrb.mxu0 %v1086_v10  ;;  %1770 = vmatpush.msra.mxu1 %v456_v12  ;;  %v1166_v51 = vld [vmem:[%s6624_s28 + $0x1b38] sm:$0xff]  ;;  %v1316_v52 = vld [vmem:[%s6624_s28 + $0x1fe8] sm:$0xff] }
  0x94   : > { %1855 = vmatpush.msrb.mxu2 %v1406_v11  ;;  %1810 = vmatpush.msra.mxu3 %v776_v13  ;;  %v1486_v53 = vld [vmem:[%s6624_s28 + $0x2538] sm:$0xff]  ;;  %v1156_v55 = vld [vmem:[%s6624_s28 + $0x1ae8] sm:$0xff] }
  0x95   : > { %1816 = vmatpush.msrb.mxu0 %v1076_v15  ;;  %1835 = vmatpush.msrb.mxu1 %v1246_v16  ;;  %v986_v54 = vld [vmem:[%s6624_s28 + $0x1598] sm:$0xff]  ;;  %v1476_v57 = vld [vmem:[%s6624_s28 + $0x24e8] sm:$0xff] }
  0x96   : > { %1856 = vmatpush.msrb.mxu2 %v1396_v17  ;;  %1875 = vmatpush.msrb.mxu3 %v1566_v18  ;;  %v1306_v56 = vld [vmem:[%s6624_s28 + $0x1f98] sm:$0xff]  ;;  %v976_v59 = vld [vmem:[%s6624_s28 + $0x1548] sm:$0xff] }
  0x97   : > { %1817 = vmatpush.msrb.mxu0 %v1066_v21  ;;  %1836 = vmatpush.msrb.mxu1 %v1236_v22  ;;  %v1146_v60 = vld [vmem:[%s6624_s28 + $0x1a98] sm:$0xff]  ;;  %v1296_v61 = vld [vmem:[%s6624_s28 + $0x1f48] sm:$0xff]  ;;  %v447_v21 = vld [vmem:[%s6624_s28 + $0x4c0] sm:$0xff] }
  0x98   : > { %1857 = vmatpush.msrb.mxu2 %v1386_v23  ;;  %1876 = vmatpush.msrb.mxu3 %v1556_v24  ;;  %v1466_v62 = vld [vmem:[%s6624_s28 + $0x2498] sm:$0xff]  ;;  %v1136_v2 = vld [vmem:[%s6624_s28 + $0x1a48] sm:$0xff]  ;;  %v767_v22 = vld [vmem:[%s6624_s28 + $0xec0] sm:$0xff] }
  0x99   : > { %1818 = vmatpush.msrb.mxu0 %v1056_v26  ;;  %1837 = vmatpush.msrb.mxu1 %v1226_v27  ;;  %v966_v1 = vld [vmem:[%s6624_s28 + $0x14f8] sm:$0xff]  ;;  %v1456_v4 = vld [vmem:[%s6624_s28 + $0x2448] sm:$0xff]  ;;  %v607_v26 = vld [vmem:[%s6624_s28 + $0x9c0] sm:$0xff] }
  0x9a   : > { %1858 = vmatpush.msrb.mxu2 %v1376_v28  ;;  %1877 = vmatpush.msrb.mxu3 %v1546_v29  ;;  %v1286_v3 = vld [vmem:[%s6624_s28 + $0x1ef8] sm:$0xff]  ;;  %v956_v6 = vld [vmem:[%s6624_s28 + $0x14a8] sm:$0xff]  ;;  %v757_v27 = vld [vmem:[%s6624_s28 + $0xe70] sm:$0xff] }
  0x9b   : > { %1819 = vmatpush.msrb.mxu0 %v1046_v30  ;;  %1838 = vmatpush.msrb.mxu1 %v1216_v31  ;;  %v1126_v7 = vld [vmem:[%s6624_s28 + $0x19f8] sm:$0xff]  ;;  %v1276_v8 = vld [vmem:[%s6624_s28 + $0x1ea8] sm:$0xff]  ;;  %v927_v28 = vld [vmem:[%s6624_s28 + $0x13c0] sm:$0xff] }
  0x9c   : > { %1859 = vmatpush.msrb.mxu2 %v1366_v32  ;;  %1878 = vmatpush.msrb.mxu3 %v1536_v33  ;;  %v1446_v9 = vld [vmem:[%s6624_s28 + $0x23f8] sm:$0xff]  ;;  %v1116_v11 = vld [vmem:[%s6624_s28 + $0x19a8] sm:$0xff]  ;;  %v597_v29 = vld [vmem:[%s6624_s28 + $0x970] sm:$0xff] }
  0x9d   : > { %1820 = vmatpush.msrb.mxu0 %v1036_v34  ;;  %1839 = vmatpush.msrb.mxu1 %v1206_v35  ;;  %v946_v10 = vld [vmem:[%s6624_s28 + $0x1458] sm:$0xff]  ;;  %v1436_v13 = vld [vmem:[%s6624_s28 + $0x23a8] sm:$0xff]  ;;  %v917_v30 = vld [vmem:[%s6624_s28 + $0x1370] sm:$0xff] }
  0x9e   : > { %1860 = vmatpush.msrb.mxu2 %v1356_v36  ;;  %1879 = vmatpush.msrb.mxu3 %v1526_v37  ;;  %v1266_v12 = vld [vmem:[%s6624_s28 + $0x1e58] sm:$0xff]  ;;  %v936_v15 = vld [vmem:[%s6624_s28 + $0x1408] sm:$0xff]  ;;  %v417_v31 = vld [vmem:[%s6624_s28 + $0x3d0] sm:$0xff] }
  0x9f   : > { %1821 = vmatpush.msrb.mxu0 %v1026_v38  ;;  %1840 = vmatpush.msrb.mxu1 %v1196_v39  ;;  %v1106_v16 = vld [vmem:[%s6624_s28 + $0x1958] sm:$0xff]  ;;  %v1256_v17 = vld [vmem:[%s6624_s28 + $0x1e08] sm:$0xff]  ;;  %v587_v32 = vld [vmem:[%s6624_s28 + $0x920] sm:$0xff] }
  0xa0   : > { %1861 = vmatpush.msrb.mxu2 %v1346_v40  ;;  %1880 = vmatpush.msrb.mxu3 %v1516_v41  ;;  %v1426_v18 = vld [vmem:[%s6624_s28 + $0x2358] sm:$0xff]  ;;  %v1096_v23 = vld [vmem:[%s6624_s28 + $0x1908] sm:$0xff]  ;;  %v737_v33 = vld [vmem:[%s6624_s28 + $0xdd0] sm:$0xff] }
  0xa1   : > { %1822 = vmatpush.msrb.mxu0 %v1016_v42  ;;  %1841 = vmatpush.msrb.mxu1 %v1186_v43  ;;  %v1416_v24 = vld [vmem:[%s6624_s28 + $0x2308] sm:$0xff]  ;;  %v407_v34 = vld [vmem:[%s6624_s28 + $0x380] sm:$0xff]  ;;  %v577_v35 = vld [vmem:[%s6624_s28 + $0x8d0] sm:$0xff] }
  0xa2   : > { %1862 = vmatpush.msrb.mxu2 %v1336_v44  ;;  %1881 = vmatpush.msrb.mxu3 %v1506_v45  ;;  %v727_v36 = vld [vmem:[%s6624_s28 + $0xd80] sm:$0xff]  ;;  %v897_v37 = vld [vmem:[%s6624_s28 + $0x12d0] sm:$0xff] }
  0xa3   : > { %1823 = vmatpush.msrb.mxu0 %v1006_v46  ;;  %1842 = vmatpush.msrb.mxu1 %v1176_v47  ;;  %v567_v38 = vld [vmem:[%s6624_s28 + $0x880] sm:$0xff]  ;;  %v717_v39 = vld [vmem:[%s6624_s28 + $0xd30] sm:$0xff] }
  0xa4   : > { %1863 = vmatpush.msrb.mxu2 %v1326_v48  ;;  %1882 = vmatpush.msrb.mxu3 %v1496_v49  ;;  %v887_v40 = vld [vmem:[%s6624_s28 + $0x1280] sm:$0xff]  ;;  %v557_v41 = vld [vmem:[%s6624_s28 + $0x830] sm:$0xff] }
  0xa5   : > { %1824 = vmatpush.msrb.mxu0 %v996_v50  ;;  %1843 = vmatpush.msrb.mxu1 %v1166_v51  ;;  %v877_v42 = vld [vmem:[%s6624_s28 + $0x1230] sm:$0xff]  ;;  %v547_v44 = vld [vmem:[%s6624_s28 + $0x7e0] sm:$0xff] }
  0xa6   : > { %1864 = vmatpush.msrb.mxu2 %v1316_v52  ;;  %1883 = vmatpush.msrb.mxu3 %v1486_v53  ;;  %v377_v43 = vld [vmem:[%s6624_s28 + $0x290] sm:$0xff]  ;;  %v367_v46 = vld [vmem:[%s6624_s28 + $0x240] sm:$0xff] }
  0xa7   : > { %1825 = vmatpush.msrb.mxu0 %v986_v54  ;;  %1844 = vmatpush.msrb.mxu1 %v1156_v55  ;;  %v697_v45 = vld [vmem:[%s6624_s28 + $0xc90] sm:$0xff]  ;;  %v687_v48 = vld [vmem:[%s6624_s28 + $0xc40] sm:$0xff] }
  0xa8   : > { %1865 = vmatpush.msrb.mxu2 %v1306_v56  ;;  %1884 = vmatpush.msrb.mxu3 %v1476_v57  ;;  %v537_v47 = vld [vmem:[%s6624_s28 + $0x790] sm:$0xff]  ;;  %v527_v51 = vld [vmem:[%s6624_s28 + $0x740] sm:$0xff] }
  0xa9   : > { %1826 = vmatpush.msrb.mxu0 %v976_v59  ;;  %1845 = vmatpush.msrb.mxu1 %v1146_v60  ;;  %v857_v49 = vld [vmem:[%s6624_s28 + $0x1190] sm:$0xff]  ;;  %v847_v53 = vld [vmem:[%s6624_s28 + $0x1140] sm:$0xff] }
  0xaa   : > { %1866 = vmatpush.msrb.mxu2 %v1296_v61  ;;  %1885 = vmatpush.msrb.mxu3 %v1466_v62  ;;  %v357_v50 = vld [vmem:[%s6624_s28 + $0x1f0] sm:$0xff]  ;;  %v347_v54 = vld [vmem:[%s6624_s28 + $0x1a0] sm:$0xff] }
  0xab   : > { %1827 = vmatpush.msrb.mxu0 %v966_v1  ;;  %1846 = vmatpush.msrb.mxu1 %v1136_v2  ;;  %v677_v52 = vld [vmem:[%s6624_s28 + $0xbf0] sm:$0xff]  ;;  %v667_v56 = vld [vmem:[%s6624_s28 + $0xba0] sm:$0xff] }
  0xac   : > { %1867 = vmatpush.msrb.mxu2 %v1286_v3  ;;  %1886 = vmatpush.msrb.mxu3 %v1456_v4  ;;  %v517_v55 = vld [vmem:[%s6624_s28 + $0x6f0] sm:$0xff]  ;;  %v507_v60 = vld [vmem:[%s6624_s28 + $0x6a0] sm:$0xff] }
  0xad   : > { %1828 = vmatpush.msrb.mxu0 %v956_v6  ;;  %1847 = vmatpush.msrb.mxu1 %v1126_v7  ;;  %v837_v57 = vld [vmem:[%s6624_s28 + $0x10f0] sm:$0xff]  ;;  %v827_v62 = vld [vmem:[%s6624_s28 + $0x10a0] sm:$0xff] }
  0xae   : > { %1868 = vmatpush.msrb.mxu2 %v1276_v8  ;;  %1887 = vmatpush.msrb.mxu3 %v1446_v9  ;;  %v337_v59 = vld [vmem:[%s6624_s28 + $0x150] sm:$0xff]  ;;  %v327_v1 = vld [vmem:[%s6624_s28 + $0x100] sm:$0xff] }
  0xaf   : > { %1829 = vmatpush.msrb.mxu0 %v946_v10  ;;  %1848 = vmatpush.msrb.mxu1 %v1116_v11  ;;  %v657_v61 = vld [vmem:[%s6624_s28 + $0xb50] sm:$0xff]  ;;  %v647_v3 = vld [vmem:[%s6624_s28 + $0xb00] sm:$0xff] }
  0xb0   : > { %1869 = vmatpush.msrb.mxu2 %v1266_v12  ;;  %1888 = vmatpush.msrb.mxu3 %v1436_v13  ;;  %v497_v2 = vld [vmem:[%s6624_s28 + $0x650] sm:$0xff]  ;;  %v487_v7 = vld [vmem:[%s6624_s28 + $0x600] sm:$0xff] }
  0xb1   : > { %1791 = vmatmul.f32.vlgmr.msra.gmra.mxu2 %v6776_v58  ;;  %1830 = vmatpush.msrb.mxu0 %v936_v15  ;;  %v437_v58 = vld [vmem:[%s6624_s28 + $0x470] sm:$0xff]  ;;  %v807_v9 = vld [vmem:[%s6624_s28 + $0x1000] sm:$0xff] }
  0xb2   : > { %1849 = vmatpush.msrb.mxu1 %v1106_v16  ;;  %1870 = vmatpush.msrb.mxu2 %v1256_v17  ;;  %v817_v4 = vld [vmem:[%s6624_s28 + $0x1050] sm:$0xff]  ;;  %v307_v10 = vld [vmem:[%s6624_s28 + $0x60] sm:$0xff] }
  0xb3   : > { %1889 = vmatpush.msrb.mxu3 %v1426_v18  ;;  %1751 = vmatmul.f32.vlgmr.msra.gmra.mxu0 %v6783_v63  ;;  %v427_v63 = vld [vmem:[%s6624_s28 + $0x420] sm:$0xff]  ;;  %v317_v6 = vld [vmem:[%s6624_s28 + $0xb0] sm:$0xff] }
  0xb4   : > { %1811 = vmatmul.f32.vlgmr.msra.gmra.mxu3 %v6787_v0  ;;  %1895 = vmatpush.msra.mxu0 %v447_v21  ;;  %v747_v0 = vld [vmem:[%s6624_s28 + $0xe20] sm:$0xff]  ;;  %v637_v8 = vld [vmem:[%s6624_s28 + $0xab0] sm:$0xff] }
  0xb5   : > { %1935 = vmatpush.msra.mxu2 %v767_v22  ;;  %1850 = vmatpush.msrb.mxu1 %v1096_v23  ;;  %v477_v11 = vld [vmem:[%s6624_s28 + $0x5b0] sm:$0xff]  ;;  %v627_v12 = vld [vmem:[%s6624_s28 + $0xa60] sm:$0xff] }
  0xb6   : > { %1890 = vmatpush.msrb.mxu3 %v1416_v24  ;;  %1771 = vmatmul.f32.vlgmr.msra.gmra.mxu1 %v6795_v5  ;;  %v907_v5 = vld [vmem:[%s6624_s28 + $0x1320] sm:$0xff]  ;;  %v797_v13 = vld [vmem:[%s6624_s28 + $0xfb0] sm:$0xff] }
  0xb7   : > { %1896 = vmatpush.msra.mxu0 %v437_v58  ;;  %1915 = vmatpush.msra.mxu1 %v607_v26  ;;  %v297_v15 = vld [vmem:[%s6624_s28 + $0x10] sm:$0xff]  ;;  %v467_v16 = vld [vmem:[%s6624_s28 + $0x560] sm:$0xff] }
  0xb8   : > { %1936 = vmatpush.msra.mxu2 %v757_v27  ;;  %1955 = vmatpush.msra.mxu3 %v927_v28  ;;  %v617_v17 = vld [vmem:[%s6624_s28 + $0xa10] sm:$0xff]  ;;  %v787_v18 = vld [vmem:[%s6624_s28 + $0xf60] sm:$0xff] }
  0xb9   : > { %1897 = vmatpush.msra.mxu0 %v427_v63  ;;  %1916 = vmatpush.msra.mxu1 %v597_v29  ;;  %v1087_v21 = vld [vmem:[%s6624_s28 + $0x18c0] sm:$0xff]  ;;  %v457_v23 = vld [vmem:[%s6624_s28 + $0x510] sm:$0xff] }
  0xba   : > { %1937 = vmatpush.msra.mxu2 %v747_v0  ;;  %1956 = vmatpush.msra.mxu3 %v917_v30  ;;  %v1407_v22 = vld [vmem:[%s6624_s28 + $0x22c0] sm:$0xff]  ;;  %v777_v24 = vld [vmem:[%s6624_s28 + $0xf10] sm:$0xff] }
  0xbb   : > { %1871 = vmatmul.f32.vlgmr.msrb.gmra.mxu2 %v6808_v14  ;;  %1898 = vmatpush.msra.mxu0 %v417_v31  ;;  %v397_v14 = vld [vmem:[%s6624_s28 + $0x330] sm:$0xff]  ;;  %v1247_v26 = vld [vmem:[%s6624_s28 + $0x1dc0] sm:$0xff] }
  0xbc   : > { %1917 = vmatpush.msra.mxu1 %v587_v32  ;;  %1938 = vmatpush.msra.mxu2 %v737_v33  ;;  %v1077_v58 = vld [vmem:[%s6624_s28 + $0x1870] sm:$0xff]  ;;  %v1567_v28 = vld [vmem:[%s6624_s28 + $0x27c0] sm:$0xff] }
  0xbd   : > { %1957 = vmatpush.msra.mxu3 %v907_v5  ;;  %1831 = vmatmul.f32.vlgmr.msrb.gmra.mxu0 %v6815_v19  ;;  %v387_v19 = vld [vmem:[%s6624_s28 + $0x2e0] sm:$0xff]  ;;  %v1397_v27 = vld [vmem:[%s6624_s28 + $0x2270] sm:$0xff] }
  0xbe   : > { %1891 = vmatmul.f32.vlgmr.msrb.gmra.mxu3 %v6819_v20  ;;  %1899 = vmatpush.msra.mxu0 %v407_v34  ;;  %v707_v20 = vld [vmem:[%s6624_s28 + $0xce0] sm:$0xff]  ;;  %v1237_v29 = vld [vmem:[%s6624_s28 + $0x1d70] sm:$0xff] }
  0xbf   : > { %1918 = vmatpush.msra.mxu1 %v577_v35  ;;  %1939 = vmatpush.msra.mxu2 %v727_v36  ;;  %v1067_v63 = vld [vmem:[%s6624_s28 + $0x1820] sm:$0xff]  ;;  %v1557_v30 = vld [vmem:[%s6624_s28 + $0x2770] sm:$0xff] }
  0xc0   : > { %1958 = vmatpush.msra.mxu3 %v897_v37  ;;  %1851 = vmatmul.f32.vlgmr.msrb.gmra.mxu1 %v6827_v25  ;;  %v867_v25 = vld [vmem:[%s6624_s28 + $0x11e0] sm:$0xff]  ;;  %v1057_v31 = vld [vmem:[%s6624_s28 + $0x17d0] sm:$0xff] }
  0xc1   : > { %1900 = vmatpush.msra.mxu0 %v397_v14  ;;  %1919 = vmatpush.msra.mxu1 %v567_v38  ;;  %v1387_v0 = vld [vmem:[%s6624_s28 + $0x2220] sm:$0xff]  ;;  %v1377_v33 = vld [vmem:[%s6624_s28 + $0x21d0] sm:$0xff] }
  0xc2   : > { %1940 = vmatpush.msra.mxu2 %v717_v39  ;;  %1959 = vmatpush.msra.mxu3 %v887_v40  ;;  %v1227_v32 = vld [vmem:[%s6624_s28 + $0x1d20] sm:$0xff]  ;;  %v1217_v35 = vld [vmem:[%s6624_s28 + $0x1cd0] sm:$0xff] }
  0xc3   : > { %1901 = vmatpush.msra.mxu0 %v387_v19  ;;  %1920 = vmatpush.msra.mxu1 %v557_v41  ;;  %v1547_v5 = vld [vmem:[%s6624_s28 + $0x2720] sm:$0xff]  ;;  %v1537_v37 = vld [vmem:[%s6624_s28 + $0x26d0] sm:$0xff] }
  0xc4   : > { %1941 = vmatpush.msra.mxu2 %v707_v20  ;;  %1960 = vmatpush.msra.mxu3 %v877_v42  ;;  %v1047_v34 = vld [vmem:[%s6624_s28 + $0x1780] sm:$0xff]  ;;  %v1037_v14 = vld [vmem:[%s6624_s28 + $0x1730] sm:$0xff] }
  0xc5   : > { %1902 = vmatpush.msra.mxu0 %v377_v43  ;;  %1921 = vmatpush.msra.mxu1 %v547_v44  ;;  %v1367_v36 = vld [vmem:[%s6624_s28 + $0x2180] sm:$0xff]  ;;  %v1357_v39 = vld [vmem:[%s6624_s28 + $0x2130] sm:$0xff] }
  0xc6   : > { %1942 = vmatpush.msra.mxu2 %v697_v45  ;;  %1961 = vmatpush.msra.mxu3 %v867_v25  ;;  %v1207_v38 = vld [vmem:[%s6624_s28 + $0x1c80] sm:$0xff]  ;;  %v1197_v41 = vld [vmem:[%s6624_s28 + $0x1c30] sm:$0xff] }
  0xc7   : > { %1903 = vmatpush.msra.mxu0 %v367_v46  ;;  %1922 = vmatpush.msra.mxu1 %v537_v47  ;;  %v1527_v40 = vld [vmem:[%s6624_s28 + $0x2680] sm:$0xff]  ;;  %v1517_v42 = vld [vmem:[%s6624_s28 + $0x2630] sm:$0xff] }
  0xc8   : > { %1943 = vmatpush.msra.mxu2 %v687_v48  ;;  %1962 = vmatpush.msra.mxu3 %v857_v49  ;;  %v1027_v19 = vld [vmem:[%s6624_s28 + $0x16e0] sm:$0xff]  ;;  %v1017_v43 = vld [vmem:[%s6624_s28 + $0x1690] sm:$0xff] }
  0xc9   : > { %1904 = vmatpush.msra.mxu0 %v357_v50  ;;  %1923 = vmatpush.msra.mxu1 %v527_v51  ;;  %v1347_v20 = vld [vmem:[%s6624_s28 + $0x20e0] sm:$0xff]  ;;  %v1337_v45 = vld [vmem:[%s6624_s28 + $0x2090] sm:$0xff] }
  0xca   : > { %1944 = vmatpush.msra.mxu2 %v677_v52  ;;  %1963 = vmatpush.msra.mxu3 %v847_v53  ;;  %v1187_v44 = vld [vmem:[%s6624_s28 + $0x1be0] sm:$0xff]  ;;  %v1177_v47 = vld [vmem:[%s6624_s28 + $0x1b90] sm:$0xff] }
  0xcb   : > { %1905 = vmatpush.msra.mxu0 %v347_v54  ;;  %1924 = vmatpush.msra.mxu1 %v517_v55  ;;  %v1507_v25 = vld [vmem:[%s6624_s28 + $0x25e0] sm:$0xff]  ;;  %v1497_v49 = vld [vmem:[%s6624_s28 + $0x2590] sm:$0xff] }
  0xcc   : > { %1945 = vmatpush.msra.mxu2 %v667_v56  ;;  %1964 = vmatpush.msra.mxu3 %v837_v57  ;;  %v1007_v46 = vld [vmem:[%s6624_s28 + $0x1640] sm:$0xff]  ;;  %v997_v50 = vld [vmem:[%s6624_s28 + $0x15f0] sm:$0xff] }
  0xcd   : > { %1906 = vmatpush.msra.mxu0 %v337_v59  ;;  %1925 = vmatpush.msra.mxu1 %v507_v60  ;;  %v1327_v48 = vld [vmem:[%s6624_s28 + $0x2040] sm:$0xff]  ;;  %v1317_v52 = vld [vmem:[%s6624_s28 + $0x1ff0] sm:$0xff] }
  0xce   : > { %1946 = vmatpush.msra.mxu2 %v657_v61  ;;  %1965 = vmatpush.msra.mxu3 %v827_v62  ;;  %v1167_v51 = vld [vmem:[%s6624_s28 + $0x1b40] sm:$0xff]  ;;  %v1157_v55 = vld [vmem:[%s6624_s28 + $0x1af0] sm:$0xff] }
  0xcf   : > { %1907 = vmatpush.msra.mxu0 %v327_v1  ;;  %1926 = vmatpush.msra.mxu1 %v497_v2  ;;  %v1487_v53 = vld [vmem:[%s6624_s28 + $0x2540] sm:$0xff]  ;;  %v1477_v57 = vld [vmem:[%s6624_s28 + $0x24f0] sm:$0xff] }
  0xd0   : > { %1947 = vmatpush.msra.mxu2 %v647_v3  ;;  %1966 = vmatpush.msra.mxu3 %v817_v4  ;;  %v987_v54 = vld [vmem:[%s6624_s28 + $0x15a0] sm:$0xff]  ;;  %v977_v59 = vld [vmem:[%s6624_s28 + $0x1550] sm:$0xff] }
  0xd1   : > { %1908 = vmatpush.msra.mxu0 %v317_v6  ;;  %1927 = vmatpush.msra.mxu1 %v487_v7  ;;  %v1307_v56 = vld [vmem:[%s6624_s28 + $0x1fa0] sm:$0xff]  ;;  %v1297_v61 = vld [vmem:[%s6624_s28 + $0x1f50] sm:$0xff] }
  0xd2   : > { %1948 = vmatpush.msra.mxu2 %v637_v8  ;;  %1967 = vmatpush.msra.mxu3 %v807_v9  ;;  %v1147_v60 = vld [vmem:[%s6624_s28 + $0x1aa0] sm:$0xff]  ;;  %v1137_v2 = vld [vmem:[%s6624_s28 + $0x1a50] sm:$0xff] }
  0xd3   : > { %1909 = vmatpush.msra.mxu0 %v307_v10  ;;  %1928 = vmatpush.msra.mxu1 %v477_v11  ;;  %v1467_v62 = vld [vmem:[%s6624_s28 + $0x24a0] sm:$0xff]  ;;  %v1457_v6 = vld [vmem:[%s6624_s28 + $0x2450] sm:$0xff] }
  0xd4   : > { %1949 = vmatpush.msra.mxu2 %v627_v12  ;;  %1968 = vmatpush.msra.mxu3 %v797_v13  ;;  %v967_v1 = vld [vmem:[%s6624_s28 + $0x1500] sm:$0xff]  ;;  %v957_v7 = vld [vmem:[%s6624_s28 + $0x14b0] sm:$0xff] }
  0xd5   : > { %1910 = vmatpush.msra.mxu0 %v297_v15  ;;  %1929 = vmatpush.msra.mxu1 %v467_v16  ;;  %v1287_v4 = vld [vmem:[%s6624_s28 + $0x1f00] sm:$0xff]  ;;  %v1277_v9 = vld [vmem:[%s6624_s28 + $0x1eb0] sm:$0xff] }
  0xd6   : > { %1950 = vmatpush.msra.mxu2 %v617_v17  ;;  %1969 = vmatpush.msra.mxu3 %v787_v18  ;;  %v1127_v8 = vld [vmem:[%s6624_s28 + $0x1a00] sm:$0xff]  ;;  %v1117_v13 = vld [vmem:[%s6624_s28 + $0x19b0] sm:$0xff] }
  0xd7   : > { %1975 = vmatpush.msrb.mxu0 %v1087_v21  ;;  %1930 = vmatpush.msra.mxu1 %v457_v23  ;;  %v1447_v10 = vld [vmem:[%s6624_s28 + $0x2400] sm:$0xff]  ;;  %v1437_v18 = vld [vmem:[%s6624_s28 + $0x23b0] sm:$0xff] }
  0xd8   : > { %2015 = vmatpush.msrb.mxu2 %v1407_v22  ;;  %1970 = vmatpush.msra.mxu3 %v777_v24  ;;  %v947_v12 = vld [vmem:[%s6624_s28 + $0x1460] sm:$0xff]  ;;  %v937_v21 = vld [vmem:[%s6624_s28 + $0x1410] sm:$0xff] }
  0xd9   : > { %1976 = vmatpush.msrb.mxu0 %v1077_v58  ;;  %1995 = vmatpush.msrb.mxu1 %v1247_v26  ;;  %v1267_v17 = vld [vmem:[%s6624_s28 + $0x1e60] sm:$0xff]  ;;  %v1257_v24 = vld [vmem:[%s6624_s28 + $0x1e10] sm:$0xff] }
  0xda   : > { %2016 = vmatpush.msrb.mxu2 %v1397_v27  ;;  %2035 = vmatpush.msrb.mxu3 %v1567_v28  ;;  %v1107_v23 = vld [vmem:[%s6624_s28 + $0x1960] sm:$0xff] }
  0xdb   : > { %1977 = vmatpush.msrb.mxu0 %v1067_v63  ;;  %1996 = vmatpush.msrb.mxu1 %v1237_v29  ;;  %v1427_v26 = vld [vmem:[%s6624_s28 + $0x2360] sm:$0xff]  ;;  %v448_v63 = vld [vmem:[%s6624_s28 + $0x4c8] sm:$0xff] }
  0xdc   : > { %2017 = vmatpush.msrb.mxu2 %v1387_v0  ;;  %2036 = vmatpush.msrb.mxu3 %v1557_v30  ;;  %v7076_v28 = vld [vmem:[%s6769_s6 + $0x10] sm:$0xff]  ;;  %v768_v29 = vld [vmem:[%s6624_s28 + $0xec8] sm:$0xff]  ;;  %v1097_v0 = vld [vmem:[%s6624_s28 + $0x1910] sm:$0xff] }
  0xdd   : > { %1978 = vmatpush.msrb.mxu0 %v1057_v31  ;;  %1997 = vmatpush.msrb.mxu1 %v1227_v32  ;;  %v7083_v31 = vld [vmem:[%s6769_s6] sm:$0xff] }
  0xde   : > { %2018 = vmatpush.msrb.mxu2 %v1377_v33  ;;  %2037 = vmatpush.msrb.mxu3 %v1547_v5  ;;  %v1417_v32 = vld [vmem:[%s6624_s28 + $0x2310] sm:$0xff]  ;;  %v7088_v5 = vld [vmem:[%s6769_s6 + $0x18] sm:$0xff] }
  0xdf   : > { %1979 = vmatpush.msrb.mxu0 %v1047_v34  ;;  %1998 = vmatpush.msrb.mxu1 %v1217_v35  ;;  %v438_v34 = vld [vmem:[%s6624_s28 + $0x478] sm:$0xff]  ;;  %v608_v35 = vld [vmem:[%s6624_s28 + $0x9c8] sm:$0xff] }
  0xe0   : > { %2019 = vmatpush.msrb.mxu2 %v1367_v36  ;;  %2038 = vmatpush.msrb.mxu3 %v1537_v37  ;;  %v758_v36 = vld [vmem:[%s6624_s28 + $0xe78] sm:$0xff]  ;;  %v928_v37 = vld [vmem:[%s6624_s28 + $0x13c8] sm:$0xff] }
  0xe1   : > { %1980 = vmatpush.msrb.mxu0 %v1037_v14  ;;  %1999 = vmatpush.msrb.mxu1 %v1207_v38  ;;  %v7096_v38 = vld [vmem:[%s6769_s6 + $0x8] sm:$0xff] }
  0xe2   : > { %2020 = vmatpush.msrb.mxu2 %v1357_v39  ;;  %2039 = vmatpush.msrb.mxu3 %v1527_v40  ;;  %v428_v39 = vld [vmem:[%s6624_s28 + $0x428] sm:$0xff]  ;;  %v598_v40 = vld [vmem:[%s6624_s28 + $0x978] sm:$0xff] }
  0xe3   : > { %1981 = vmatpush.msrb.mxu0 %v1027_v19  ;;  %2000 = vmatpush.msrb.mxu1 %v1197_v41 }
  0xe4   : > { %2021 = vmatpush.msrb.mxu2 %v1347_v20  ;;  %2040 = vmatpush.msrb.mxu3 %v1517_v42  ;;  %v748_v20 = vld [vmem:[%s6624_s28 + $0xe28] sm:$0xff]  ;;  %v918_v42 = vld [vmem:[%s6624_s28 + $0x1378] sm:$0xff] }
  0xe5   : > { %1982 = vmatpush.msrb.mxu0 %v1017_v43  ;;  %2001 = vmatpush.msrb.mxu1 %v1187_v44  ;;  %v418_v43 = vld [vmem:[%s6624_s28 + $0x3d8] sm:$0xff] }
  0xe6   : > { %2022 = vmatpush.msrb.mxu2 %v1337_v45  ;;  %2041 = vmatpush.msrb.mxu3 %v1507_v25  ;;  %v588_v45 = vld [vmem:[%s6624_s28 + $0x928] sm:$0xff]  ;;  %v738_v25 = vld [vmem:[%s6624_s28 + $0xdd8] sm:$0xff] }
  0xe7   : > { %1983 = vmatpush.msrb.mxu0 %v1007_v46  ;;  %2002 = vmatpush.msrb.mxu1 %v1177_v47  ;;  %v908_v47 = vld [vmem:[%s6624_s28 + $0x1328] sm:$0xff] }
  0xe8   : > { %2023 = vmatpush.msrb.mxu2 %v1327_v48  ;;  %2042 = vmatpush.msrb.mxu3 %v1497_v49  ;;  %v7110_v49 = vld [vmem:[%s6769_s6 + $0x30] sm:$0xff] }
  0xe9   : > { %1984 = vmatpush.msrb.mxu0 %v997_v50  ;;  %2003 = vmatpush.msrb.mxu1 %v1167_v51  ;;  %v408_v50 = vld [vmem:[%s6624_s28 + $0x388] sm:$0xff]  ;;  %v578_v51 = vld [vmem:[%s6624_s28 + $0x8d8] sm:$0xff] }
  0xea   : > { %2024 = vmatpush.msrb.mxu2 %v1317_v52  ;;  %2043 = vmatpush.msrb.mxu3 %v1487_v53  ;;  %v728_v52 = vld [vmem:[%s6624_s28 + $0xd88] sm:$0xff]  ;;  %v7117_v53 = vld [vmem:[%s6769_s6 + $0x20] sm:$0xff] }
  0xeb   : > { %1985 = vmatpush.msrb.mxu0 %v987_v54  ;;  %2004 = vmatpush.msrb.mxu1 %v1157_v55  ;;  %v898_v54 = vld [vmem:[%s6624_s28 + $0x12d8] sm:$0xff]  ;;  %v7122_v55 = vld [vmem:[%s6769_s6 + $0x38] sm:$0xff] }
  0xec   : > { %2025 = vmatpush.msrb.mxu2 %v1307_v56  ;;  %2044 = vmatpush.msrb.mxu3 %v1477_v57  ;;  %v1592_v3 = vpop.f32.mrf.mxu0  ;;  %v398_v56 = vld [vmem:[%s6624_s28 + $0x338] sm:$0xff]  ;;  %v568_v57 = vld [vmem:[%s6624_s28 + $0x888] sm:$0xff] }
  0xed   : > { %1986 = vmatpush.msrb.mxu0 %v977_v59  ;;  %2005 = vmatpush.msrb.mxu1 %v1147_v60  ;;  %v718_v59 = vld [vmem:[%s6624_s28 + $0xd38] sm:$0xff]  ;;  %v888_v60 = vld [vmem:[%s6624_s28 + $0x1288] sm:$0xff] }
  0xee   : > { %2026 = vmatpush.msrb.mxu2 %v1297_v61  ;;  %2045 = vmatpush.msrb.mxu3 %v1467_v62  ;;  %v7130_v61 = vld [vmem:[%s6769_s6 + $0x28] sm:$0xff]  ;;  %v388_v62 = vld [vmem:[%s6624_s28 + $0x2e8] sm:$0xff] }
  0xef   : > { %1987 = vmatpush.msrb.mxu0 %v967_v1  ;;  %2006 = vmatpush.msrb.mxu1 %v1137_v2  ;;  %v1612_v11 = vpop.f32.mrf.mxu1  ;;  %v558_v1 = vld [vmem:[%s6624_s28 + $0x838] sm:$0xff]  ;;  %v708_v2 = vld [vmem:[%s6624_s28 + $0xce8] sm:$0xff] }
  0xf0   : > { %2027 = vmatpush.msrb.mxu2 %v1287_v4  ;;  %2046 = vmatpush.msrb.mxu3 %v1457_v6  ;;  %v1613_v15 = vadd.f32 %v1612_v11, %v1592_v3  ;;  %v1632_v16 = vpop.f32.mrf.mxu2  ;;  %v878_v3 = vld [vmem:[%s6624_s28 + $0x1238] sm:$0xff]  ;;  %v548_v6 = vld [vmem:[%s6624_s28 + $0x7e8] sm:$0xff] }
  0xf1   : > { %1988 = vmatpush.msrb.mxu0 %v957_v7  ;;  %2007 = vmatpush.msrb.mxu1 %v1127_v8  ;;  %v378_v4 = vld [vmem:[%s6624_s28 + $0x298] sm:$0xff]  ;;  %v868_v8 = vld [vmem:[%s6624_s28 + $0x11e8] sm:$0xff] }
  0xf2   : > { %2028 = vmatpush.msrb.mxu2 %v1277_v9  ;;  %2047 = vmatpush.msrb.mxu3 %v1447_v10  ;;  %v1633_v22 = vadd.f32 %v1632_v16, %v1613_v15  ;;  %v698_v7 = vld [vmem:[%s6624_s28 + $0xc98] sm:$0xff]  ;;  %v368_v9 = vld [vmem:[%s6624_s28 + $0x248] sm:$0xff] }
  0xf3   : > { %1989 = vmatpush.msrb.mxu0 %v947_v12  ;;  %2008 = vmatpush.msrb.mxu1 %v1117_v13  ;;  %v1652_v58 = vpop.f32.mrf.mxu3  ;;  %v538_v10 = vld [vmem:[%s6624_s28 + $0x798] sm:$0xff]  ;;  %v688_v11 = vld [vmem:[%s6624_s28 + $0xc48] sm:$0xff] }
  0xf4   : > { %2029 = vmatpush.msrb.mxu2 %v1267_v17  ;;  %2048 = vmatpush.msrb.mxu3 %v1437_v18  ;;  %v1653_v27 = vadd.f32 %v1652_v58, %v1633_v22  ;;  %v858_v12 = vld [vmem:[%s6624_s28 + $0x1198] sm:$0xff]  ;;  %v528_v15 = vld [vmem:[%s6624_s28 + $0x748] sm:$0xff] }
  0xf5   : > { %1951 = vmatmul.f32.vlgmr.msra.gmra.mxu2 %v7076_v28  ;;  %1990 = vmatpush.msrb.mxu0 %v937_v21  ;;  %v358_v13 = vld [vmem:[%s6624_s28 + $0x1f8] sm:$0xff]  ;;  %v848_v17 = vld [vmem:[%s6624_s28 + $0x1148] sm:$0xff] }
  0xf6   : > { %2009 = vmatpush.msrb.mxu1 %v1107_v23  ;;  %2030 = vmatpush.msrb.mxu2 %v1257_v24  ;;  %v1672_v30 = vpop.f32.mrf.mxu0  ;;  %v678_v16 = vld [vmem:[%s6624_s28 + $0xbf8] sm:$0xff]  ;;  %v348_v18 = vld [vmem:[%s6624_s28 + $0x1a8] sm:$0xff] }
  0xf7   : > { %2049 = vmatpush.msrb.mxu3 %v1427_v26  ;;  %1911 = vmatmul.f32.vlgmr.msra.gmra.mxu0 %v7083_v31  ;;  %v1673_v33 = vadd.f32 %v1672_v30, %v1653_v27  ;;  %v518_v21 = vld [vmem:[%s6624_s28 + $0x6f8] sm:$0xff]  ;;  %v668_v22 = vld [vmem:[%s6624_s28 + $0xba8] sm:$0xff] }
  0xf8   : > { %1971 = vmatmul.f32.vlgmr.msra.gmra.mxu3 %v7088_v5  ;;  %2055 = vmatpush.msra.mxu0 %v448_v63  ;;  %v838_v23 = vld [vmem:[%s6624_s28 + $0x10f8] sm:$0xff]  ;;  %v508_v58 = vld [vmem:[%s6624_s28 + $0x6a8] sm:$0xff] }
  0xf9   : > { %2095 = vmatpush.msra.mxu2 %v768_v29  ;;  %2010 = vmatpush.msrb.mxu1 %v1097_v0  ;;  %v1692_v14 = vpop.f32.mrf.mxu1  ;;  %v338_v24 = vld [vmem:[%s6624_s28 + $0x158] sm:$0xff]  ;;  %v828_v27 = vld [vmem:[%s6624_s28 + $0x10a8] sm:$0xff] }
  0xfa   : > { %2050 = vmatpush.msrb.mxu3 %v1417_v32  ;;  %1931 = vmatmul.f32.vlgmr.msra.gmra.mxu1 %v7096_v38  ;;  %v1693_v19 = vadd.f32 %v1692_v14, %v1673_v33  ;;  %v1712_v41 = vpop.f32.mrf.mxu2  ;;  %v658_v26 = vld [vmem:[%s6624_s28 + $0xb58] sm:$0xff]  ;;  %v328_v63 = vld [vmem:[%s6624_s28 + $0x108] sm:$0xff] }
  0xfb   : > { %2056 = vmatpush.msra.mxu0 %v438_v34  ;;  %2075 = vmatpush.msra.mxu1 %v608_v35  ;;  %v498_v29 = vld [vmem:[%s6624_s28 + $0x658] sm:$0xff]  ;;  %v648_v0 = vld [vmem:[%s6624_s28 + $0xb08] sm:$0xff] }
  0xfc   : > { %2096 = vmatpush.msra.mxu2 %v758_v36  ;;  %2115 = vmatpush.msra.mxu3 %v928_v37  ;;  %v1713_v44 = vadd.f32 %v1712_v41, %v1693_v19  ;;  %v818_v30 = vld [vmem:[%s6624_s28 + $0x1058] sm:$0xff]  ;;  %v488_v33 = vld [vmem:[%s6624_s28 + $0x608] sm:$0xff] }
  0xfd   : > { %2057 = vmatpush.msra.mxu0 %v428_v39  ;;  %2076 = vmatpush.msra.mxu1 %v598_v40  ;;  %v1732_v46 = vpop.f32.mrf.mxu3  ;;  %v318_v32 = vld [vmem:[%s6624_s28 + $0xb8] sm:$0xff]  ;;  %v808_v35 = vld [vmem:[%s6624_s28 + $0x1008] sm:$0xff] }
  0xfe   : > { %2097 = vmatpush.msra.mxu2 %v748_v20  ;;  %2116 = vmatpush.msra.mxu3 %v918_v42  ;;  %v7107_v48 = vadd.f32 %v1732_v46, %v1713_v44  ;;  %v638_v34 = vld [vmem:[%s6624_s28 + $0xab8] sm:$0xff]  ;;  %v308_v36 = vld [vmem:[%s6624_s28 + $0x68] sm:$0xff] }
  0xff   : > { %2031 = vmatmul.f32.vlgmr.msrb.gmra.mxu2 %v7110_v49  ;;  %2058 = vmatpush.msra.mxu0 %v418_v43  ;;  %v478_v37 = vld [vmem:[%s6624_s28 + $0x5b8] sm:$0xff]  ;;  %v628_v14 = vld [vmem:[%s6624_s28 + $0xa68] sm:$0xff] }
 0x100   : > { %2077 = vmatpush.msra.mxu1 %v588_v45  ;;  %2098 = vmatpush.msra.mxu2 %v738_v25  ;;  %v798_v39 = vld [vmem:[%s6624_s28 + $0xfb8] sm:$0xff]  ;;  %v468_v19 = vld [vmem:[%s6624_s28 + $0x568] sm:$0xff] }
 0x101   : > { %2117 = vmatpush.msra.mxu3 %v908_v47  ;;  %1991 = vmatmul.f32.vlgmr.msrb.gmra.mxu0 %v7117_v53  ;;  %v298_v40 = vld [vmem:[%s6624_s28 + $0x18] sm:$0xff]  ;;  %v788_v20 = vld [vmem:[%s6624_s28 + $0xf68] sm:$0xff] }
 0x102   : > { %2051 = vmatmul.f32.vlgmr.msrb.gmra.mxu3 %v7122_v55  ;;  %2059 = vmatpush.msra.mxu0 %v408_v50  ;;  %v618_v41 = vld [vmem:[%s6624_s28 + $0xa18] sm:$0xff]  ;;  %v1088_v42 = vld [vmem:[%s6624_s28 + $0x18c8] sm:$0xff] }
 0x103   : > { %2078 = vmatpush.msra.mxu1 %v578_v51  ;;  %2099 = vmatpush.msra.mxu2 %v728_v52  ;;  %v1408_v43 = vld [vmem:[%s6624_s28 + $0x22c8] sm:$0xff]  ;;  %v458_v44 = vld [vmem:[%s6624_s28 + $0x518] sm:$0xff] }
 0x104   : > { %2118 = vmatpush.msra.mxu3 %v898_v54  ;;  %2011 = vmatmul.f32.vlgmr.msrb.gmra.mxu1 %v7130_v61  ;;  %v778_v45 = vld [vmem:[%s6624_s28 + $0xf18] sm:$0xff]  ;;  %v1248_v46 = vld [vmem:[%s6624_s28 + $0x1dc8] sm:$0xff] }
 0x105   : > { %2060 = vmatpush.msra.mxu0 %v398_v56  ;;  %2079 = vmatpush.msra.mxu1 %v568_v57  ;;  %v1078_v25 = vld [vmem:[%s6624_s28 + $0x1878] sm:$0xff]  ;;  %v1568_v50 = vld [vmem:[%s6624_s28 + $0x27c8] sm:$0xff] }
 0x106   : > { %2100 = vmatpush.msra.mxu2 %v718_v59  ;;  %2119 = vmatpush.msra.mxu3 %v888_v60  ;;  %v1398_v47 = vld [vmem:[%s6624_s28 + $0x2278] sm:$0xff]  ;;  %v1068_v51 = vld [vmem:[%s6624_s28 + $0x1828] sm:$0xff] }
 0x107   : > { %2061 = vmatpush.msra.mxu0 %v388_v62  ;;  %2080 = vmatpush.msra.mxu1 %v558_v1  ;;  %v1238_v52 = vld [vmem:[%s6624_s28 + $0x1d78] sm:$0xff]  ;;  %v1388_v54 = vld [vmem:[%s6624_s28 + $0x2228] sm:$0xff] }
 0x108   : > { %2101 = vmatpush.msra.mxu2 %v708_v2  ;;  %2120 = vmatpush.msra.mxu3 %v878_v3  ;;  %v1558_v56 = vld [vmem:[%s6624_s28 + $0x2778] sm:$0xff]  ;;  %v1228_v59 = vld [vmem:[%s6624_s28 + $0x1d28] sm:$0xff] }
 0x109   : > { %2062 = vmatpush.msra.mxu0 %v378_v4  ;;  %2081 = vmatpush.msra.mxu1 %v548_v6  ;;  %v1058_v57 = vld [vmem:[%s6624_s28 + $0x17d8] sm:$0xff]  ;;  %v1548_v62 = vld [vmem:[%s6624_s28 + $0x2728] sm:$0xff] }
 0x10a   : > { %2102 = vmatpush.msra.mxu2 %v698_v7  ;;  %2121 = vmatpush.msra.mxu3 %v868_v8  ;;  %v1378_v60 = vld [vmem:[%s6624_s28 + $0x21d8] sm:$0xff]  ;;  %v1048_v1 = vld [vmem:[%s6624_s28 + $0x1788] sm:$0xff] }
 0x10b   : > { %2063 = vmatpush.msra.mxu0 %v368_v9  ;;  %2082 = vmatpush.msra.mxu1 %v538_v10  ;;  %v1218_v2 = vld [vmem:[%s6624_s28 + $0x1cd8] sm:$0xff]  ;;  %v1368_v3 = vld [vmem:[%s6624_s28 + $0x2188] sm:$0xff] }
 0x10c   : > { %2103 = vmatpush.msra.mxu2 %v688_v11  ;;  %2122 = vmatpush.msra.mxu3 %v858_v12  ;;  %v1538_v4 = vld [vmem:[%s6624_s28 + $0x26d8] sm:$0xff]  ;;  %v1208_v7 = vld [vmem:[%s6624_s28 + $0x1c88] sm:$0xff] }
 0x10d   : > { %2064 = vmatpush.msra.mxu0 %v358_v13  ;;  %2083 = vmatpush.msra.mxu1 %v528_v15  ;;  %v1038_v6 = vld [vmem:[%s6624_s28 + $0x1738] sm:$0xff]  ;;  %v1528_v9 = vld [vmem:[%s6624_s28 + $0x2688] sm:$0xff] }
 0x10e   : > { %2104 = vmatpush.msra.mxu2 %v678_v16  ;;  %2123 = vmatpush.msra.mxu3 %v848_v17  ;;  %v1358_v8 = vld [vmem:[%s6624_s28 + $0x2138] sm:$0xff]  ;;  %v1028_v10 = vld [vmem:[%s6624_s28 + $0x16e8] sm:$0xff] }
 0x10f   : > { %2065 = vmatpush.msra.mxu0 %v348_v18  ;;  %2084 = vmatpush.msra.mxu1 %v518_v21  ;;  %v1198_v11 = vld [vmem:[%s6624_s28 + $0x1c38] sm:$0xff]  ;;  %v1348_v12 = vld [vmem:[%s6624_s28 + $0x20e8] sm:$0xff] }
 0x110   : > { %2105 = vmatpush.msra.mxu2 %v668_v22  ;;  %2124 = vmatpush.msra.mxu3 %v838_v23  ;;  %v1518_v13 = vld [vmem:[%s6624_s28 + $0x2638] sm:$0xff]  ;;  %v1188_v16 = vld [vmem:[%s6624_s28 + $0x1be8] sm:$0xff] }
 0x111   : > { %2066 = vmatpush.msra.mxu0 %v338_v24  ;;  %2085 = vmatpush.msra.mxu1 %v508_v58  ;;  %v1018_v15 = vld [vmem:[%s6624_s28 + $0x1698] sm:$0xff]  ;;  %v1508_v18 = vld [vmem:[%s6624_s28 + $0x25e8] sm:$0xff] }
 0x112   : > { %2106 = vmatpush.msra.mxu2 %v658_v26  ;;  %2125 = vmatpush.msra.mxu3 %v828_v27  ;;  %v1338_v17 = vld [vmem:[%s6624_s28 + $0x2098] sm:$0xff]  ;;  %v1008_v21 = vld [vmem:[%s6624_s28 + $0x1648] sm:$0xff] }
 0x113   : > { %2067 = vmatpush.msra.mxu0 %v328_v63  ;;  %2086 = vmatpush.msra.mxu1 %v498_v29  ;;  %v1178_v22 = vld [vmem:[%s6624_s28 + $0x1b98] sm:$0xff]  ;;  %v1328_v23 = vld [vmem:[%s6624_s28 + $0x2048] sm:$0xff] }
 0x114   : > { %2107 = vmatpush.msra.mxu2 %v648_v0  ;;  %2126 = vmatpush.msra.mxu3 %v818_v30  ;;  %v1498_v24 = vld [vmem:[%s6624_s28 + $0x2598] sm:$0xff]  ;;  %v1168_v26 = vld [vmem:[%s6624_s28 + $0x1b48] sm:$0xff] }
 0x115   : > { %2068 = vmatpush.msra.mxu0 %v318_v32  ;;  %2087 = vmatpush.msra.mxu1 %v488_v33  ;;  %v998_v58 = vld [vmem:[%s6624_s28 + $0x15f8] sm:$0xff]  ;;  %v1488_v63 = vld [vmem:[%s6624_s28 + $0x2548] sm:$0xff] }
 0x116   : > { %2108 = vmatpush.msra.mxu2 %v638_v34  ;;  %2127 = vmatpush.msra.mxu3 %v808_v35  ;;  %v1318_v27 = vld [vmem:[%s6624_s28 + $0x1ff8] sm:$0xff]  ;;  %v988_v29 = vld [vmem:[%s6624_s28 + $0x15a8] sm:$0xff] }
 0x117   : > { %2069 = vmatpush.msra.mxu0 %v308_v36  ;;  %2088 = vmatpush.msra.mxu1 %v478_v37  ;;  %v1158_v0 = vld [vmem:[%s6624_s28 + $0x1af8] sm:$0xff]  ;;  %v1308_v30 = vld [vmem:[%s6624_s28 + $0x1fa8] sm:$0xff] }
 0x118   : > { %2109 = vmatpush.msra.mxu2 %v628_v14  ;;  %2128 = vmatpush.msra.mxu3 %v798_v39  ;;  %v1478_v32 = vld [vmem:[%s6624_s28 + $0x24f8] sm:$0xff]  ;;  %v1148_v34 = vld [vmem:[%s6624_s28 + $0x1aa8] sm:$0xff] }
 0x119   : > { %2070 = vmatpush.msra.mxu0 %v298_v40  ;;  %2089 = vmatpush.msra.mxu1 %v468_v19  ;;  %v978_v33 = vld [vmem:[%s6624_s28 + $0x1558] sm:$0xff]  ;;  %v1468_v36 = vld [vmem:[%s6624_s28 + $0x24a8] sm:$0xff] }
 0x11a   : > { %2110 = vmatpush.msra.mxu2 %v618_v41  ;;  %2129 = vmatpush.msra.mxu3 %v788_v20  ;;  %v1298_v35 = vld [vmem:[%s6624_s28 + $0x1f58] sm:$0xff]  ;;  %v968_v37 = vld [vmem:[%s6624_s28 + $0x1508] sm:$0xff] }
 0x11b   : > { %2135 = vmatpush.msrb.mxu0 %v1088_v42  ;;  %2090 = vmatpush.msra.mxu1 %v458_v44  ;;  %v1138_v14 = vld [vmem:[%s6624_s28 + $0x1a58] sm:$0xff]  ;;  %v1288_v40 = vld [vmem:[%s6624_s28 + $0x1f08] sm:$0xff] }
 0x11c   : > { %2175 = vmatpush.msrb.mxu2 %v1408_v43  ;;  %2130 = vmatpush.msra.mxu3 %v778_v45  ;;  %v1458_v19 = vld [vmem:[%s6624_s28 + $0x2458] sm:$0xff]  ;;  %v1128_v20 = vld [vmem:[%s6624_s28 + $0x1a08] sm:$0xff] }
 0x11d   : > { %2136 = vmatpush.msrb.mxu0 %v1078_v25  ;;  %2155 = vmatpush.msrb.mxu1 %v1248_v46  ;;  %v958_v41 = vld [vmem:[%s6624_s28 + $0x14b8] sm:$0xff]  ;;  %v1448_v43 = vld [vmem:[%s6624_s28 + $0x2408] sm:$0xff] }
 0x11e   : > { %2176 = vmatpush.msrb.mxu2 %v1398_v47  ;;  %2195 = vmatpush.msrb.mxu3 %v1568_v50  ;;  %v1278_v42 = vld [vmem:[%s6624_s28 + $0x1eb8] sm:$0xff]  ;;  %v948_v45 = vld [vmem:[%s6624_s28 + $0x1468] sm:$0xff] }
 0x11f   : > { %2137 = vmatpush.msrb.mxu0 %v1068_v51  ;;  %2156 = vmatpush.msrb.mxu1 %v1238_v52  ;;  %v1118_v25 = vld [vmem:[%s6624_s28 + $0x19b8] sm:$0xff]  ;;  %v1268_v50 = vld [vmem:[%s6624_s28 + $0x1e68] sm:$0xff] }
 0x120   : > { %2177 = vmatpush.msrb.mxu2 %v1388_v54  ;;  %2196 = vmatpush.msrb.mxu3 %v1558_v56  ;;  %v1438_v51 = vld [vmem:[%s6624_s28 + $0x23b8] sm:$0xff]  ;;  %v1108_v56 = vld [vmem:[%s6624_s28 + $0x1968] sm:$0xff] }
 0x121   : > { %2138 = vmatpush.msrb.mxu0 %v1058_v57  ;;  %2157 = vmatpush.msrb.mxu1 %v1228_v59  ;;  %v938_v52 = vld [vmem:[%s6624_s28 + $0x1418] sm:$0xff] }
 0x122   : > { %2178 = vmatpush.msrb.mxu2 %v1378_v60  ;;  %2197 = vmatpush.msrb.mxu3 %v1548_v62  ;;  %v1258_v57 = vld [vmem:[%s6624_s28 + $0x1e18] sm:$0xff]  ;;  %v1428_v60 = vld [vmem:[%s6624_s28 + $0x2368] sm:$0xff] }
 0x123   : > { %2139 = vmatpush.msrb.mxu0 %v1048_v1  ;;  %2158 = vmatpush.msrb.mxu1 %v1218_v2  ;;  %v449_v1 = vld [vmem:[%s6624_s28 + $0x4d0] sm:$0xff] }
 0x124   : > { %2179 = vmatpush.msrb.mxu2 %v1368_v3  ;;  %2198 = vmatpush.msrb.mxu3 %v1538_v4  ;;  %v769_v2 = vld [vmem:[%s6624_s28 + $0xed0] sm:$0xff]  ;;  %v1098_v3 = vld [vmem:[%s6624_s28 + $0x1918] sm:$0xff] }
 0x125   : > { %2140 = vmatpush.msrb.mxu0 %v1038_v6  ;;  %2159 = vmatpush.msrb.mxu1 %v1208_v7  ;;  %v1418_v6 = vld [vmem:[%s6624_s28 + $0x2318] sm:$0xff] }
 0x126   : > { %2180 = vmatpush.msrb.mxu2 %v1358_v8  ;;  %2199 = vmatpush.msrb.mxu3 %v1528_v9  ;;  %v609_v8 = vld [vmem:[%s6624_s28 + $0x9d0] sm:$0xff]  ;;  %v759_v9 = vld [vmem:[%s6624_s28 + $0xe80] sm:$0xff] }
 0x127   : > { %2141 = vmatpush.msrb.mxu0 %v1028_v10  ;;  %2160 = vmatpush.msrb.mxu1 %v1198_v11  ;;  %v929_v10 = vld [vmem:[%s6624_s28 + $0x13d0] sm:$0xff] }
 0x128   : > { %2181 = vmatpush.msrb.mxu2 %v1348_v12  ;;  %2200 = vmatpush.msrb.mxu3 %v1518_v13  ;;  %v599_v12 = vld [vmem:[%s6624_s28 + $0x980] sm:$0xff] }
 0x129   : > { %2142 = vmatpush.msrb.mxu0 %v1018_v15  ;;  %2161 = vmatpush.msrb.mxu1 %v1188_v16  ;;  %v749_v15 = vld [vmem:[%s6624_s28 + $0xe30] sm:$0xff]  ;;  %v919_v16 = vld [vmem:[%s6624_s28 + $0x1380] sm:$0xff] }
 0x12a   : > { %2182 = vmatpush.msrb.mxu2 %v1338_v17  ;;  %2201 = vmatpush.msrb.mxu3 %v1508_v18  ;;  %v419_v17 = vld [vmem:[%s6624_s28 + $0x3e0] sm:$0xff] }
 0x12b   : > { %2143 = vmatpush.msrb.mxu0 %v1008_v21  ;;  %2162 = vmatpush.msrb.mxu1 %v1178_v22  ;;  %v739_v21 = vld [vmem:[%s6624_s28 + $0xde0] sm:$0xff] }
 0x12c   : > { %2183 = vmatpush.msrb.mxu2 %v1328_v23  ;;  %2202 = vmatpush.msrb.mxu3 %v1498_v24  ;;  %v909_v23 = vld [vmem:[%s6624_s28 + $0x1330] sm:$0xff] }
 0x12d   : > { %2144 = vmatpush.msrb.mxu0 %v998_v58  ;;  %2163 = vmatpush.msrb.mxu1 %v1168_v26  ;;  %v409_v58 = vld [vmem:[%s6624_s28 + $0x390] sm:$0xff]  ;;  %v579_v26 = vld [vmem:[%s6624_s28 + $0x8e0] sm:$0xff] }
 0x12e   : > { %2184 = vmatpush.msrb.mxu2 %v1318_v27  ;;  %2203 = vmatpush.msrb.mxu3 %v1488_v63  ;;  %v729_v27 = vld [vmem:[%s6624_s28 + $0xd90] sm:$0xff]  ;;  %v899_v63 = vld [vmem:[%s6624_s28 + $0x12e0] sm:$0xff] }
 0x12f   : > { %2145 = vmatpush.msrb.mxu0 %v988_v29  ;;  %2164 = vmatpush.msrb.mxu1 %v1158_v0  ;;  %v569_v29 = vld [vmem:[%s6624_s28 + $0x890] sm:$0xff]  ;;  %v719_v0 = vld [vmem:[%s6624_s28 + $0xd40] sm:$0xff] }
 0x130   : > { %2185 = vmatpush.msrb.mxu2 %v1308_v30  ;;  %2204 = vmatpush.msrb.mxu3 %v1478_v32  ;;  %v1752_v39 = vpop.f32.mrf.mxu0  ;;  %v889_v30 = vld [vmem:[%s6624_s28 + $0x1290] sm:$0xff]  ;;  %v559_v32 = vld [vmem:[%s6624_s28 + $0x840] sm:$0xff] }
 0x131   : > { %2146 = vmatpush.msrb.mxu0 %v978_v33  ;;  %2165 = vmatpush.msrb.mxu1 %v1148_v34  ;;  %v879_v33 = vld [vmem:[%s6624_s28 + $0x1240] sm:$0xff] }
 0x132   : > { %2186 = vmatpush.msrb.mxu2 %v1298_v35  ;;  %2205 = vmatpush.msrb.mxu3 %v1468_v36  ;;  %v379_v34 = vld [vmem:[%s6624_s28 + $0x2a0] sm:$0xff]  ;;  %v549_v35 = vld [vmem:[%s6624_s28 + $0x7f0] sm:$0xff] }
 0x133   : > { %2147 = vmatpush.msrb.mxu0 %v968_v37  ;;  %2166 = vmatpush.msrb.mxu1 %v1138_v14  ;;  %v1772_v44 = vpop.f32.mrf.mxu1  ;;  %v699_v36 = vld [vmem:[%s6624_s28 + $0xca0] sm:$0xff]  ;;  %v369_v37 = vld [vmem:[%s6624_s28 + $0x250] sm:$0xff] }
 0x134   : > { %2187 = vmatpush.msrb.mxu2 %v1288_v40  ;;  %2206 = vmatpush.msrb.mxu3 %v1458_v19  ;;  %v1773_v46 = vadd.f32 %v1772_v44, %v1752_v39  ;;  %v1792_v47 = vpop.f32.mrf.mxu2  ;;  %v539_v14 = vld [vmem:[%s6624_s28 + $0x7a0] sm:$0xff]  ;;  %v689_v39 = vld [vmem:[%s6624_s28 + $0xc50] sm:$0xff] }
 0x135   : > { %2148 = vmatpush.msrb.mxu0 %v958_v41  ;;  %2167 = vmatpush.msrb.mxu1 %v1128_v20  ;;  %v859_v40 = vld [vmem:[%s6624_s28 + $0x11a0] sm:$0xff]  ;;  %v529_v41 = vld [vmem:[%s6624_s28 + $0x750] sm:$0xff] }
 0x136   : > { %2188 = vmatpush.msrb.mxu2 %v1278_v42  ;;  %2207 = vmatpush.msrb.mxu3 %v1448_v43  ;;  %v1793_v54 = vadd.f32 %v1792_v47, %v1773_v46  ;;  %v359_v19 = vld [vmem:[%s6624_s28 + $0x200] sm:$0xff]  ;;  %v849_v42 = vld [vmem:[%s6624_s28 + $0x1150] sm:$0xff] }
 0x137   : > { %2149 = vmatpush.msrb.mxu0 %v948_v45  ;;  %2168 = vmatpush.msrb.mxu1 %v1118_v25  ;;  %v1812_v59 = vpop.f32.mrf.mxu3  ;;  %v679_v20 = vld [vmem:[%s6624_s28 + $0xc00] sm:$0xff]  ;;  %v349_v43 = vld [vmem:[%s6624_s28 + $0x1b0] sm:$0xff] }
 0x138   : > { %2189 = vmatpush.msrb.mxu2 %v1268_v50  ;;  %2208 = vmatpush.msrb.mxu3 %v1438_v51  ;;  %v1813_v62 = vadd.f32 %v1812_v59, %v1793_v54  ;;  %v519_v44 = vld [vmem:[%s6624_s28 + $0x700] sm:$0xff]  ;;  %v669_v45 = vld [vmem:[%s6624_s28 + $0xbb0] sm:$0xff] }
 0x139   : > { %2111 = vmatmul.f32.vlgmr.msra.gmra.mxu2 %v7076_v28  ;;  %2150 = vmatpush.msrb.mxu0 %v938_v52  ;;  %v439_v28 = vld [vmem:[%s6624_s28 + $0x480] sm:$0xff]  ;;  %v509_v47 = vld [vmem:[%s6624_s28 + $0x6b0] sm:$0xff] }
 0x13a   : > { %2169 = vmatpush.msrb.mxu1 %v1108_v56  ;;  %2190 = vmatpush.msrb.mxu2 %v1258_v57  ;;  %v1832_v4 = vpop.f32.mrf.mxu0  ;;  %v839_v25 = vld [vmem:[%s6624_s28 + $0x1100] sm:$0xff]  ;;  %v829_v51 = vld [vmem:[%s6624_s28 + $0x10b0] sm:$0xff] }
 0x13b   : > { %2209 = vmatpush.msrb.mxu3 %v1428_v60  ;;  %2071 = vmatmul.f32.vlgmr.msra.gmra.mxu0 %v7083_v31  ;;  %v1833_v7 = vadd.f32 %v1832_v4, %v1813_v62  ;;  %v429_v31 = vld [vmem:[%s6624_s28 + $0x430] sm:$0xff]  ;;  %v339_v46 = vld [vmem:[%s6624_s28 + $0x160] sm:$0xff] }
 0x13c   : > { %2131 = vmatmul.f32.vlgmr.msra.gmra.mxu3 %v7088_v5  ;;  %2215 = vmatpush.msra.mxu0 %v449_v1  ;;  %v659_v50 = vld [vmem:[%s6624_s28 + $0xb60] sm:$0xff]  ;;  %v329_v52 = vld [vmem:[%s6624_s28 + $0x110] sm:$0xff] }
 0x13d   : > { %2255 = vmatpush.msra.mxu2 %v769_v2  ;;  %2170 = vmatpush.msrb.mxu1 %v1098_v3  ;;  %v1852_v11 = vpop.f32.mrf.mxu1  ;;  %v499_v54 = vld [vmem:[%s6624_s28 + $0x660] sm:$0xff]  ;;  %v649_v56 = vld [vmem:[%s6624_s28 + $0xb10] sm:$0xff] }
 0x13e   : > { %2210 = vmatpush.msrb.mxu3 %v1418_v6  ;;  %2091 = vmatmul.f32.vlgmr.msra.gmra.mxu1 %v7096_v38  ;;  %v1853_v13 = vadd.f32 %v1852_v11, %v1833_v7  ;;  %v1872_v5 = vpop.f32.mrf.mxu2  ;;  %v589_v38 = vld [vmem:[%s6624_s28 + $0x930] sm:$0xff]  ;;  %v819_v57 = vld [vmem:[%s6624_s28 + $0x1060] sm:$0xff] }
 0x13f   : > { %2216 = vmatpush.msra.mxu0 %v439_v28  ;;  %2235 = vmatpush.msra.mxu1 %v609_v8  ;;  %v319_v59 = vld [vmem:[%s6624_s28 + $0xc0] sm:$0xff]  ;;  %v489_v60 = vld [vmem:[%s6624_s28 + $0x610] sm:$0xff] }
 0x140   : > { %2256 = vmatpush.msra.mxu2 %v759_v9  ;;  %2275 = vmatpush.msra.mxu3 %v929_v10  ;;  %v1873_v18 = vadd.f32 %v1872_v5, %v1853_v13  ;;  %v639_v62 = vld [vmem:[%s6624_s28 + $0xac0] sm:$0xff]  ;;  %v809_v1 = vld [vmem:[%s6624_s28 + $0x1010] sm:$0xff] }
 0x141   : > { %2217 = vmatpush.msra.mxu0 %v429_v31  ;;  %2236 = vmatpush.msra.mxu1 %v599_v12  ;;  %v1892_v22 = vpop.f32.mrf.mxu3  ;;  %v309_v2 = vld [vmem:[%s6624_s28 + $0x70] sm:$0xff]  ;;  %v479_v3 = vld [vmem:[%s6624_s28 + $0x5c0] sm:$0xff] }
 0x142   : > { %2257 = vmatpush.msra.mxu2 %v749_v15  ;;  %2276 = vmatpush.msra.mxu3 %v919_v16  ;;  %v7257_v24 = vadd.f32 %v1892_v22, %v1873_v18  ;;  %v629_v4 = vld [vmem:[%s6624_s28 + $0xa70] sm:$0xff]  ;;  %v799_v6 = vld [vmem:[%s6624_s28 + $0xfc0] sm:$0xff] }
 0x143   : > { %2191 = vmatmul.f32.vlgmr.msrb.gmra.mxu2 %v7110_v49  ;;  %2218 = vmatpush.msra.mxu0 %v419_v17  ;;  %v399_v49 = vld [vmem:[%s6624_s28 + $0x340] sm:$0xff]  ;;  %v469_v28 = vld [vmem:[%s6624_s28 + $0x570] sm:$0xff] }
 0x144   : > { %2237 = vmatpush.msra.mxu1 %v589_v38  ;;  %2258 = vmatpush.msra.mxu2 %v739_v21  ;;  %v299_v7 = vld [vmem:[%s6624_s28 + $0x20] sm:$0xff]  ;;  %v789_v9 = vld [vmem:[%s6624_s28 + $0xf70] sm:$0xff] }
 0x145   : > { %2277 = vmatpush.msra.mxu3 %v909_v23  ;;  %2151 = vmatmul.f32.vlgmr.msrb.gmra.mxu0 %v7117_v53  ;;  %v389_v53 = vld [vmem:[%s6624_s28 + $0x2f0] sm:$0xff]  ;;  %v619_v8 = vld [vmem:[%s6624_s28 + $0xa20] sm:$0xff] }
 0x146   : > { %2211 = vmatmul.f32.vlgmr.msrb.gmra.mxu3 %v7122_v55  ;;  %2219 = vmatpush.msra.mxu0 %v409_v58  ;;  %v709_v55 = vld [vmem:[%s6624_s28 + $0xcf0] sm:$0xff]  ;;  %v459_v31 = vld [vmem:[%s6624_s28 + $0x520] sm:$0xff] }
 0x147   : > { %2238 = vmatpush.msra.mxu1 %v579_v26  ;;  %2259 = vmatpush.msra.mxu2 %v729_v27  ;;  %v1089_v10 = vld [vmem:[%s6624_s28 + $0x18d0] sm:$0xff]  ;;  %v779_v12 = vld [vmem:[%s6624_s28 + $0xf20] sm:$0xff] }
 0x148   : > { %2278 = vmatpush.msra.mxu3 %v899_v63  ;;  %2171 = vmatmul.f32.vlgmr.msrb.gmra.mxu1 %v7130_v61  ;;  %v869_v61 = vld [vmem:[%s6624_s28 + $0x11f0] sm:$0xff]  ;;  %v1079_v13 = vld [vmem:[%s6624_s28 + $0x1880] sm:$0xff] }
 0x149   : > { %2220 = vmatpush.msra.mxu0 %v399_v49  ;;  %2239 = vmatpush.msra.mxu1 %v569_v29  ;;  %v1409_v11 = vld [vmem:[%s6624_s28 + $0x22d0] sm:$0xff]  ;;  %v1399_v15 = vld [vmem:[%s6624_s28 + $0x2280] sm:$0xff] }
 0x14a   : > { %2260 = vmatpush.msra.mxu2 %v719_v0  ;;  %2279 = vmatpush.msra.mxu3 %v889_v30  ;;  %v1249_v5 = vld [vmem:[%s6624_s28 + $0x1dd0] sm:$0xff]  ;;  %v1239_v18 = vld [vmem:[%s6624_s28 + $0x1d80] sm:$0xff] }
 0x14b   : > { %2221 = vmatpush.msra.mxu0 %v389_v53  ;;  %2240 = vmatpush.msra.mxu1 %v559_v32  ;;  %v1569_v16 = vld [vmem:[%s6624_s28 + $0x27d0] sm:$0xff]  ;;  %v1559_v21 = vld [vmem:[%s6624_s28 + $0x2780] sm:$0xff] }
 0x14c   : > { %2261 = vmatpush.msra.mxu2 %v709_v55  ;;  %2280 = vmatpush.msra.mxu3 %v879_v33  ;;  %v1069_v17 = vld [vmem:[%s6624_s28 + $0x1830] sm:$0xff]  ;;  %v1059_v22 = vld [vmem:[%s6624_s28 + $0x17e0] sm:$0xff] }
 0x14d   : > { %2222 = vmatpush.msra.mxu0 %v379_v34  ;;  %2241 = vmatpush.msra.mxu1 %v549_v35  ;;  %v1389_v38 = vld [vmem:[%s6624_s28 + $0x2230] sm:$0xff]  ;;  %v1379_v58 = vld [vmem:[%s6624_s28 + $0x21e0] sm:$0xff] }
 0x14e   : > { %2262 = vmatpush.msra.mxu2 %v699_v36  ;;  %2281 = vmatpush.msra.mxu3 %v869_v61  ;;  %v1229_v23 = vld [vmem:[%s6624_s28 + $0x1d30] sm:$0xff]  ;;  %v1219_v63 = vld [vmem:[%s6624_s28 + $0x1ce0] sm:$0xff] }
 0x14f   : > { %2223 = vmatpush.msra.mxu0 %v369_v37  ;;  %2242 = vmatpush.msra.mxu1 %v539_v14  ;;  %v1549_v26 = vld [vmem:[%s6624_s28 + $0x2730] sm:$0xff]  ;;  %v1539_v29 = vld [vmem:[%s6624_s28 + $0x26e0] sm:$0xff] }
 0x150   : > { %2263 = vmatpush.msra.mxu2 %v689_v39  ;;  %2282 = vmatpush.msra.mxu3 %v859_v40  ;;  %v1049_v27 = vld [vmem:[%s6624_s28 + $0x1790] sm:$0xff]  ;;  %v1039_v0 = vld [vmem:[%s6624_s28 + $0x1740] sm:$0xff] }
 0x151   : > { %2224 = vmatpush.msra.mxu0 %v359_v19  ;;  %2243 = vmatpush.msra.mxu1 %v529_v41  ;;  %v1369_v49 = vld [vmem:[%s6624_s28 + $0x2190] sm:$0xff]  ;;  %v1359_v53 = vld [vmem:[%s6624_s28 + $0x2140] sm:$0xff] }
 0x152   : > { %2264 = vmatpush.msra.mxu2 %v679_v20  ;;  %2283 = vmatpush.msra.mxu3 %v849_v42  ;;  %v1209_v30 = vld [vmem:[%s6624_s28 + $0x1c90] sm:$0xff]  ;;  %v1199_v33 = vld [vmem:[%s6624_s28 + $0x1c40] sm:$0xff] }
 0x153   : > { %2225 = vmatpush.msra.mxu0 %v349_v43  ;;  %2244 = vmatpush.msra.mxu1 %v519_v44  ;;  %v1529_v32 = vld [vmem:[%s6624_s28 + $0x2690] sm:$0xff]  ;;  %v1519_v35 = vld [vmem:[%s6624_s28 + $0x2640] sm:$0xff] }
 0x154   : > { %2265 = vmatpush.msra.mxu2 %v669_v45  ;;  %2284 = vmatpush.msra.mxu3 %v839_v25  ;;  %v1029_v55 = vld [vmem:[%s6624_s28 + $0x16f0] sm:$0xff]  ;;  %v1019_v36 = vld [vmem:[%s6624_s28 + $0x16a0] sm:$0xff] }
 0x155   : > { %2226 = vmatpush.msra.mxu0 %v339_v46  ;;  %2245 = vmatpush.msra.mxu1 %v509_v47  ;;  %v1349_v34 = vld [vmem:[%s6624_s28 + $0x20f0] sm:$0xff]  ;;  %v1339_v37 = vld [vmem:[%s6624_s28 + $0x20a0] sm:$0xff] }
 0x156   : > { %2266 = vmatpush.msra.mxu2 %v659_v50  ;;  %2285 = vmatpush.msra.mxu3 %v829_v51  ;;  %v1189_v61 = vld [vmem:[%s6624_s28 + $0x1bf0] sm:$0xff]  ;;  %v1179_v40 = vld [vmem:[%s6624_s28 + $0x1ba0] sm:$0xff] }
 0x157   : > { %2227 = vmatpush.msra.mxu0 %v329_v52  ;;  %2246 = vmatpush.msra.mxu1 %v499_v54  ;;  %v1509_v14 = vld [vmem:[%s6624_s28 + $0x25f0] sm:$0xff]  ;;  %v1499_v41 = vld [vmem:[%s6624_s28 + $0x25a0] sm:$0xff] }
 0x158   : > { %2267 = vmatpush.msra.mxu2 %v649_v56  ;;  %2286 = vmatpush.msra.mxu3 %v819_v57  ;;  %v1009_v39 = vld [vmem:[%s6624_s28 + $0x1650] sm:$0xff]  ;;  %v999_v20 = vld [vmem:[%s6624_s28 + $0x1600] sm:$0xff] }
 0x159   : > { %2228 = vmatpush.msra.mxu0 %v319_v59  ;;  %2247 = vmatpush.msra.mxu1 %v489_v60  ;;  %v1329_v19 = vld [vmem:[%s6624_s28 + $0x2050] sm:$0xff]  ;;  %v1319_v43 = vld [vmem:[%s6624_s28 + $0x2000] sm:$0xff] }
 0x15a   : > { %2268 = vmatpush.msra.mxu2 %v639_v62  ;;  %2287 = vmatpush.msra.mxu3 %v809_v1  ;;  %v1169_v42 = vld [vmem:[%s6624_s28 + $0x1b50] sm:$0xff]  ;;  %v1159_v25 = vld [vmem:[%s6624_s28 + $0x1b00] sm:$0xff] }
 0x15b   : > { %2229 = vmatpush.msra.mxu0 %v309_v2  ;;  %2248 = vmatpush.msra.mxu1 %v479_v3  ;;  %v1489_v44 = vld [vmem:[%s6624_s28 + $0x2550] sm:$0xff]  ;;  %v1479_v47 = vld [vmem:[%s6624_s28 + $0x2500] sm:$0xff] }
 0x15c   : > { %2269 = vmatpush.msra.mxu2 %v629_v4  ;;  %2288 = vmatpush.msra.mxu3 %v799_v6  ;;  %v989_v45 = vld [vmem:[%s6624_s28 + $0x15b0] sm:$0xff]  ;;  %v979_v50 = vld [vmem:[%s6624_s28 + $0x1560] sm:$0xff] }
 0x15d   : > { %2230 = vmatpush.msra.mxu0 %v299_v7  ;;  %2249 = vmatpush.msra.mxu1 %v469_v28  ;;  %v1309_v46 = vld [vmem:[%s6624_s28 + $0x1fb0] sm:$0xff]  ;;  %v1299_v52 = vld [vmem:[%s6624_s28 + $0x1f60] sm:$0xff] }
 0x15e   : > { %2270 = vmatpush.msra.mxu2 %v619_v8  ;;  %2289 = vmatpush.msra.mxu3 %v789_v9  ;;  %v1149_v51 = vld [vmem:[%s6624_s28 + $0x1ab0] sm:$0xff]  ;;  %v1139_v57 = vld [vmem:[%s6624_s28 + $0x1a60] sm:$0xff] }
 0x15f   : > { %2295 = vmatpush.msrb.mxu0 %v1089_v10  ;;  %2250 = vmatpush.msra.mxu1 %v459_v31  ;;  %v1469_v54 = vld [vmem:[%s6624_s28 + $0x24b0] sm:$0xff]  ;;  %v1459_v62 = vld [vmem:[%s6624_s28 + $0x2460] sm:$0xff] }
 0x160   : > { %2335 = vmatpush.msrb.mxu2 %v1409_v11  ;;  %2290 = vmatpush.msra.mxu3 %v779_v12  ;;  %v969_v56 = vld [vmem:[%s6624_s28 + $0x1510] sm:$0xff]  ;;  %v959_v1 = vld [vmem:[%s6624_s28 + $0x14c0] sm:$0xff] }
 0x161   : > { %2296 = vmatpush.msrb.mxu0 %v1079_v13  ;;  %2315 = vmatpush.msrb.mxu1 %v1249_v5  ;;  %v1289_v60 = vld [vmem:[%s6624_s28 + $0x1f10] sm:$0xff]  ;;  %v1279_v3 = vld [vmem:[%s6624_s28 + $0x1ec0] sm:$0xff] }
 0x162   : > { %2336 = vmatpush.msrb.mxu2 %v1399_v15  ;;  %2355 = vmatpush.msrb.mxu3 %v1569_v16  ;;  %v1129_v2 = vld [vmem:[%s6624_s28 + $0x1a10] sm:$0xff]  ;;  %v1119_v28 = vld [vmem:[%s6624_s28 + $0x19c0] sm:$0xff] }
 0x163   : > { %2297 = vmatpush.msrb.mxu0 %v1069_v17  ;;  %2316 = vmatpush.msrb.mxu1 %v1239_v18  ;;  %v1449_v4 = vld [vmem:[%s6624_s28 + $0x2410] sm:$0xff]  ;;  %v1439_v11 = vld [vmem:[%s6624_s28 + $0x23c0] sm:$0xff] }
 0x164   : > { %2337 = vmatpush.msrb.mxu2 %v1389_v38  ;;  %2356 = vmatpush.msrb.mxu3 %v1559_v21  ;;  %v949_v7 = vld [vmem:[%s6624_s28 + $0x1470] sm:$0xff]  ;;  %v939_v31 = vld [vmem:[%s6624_s28 + $0x1420] sm:$0xff]  ;;  %v450_v38 = vld [vmem:[%s6624_s28 + $0x4d8] sm:$0xff] }
 0x165   : > { %2298 = vmatpush.msrb.mxu0 %v1059_v22  ;;  %2317 = vmatpush.msrb.mxu1 %v1229_v23  ;;  %v1269_v10 = vld [vmem:[%s6624_s28 + $0x1e70] sm:$0xff]  ;;  %v1259_v5 = vld [vmem:[%s6624_s28 + $0x1e20] sm:$0xff]  ;;  %v770_v21 = vld [vmem:[%s6624_s28 + $0xed8] sm:$0xff] }
 0x166   : > { %2338 = vmatpush.msrb.mxu2 %v1379_v58  ;;  %2357 = vmatpush.msrb.mxu3 %v1549_v26  ;;  %v1109_v13 = vld [vmem:[%s6624_s28 + $0x1970] sm:$0xff]  ;;  %v7376_v18 = vld [vmem:[%s6769_s6 + $0x10] sm:$0xff] }
 0x167   : > { %2299 = vmatpush.msrb.mxu0 %v1049_v27  ;;  %2318 = vmatpush.msrb.mxu1 %v1219_v63  ;;  %v1429_v16 = vld [vmem:[%s6624_s28 + $0x2370] sm:$0xff]  ;;  %v1099_v22 = vld [vmem:[%s6624_s28 + $0x1920] sm:$0xff]  ;;  %v7388_v63 = vld [vmem:[%s6769_s6 + $0x18] sm:$0xff] }
 0x168   : > { %2339 = vmatpush.msrb.mxu2 %v1369_v49  ;;  %2358 = vmatpush.msrb.mxu3 %v1539_v29  ;;  %v7383_v58 = vld [vmem:[%s6769_s6] sm:$0xff]  ;;  %v1419_v26 = vld [vmem:[%s6624_s28 + $0x2320] sm:$0xff]  ;;  %v440_v49 = vld [vmem:[%s6624_s28 + $0x488] sm:$0xff] }
 0x169   : > { %2300 = vmatpush.msrb.mxu0 %v1039_v0  ;;  %2319 = vmatpush.msrb.mxu1 %v1209_v30  ;;  %v610_v29 = vld [vmem:[%s6624_s28 + $0x9d8] sm:$0xff]  ;;  %v760_v0 = vld [vmem:[%s6624_s28 + $0xe88] sm:$0xff] }
 0x16a   : > { %2340 = vmatpush.msrb.mxu2 %v1359_v53  ;;  %2359 = vmatpush.msrb.mxu3 %v1529_v32  ;;  %v930_v30 = vld [vmem:[%s6624_s28 + $0x13d8] sm:$0xff] }
 0x16b   : > { %2301 = vmatpush.msrb.mxu0 %v1029_v55  ;;  %2320 = vmatpush.msrb.mxu1 %v1199_v33  ;;  %v7396_v32 = vld [vmem:[%s6769_s6 + $0x8] sm:$0xff]  ;;  %v600_v33 = vld [vmem:[%s6624_s28 + $0x988] sm:$0xff] }
 0x16c   : > { %2341 = vmatpush.msrb.mxu2 %v1349_v34  ;;  %2360 = vmatpush.msrb.mxu3 %v1519_v35  ;;  %v430_v55 = vld [vmem:[%s6624_s28 + $0x438] sm:$0xff] }
 0x16d   : > { %2302 = vmatpush.msrb.mxu0 %v1019_v36  ;;  %2321 = vmatpush.msrb.mxu1 %v1189_v61  ;;  %v750_v36 = vld [vmem:[%s6624_s28 + $0xe38] sm:$0xff]  ;;  %v920_v61 = vld [vmem:[%s6624_s28 + $0x1388] sm:$0xff] }
 0x16e   : > { %2342 = vmatpush.msrb.mxu2 %v1339_v37  ;;  %2361 = vmatpush.msrb.mxu3 %v1509_v14  ;;  %v420_v37 = vld [vmem:[%s6624_s28 + $0x3e8] sm:$0xff] }
 0x16f   : > { %2303 = vmatpush.msrb.mxu0 %v1009_v39  ;;  %2322 = vmatpush.msrb.mxu1 %v1179_v40  ;;  %v590_v39 = vld [vmem:[%s6624_s28 + $0x938] sm:$0xff]  ;;  %v740_v40 = vld [vmem:[%s6624_s28 + $0xde8] sm:$0xff] }
 0x170   : > { %2343 = vmatpush.msrb.mxu2 %v1329_v19  ;;  %2362 = vmatpush.msrb.mxu3 %v1499_v41  ;;  %v910_v41 = vld [vmem:[%s6624_s28 + $0x1338] sm:$0xff] }
 0x171   : > { %2304 = vmatpush.msrb.mxu0 %v999_v20  ;;  %2323 = vmatpush.msrb.mxu1 %v1169_v42  ;;  %v7410_v42 = vld [vmem:[%s6769_s6 + $0x30] sm:$0xff] }
 0x172   : > { %2344 = vmatpush.msrb.mxu2 %v1319_v43  ;;  %2363 = vmatpush.msrb.mxu3 %v1489_v44  ;;  %v410_v43 = vld [vmem:[%s6624_s28 + $0x398] sm:$0xff]  ;;  %v580_v44 = vld [vmem:[%s6624_s28 + $0x8e8] sm:$0xff] }
 0x173   : > { %2305 = vmatpush.msrb.mxu0 %v989_v45  ;;  %2324 = vmatpush.msrb.mxu1 %v1159_v25  ;;  %v730_v45 = vld [vmem:[%s6624_s28 + $0xd98] sm:$0xff]  ;;  %v7417_v25 = vld [vmem:[%s6769_s6 + $0x20] sm:$0xff] }
 0x174   : > { %2345 = vmatpush.msrb.mxu2 %v1309_v46  ;;  %2364 = vmatpush.msrb.mxu3 %v1479_v47  ;;  %v1912_v59 = vpop.f32.mrf.mxu0  ;;  %v900_v46 = vld [vmem:[%s6624_s28 + $0x12e8] sm:$0xff] }
 0x175   : > { %2306 = vmatpush.msrb.mxu0 %v979_v50  ;;  %2325 = vmatpush.msrb.mxu1 %v1149_v51  ;;  %v7422_v47 = vld [vmem:[%s6769_s6 + $0x38] sm:$0xff]  ;;  %v570_v51 = vld [vmem:[%s6624_s28 + $0x898] sm:$0xff] }
 0x176   : > { %2346 = vmatpush.msrb.mxu2 %v1299_v52  ;;  %2365 = vmatpush.msrb.mxu3 %v1469_v54  ;;  %v400_v50 = vld [vmem:[%s6624_s28 + $0x348] sm:$0xff]  ;;  %v890_v54 = vld [vmem:[%s6624_s28 + $0x1298] sm:$0xff] }
 0x177   : > { %2307 = vmatpush.msrb.mxu0 %v969_v56  ;;  %2326 = vmatpush.msrb.mxu1 %v1139_v57  ;;  %v1932_v6 = vpop.f32.mrf.mxu1  ;;  %v720_v52 = vld [vmem:[%s6624_s28 + $0xd48] sm:$0xff]  ;;  %v7430_v56 = vld [vmem:[%s6769_s6 + $0x28] sm:$0xff] }
 0x178   : > { %2347 = vmatpush.msrb.mxu2 %v1289_v60  ;;  %2366 = vmatpush.msrb.mxu3 %v1459_v62  ;;  %v1933_v8 = vadd.f32 %v1932_v6, %v1912_v59  ;;  %v1952_v9 = vpop.f32.mrf.mxu2  ;;  %v390_v57 = vld [vmem:[%s6624_s28 + $0x2f8] sm:$0xff]  ;;  %v560_v59 = vld [vmem:[%s6624_s28 + $0x848] sm:$0xff] }
 0x179   : > { %2308 = vmatpush.msrb.mxu0 %v959_v1  ;;  %2327 = vmatpush.msrb.mxu1 %v1129_v2  ;;  %v710_v60 = vld [vmem:[%s6624_s28 + $0xcf8] sm:$0xff]  ;;  %v880_v62 = vld [vmem:[%s6624_s28 + $0x1248] sm:$0xff] }
 0x17a   : > { %2348 = vmatpush.msrb.mxu2 %v1279_v3  ;;  %2367 = vmatpush.msrb.mxu3 %v1449_v4  ;;  %v1953_v12 = vadd.f32 %v1952_v9, %v1933_v8  ;;  %v380_v1 = vld [vmem:[%s6624_s28 + $0x2a8] sm:$0xff]  ;;  %v550_v2 = vld [vmem:[%s6624_s28 + $0x7f8] sm:$0xff] }
 0x17b   : > { %2309 = vmatpush.msrb.mxu0 %v949_v7  ;;  %2328 = vmatpush.msrb.mxu1 %v1119_v28  ;;  %v1972_v15 = vpop.f32.mrf.mxu3  ;;  %v700_v3 = vld [vmem:[%s6624_s28 + $0xca8] sm:$0xff]  ;;  %v870_v4 = vld [vmem:[%s6624_s28 + $0x11f8] sm:$0xff] }
 0x17c   : > { %2349 = vmatpush.msrb.mxu2 %v1269_v10  ;;  %2368 = vmatpush.msrb.mxu3 %v1439_v11  ;;  %v1973_v17 = vadd.f32 %v1972_v15, %v1953_v12  ;;  %v370_v6 = vld [vmem:[%s6624_s28 + $0x258] sm:$0xff]  ;;  %v540_v7 = vld [vmem:[%s6624_s28 + $0x7a8] sm:$0xff] }
 0x17d   : > { %2271 = vmatmul.f32.vlgmr.msra.gmra.mxu2 %v7376_v18  ;;  %2310 = vmatpush.msrb.mxu0 %v939_v31  ;;  %v690_v28 = vld [vmem:[%s6624_s28 + $0xc58] sm:$0xff]  ;;  %v860_v8 = vld [vmem:[%s6624_s28 + $0x11a8] sm:$0xff] }
 0x17e   : > { %2329 = vmatpush.msrb.mxu1 %v1109_v13  ;;  %2350 = vmatpush.msrb.mxu2 %v1259_v5  ;;  %v1992_v23 = vpop.f32.mrf.mxu0  ;;  %v360_v9 = vld [vmem:[%s6624_s28 + $0x208] sm:$0xff]  ;;  %v530_v10 = vld [vmem:[%s6624_s28 + $0x758] sm:$0xff] }
 0x17f   : > { %2369 = vmatpush.msrb.mxu3 %v1429_v16  ;;  %2231 = vmatmul.f32.vlgmr.msra.gmra.mxu0 %v7383_v58  ;;  %v1993_v27 = vadd.f32 %v1992_v23, %v1973_v17  ;;  %v680_v11 = vld [vmem:[%s6624_s28 + $0xc08] sm:$0xff]  ;;  %v850_v31 = vld [vmem:[%s6624_s28 + $0x1158] sm:$0xff] }
 0x180   : > { %2291 = vmatmul.f32.vlgmr.msra.gmra.mxu3 %v7388_v63  ;;  %2375 = vmatpush.msra.mxu0 %v450_v38  ;;  %v350_v12 = vld [vmem:[%s6624_s28 + $0x1b8] sm:$0xff]  ;;  %v520_v13 = vld [vmem:[%s6624_s28 + $0x708] sm:$0xff] }
 0x181   : > { %2415 = vmatpush.msra.mxu2 %v770_v21  ;;  %2330 = vmatpush.msrb.mxu1 %v1099_v22  ;;  %v2012_v53 = vpop.f32.mrf.mxu1  ;;  %v670_v5 = vld [vmem:[%s6624_s28 + $0xbb8] sm:$0xff]  ;;  %v840_v15 = vld [vmem:[%s6624_s28 + $0x1108] sm:$0xff] }
 0x182   : > { %2370 = vmatpush.msrb.mxu3 %v1419_v26  ;;  %2251 = vmatmul.f32.vlgmr.msra.gmra.mxu1 %v7396_v32  ;;  %v2013_v34 = vadd.f32 %v2012_v53, %v1993_v27  ;;  %v2032_v35 = vpop.f32.mrf.mxu2  ;;  %v340_v16 = vld [vmem:[%s6624_s28 + $0x168] sm:$0xff]  ;;  %v510_v17 = vld [vmem:[%s6624_s28 + $0x6b8] sm:$0xff] }
 0x183   : > { %2376 = vmatpush.msra.mxu0 %v440_v49  ;;  %2395 = vmatpush.msra.mxu1 %v610_v29  ;;  %v660_v38 = vld [vmem:[%s6624_s28 + $0xb68] sm:$0xff]  ;;  %v830_v21 = vld [vmem:[%s6624_s28 + $0x10b8] sm:$0xff] }
 0x184   : > { %2416 = vmatpush.msra.mxu2 %v760_v0  ;;  %2435 = vmatpush.msra.mxu3 %v930_v30  ;;  %v2033_v14 = vadd.f32 %v2032_v35, %v2013_v34  ;;  %v330_v22 = vld [vmem:[%s6624_s28 + $0x118] sm:$0xff]  ;;  %v500_v23 = vld [vmem:[%s6624_s28 + $0x668] sm:$0xff] }
 0x185   : > { %2377 = vmatpush.msra.mxu0 %v430_v55  ;;  %2396 = vmatpush.msra.mxu1 %v600_v33  ;;  %v2052_v19 = vpop.f32.mrf.mxu3  ;;  %v650_v26 = vld [vmem:[%s6624_s28 + $0xb18] sm:$0xff]  ;;  %v820_v27 = vld [vmem:[%s6624_s28 + $0x1068] sm:$0xff] }
 0x186   : > { %2417 = vmatpush.msra.mxu2 %v750_v36  ;;  %2436 = vmatpush.msra.mxu3 %v920_v61  ;;  %v7407_v20 = vadd.f32 %v2052_v19, %v2033_v14  ;;  %v320_v49 = vld [vmem:[%s6624_s28 + $0xc8] sm:$0xff]  ;;  %v490_v29 = vld [vmem:[%s6624_s28 + $0x618] sm:$0xff] }
 0x187   : > { %2351 = vmatmul.f32.vlgmr.msrb.gmra.mxu2 %v7410_v42  ;;  %2378 = vmatpush.msra.mxu0 %v420_v37  ;;  %v640_v0 = vld [vmem:[%s6624_s28 + $0xac8] sm:$0xff]  ;;  %v810_v30 = vld [vmem:[%s6624_s28 + $0x1018] sm:$0xff] }
 0x188   : > { %2397 = vmatpush.msra.mxu1 %v590_v39  ;;  %2418 = vmatpush.msra.mxu2 %v740_v40  ;;  %v310_v53 = vld [vmem:[%s6624_s28 + $0x78] sm:$0xff]  ;;  %v480_v55 = vld [vmem:[%s6624_s28 + $0x5c8] sm:$0xff] }
 0x189   : > { %2437 = vmatpush.msra.mxu3 %v910_v41  ;;  %2311 = vmatmul.f32.vlgmr.msrb.gmra.mxu0 %v7417_v25  ;;  %v630_v33 = vld [vmem:[%s6624_s28 + $0xa78] sm:$0xff]  ;;  %v800_v34 = vld [vmem:[%s6624_s28 + $0xfc8] sm:$0xff] }
 0x18a   : > { %2371 = vmatmul.f32.vlgmr.msrb.gmra.mxu3 %v7422_v47  ;;  %2379 = vmatpush.msra.mxu0 %v410_v43  ;;  %v300_v35 = vld [vmem:[%s6624_s28 + $0x28] sm:$0xff]  ;;  %v470_v36 = vld [vmem:[%s6624_s28 + $0x578] sm:$0xff] }
 0x18b   : > { %2398 = vmatpush.msra.mxu1 %v580_v44  ;;  %2419 = vmatpush.msra.mxu2 %v730_v45  ;;  %v620_v61 = vld [vmem:[%s6624_s28 + $0xa28] sm:$0xff]  ;;  %v790_v37 = vld [vmem:[%s6624_s28 + $0xf78] sm:$0xff] }
 0x18c   : > { %2438 = vmatpush.msra.mxu3 %v900_v46  ;;  %2331 = vmatmul.f32.vlgmr.msrb.gmra.mxu1 %v7430_v56  ;;  %v1090_v14 = vld [vmem:[%s6624_s28 + $0x18d8] sm:$0xff]  ;;  %v460_v40 = vld [vmem:[%s6624_s28 + $0x528] sm:$0xff] }
 0x18d   : > { %2380 = vmatpush.msra.mxu0 %v400_v50  ;;  %2399 = vmatpush.msra.mxu1 %v570_v51  ;;  %v1410_v39 = vld [vmem:[%s6624_s28 + $0x22d8] sm:$0xff]  ;;  %v780_v19 = vld [vmem:[%s6624_s28 + $0xf28] sm:$0xff] }
 0x18e   : > { %2420 = vmatpush.msra.mxu2 %v720_v52  ;;  %2439 = vmatpush.msra.mxu3 %v890_v54  ;;  %v1080_v41 = vld [vmem:[%s6624_s28 + $0x1888] sm:$0xff]  ;;  %v1250_v43 = vld [vmem:[%s6624_s28 + $0x1dd8] sm:$0xff] }
 0x18f   : > { %2381 = vmatpush.msra.mxu0 %v390_v57  ;;  %2400 = vmatpush.msra.mxu1 %v560_v59  ;;  %v1400_v44 = vld [vmem:[%s6624_s28 + $0x2288] sm:$0xff]  ;;  %v1570_v45 = vld [vmem:[%s6624_s28 + $0x27d8] sm:$0xff] }
 0x190   : > { %2421 = vmatpush.msra.mxu2 %v710_v60  ;;  %2440 = vmatpush.msra.mxu3 %v880_v62  ;;  %v1070_v46 = vld [vmem:[%s6624_s28 + $0x1838] sm:$0xff]  ;;  %v1240_v50 = vld [vmem:[%s6624_s28 + $0x1d88] sm:$0xff] }
 0x191   : > { %2382 = vmatpush.msra.mxu0 %v380_v1  ;;  %2401 = vmatpush.msra.mxu1 %v550_v2  ;;  %v1390_v51 = vld [vmem:[%s6624_s28 + $0x2238] sm:$0xff]  ;;  %v1560_v52 = vld [vmem:[%s6624_s28 + $0x2788] sm:$0xff] }
 0x192   : > { %2422 = vmatpush.msra.mxu2 %v700_v3  ;;  %2441 = vmatpush.msra.mxu3 %v870_v4  ;;  %v1060_v54 = vld [vmem:[%s6624_s28 + $0x17e8] sm:$0xff]  ;;  %v1230_v57 = vld [vmem:[%s6624_s28 + $0x1d38] sm:$0xff] }
 0x193   : > { %2383 = vmatpush.msra.mxu0 %v370_v6  ;;  %2402 = vmatpush.msra.mxu1 %v540_v7  ;;  %v1380_v59 = vld [vmem:[%s6624_s28 + $0x21e8] sm:$0xff]  ;;  %v1550_v60 = vld [vmem:[%s6624_s28 + $0x2738] sm:$0xff] }
 0x194   : > { %2423 = vmatpush.msra.mxu2 %v690_v28  ;;  %2442 = vmatpush.msra.mxu3 %v860_v8  ;;  %v1050_v62 = vld [vmem:[%s6624_s28 + $0x1798] sm:$0xff]  ;;  %v1220_v1 = vld [vmem:[%s6624_s28 + $0x1ce8] sm:$0xff] }
 0x195   : > { %2384 = vmatpush.msra.mxu0 %v360_v9  ;;  %2403 = vmatpush.msra.mxu1 %v530_v10  ;;  %v1370_v2 = vld [vmem:[%s6624_s28 + $0x2198] sm:$0xff]  ;;  %v1540_v3 = vld [vmem:[%s6624_s28 + $0x26e8] sm:$0xff] }
 0x196   : > { %2424 = vmatpush.msra.mxu2 %v680_v11  ;;  %2443 = vmatpush.msra.mxu3 %v850_v31  ;;  %v1040_v4 = vld [vmem:[%s6624_s28 + $0x1748] sm:$0xff]  ;;  %v1210_v6 = vld [vmem:[%s6624_s28 + $0x1c98] sm:$0xff] }
 0x197   : > { %2385 = vmatpush.msra.mxu0 %v350_v12  ;;  %2404 = vmatpush.msra.mxu1 %v520_v13  ;;  %v1360_v7 = vld [vmem:[%s6624_s28 + $0x2148] sm:$0xff]  ;;  %v1530_v28 = vld [vmem:[%s6624_s28 + $0x2698] sm:$0xff] }
 0x198   : > { %2425 = vmatpush.msra.mxu2 %v670_v5  ;;  %2444 = vmatpush.msra.mxu3 %v840_v15  ;;  %v1030_v8 = vld [vmem:[%s6624_s28 + $0x16f8] sm:$0xff]  ;;  %v1200_v9 = vld [vmem:[%s6624_s28 + $0x1c48] sm:$0xff] }
 0x199   : > { %2386 = vmatpush.msra.mxu0 %v340_v16  ;;  %2405 = vmatpush.msra.mxu1 %v510_v17  ;;  %v1350_v10 = vld [vmem:[%s6624_s28 + $0x20f8] sm:$0xff]  ;;  %v1520_v11 = vld [vmem:[%s6624_s28 + $0x2648] sm:$0xff] }
 0x19a   : > { %2426 = vmatpush.msra.mxu2 %v660_v38  ;;  %2445 = vmatpush.msra.mxu3 %v830_v21  ;;  %v1020_v31 = vld [vmem:[%s6624_s28 + $0x16a8] sm:$0xff]  ;;  %v1190_v12 = vld [vmem:[%s6624_s28 + $0x1bf8] sm:$0xff] }
 0x19b   : > { %2387 = vmatpush.msra.mxu0 %v330_v22  ;;  %2406 = vmatpush.msra.mxu1 %v500_v23  ;;  %v1340_v13 = vld [vmem:[%s6624_s28 + $0x20a8] sm:$0xff]  ;;  %v1510_v5 = vld [vmem:[%s6624_s28 + $0x25f8] sm:$0xff] }
 0x19c   : > { %2427 = vmatpush.msra.mxu2 %v650_v26  ;;  %2446 = vmatpush.msra.mxu3 %v820_v27  ;;  %v1010_v15 = vld [vmem:[%s6624_s28 + $0x1658] sm:$0xff]  ;;  %v1180_v16 = vld [vmem:[%s6624_s28 + $0x1ba8] sm:$0xff] }
 0x19d   : > { %2388 = vmatpush.msra.mxu0 %v320_v49  ;;  %2407 = vmatpush.msra.mxu1 %v490_v29  ;;  %v1330_v17 = vld [vmem:[%s6624_s28 + $0x2058] sm:$0xff]  ;;  %v1500_v38 = vld [vmem:[%s6624_s28 + $0x25a8] sm:$0xff] }
 0x19e   : > { %2428 = vmatpush.msra.mxu2 %v640_v0  ;;  %2447 = vmatpush.msra.mxu3 %v810_v30  ;;  %v1000_v21 = vld [vmem:[%s6624_s28 + $0x1608] sm:$0xff]  ;;  %v1170_v22 = vld [vmem:[%s6624_s28 + $0x1b58] sm:$0xff] }
 0x19f   : > { %2389 = vmatpush.msra.mxu0 %v310_v53  ;;  %2408 = vmatpush.msra.mxu1 %v480_v55  ;;  %v1320_v23 = vld [vmem:[%s6624_s28 + $0x2008] sm:$0xff]  ;;  %v1490_v26 = vld [vmem:[%s6624_s28 + $0x2558] sm:$0xff] }
 0x1a0   : > { %2429 = vmatpush.msra.mxu2 %v630_v33  ;;  %2448 = vmatpush.msra.mxu3 %v800_v34  ;;  %v990_v27 = vld [vmem:[%s6624_s28 + $0x15b8] sm:$0xff]  ;;  %v1160_v49 = vld [vmem:[%s6624_s28 + $0x1b08] sm:$0xff] }
 0x1a1   : > { %2390 = vmatpush.msra.mxu0 %v300_v35  ;;  %2409 = vmatpush.msra.mxu1 %v470_v36  ;;  %v1310_v29 = vld [vmem:[%s6624_s28 + $0x1fb8] sm:$0xff]  ;;  %v1480_v0 = vld [vmem:[%s6624_s28 + $0x2508] sm:$0xff] }
 0x1a2   : > { %2430 = vmatpush.msra.mxu2 %v620_v61  ;;  %2449 = vmatpush.msra.mxu3 %v790_v37  ;;  %v980_v30 = vld [vmem:[%s6624_s28 + $0x1568] sm:$0xff]  ;;  %v1150_v53 = vld [vmem:[%s6624_s28 + $0x1ab8] sm:$0xff] }
 0x1a3   : > { %2455 = vmatpush.msrb.mxu0 %v1090_v14  ;;  %2410 = vmatpush.msra.mxu1 %v460_v40  ;;  %v1300_v55 = vld [vmem:[%s6624_s28 + $0x1f68] sm:$0xff]  ;;  %v1470_v33 = vld [vmem:[%s6624_s28 + $0x24b8] sm:$0xff] }
 0x1a4   : > { %2495 = vmatpush.msrb.mxu2 %v1410_v39  ;;  %2450 = vmatpush.msra.mxu3 %v780_v19  ;;  %v970_v34 = vld [vmem:[%s6624_s28 + $0x1518] sm:$0xff]  ;;  %v1140_v35 = vld [vmem:[%s6624_s28 + $0x1a68] sm:$0xff] }
 0x1a5   : > { %2456 = vmatpush.msrb.mxu0 %v1080_v41  ;;  %2475 = vmatpush.msrb.mxu1 %v1250_v43  ;;  %v1290_v61 = vld [vmem:[%s6624_s28 + $0x1f18] sm:$0xff]  ;;  %v1460_v37 = vld [vmem:[%s6624_s28 + $0x2468] sm:$0xff] }
 0x1a6   : > { %2496 = vmatpush.msrb.mxu2 %v1400_v44  ;;  %2515 = vmatpush.msrb.mxu3 %v1570_v45  ;;  %v960_v14 = vld [vmem:[%s6624_s28 + $0x14c8] sm:$0xff]  ;;  %v1130_v39 = vld [vmem:[%s6624_s28 + $0x1a18] sm:$0xff] }
 0x1a7   : > { %2457 = vmatpush.msrb.mxu0 %v1070_v46  ;;  %2476 = vmatpush.msrb.mxu1 %v1240_v50  ;;  %v1280_v40 = vld [vmem:[%s6624_s28 + $0x1ec8] sm:$0xff]  ;;  %v1450_v19 = vld [vmem:[%s6624_s28 + $0x2418] sm:$0xff] }
 0x1a8   : > { %2497 = vmatpush.msrb.mxu2 %v1390_v51  ;;  %2516 = vmatpush.msrb.mxu3 %v1560_v52  ;;  %v950_v43 = vld [vmem:[%s6624_s28 + $0x1478] sm:$0xff]  ;;  %v1120_v44 = vld [vmem:[%s6624_s28 + $0x19c8] sm:$0xff] }
 0x1a9   : > { %2458 = vmatpush.msrb.mxu0 %v1060_v54  ;;  %2477 = vmatpush.msrb.mxu1 %v1230_v57  ;;  %v1270_v50 = vld [vmem:[%s6624_s28 + $0x1e78] sm:$0xff]  ;;  %v1440_v51 = vld [vmem:[%s6624_s28 + $0x23c8] sm:$0xff] }
 0x1aa   : > { %2498 = vmatpush.msrb.mxu2 %v1380_v59  ;;  %2517 = vmatpush.msrb.mxu3 %v1550_v60  ;;  %v940_v52 = vld [vmem:[%s6624_s28 + $0x1428] sm:$0xff]  ;;  %v1110_v57 = vld [vmem:[%s6624_s28 + $0x1978] sm:$0xff] }
 0x1ab   : > { %2459 = vmatpush.msrb.mxu0 %v1050_v62  ;;  %2478 = vmatpush.msrb.mxu1 %v1220_v1  ;;  %v1260_v59 = vld [vmem:[%s6624_s28 + $0x1e28] sm:$0xff]  ;;  %v1430_v62 = vld [vmem:[%s6624_s28 + $0x2378] sm:$0xff] }
 0x1ac   : > { %2499 = vmatpush.msrb.mxu2 %v1370_v2  ;;  %2518 = vmatpush.msrb.mxu3 %v1540_v3  ;;  %v451_v2 = vld [vmem:[%s6624_s28 + $0x4e0] sm:$0xff] }
 0x1ad   : > { %2460 = vmatpush.msrb.mxu0 %v1040_v4  ;;  %2479 = vmatpush.msrb.mxu1 %v1210_v6  ;;  %v771_v3 = vld [vmem:[%s6624_s28 + $0xee0] sm:$0xff]  ;;  %v1100_v4 = vld [vmem:[%s6624_s28 + $0x1928] sm:$0xff] }
 0x1ae   : > { %2500 = vmatpush.msrb.mxu2 %v1360_v7  ;;  %2519 = vmatpush.msrb.mxu3 %v1530_v28  ;;  %v1420_v7 = vld [vmem:[%s6624_s28 + $0x2328] sm:$0xff] }
 0x1af   : > { %2461 = vmatpush.msrb.mxu0 %v1030_v8  ;;  %2480 = vmatpush.msrb.mxu1 %v1200_v9  ;;  %v611_v8 = vld [vmem:[%s6624_s28 + $0x9e0] sm:$0xff]  ;;  %v761_v9 = vld [vmem:[%s6624_s28 + $0xe90] sm:$0xff] }
 0x1b0   : > { %2501 = vmatpush.msrb.mxu2 %v1350_v10  ;;  %2520 = vmatpush.msrb.mxu3 %v1520_v11  ;;  %v931_v10 = vld [vmem:[%s6624_s28 + $0x13e0] sm:$0xff] }
 0x1b1   : > { %2462 = vmatpush.msrb.mxu0 %v1020_v31  ;;  %2481 = vmatpush.msrb.mxu1 %v1190_v12  ;;  %v601_v31 = vld [vmem:[%s6624_s28 + $0x990] sm:$0xff] }
 0x1b2   : > { %2502 = vmatpush.msrb.mxu2 %v1340_v13  ;;  %2521 = vmatpush.msrb.mxu3 %v1510_v5  ;;  %v751_v13 = vld [vmem:[%s6624_s28 + $0xe40] sm:$0xff]  ;;  %v921_v5 = vld [vmem:[%s6624_s28 + $0x1390] sm:$0xff] }
 0x1b3   : > { %2463 = vmatpush.msrb.mxu0 %v1010_v15  ;;  %2482 = vmatpush.msrb.mxu1 %v1180_v16  ;;  %v421_v15 = vld [vmem:[%s6624_s28 + $0x3f0] sm:$0xff] }
 0x1b4   : > { %2503 = vmatpush.msrb.mxu2 %v1330_v17  ;;  %2522 = vmatpush.msrb.mxu3 %v1500_v38  ;;  %v741_v17 = vld [vmem:[%s6624_s28 + $0xdf0] sm:$0xff] }
 0x1b5   : > { %2464 = vmatpush.msrb.mxu0 %v1000_v21  ;;  %2483 = vmatpush.msrb.mxu1 %v1170_v22  ;;  %v911_v21 = vld [vmem:[%s6624_s28 + $0x1340] sm:$0xff] }
 0x1b6   : > { %2504 = vmatpush.msrb.mxu2 %v1320_v23  ;;  %2523 = vmatpush.msrb.mxu3 %v1490_v26  ;;  %v411_v23 = vld [vmem:[%s6624_s28 + $0x3a0] sm:$0xff]  ;;  %v581_v26 = vld [vmem:[%s6624_s28 + $0x8f0] sm:$0xff] }
 0x1b7   : > { %2465 = vmatpush.msrb.mxu0 %v990_v27  ;;  %2484 = vmatpush.msrb.mxu1 %v1160_v49  ;;  %v731_v27 = vld [vmem:[%s6624_s28 + $0xda0] sm:$0xff]  ;;  %v901_v49 = vld [vmem:[%s6624_s28 + $0x12f0] sm:$0xff] }
 0x1b8   : > { %2505 = vmatpush.msrb.mxu2 %v1310_v29  ;;  %2524 = vmatpush.msrb.mxu3 %v1480_v0  ;;  %v2072_v36 = vpop.f32.mrf.mxu0  ;;  %v571_v29 = vld [vmem:[%s6624_s28 + $0x8a0] sm:$0xff]  ;;  %v721_v0 = vld [vmem:[%s6624_s28 + $0xd50] sm:$0xff] }
 0x1b9   : > { %2466 = vmatpush.msrb.mxu0 %v980_v30  ;;  %2485 = vmatpush.msrb.mxu1 %v1150_v53  ;;  %v891_v30 = vld [vmem:[%s6624_s28 + $0x12a0] sm:$0xff]  ;;  %v561_v53 = vld [vmem:[%s6624_s28 + $0x850] sm:$0xff] }
 0x1ba   : > { %2506 = vmatpush.msrb.mxu2 %v1300_v55  ;;  %2525 = vmatpush.msrb.mxu3 %v1470_v33  ;;  %v881_v55 = vld [vmem:[%s6624_s28 + $0x1250] sm:$0xff] }
 0x1bb   : > { %2467 = vmatpush.msrb.mxu0 %v970_v34  ;;  %2486 = vmatpush.msrb.mxu1 %v1140_v35  ;;  %v2092_v41 = vpop.f32.mrf.mxu1  ;;  %v381_v33 = vld [vmem:[%s6624_s28 + $0x2b0] sm:$0xff]  ;;  %v551_v34 = vld [vmem:[%s6624_s28 + $0x800] sm:$0xff] }
 0x1bc   : > { %2507 = vmatpush.msrb.mxu2 %v1290_v61  ;;  %2526 = vmatpush.msrb.mxu3 %v1460_v37  ;;  %v2093_v45 = vadd.f32 %v2092_v41, %v2072_v36  ;;  %v2112_v46 = vpop.f32.mrf.mxu2  ;;  %v701_v35 = vld [vmem:[%s6624_s28 + $0xcb0] sm:$0xff]  ;;  %v371_v36 = vld [vmem:[%s6624_s28 + $0x260] sm:$0xff] }
 0x1bd   : > { %2468 = vmatpush.msrb.mxu0 %v960_v14  ;;  %2487 = vmatpush.msrb.mxu1 %v1130_v39  ;;  %v541_v61 = vld [vmem:[%s6624_s28 + $0x7b0] sm:$0xff]  ;;  %v691_v37 = vld [vmem:[%s6624_s28 + $0xc60] sm:$0xff] }
 0x1be   : > { %2508 = vmatpush.msrb.mxu2 %v1280_v40  ;;  %2527 = vmatpush.msrb.mxu3 %v1450_v19  ;;  %v2113_v54 = vadd.f32 %v2112_v46, %v2093_v45  ;;  %v861_v14 = vld [vmem:[%s6624_s28 + $0x11b0] sm:$0xff]  ;;  %v531_v40 = vld [vmem:[%s6624_s28 + $0x760] sm:$0xff] }
 0x1bf   : > { %2469 = vmatpush.msrb.mxu0 %v950_v43  ;;  %2488 = vmatpush.msrb.mxu1 %v1120_v44  ;;  %v2132_v60 = vpop.f32.mrf.mxu3  ;;  %v361_v39 = vld [vmem:[%s6624_s28 + $0x210] sm:$0xff]  ;;  %v851_v41 = vld [vmem:[%s6624_s28 + $0x1160] sm:$0xff] }
 0x1c0   : > { %2509 = vmatpush.msrb.mxu2 %v1270_v50  ;;  %2528 = vmatpush.msrb.mxu3 %v1440_v51  ;;  %v2133_v1 = vadd.f32 %v2132_v60, %v2113_v54  ;;  %v681_v19 = vld [vmem:[%s6624_s28 + $0xc10] sm:$0xff]  ;;  %v351_v43 = vld [vmem:[%s6624_s28 + $0x1c0] sm:$0xff] }
 0x1c1   : > { %2431 = vmatmul.f32.vlgmr.msra.gmra.mxu2 %v7376_v18  ;;  %2470 = vmatpush.msrb.mxu0 %v940_v52  ;;  %v441_v18 = vld [vmem:[%s6624_s28 + $0x490] sm:$0xff]  ;;  %v671_v45 = vld [vmem:[%s6624_s28 + $0xbc0] sm:$0xff] }
 0x1c2   : > { %2489 = vmatpush.msrb.mxu1 %v1110_v57  ;;  %2510 = vmatpush.msrb.mxu2 %v1260_v59  ;;  %v2152_v6 = vpop.f32.mrf.mxu0  ;;  %v521_v44 = vld [vmem:[%s6624_s28 + $0x710] sm:$0xff]  ;;  %v511_v51 = vld [vmem:[%s6624_s28 + $0x6c0] sm:$0xff] }
 0x1c3   : > { %2529 = vmatpush.msrb.mxu3 %v1430_v62  ;;  %2391 = vmatmul.f32.vlgmr.msra.gmra.mxu0 %v7383_v58  ;;  %v2153_v28 = vadd.f32 %v2152_v6, %v2133_v1  ;;  %v431_v58 = vld [vmem:[%s6624_s28 + $0x440] sm:$0xff]  ;;  %v841_v46 = vld [vmem:[%s6624_s28 + $0x1110] sm:$0xff] }
 0x1c4   : > { %2451 = vmatmul.f32.vlgmr.msra.gmra.mxu3 %v7388_v63  ;;  %2535 = vmatpush.msra.mxu0 %v451_v2  ;;  %v341_v50 = vld [vmem:[%s6624_s28 + $0x170] sm:$0xff]  ;;  %v831_v54 = vld [vmem:[%s6624_s28 + $0x10c0] sm:$0xff] }
 0x1c5   : > { %2575 = vmatpush.msra.mxu2 %v771_v3  ;;  %2490 = vmatpush.msrb.mxu1 %v1100_v4  ;;  %v2172_v11 = vpop.f32.mrf.mxu1  ;;  %v661_v52 = vld [vmem:[%s6624_s28 + $0xb70] sm:$0xff]  ;;  %v331_v57 = vld [vmem:[%s6624_s28 + $0x120] sm:$0xff] }
 0x1c6   : > { %2530 = vmatpush.msrb.mxu3 %v1420_v7  ;;  %2411 = vmatmul.f32.vlgmr.msra.gmra.mxu1 %v7396_v32  ;;  %v2173_v12 = vadd.f32 %v2172_v11, %v2153_v28  ;;  %v2192_v63 = vpop.f32.mrf.mxu2  ;;  %v591_v32 = vld [vmem:[%s6624_s28 + $0x940] sm:$0xff]  ;;  %v501_v59 = vld [vmem:[%s6624_s28 + $0x670] sm:$0xff] }
 0x1c7   : > { %2536 = vmatpush.msra.mxu0 %v441_v18  ;;  %2555 = vmatpush.msra.mxu1 %v611_v8  ;;  %v651_v60 = vld [vmem:[%s6624_s28 + $0xb20] sm:$0xff]  ;;  %v821_v62 = vld [vmem:[%s6624_s28 + $0x1070] sm:$0xff] }
 0x1c8   : > { %2576 = vmatpush.msra.mxu2 %v761_v9  ;;  %2595 = vmatpush.msra.mxu3 %v931_v10  ;;  %v2193_v16 = vadd.f32 %v2192_v63, %v2173_v12  ;;  %v321_v1 = vld [vmem:[%s6624_s28 + $0xd0] sm:$0xff]  ;;  %v491_v2 = vld [vmem:[%s6624_s28 + $0x620] sm:$0xff] }
 0x1c9   : > { %2537 = vmatpush.msra.mxu0 %v431_v58  ;;  %2556 = vmatpush.msra.mxu1 %v601_v31  ;;  %v2212_v38 = vpop.f32.mrf.mxu3  ;;  %v641_v3 = vld [vmem:[%s6624_s28 + $0xad0] sm:$0xff]  ;;  %v811_v4 = vld [vmem:[%s6624_s28 + $0x1020] sm:$0xff] }
 0x1ca   : > { %2577 = vmatpush.msra.mxu2 %v751_v13  ;;  %2596 = vmatpush.msra.mxu3 %v921_v5  ;;  %v7557_v22 = vadd.f32 %v2212_v38, %v2193_v16  ;;  %v311_v6 = vld [vmem:[%s6624_s28 + $0x80] sm:$0xff]  ;;  %v481_v7 = vld [vmem:[%s6624_s28 + $0x5d0] sm:$0xff] }
 0x1cb   : > { %2511 = vmatmul.f32.vlgmr.msrb.gmra.mxu2 %v7410_v42  ;;  %2538 = vmatpush.msra.mxu0 %v421_v15  ;;  %v401_v42 = vld [vmem:[%s6624_s28 + $0x350] sm:$0xff]  ;;  %v631_v28 = vld [vmem:[%s6624_s28 + $0xa80] sm:$0xff] }
 0x1cc   : > { %2557 = vmatpush.msra.mxu1 %v591_v32  ;;  %2578 = vmatpush.msra.mxu2 %v741_v17  ;;  %v801_v18 = vld [vmem:[%s6624_s28 + $0xfd0] sm:$0xff]  ;;  %v471_v9 = vld [vmem:[%s6624_s28 + $0x580] sm:$0xff] }
 0x1cd   : > { %2597 = vmatpush.msra.mxu3 %v911_v21  ;;  %2471 = vmatmul.f32.vlgmr.msrb.gmra.mxu0 %v7417_v25  ;;  %v391_v25 = vld [vmem:[%s6624_s28 + $0x300] sm:$0xff]  ;;  %v301_v8 = vld [vmem:[%s6624_s28 + $0x30] sm:$0xff] }
 0x1ce   : > { %2531 = vmatmul.f32.vlgmr.msrb.gmra.mxu3 %v7422_v47  ;;  %2539 = vmatpush.msra.mxu0 %v411_v23  ;;  %v711_v47 = vld [vmem:[%s6624_s28 + $0xd00] sm:$0xff]  ;;  %v621_v10 = vld [vmem:[%s6624_s28 + $0xa30] sm:$0xff] }
 0x1cf   : > { %2558 = vmatpush.msra.mxu1 %v581_v26  ;;  %2579 = vmatpush.msra.mxu2 %v731_v27  ;;  %v791_v11 = vld [vmem:[%s6624_s28 + $0xf80] sm:$0xff]  ;;  %v461_v12 = vld [vmem:[%s6624_s28 + $0x530] sm:$0xff] }
 0x1d0   : > { %2598 = vmatpush.msra.mxu3 %v901_v49  ;;  %2491 = vmatmul.f32.vlgmr.msrb.gmra.mxu1 %v7430_v56  ;;  %v871_v56 = vld [vmem:[%s6624_s28 + $0x1200] sm:$0xff]  ;;  %v781_v63 = vld [vmem:[%s6624_s28 + $0xf30] sm:$0xff] }
 0x1d1   : > { %2540 = vmatpush.msra.mxu0 %v401_v42  ;;  %2559 = vmatpush.msra.mxu1 %v571_v29  ;;  %v1091_v58 = vld [vmem:[%s6624_s28 + $0x18e0] sm:$0xff]  ;;  %v1081_v13 = vld [vmem:[%s6624_s28 + $0x1890] sm:$0xff] }
 0x1d2   : > { %2580 = vmatpush.msra.mxu2 %v721_v0  ;;  %2599 = vmatpush.msra.mxu3 %v891_v30  ;;  %v1411_v31 = vld [vmem:[%s6624_s28 + $0x22e0] sm:$0xff]  ;;  %v1401_v15 = vld [vmem:[%s6624_s28 + $0x2290] sm:$0xff] }
 0x1d3   : > { %2541 = vmatpush.msra.mxu0 %v391_v25  ;;  %2560 = vmatpush.msra.mxu1 %v561_v53  ;;  %v1251_v5 = vld [vmem:[%s6624_s28 + $0x1de0] sm:$0xff]  ;;  %v1241_v17 = vld [vmem:[%s6624_s28 + $0x1d90] sm:$0xff] }
 0x1d4   : > { %2581 = vmatpush.msra.mxu2 %v711_v47  ;;  %2600 = vmatpush.msra.mxu3 %v881_v55  ;;  %v1571_v16 = vld [vmem:[%s6624_s28 + $0x27e0] sm:$0xff]  ;;  %v1561_v21 = vld [vmem:[%s6624_s28 + $0x2790] sm:$0xff] }
 0x1d5   : > { %2542 = vmatpush.msra.mxu0 %v381_v33  ;;  %2561 = vmatpush.msra.mxu1 %v551_v34  ;;  %v1071_v32 = vld [vmem:[%s6624_s28 + $0x1840] sm:$0xff]  ;;  %v1061_v23 = vld [vmem:[%s6624_s28 + $0x17f0] sm:$0xff] }
 0x1d6   : > { %2582 = vmatpush.msra.mxu2 %v701_v35  ;;  %2601 = vmatpush.msra.mxu3 %v871_v56  ;;  %v1391_v38 = vld [vmem:[%s6624_s28 + $0x2240] sm:$0xff]  ;;  %v1381_v27 = vld [vmem:[%s6624_s28 + $0x21f0] sm:$0xff] }
 0x1d7   : > { %2543 = vmatpush.msra.mxu0 %v371_v36  ;;  %2562 = vmatpush.msra.mxu1 %v541_v61  ;;  %v1231_v26 = vld [vmem:[%s6624_s28 + $0x1d40] sm:$0xff]  ;;  %v1221_v29 = vld [vmem:[%s6624_s28 + $0x1cf0] sm:$0xff] }
 0x1d8   : > { %2583 = vmatpush.msra.mxu2 %v691_v37  ;;  %2602 = vmatpush.msra.mxu3 %v861_v14  ;;  %v1551_v49 = vld [vmem:[%s6624_s28 + $0x2740] sm:$0xff]  ;;  %v1541_v30 = vld [vmem:[%s6624_s28 + $0x26f0] sm:$0xff] }
 0x1d9   : > { %2544 = vmatpush.msra.mxu0 %v361_v39  ;;  %2563 = vmatpush.msra.mxu1 %v531_v40  ;;  %v1051_v42 = vld [vmem:[%s6624_s28 + $0x17a0] sm:$0xff]  ;;  %v1041_v25 = vld [vmem:[%s6624_s28 + $0x1750] sm:$0xff] }
 0x1da   : > { %2584 = vmatpush.msra.mxu2 %v681_v19  ;;  %2603 = vmatpush.msra.mxu3 %v851_v41  ;;  %v1371_v0 = vld [vmem:[%s6624_s28 + $0x21a0] sm:$0xff]  ;;  %v1361_v47 = vld [vmem:[%s6624_s28 + $0x2150] sm:$0xff] }
 0x1db   : > { %2545 = vmatpush.msra.mxu0 %v351_v43  ;;  %2564 = vmatpush.msra.mxu1 %v521_v44  ;;  %v1211_v53 = vld [vmem:[%s6624_s28 + $0x1ca0] sm:$0xff]  ;;  %v1201_v34 = vld [vmem:[%s6624_s28 + $0x1c50] sm:$0xff] }
 0x1dc   : > { %2585 = vmatpush.msra.mxu2 %v671_v45  ;;  %2604 = vmatpush.msra.mxu3 %v841_v46  ;;  %v1531_v55 = vld [vmem:[%s6624_s28 + $0x26a0] sm:$0xff]  ;;  %v1521_v56 = vld [vmem:[%s6624_s28 + $0x2650] sm:$0xff] }
 0x1dd   : > { %2546 = vmatpush.msra.mxu0 %v341_v50  ;;  %2565 = vmatpush.msra.mxu1 %v511_v51  ;;  %v1031_v33 = vld [vmem:[%s6624_s28 + $0x1700] sm:$0xff]  ;;  %v1021_v36 = vld [vmem:[%s6624_s28 + $0x16b0] sm:$0xff] }
 0x1de   : > { %2586 = vmatpush.msra.mxu2 %v661_v52  ;;  %2605 = vmatpush.msra.mxu3 %v831_v54  ;;  %v1351_v35 = vld [vmem:[%s6624_s28 + $0x2100] sm:$0xff]  ;;  %v1341_v37 = vld [vmem:[%s6624_s28 + $0x20b0] sm:$0xff] }
 0x1df   : > { %2547 = vmatpush.msra.mxu0 %v331_v57  ;;  %2566 = vmatpush.msra.mxu1 %v501_v59  ;;  %v1191_v61 = vld [vmem:[%s6624_s28 + $0x1c00] sm:$0xff]  ;;  %v1181_v40 = vld [vmem:[%s6624_s28 + $0x1bb0] sm:$0xff] }
 0x1e0   : > { %2587 = vmatpush.msra.mxu2 %v651_v60  ;;  %2606 = vmatpush.msra.mxu3 %v821_v62  ;;  %v1511_v14 = vld [vmem:[%s6624_s28 + $0x2600] sm:$0xff]  ;;  %v1501_v41 = vld [vmem:[%s6624_s28 + $0x25b0] sm:$0xff] }
 0x1e1   : > { %2548 = vmatpush.msra.mxu0 %v321_v1  ;;  %2567 = vmatpush.msra.mxu1 %v491_v2  ;;  %v1011_v39 = vld [vmem:[%s6624_s28 + $0x1660] sm:$0xff]  ;;  %v1001_v43 = vld [vmem:[%s6624_s28 + $0x1610] sm:$0xff] }
 0x1e2   : > { %2588 = vmatpush.msra.mxu2 %v641_v3  ;;  %2607 = vmatpush.msra.mxu3 %v811_v4  ;;  %v1331_v19 = vld [vmem:[%s6624_s28 + $0x2060] sm:$0xff]  ;;  %v1321_v45 = vld [vmem:[%s6624_s28 + $0x2010] sm:$0xff] }
 0x1e3   : > { %2549 = vmatpush.msra.mxu0 %v311_v6  ;;  %2568 = vmatpush.msra.mxu1 %v481_v7  ;;  %v1171_v44 = vld [vmem:[%s6624_s28 + $0x1b60] sm:$0xff]  ;;  %v1161_v51 = vld [vmem:[%s6624_s28 + $0x1b10] sm:$0xff] }
 0x1e4   : > { %2589 = vmatpush.msra.mxu2 %v631_v28  ;;  %2608 = vmatpush.msra.mxu3 %v801_v18  ;;  %v1491_v46 = vld [vmem:[%s6624_s28 + $0x2560] sm:$0xff]  ;;  %v1481_v54 = vld [vmem:[%s6624_s28 + $0x2510] sm:$0xff] }
 0x1e5   : > { %2550 = vmatpush.msra.mxu0 %v301_v8  ;;  %2569 = vmatpush.msra.mxu1 %v471_v9  ;;  %v991_v50 = vld [vmem:[%s6624_s28 + $0x15c0] sm:$0xff]  ;;  %v981_v57 = vld [vmem:[%s6624_s28 + $0x1570] sm:$0xff] }
 0x1e6   : > { %2590 = vmatpush.msra.mxu2 %v621_v10  ;;  %2609 = vmatpush.msra.mxu3 %v791_v11  ;;  %v1311_v52 = vld [vmem:[%s6624_s28 + $0x1fc0] sm:$0xff]  ;;  %v1301_v60 = vld [vmem:[%s6624_s28 + $0x1f70] sm:$0xff] }
 0x1e7   : > { %2615 = vmatpush.msrb.mxu0 %v1091_v58  ;;  %2570 = vmatpush.msra.mxu1 %v461_v12  ;;  %v1151_v59 = vld [vmem:[%s6624_s28 + $0x1ac0] sm:$0xff]  ;;  %v1141_v2 = vld [vmem:[%s6624_s28 + $0x1a70] sm:$0xff] }
 0x1e8   : > { %2655 = vmatpush.msrb.mxu2 %v1411_v31  ;;  %2610 = vmatpush.msra.mxu3 %v781_v63  ;;  %v1471_v62 = vld [vmem:[%s6624_s28 + $0x24c0] sm:$0xff]  ;;  %v1461_v6 = vld [vmem:[%s6624_s28 + $0x2470] sm:$0xff] }
 0x1e9   : > { %2616 = vmatpush.msrb.mxu0 %v1081_v13  ;;  %2635 = vmatpush.msrb.mxu1 %v1251_v5  ;;  %v971_v1 = vld [vmem:[%s6624_s28 + $0x1520] sm:$0xff]  ;;  %v961_v7 = vld [vmem:[%s6624_s28 + $0x14d0] sm:$0xff] }
 0x1ea   : > { %2656 = vmatpush.msrb.mxu2 %v1401_v15  ;;  %2675 = vmatpush.msrb.mxu3 %v1571_v16  ;;  %v1291_v4 = vld [vmem:[%s6624_s28 + $0x1f20] sm:$0xff]  ;;  %v1281_v18 = vld [vmem:[%s6624_s28 + $0x1ed0] sm:$0xff] }
 0x1eb   : > { %2617 = vmatpush.msrb.mxu0 %v1071_v32  ;;  %2636 = vmatpush.msrb.mxu1 %v1241_v17  ;;  %v1131_v28 = vld [vmem:[%s6624_s28 + $0x1a20] sm:$0xff]  ;;  %v1121_v11 = vld [vmem:[%s6624_s28 + $0x19d0] sm:$0xff] }
 0x1ec   : > { %2657 = vmatpush.msrb.mxu2 %v1391_v38  ;;  %2676 = vmatpush.msrb.mxu3 %v1561_v21  ;;  %v1451_v8 = vld [vmem:[%s6624_s28 + $0x2420] sm:$0xff]  ;;  %v1441_v63 = vld [vmem:[%s6624_s28 + $0x23d0] sm:$0xff] }
 0x1ed   : > { %2618 = vmatpush.msrb.mxu0 %v1061_v23  ;;  %2637 = vmatpush.msrb.mxu1 %v1231_v26  ;;  %v951_v10 = vld [vmem:[%s6624_s28 + $0x1480] sm:$0xff]  ;;  %v941_v13 = vld [vmem:[%s6624_s28 + $0x1430] sm:$0xff]  ;;  %v452_v23 = vld [vmem:[%s6624_s28 + $0x4e8] sm:$0xff] }
 0x1ee   : > { %2658 = vmatpush.msrb.mxu2 %v1381_v27  ;;  %2677 = vmatpush.msrb.mxu3 %v1551_v49  ;;  %v1271_v12 = vld [vmem:[%s6624_s28 + $0x1e80] sm:$0xff]  ;;  %v1261_v16 = vld [vmem:[%s6624_s28 + $0x1e30] sm:$0xff]  ;;  %v772_v26 = vld [vmem:[%s6624_s28 + $0xee8] sm:$0xff] }
 0x1ef   : > { %2619 = vmatpush.msrb.mxu0 %v1051_v42  ;;  %2638 = vmatpush.msrb.mxu1 %v1221_v29  ;;  %v1111_v15 = vld [vmem:[%s6624_s28 + $0x1980] sm:$0xff]  ;;  %v1101_v27 = vld [vmem:[%s6624_s28 + $0x1930] sm:$0xff] }
 0x1f0   : > { %2659 = vmatpush.msrb.mxu2 %v1371_v0  ;;  %2678 = vmatpush.msrb.mxu3 %v1541_v30  ;;  %v1431_v17 = vld [vmem:[%s6624_s28 + $0x2380] sm:$0xff]  ;;  %v7683_v42 = vld [vmem:[%s6769_s6] sm:$0xff]  ;;  %v7688_v30 = vld [vmem:[%s6769_s6 + $0x18] sm:$0xff] }
 0x1f1   : > { %2620 = vmatpush.msrb.mxu0 %v1041_v25  ;;  %2639 = vmatpush.msrb.mxu1 %v1211_v53  ;;  %v7676_v21 = vld [vmem:[%s6769_s6 + $0x10] sm:$0xff]  ;;  %v1421_v29 = vld [vmem:[%s6624_s28 + $0x2330] sm:$0xff]  ;;  %v442_v25 = vld [vmem:[%s6624_s28 + $0x498] sm:$0xff] }
 0x1f2   : > { %2660 = vmatpush.msrb.mxu2 %v1361_v47  ;;  %2679 = vmatpush.msrb.mxu3 %v1531_v55  ;;  %v612_v53 = vld [vmem:[%s6624_s28 + $0x9e8] sm:$0xff]  ;;  %v762_v47 = vld [vmem:[%s6624_s28 + $0xe98] sm:$0xff] }
 0x1f3   : > { %2621 = vmatpush.msrb.mxu0 %v1031_v33  ;;  %2640 = vmatpush.msrb.mxu1 %v1201_v34  ;;  %v932_v55 = vld [vmem:[%s6624_s28 + $0x13e8] sm:$0xff]  ;;  %v7696_v34 = vld [vmem:[%s6769_s6 + $0x8] sm:$0xff] }
 0x1f4   : > { %2661 = vmatpush.msrb.mxu2 %v1351_v35  ;;  %2680 = vmatpush.msrb.mxu3 %v1521_v56  ;;  %v432_v35 = vld [vmem:[%s6624_s28 + $0x448] sm:$0xff]  ;;  %v602_v56 = vld [vmem:[%s6624_s28 + $0x998] sm:$0xff] }
 0x1f5   : > { %2622 = vmatpush.msrb.mxu0 %v1021_v36  ;;  %2641 = vmatpush.msrb.mxu1 %v1191_v61 }
 0x1f6   : > { %2662 = vmatpush.msrb.mxu2 %v1341_v37  ;;  %2681 = vmatpush.msrb.mxu3 %v1511_v14  ;;  %v752_v37 = vld [vmem:[%s6624_s28 + $0xe48] sm:$0xff]  ;;  %v922_v14 = vld [vmem:[%s6624_s28 + $0x1398] sm:$0xff] }
 0x1f7   : > { %2623 = vmatpush.msrb.mxu0 %v1011_v39  ;;  %2642 = vmatpush.msrb.mxu1 %v1181_v40  ;;  %v422_v39 = vld [vmem:[%s6624_s28 + $0x3f8] sm:$0xff] }
 0x1f8   : > { %2663 = vmatpush.msrb.mxu2 %v1331_v19  ;;  %2682 = vmatpush.msrb.mxu3 %v1501_v41  ;;  %v592_v19 = vld [vmem:[%s6624_s28 + $0x948] sm:$0xff]  ;;  %v742_v41 = vld [vmem:[%s6624_s28 + $0xdf8] sm:$0xff] }
 0x1f9   : > { %2624 = vmatpush.msrb.mxu0 %v1001_v43  ;;  %2643 = vmatpush.msrb.mxu1 %v1171_v44  ;;  %v912_v44 = vld [vmem:[%s6624_s28 + $0x1348] sm:$0xff] }
 0x1fa   : > { %2664 = vmatpush.msrb.mxu2 %v1321_v45  ;;  %2683 = vmatpush.msrb.mxu3 %v1491_v46  ;;  %v7710_v46 = vld [vmem:[%s6769_s6 + $0x30] sm:$0xff] }
 0x1fb   : > { %2625 = vmatpush.msrb.mxu0 %v991_v50  ;;  %2644 = vmatpush.msrb.mxu1 %v1161_v51  ;;  %v412_v50 = vld [vmem:[%s6624_s28 + $0x3a8] sm:$0xff]  ;;  %v582_v51 = vld [vmem:[%s6624_s28 + $0x8f8] sm:$0xff] }
 0x1fc   : > { %2665 = vmatpush.msrb.mxu2 %v1311_v52  ;;  %2684 = vmatpush.msrb.mxu3 %v1481_v54  ;;  %v2232_v3 = vpop.f32.mrf.mxu0  ;;  %v732_v52 = vld [vmem:[%s6624_s28 + $0xda8] sm:$0xff]  ;;  %v7717_v54 = vld [vmem:[%s6769_s6 + $0x20] sm:$0xff] }
 0x1fd   : > { %2626 = vmatpush.msrb.mxu0 %v981_v57  ;;  %2645 = vmatpush.msrb.mxu1 %v1151_v59  ;;  %v902_v57 = vld [vmem:[%s6624_s28 + $0x12f8] sm:$0xff]  ;;  %v7722_v59 = vld [vmem:[%s6769_s6 + $0x38] sm:$0xff] }
 0x1fe   : > { %2666 = vmatpush.msrb.mxu2 %v1301_v60  ;;  %2685 = vmatpush.msrb.mxu3 %v1471_v62  ;;  %v402_v60 = vld [vmem:[%s6624_s28 + $0x358] sm:$0xff]  ;;  %v572_v62 = vld [vmem:[%s6624_s28 + $0x8a8] sm:$0xff] }
 0x1ff   : > { %2627 = vmatpush.msrb.mxu0 %v971_v1  ;;  %2646 = vmatpush.msrb.mxu1 %v1141_v2  ;;  %v2252_v9 = vpop.f32.mrf.mxu1  ;;  %v722_v1 = vld [vmem:[%s6624_s28 + $0xd58] sm:$0xff]  ;;  %v892_v2 = vld [vmem:[%s6624_s28 + $0x12a8] sm:$0xff] }
 0x200   : > { %2667 = vmatpush.msrb.mxu2 %v1291_v4  ;;  %2686 = vmatpush.msrb.mxu3 %v1461_v6  ;;  %v2253_v58 = vadd.f32 %v2252_v9, %v2232_v3  ;;  %v2272_v31 = vpop.f32.mrf.mxu2  ;;  %v7730_v3 = vld [vmem:[%s6769_s6 + $0x28] sm:$0xff]  ;;  %v392_v4 = vld [vmem:[%s6624_s28 + $0x308] sm:$0xff] }
 0x201   : > { %2628 = vmatpush.msrb.mxu0 %v961_v7  ;;  %2647 = vmatpush.msrb.mxu1 %v1131_v28  ;;  %v562_v6 = vld [vmem:[%s6624_s28 + $0x858] sm:$0xff]  ;;  %v712_v7 = vld [vmem:[%s6624_s28 + $0xd08] sm:$0xff] }
 0x202   : > { %2668 = vmatpush.msrb.mxu2 %v1281_v18  ;;  %2687 = vmatpush.msrb.mxu3 %v1451_v8  ;;  %v2273_v5 = vadd.f32 %v2272_v31, %v2253_v58  ;;  %v882_v28 = vld [vmem:[%s6624_s28 + $0x1258] sm:$0xff]  ;;  %v552_v8 = vld [vmem:[%s6624_s28 + $0x808] sm:$0xff] }
 0x203   : > { %2629 = vmatpush.msrb.mxu0 %v951_v10  ;;  %2648 = vmatpush.msrb.mxu1 %v1121_v11  ;;  %v2292_v32 = vpop.f32.mrf.mxu3  ;;  %v382_v18 = vld [vmem:[%s6624_s28 + $0x2b8] sm:$0xff]  ;;  %v872_v10 = vld [vmem:[%s6624_s28 + $0x1208] sm:$0xff] }
 0x204   : > { %2669 = vmatpush.msrb.mxu2 %v1271_v12  ;;  %2688 = vmatpush.msrb.mxu3 %v1441_v63  ;;  %v2293_v38 = vadd.f32 %v2292_v32, %v2273_v5  ;;  %v702_v9 = vld [vmem:[%s6624_s28 + $0xcb8] sm:$0xff]  ;;  %v372_v11 = vld [vmem:[%s6624_s28 + $0x268] sm:$0xff] }
 0x205   : > { %2591 = vmatmul.f32.vlgmr.msra.gmra.mxu2 %v7676_v21  ;;  %2630 = vmatpush.msrb.mxu0 %v941_v13  ;;  %v542_v58 = vld [vmem:[%s6624_s28 + $0x7b8] sm:$0xff]  ;;  %v692_v31 = vld [vmem:[%s6624_s28 + $0xc68] sm:$0xff] }
 0x206   : > { %2649 = vmatpush.msrb.mxu1 %v1111_v15  ;;  %2670 = vmatpush.msrb.mxu2 %v1261_v16  ;;  %v2312_v49 = vpop.f32.mrf.mxu0  ;;  %v862_v12 = vld [vmem:[%s6624_s28 + $0x11b8] sm:$0xff]  ;;  %v532_v13 = vld [vmem:[%s6624_s28 + $0x768] sm:$0xff] }
 0x207   : > { %2689 = vmatpush.msrb.mxu3 %v1431_v17  ;;  %2551 = vmatmul.f32.vlgmr.msra.gmra.mxu0 %v7683_v42  ;;  %v2313_v0 = vadd.f32 %v2312_v49, %v2293_v38  ;;  %v362_v63 = vld [vmem:[%s6624_s28 + $0x218] sm:$0xff]  ;;  %v852_v15 = vld [vmem:[%s6624_s28 + $0x1168] sm:$0xff] }
 0x208   : > { %2611 = vmatmul.f32.vlgmr.msra.gmra.mxu3 %v7688_v30  ;;  %2695 = vmatpush.msra.mxu0 %v452_v23  ;;  %v682_v5 = vld [vmem:[%s6624_s28 + $0xc18] sm:$0xff]  ;;  %v352_v16 = vld [vmem:[%s6624_s28 + $0x1c8] sm:$0xff] }
 0x209   : > { %2735 = vmatpush.msra.mxu2 %v772_v26  ;;  %2650 = vmatpush.msrb.mxu1 %v1101_v27  ;;  %v2332_v33 = vpop.f32.mrf.mxu1  ;;  %v522_v32 = vld [vmem:[%s6624_s28 + $0x718] sm:$0xff]  ;;  %v672_v17 = vld [vmem:[%s6624_s28 + $0xbc8] sm:$0xff] }
 0x20a   : > { %2690 = vmatpush.msrb.mxu3 %v1421_v29  ;;  %2571 = vmatmul.f32.vlgmr.msra.gmra.mxu1 %v7696_v34  ;;  %v2333_v36 = vadd.f32 %v2332_v33, %v2313_v0  ;;  %v2352_v61 = vpop.f32.mrf.mxu2  ;;  %v842_v38 = vld [vmem:[%s6624_s28 + $0x1118] sm:$0xff]  ;;  %v512_v26 = vld [vmem:[%s6624_s28 + $0x6c8] sm:$0xff] }
 0x20b   : > { %2696 = vmatpush.msra.mxu0 %v442_v25  ;;  %2715 = vmatpush.msra.mxu1 %v612_v53  ;;  %v342_v23 = vld [vmem:[%s6624_s28 + $0x178] sm:$0xff]  ;;  %v832_v49 = vld [vmem:[%s6624_s28 + $0x10c8] sm:$0xff] }
 0x20c   : > { %2736 = vmatpush.msra.mxu2 %v762_v47  ;;  %2755 = vmatpush.msra.mxu3 %v932_v55  ;;  %v2353_v40 = vadd.f32 %v2352_v61, %v2333_v36  ;;  %v662_v27 = vld [vmem:[%s6624_s28 + $0xb78] sm:$0xff]  ;;  %v332_v29 = vld [vmem:[%s6624_s28 + $0x128] sm:$0xff] }
 0x20d   : > { %2697 = vmatpush.msra.mxu0 %v432_v35  ;;  %2716 = vmatpush.msra.mxu1 %v602_v56  ;;  %v2372_v43 = vpop.f32.mrf.mxu3  ;;  %v502_v0 = vld [vmem:[%s6624_s28 + $0x678] sm:$0xff]  ;;  %v652_v25 = vld [vmem:[%s6624_s28 + $0xb28] sm:$0xff] }
 0x20e   : > { %2737 = vmatpush.msra.mxu2 %v752_v37  ;;  %2756 = vmatpush.msra.mxu3 %v922_v14  ;;  %v7707_v45 = vadd.f32 %v2372_v43, %v2353_v40  ;;  %v822_v53 = vld [vmem:[%s6624_s28 + $0x1078] sm:$0xff]  ;;  %v492_v55 = vld [vmem:[%s6624_s28 + $0x628] sm:$0xff] }
 0x20f   : > { %2671 = vmatmul.f32.vlgmr.msrb.gmra.mxu2 %v7710_v46  ;;  %2698 = vmatpush.msra.mxu0 %v422_v39  ;;  %v322_v47 = vld [vmem:[%s6624_s28 + $0xd8] sm:$0xff]  ;;  %v812_v35 = vld [vmem:[%s6624_s28 + $0x1028] sm:$0xff] }
 0x210   : > { %2717 = vmatpush.msra.mxu1 %v592_v19  ;;  %2738 = vmatpush.msra.mxu2 %v742_v41  ;;  %v642_v33 = vld [vmem:[%s6624_s28 + $0xad8] sm:$0xff]  ;;  %v312_v56 = vld [vmem:[%s6624_s28 + $0x88] sm:$0xff] }
 0x211   : > { %2757 = vmatpush.msra.mxu3 %v912_v44  ;;  %2631 = vmatmul.f32.vlgmr.msrb.gmra.mxu0 %v7717_v54  ;;  %v482_v36 = vld [vmem:[%s6624_s28 + $0x5d8] sm:$0xff]  ;;  %v632_v61 = vld [vmem:[%s6624_s28 + $0xa88] sm:$0xff] }
 0x212   : > { %2691 = vmatmul.f32.vlgmr.msrb.gmra.mxu3 %v7722_v59  ;;  %2699 = vmatpush.msra.mxu0 %v412_v50  ;;  %v802_v37 = vld [vmem:[%s6624_s28 + $0xfd8] sm:$0xff]  ;;  %v472_v39 = vld [vmem:[%s6624_s28 + $0x588] sm:$0xff] }
 0x213   : > { %2718 = vmatpush.msra.mxu1 %v582_v51  ;;  %2739 = vmatpush.msra.mxu2 %v732_v52  ;;  %v302_v14 = vld [vmem:[%s6624_s28 + $0x38] sm:$0xff]  ;;  %v792_v19 = vld [vmem:[%s6624_s28 + $0xf88] sm:$0xff] }
 0x214   : > { %2758 = vmatpush.msra.mxu3 %v902_v57  ;;  %2651 = vmatmul.f32.vlgmr.msrb.gmra.mxu1 %v7730_v3  ;;  %v622_v40 = vld [vmem:[%s6624_s28 + $0xa38] sm:$0xff]  ;;  %v1092_v41 = vld [vmem:[%s6624_s28 + $0x18e8] sm:$0xff] }
 0x215   : > { %2700 = vmatpush.msra.mxu0 %v402_v60  ;;  %2719 = vmatpush.msra.mxu1 %v572_v62  ;;  %v1412_v43 = vld [vmem:[%s6624_s28 + $0x22e8] sm:$0xff]  ;;  %v462_v44 = vld [vmem:[%s6624_s28 + $0x538] sm:$0xff] }
 0x216   : > { %2740 = vmatpush.msra.mxu2 %v722_v1  ;;  %2759 = vmatpush.msra.mxu3 %v892_v2  ;;  %v782_v50 = vld [vmem:[%s6624_s28 + $0xf38] sm:$0xff]  ;;  %v1252_v52 = vld [vmem:[%s6624_s28 + $0x1de8] sm:$0xff] }
 0x217   : > { %2701 = vmatpush.msra.mxu0 %v392_v4  ;;  %2720 = vmatpush.msra.mxu1 %v562_v6  ;;  %v1082_v51 = vld [vmem:[%s6624_s28 + $0x1898] sm:$0xff]  ;;  %v1572_v60 = vld [vmem:[%s6624_s28 + $0x27e8] sm:$0xff] }
 0x218   : > { %2741 = vmatpush.msra.mxu2 %v712_v7  ;;  %2760 = vmatpush.msra.mxu3 %v882_v28  ;;  %v1402_v57 = vld [vmem:[%s6624_s28 + $0x2298] sm:$0xff]  ;;  %v1072_v62 = vld [vmem:[%s6624_s28 + $0x1848] sm:$0xff] }
 0x219   : > { %2702 = vmatpush.msra.mxu0 %v382_v18  ;;  %2721 = vmatpush.msra.mxu1 %v552_v8  ;;  %v1242_v1 = vld [vmem:[%s6624_s28 + $0x1d98] sm:$0xff]  ;;  %v1392_v2 = vld [vmem:[%s6624_s28 + $0x2248] sm:$0xff] }
 0x21a   : > { %2742 = vmatpush.msra.mxu2 %v702_v9  ;;  %2761 = vmatpush.msra.mxu3 %v872_v10  ;;  %v1562_v4 = vld [vmem:[%s6624_s28 + $0x2798] sm:$0xff]  ;;  %v1232_v7 = vld [vmem:[%s6624_s28 + $0x1d48] sm:$0xff] }
 0x21b   : > { %2703 = vmatpush.msra.mxu0 %v372_v11  ;;  %2722 = vmatpush.msra.mxu1 %v542_v58  ;;  %v1062_v6 = vld [vmem:[%s6624_s28 + $0x17f8] sm:$0xff]  ;;  %v1552_v18 = vld [vmem:[%s6624_s28 + $0x2748] sm:$0xff] }
 0x21c   : > { %2743 = vmatpush.msra.mxu2 %v692_v31  ;;  %2762 = vmatpush.msra.mxu3 %v862_v12  ;;  %v1382_v28 = vld [vmem:[%s6624_s28 + $0x21f8] sm:$0xff]  ;;  %v1052_v8 = vld [vmem:[%s6624_s28 + $0x17a8] sm:$0xff] }
 0x21d   : > { %2704 = vmatpush.msra.mxu0 %v362_v63  ;;  %2723 = vmatpush.msra.mxu1 %v532_v13  ;;  %v1222_v9 = vld [vmem:[%s6624_s28 + $0x1cf8] sm:$0xff]  ;;  %v1372_v10 = vld [vmem:[%s6624_s28 + $0x21a8] sm:$0xff] }
 0x21e   : > { %2744 = vmatpush.msra.mxu2 %v682_v5  ;;  %2763 = vmatpush.msra.mxu3 %v852_v15  ;;  %v1542_v11 = vld [vmem:[%s6624_s28 + $0x26f8] sm:$0xff]  ;;  %v1212_v31 = vld [vmem:[%s6624_s28 + $0x1ca8] sm:$0xff] }
 0x21f   : > { %2705 = vmatpush.msra.mxu0 %v352_v16  ;;  %2724 = vmatpush.msra.mxu1 %v522_v32  ;;  %v1042_v58 = vld [vmem:[%s6624_s28 + $0x1758] sm:$0xff]  ;;  %v1532_v63 = vld [vmem:[%s6624_s28 + $0x26a8] sm:$0xff] }
 0x220   : > { %2745 = vmatpush.msra.mxu2 %v672_v17  ;;  %2764 = vmatpush.msra.mxu3 %v842_v38  ;;  %v1362_v12 = vld [vmem:[%s6624_s28 + $0x2158] sm:$0xff]  ;;  %v1032_v13 = vld [vmem:[%s6624_s28 + $0x1708] sm:$0xff] }
 0x221   : > { %2706 = vmatpush.msra.mxu0 %v342_v23  ;;  %2725 = vmatpush.msra.mxu1 %v512_v26  ;;  %v1202_v5 = vld [vmem:[%s6624_s28 + $0x1c58] sm:$0xff]  ;;  %v1352_v15 = vld [vmem:[%s6624_s28 + $0x2108] sm:$0xff] }
 0x222   : > { %2746 = vmatpush.msra.mxu2 %v662_v27  ;;  %2765 = vmatpush.msra.mxu3 %v832_v49  ;;  %v1522_v16 = vld [vmem:[%s6624_s28 + $0x2658] sm:$0xff]  ;;  %v1192_v17 = vld [vmem:[%s6624_s28 + $0x1c08] sm:$0xff] }
 0x223   : > { %2707 = vmatpush.msra.mxu0 %v332_v29  ;;  %2726 = vmatpush.msra.mxu1 %v502_v0  ;;  %v1022_v32 = vld [vmem:[%s6624_s28 + $0x16b8] sm:$0xff]  ;;  %v1512_v23 = vld [vmem:[%s6624_s28 + $0x2608] sm:$0xff] }
 0x224   : > { %2747 = vmatpush.msra.mxu2 %v652_v25  ;;  %2766 = vmatpush.msra.mxu3 %v822_v53  ;;  %v1342_v38 = vld [vmem:[%s6624_s28 + $0x20b8] sm:$0xff]  ;;  %v1012_v26 = vld [vmem:[%s6624_s28 + $0x1668] sm:$0xff] }
 0x225   : > { %2708 = vmatpush.msra.mxu0 %v322_v47  ;;  %2727 = vmatpush.msra.mxu1 %v492_v55  ;;  %v1182_v27 = vld [vmem:[%s6624_s28 + $0x1bb8] sm:$0xff]  ;;  %v1332_v49 = vld [vmem:[%s6624_s28 + $0x2068] sm:$0xff] }
 0x226   : > { %2748 = vmatpush.msra.mxu2 %v642_v33  ;;  %2767 = vmatpush.msra.mxu3 %v812_v35  ;;  %v1502_v29 = vld [vmem:[%s6624_s28 + $0x25b8] sm:$0xff]  ;;  %v1172_v25 = vld [vmem:[%s6624_s28 + $0x1b68] sm:$0xff] }
 0x227   : > { %2709 = vmatpush.msra.mxu0 %v312_v56  ;;  %2728 = vmatpush.msra.mxu1 %v482_v36  ;;  %v1002_v0 = vld [vmem:[%s6624_s28 + $0x1618] sm:$0xff]  ;;  %v1492_v47 = vld [vmem:[%s6624_s28 + $0x2568] sm:$0xff] }
 0x228   : > { %2749 = vmatpush.msra.mxu2 %v632_v61  ;;  %2768 = vmatpush.msra.mxu3 %v802_v37  ;;  %v1322_v53 = vld [vmem:[%s6624_s28 + $0x2018] sm:$0xff]  ;;  %v992_v55 = vld [vmem:[%s6624_s28 + $0x15c8] sm:$0xff] }
 0x229   : > { %2710 = vmatpush.msra.mxu0 %v302_v14  ;;  %2729 = vmatpush.msra.mxu1 %v472_v39  ;;  %v1162_v33 = vld [vmem:[%s6624_s28 + $0x1b18] sm:$0xff]  ;;  %v1312_v35 = vld [vmem:[%s6624_s28 + $0x1fc8] sm:$0xff] }
 0x22a   : > { %2750 = vmatpush.msra.mxu2 %v622_v40  ;;  %2769 = vmatpush.msra.mxu3 %v792_v19  ;;  %v1482_v56 = vld [vmem:[%s6624_s28 + $0x2518] sm:$0xff]  ;;  %v1152_v61 = vld [vmem:[%s6624_s28 + $0x1ac8] sm:$0xff] }
 0x22b   : > { %2775 = vmatpush.msrb.mxu0 %v1092_v41  ;;  %2730 = vmatpush.msra.mxu1 %v462_v44  ;;  %v982_v36 = vld [vmem:[%s6624_s28 + $0x1578] sm:$0xff]  ;;  %v1472_v14 = vld [vmem:[%s6624_s28 + $0x24c8] sm:$0xff] }
 0x22c   : > { %2815 = vmatpush.msrb.mxu2 %v1412_v43  ;;  %2770 = vmatpush.msra.mxu3 %v782_v50  ;;  %v1302_v37 = vld [vmem:[%s6624_s28 + $0x1f78] sm:$0xff]  ;;  %v972_v39 = vld [vmem:[%s6624_s28 + $0x1528] sm:$0xff] }
 0x22d   : > { %2776 = vmatpush.msrb.mxu0 %v1082_v51  ;;  %2795 = vmatpush.msrb.mxu1 %v1252_v52  ;;  %v1142_v40 = vld [vmem:[%s6624_s28 + $0x1a78] sm:$0xff]  ;;  %v1292_v41 = vld [vmem:[%s6624_s28 + $0x1f28] sm:$0xff] }
 0x22e   : > { %2816 = vmatpush.msrb.mxu2 %v1402_v57  ;;  %2835 = vmatpush.msrb.mxu3 %v1572_v60  ;;  %v1462_v43 = vld [vmem:[%s6624_s28 + $0x2478] sm:$0xff]  ;;  %v1132_v50 = vld [vmem:[%s6624_s28 + $0x1a28] sm:$0xff] }
 0x22f   : > { %2777 = vmatpush.msrb.mxu0 %v1072_v62  ;;  %2796 = vmatpush.msrb.mxu1 %v1242_v1  ;;  %v962_v44 = vld [vmem:[%s6624_s28 + $0x14d8] sm:$0xff]  ;;  %v1452_v52 = vld [vmem:[%s6624_s28 + $0x2428] sm:$0xff] }
 0x230   : > { %2817 = vmatpush.msrb.mxu2 %v1392_v2  ;;  %2836 = vmatpush.msrb.mxu3 %v1562_v4  ;;  %v1282_v51 = vld [vmem:[%s6624_s28 + $0x1ed8] sm:$0xff]  ;;  %v952_v60 = vld [vmem:[%s6624_s28 + $0x1488] sm:$0xff] }
 0x231   : > { %2778 = vmatpush.msrb.mxu0 %v1062_v6  ;;  %2797 = vmatpush.msrb.mxu1 %v1232_v7  ;;  %v1122_v62 = vld [vmem:[%s6624_s28 + $0x19d8] sm:$0xff]  ;;  %v1272_v4 = vld [vmem:[%s6624_s28 + $0x1e88] sm:$0xff] }
 0x232   : > { %2818 = vmatpush.msrb.mxu2 %v1382_v28  ;;  %2837 = vmatpush.msrb.mxu3 %v1552_v18  ;;  %v1442_v6 = vld [vmem:[%s6624_s28 + $0x23d8] sm:$0xff]  ;;  %v1112_v18 = vld [vmem:[%s6624_s28 + $0x1988] sm:$0xff] }
 0x233   : > { %2779 = vmatpush.msrb.mxu0 %v1052_v8  ;;  %2798 = vmatpush.msrb.mxu1 %v1222_v9  ;;  %v942_v7 = vld [vmem:[%s6624_s28 + $0x1438] sm:$0xff] }
 0x234   : > { %2819 = vmatpush.msrb.mxu2 %v1372_v10  ;;  %2838 = vmatpush.msrb.mxu3 %v1542_v11  ;;  %v1262_v8 = vld [vmem:[%s6624_s28 + $0x1e38] sm:$0xff]  ;;  %v1432_v10 = vld [vmem:[%s6624_s28 + $0x2388] sm:$0xff] }
 0x235   : > { %2780 = vmatpush.msrb.mxu0 %v1042_v58  ;;  %2799 = vmatpush.msrb.mxu1 %v1212_v31  ;;  %v453_v58 = vld [vmem:[%s6624_s28 + $0x4f0] sm:$0xff] }
 0x236   : > { %2820 = vmatpush.msrb.mxu2 %v1362_v12  ;;  %2839 = vmatpush.msrb.mxu3 %v1532_v63  ;;  %v773_v31 = vld [vmem:[%s6624_s28 + $0xef0] sm:$0xff]  ;;  %v1102_v12 = vld [vmem:[%s6624_s28 + $0x1938] sm:$0xff] }
 0x237   : > { %2781 = vmatpush.msrb.mxu0 %v1032_v13  ;;  %2800 = vmatpush.msrb.mxu1 %v1202_v5  ;;  %v1422_v13 = vld [vmem:[%s6624_s28 + $0x2338] sm:$0xff] }
 0x238   : > { %2821 = vmatpush.msrb.mxu2 %v1352_v15  ;;  %2840 = vmatpush.msrb.mxu3 %v1522_v16  ;;  %v613_v15 = vld [vmem:[%s6624_s28 + $0x9f0] sm:$0xff]  ;;  %v763_v16 = vld [vmem:[%s6624_s28 + $0xea0] sm:$0xff] }
 0x239   : > { %2782 = vmatpush.msrb.mxu0 %v1022_v32  ;;  %2801 = vmatpush.msrb.mxu1 %v1192_v17  ;;  %v933_v32 = vld [vmem:[%s6624_s28 + $0x13f0] sm:$0xff] }
 0x23a   : > { %2822 = vmatpush.msrb.mxu2 %v1342_v38  ;;  %2841 = vmatpush.msrb.mxu3 %v1512_v23  ;;  %v603_v38 = vld [vmem:[%s6624_s28 + $0x9a0] sm:$0xff] }
 0x23b   : > { %2783 = vmatpush.msrb.mxu0 %v1012_v26  ;;  %2802 = vmatpush.msrb.mxu1 %v1182_v27  ;;  %v753_v26 = vld [vmem:[%s6624_s28 + $0xe50] sm:$0xff]  ;;  %v923_v27 = vld [vmem:[%s6624_s28 + $0x13a0] sm:$0xff] }
 0x23c   : > { %2823 = vmatpush.msrb.mxu2 %v1332_v49  ;;  %2842 = vmatpush.msrb.mxu3 %v1502_v29  ;;  %v423_v49 = vld [vmem:[%s6624_s28 + $0x400] sm:$0xff] }
 0x23d   : > { %2784 = vmatpush.msrb.mxu0 %v1002_v0  ;;  %2803 = vmatpush.msrb.mxu1 %v1172_v25  ;;  %v743_v0 = vld [vmem:[%s6624_s28 + $0xe00] sm:$0xff] }
 0x23e   : > { %2824 = vmatpush.msrb.mxu2 %v1322_v53  ;;  %2843 = vmatpush.msrb.mxu3 %v1492_v47  ;;  %v913_v53 = vld [vmem:[%s6624_s28 + $0x1350] sm:$0xff] }
 0x23f   : > { %2785 = vmatpush.msrb.mxu0 %v992_v55  ;;  %2804 = vmatpush.msrb.mxu1 %v1162_v33  ;;  %v413_v55 = vld [vmem:[%s6624_s28 + $0x3b0] sm:$0xff]  ;;  %v583_v33 = vld [vmem:[%s6624_s28 + $0x900] sm:$0xff] }
 0x240   : > { %2825 = vmatpush.msrb.mxu2 %v1312_v35  ;;  %2844 = vmatpush.msrb.mxu3 %v1482_v56  ;;  %v2392_v19 = vpop.f32.mrf.mxu0  ;;  %v733_v35 = vld [vmem:[%s6624_s28 + $0xdb0] sm:$0xff]  ;;  %v903_v56 = vld [vmem:[%s6624_s28 + $0x1300] sm:$0xff] }
 0x241   : > { %2786 = vmatpush.msrb.mxu0 %v982_v36  ;;  %2805 = vmatpush.msrb.mxu1 %v1152_v61  ;;  %v573_v36 = vld [vmem:[%s6624_s28 + $0x8b0] sm:$0xff]  ;;  %v723_v61 = vld [vmem:[%s6624_s28 + $0xd60] sm:$0xff] }
 0x242   : > { %2826 = vmatpush.msrb.mxu2 %v1302_v37  ;;  %2845 = vmatpush.msrb.mxu3 %v1472_v14  ;;  %v893_v37 = vld [vmem:[%s6624_s28 + $0x12b0] sm:$0xff]  ;;  %v563_v14 = vld [vmem:[%s6624_s28 + $0x860] sm:$0xff] }
 0x243   : > { %2787 = vmatpush.msrb.mxu0 %v972_v39  ;;  %2806 = vmatpush.msrb.mxu1 %v1142_v40  ;;  %v2412_v57 = vpop.f32.mrf.mxu1  ;;  %v883_v39 = vld [vmem:[%s6624_s28 + $0x1260] sm:$0xff] }
 0x244   : > { %2827 = vmatpush.msrb.mxu2 %v1292_v41  ;;  %2846 = vmatpush.msrb.mxu3 %v1462_v43  ;;  %v2413_v1 = vadd.f32 %v2412_v57, %v2392_v19  ;;  %v2432_v2 = vpop.f32.mrf.mxu2  ;;  %v383_v40 = vld [vmem:[%s6624_s28 + $0x2c0] sm:$0xff]  ;;  %v553_v19 = vld [vmem:[%s6624_s28 + $0x810] sm:$0xff] }
 0x245   : > { %2788 = vmatpush.msrb.mxu0 %v962_v44  ;;  %2807 = vmatpush.msrb.mxu1 %v1132_v50  ;;  %v703_v41 = vld [vmem:[%s6624_s28 + $0xcc0] sm:$0xff]  ;;  %v373_v43 = vld [vmem:[%s6624_s28 + $0x270] sm:$0xff] }
 0x246   : > { %2828 = vmatpush.msrb.mxu2 %v1282_v51  ;;  %2847 = vmatpush.msrb.mxu3 %v1452_v52  ;;  %v2433_v28 = vadd.f32 %v2432_v2, %v2413_v1  ;;  %v543_v44 = vld [vmem:[%s6624_s28 + $0x7c0] sm:$0xff]  ;;  %v693_v50 = vld [vmem:[%s6624_s28 + $0xc70] sm:$0xff] }
 0x247   : > { %2789 = vmatpush.msrb.mxu0 %v952_v60  ;;  %2808 = vmatpush.msrb.mxu1 %v1122_v62  ;;  %v2452_v9 = vpop.f32.mrf.mxu3  ;;  %v863_v51 = vld [vmem:[%s6624_s28 + $0x11c0] sm:$0xff]  ;;  %v533_v57 = vld [vmem:[%s6624_s28 + $0x770] sm:$0xff] }
 0x248   : > { %2829 = vmatpush.msrb.mxu2 %v1272_v4  ;;  %2848 = vmatpush.msrb.mxu3 %v1442_v6  ;;  %v2453_v11 = vadd.f32 %v2452_v9, %v2433_v28  ;;  %v363_v52 = vld [vmem:[%s6624_s28 + $0x220] sm:$0xff]  ;;  %v853_v62 = vld [vmem:[%s6624_s28 + $0x1170] sm:$0xff] }
 0x249   : > { %2751 = vmatmul.f32.vlgmr.msra.gmra.mxu2 %v7676_v21  ;;  %2790 = vmatpush.msrb.mxu0 %v942_v7  ;;  %v443_v21 = vld [vmem:[%s6624_s28 + $0x4a0] sm:$0xff]  ;;  %v353_v1 = vld [vmem:[%s6624_s28 + $0x1d0] sm:$0xff] }
 0x24a   : > { %2809 = vmatpush.msrb.mxu1 %v1112_v18  ;;  %2830 = vmatpush.msrb.mxu2 %v1262_v8  ;;  %v2472_v63 = vpop.f32.mrf.mxu0  ;;  %v683_v60 = vld [vmem:[%s6624_s28 + $0xc20] sm:$0xff]  ;;  %v673_v4 = vld [vmem:[%s6624_s28 + $0xbd0] sm:$0xff] }
 0x24b   : > { %2849 = vmatpush.msrb.mxu3 %v1432_v10  ;;  %2711 = vmatmul.f32.vlgmr.msra.gmra.mxu0 %v7683_v42  ;;  %v2473_v5 = vadd.f32 %v2472_v63, %v2453_v11  ;;  %v433_v42 = vld [vmem:[%s6624_s28 + $0x450] sm:$0xff]  ;;  %v523_v2 = vld [vmem:[%s6624_s28 + $0x720] sm:$0xff] }
 0x24c   : > { %2771 = vmatmul.f32.vlgmr.msra.gmra.mxu3 %v7688_v30  ;;  %2855 = vmatpush.msra.mxu0 %v453_v58  ;;  %v843_v6 = vld [vmem:[%s6624_s28 + $0x1120] sm:$0xff]  ;;  %v513_v28 = vld [vmem:[%s6624_s28 + $0x6d0] sm:$0xff] }
 0x24d   : > { %2895 = vmatpush.msra.mxu2 %v773_v31  ;;  %2810 = vmatpush.msrb.mxu1 %v1102_v12  ;;  %v2492_v17 = vpop.f32.mrf.mxu1  ;;  %v343_v7 = vld [vmem:[%s6624_s28 + $0x180] sm:$0xff]  ;;  %v833_v8 = vld [vmem:[%s6624_s28 + $0x10d0] sm:$0xff] }
 0x24e   : > { %2850 = vmatpush.msrb.mxu3 %v1422_v13  ;;  %2731 = vmatmul.f32.vlgmr.msra.gmra.mxu1 %v7696_v34  ;;  %v2493_v23 = vadd.f32 %v2492_v17, %v2473_v5  ;;  %v2512_v30 = vpop.f32.mrf.mxu2  ;;  %v593_v34 = vld [vmem:[%s6624_s28 + $0x950] sm:$0xff]  ;;  %v663_v18 = vld [vmem:[%s6624_s28 + $0xb80] sm:$0xff] }
 0x24f   : > { %2856 = vmatpush.msra.mxu0 %v443_v21  ;;  %2875 = vmatpush.msra.mxu1 %v613_v15  ;;  %v333_v9 = vld [vmem:[%s6624_s28 + $0x130] sm:$0xff]  ;;  %v503_v10 = vld [vmem:[%s6624_s28 + $0x680] sm:$0xff] }
 0x250   : > { %2896 = vmatpush.msra.mxu2 %v763_v16  ;;  %2915 = vmatpush.msra.mxu3 %v933_v32  ;;  %v2513_v29 = vadd.f32 %v2512_v30, %v2493_v23  ;;  %v653_v11 = vld [vmem:[%s6624_s28 + $0xb30] sm:$0xff]  ;;  %v823_v58 = vld [vmem:[%s6624_s28 + $0x1080] sm:$0xff] }
 0x251   : > { %2857 = vmatpush.msra.mxu0 %v433_v42  ;;  %2876 = vmatpush.msra.mxu1 %v603_v38  ;;  %v2532_v25 = vpop.f32.mrf.mxu3  ;;  %v323_v31 = vld [vmem:[%s6624_s28 + $0xe0] sm:$0xff]  ;;  %v493_v12 = vld [vmem:[%s6624_s28 + $0x630] sm:$0xff] }
 0x252   : > { %2897 = vmatpush.msra.mxu2 %v753_v26  ;;  %2916 = vmatpush.msra.mxu3 %v923_v27  ;;  %v7857_v47 = vadd.f32 %v2532_v25, %v2513_v29  ;;  %v643_v63 = vld [vmem:[%s6624_s28 + $0xae0] sm:$0xff]  ;;  %v813_v13 = vld [vmem:[%s6624_s28 + $0x1030] sm:$0xff] }
 0x253   : > { %2831 = vmatmul.f32.vlgmr.msrb.gmra.mxu2 %v7710_v46  ;;  %2858 = vmatpush.msra.mxu0 %v423_v49  ;;  %v403_v46 = vld [vmem:[%s6624_s28 + $0x360] sm:$0xff]  ;;  %v313_v5 = vld [vmem:[%s6624_s28 + $0x90] sm:$0xff] }
 0x254   : > { %2877 = vmatpush.msra.mxu1 %v593_v34  ;;  %2898 = vmatpush.msra.mxu2 %v743_v0  ;;  %v483_v21 = vld [vmem:[%s6624_s28 + $0x5e0] sm:$0xff]  ;;  %v633_v15 = vld [vmem:[%s6624_s28 + $0xa90] sm:$0xff] }
 0x255   : > { %2917 = vmatpush.msra.mxu3 %v913_v53  ;;  %2791 = vmatmul.f32.vlgmr.msrb.gmra.mxu0 %v7717_v54  ;;  %v393_v54 = vld [vmem:[%s6624_s28 + $0x310] sm:$0xff]  ;;  %v803_v16 = vld [vmem:[%s6624_s28 + $0xfe0] sm:$0xff] }
 0x256   : > { %2851 = vmatmul.f32.vlgmr.msrb.gmra.mxu3 %v7722_v59  ;;  %2859 = vmatpush.msra.mxu0 %v413_v55  ;;  %v713_v59 = vld [vmem:[%s6624_s28 + $0xd10] sm:$0xff]  ;;  %v303_v32 = vld [vmem:[%s6624_s28 + $0x40] sm:$0xff] }
 0x257   : > { %2878 = vmatpush.msra.mxu1 %v583_v33  ;;  %2899 = vmatpush.msra.mxu2 %v733_v35  ;;  %v473_v17 = vld [vmem:[%s6624_s28 + $0x590] sm:$0xff]  ;;  %v623_v42 = vld [vmem:[%s6624_s28 + $0xa40] sm:$0xff] }
 0x258   : > { %2918 = vmatpush.msra.mxu3 %v903_v56  ;;  %2811 = vmatmul.f32.vlgmr.msrb.gmra.mxu1 %v7730_v3  ;;  %v873_v3 = vld [vmem:[%s6624_s28 + $0x1210] sm:$0xff]  ;;  %v463_v26 = vld [vmem:[%s6624_s28 + $0x540] sm:$0xff] }
 0x259   : > { %2860 = vmatpush.msra.mxu0 %v403_v46  ;;  %2879 = vmatpush.msra.mxu1 %v573_v36  ;;  %v793_v38 = vld [vmem:[%s6624_s28 + $0xf90] sm:$0xff]  ;;  %v783_v27 = vld [vmem:[%s6624_s28 + $0xf40] sm:$0xff] }
 0x25a   : > { %2900 = vmatpush.msra.mxu2 %v723_v61  ;;  %2919 = vmatpush.msra.mxu3 %v893_v37  ;;  %v1093_v23 = vld [vmem:[%s6624_s28 + $0x18f0] sm:$0xff]  ;;  %v1083_v49 = vld [vmem:[%s6624_s28 + $0x18a0] sm:$0xff] }
 0x25b   : > { %2861 = vmatpush.msra.mxu0 %v393_v54  ;;  %2880 = vmatpush.msra.mxu1 %v563_v14  ;;  %v1413_v30 = vld [vmem:[%s6624_s28 + $0x22f0] sm:$0xff]  ;;  %v1403_v34 = vld [vmem:[%s6624_s28 + $0x22a0] sm:$0xff] }
 0x25c   : > { %2901 = vmatpush.msra.mxu2 %v713_v59  ;;  %2920 = vmatpush.msra.mxu3 %v883_v39  ;;  %v1253_v29 = vld [vmem:[%s6624_s28 + $0x1df0] sm:$0xff]  ;;  %v1243_v53 = vld [vmem:[%s6624_s28 + $0x1da0] sm:$0xff] }
 0x25d   : > { %2862 = vmatpush.msra.mxu0 %v383_v40  ;;  %2881 = vmatpush.msra.mxu1 %v553_v19  ;;  %v1573_v0 = vld [vmem:[%s6624_s28 + $0x27f0] sm:$0xff]  ;;  %v1563_v33 = vld [vmem:[%s6624_s28 + $0x27a0] sm:$0xff] }
 0x25e   : > { %2902 = vmatpush.msra.mxu2 %v703_v41  ;;  %2921 = vmatpush.msra.mxu3 %v873_v3  ;;  %v1073_v25 = vld [vmem:[%s6624_s28 + $0x1850] sm:$0xff]  ;;  %v1063_v35 = vld [vmem:[%s6624_s28 + $0x1800] sm:$0xff] }
 0x25f   : > { %2863 = vmatpush.msra.mxu0 %v373_v43  ;;  %2882 = vmatpush.msra.mxu1 %v543_v44  ;;  %v1393_v55 = vld [vmem:[%s6624_s28 + $0x2250] sm:$0xff]  ;;  %v1383_v46 = vld [vmem:[%s6624_s28 + $0x2200] sm:$0xff] }
 0x260   : > { %2903 = vmatpush.msra.mxu2 %v693_v50  ;;  %2922 = vmatpush.msra.mxu3 %v863_v51  ;;  %v1233_v56 = vld [vmem:[%s6624_s28 + $0x1d50] sm:$0xff]  ;;  %v1223_v37 = vld [vmem:[%s6624_s28 + $0x1d00] sm:$0xff] }
 0x261   : > { %2864 = vmatpush.msra.mxu0 %v363_v52  ;;  %2883 = vmatpush.msra.mxu1 %v533_v57  ;;  %v1553_v36 = vld [vmem:[%s6624_s28 + $0x2750] sm:$0xff]  ;;  %v1543_v14 = vld [vmem:[%s6624_s28 + $0x2700] sm:$0xff] }
 0x262   : > { %2904 = vmatpush.msra.mxu2 %v683_v60  ;;  %2923 = vmatpush.msra.mxu3 %v853_v62  ;;  %v1053_v61 = vld [vmem:[%s6624_s28 + $0x17b0] sm:$0xff]  ;;  %v1043_v59 = vld [vmem:[%s6624_s28 + $0x1760] sm:$0xff] }
 0x263   : > { %2865 = vmatpush.msra.mxu0 %v353_v1  ;;  %2884 = vmatpush.msra.mxu1 %v523_v2  ;;  %v1373_v54 = vld [vmem:[%s6624_s28 + $0x21b0] sm:$0xff]  ;;  %v1363_v40 = vld [vmem:[%s6624_s28 + $0x2160] sm:$0xff] }
 0x264   : > { %2905 = vmatpush.msra.mxu2 %v673_v4  ;;  %2924 = vmatpush.msra.mxu3 %v843_v6  ;;  %v1213_v39 = vld [vmem:[%s6624_s28 + $0x1cb0] sm:$0xff]  ;;  %v1203_v3 = vld [vmem:[%s6624_s28 + $0x1c60] sm:$0xff] }
 0x265   : > { %2866 = vmatpush.msra.mxu0 %v343_v7  ;;  %2885 = vmatpush.msra.mxu1 %v513_v28  ;;  %v1533_v19 = vld [vmem:[%s6624_s28 + $0x26b0] sm:$0xff]  ;;  %v1523_v44 = vld [vmem:[%s6624_s28 + $0x2660] sm:$0xff] }
 0x266   : > { %2906 = vmatpush.msra.mxu2 %v663_v18  ;;  %2925 = vmatpush.msra.mxu3 %v833_v8  ;;  %v1033_v41 = vld [vmem:[%s6624_s28 + $0x1710] sm:$0xff]  ;;  %v1023_v50 = vld [vmem:[%s6624_s28 + $0x16c0] sm:$0xff] }
 0x267   : > { %2867 = vmatpush.msra.mxu0 %v333_v9  ;;  %2886 = vmatpush.msra.mxu1 %v503_v10  ;;  %v1353_v43 = vld [vmem:[%s6624_s28 + $0x2110] sm:$0xff]  ;;  %v1343_v52 = vld [vmem:[%s6624_s28 + $0x20c0] sm:$0xff] }
 0x268   : > { %2907 = vmatpush.msra.mxu2 %v653_v11  ;;  %2926 = vmatpush.msra.mxu3 %v823_v58  ;;  %v1193_v51 = vld [vmem:[%s6624_s28 + $0x1c10] sm:$0xff]  ;;  %v1183_v62 = vld [vmem:[%s6624_s28 + $0x1bc0] sm:$0xff] }
 0x269   : > { %2868 = vmatpush.msra.mxu0 %v323_v31  ;;  %2887 = vmatpush.msra.mxu1 %v493_v12  ;;  %v1513_v57 = vld [vmem:[%s6624_s28 + $0x2610] sm:$0xff]  ;;  %v1503_v2 = vld [vmem:[%s6624_s28 + $0x25c0] sm:$0xff] }
 0x26a   : > { %2908 = vmatpush.msra.mxu2 %v643_v63  ;;  %2927 = vmatpush.msra.mxu3 %v813_v13  ;;  %v1013_v60 = vld [vmem:[%s6624_s28 + $0x1670] sm:$0xff]  ;;  %v1003_v4 = vld [vmem:[%s6624_s28 + $0x1620] sm:$0xff] }
 0x26b   : > { %2869 = vmatpush.msra.mxu0 %v313_v5  ;;  %2888 = vmatpush.msra.mxu1 %v483_v21  ;;  %v1333_v1 = vld [vmem:[%s6624_s28 + $0x2070] sm:$0xff]  ;;  %v1323_v7 = vld [vmem:[%s6624_s28 + $0x2020] sm:$0xff] }
 0x26c   : > { %2909 = vmatpush.msra.mxu2 %v633_v15  ;;  %2928 = vmatpush.msra.mxu3 %v803_v16  ;;  %v1173_v6 = vld [vmem:[%s6624_s28 + $0x1b70] sm:$0xff]  ;;  %v1163_v8 = vld [vmem:[%s6624_s28 + $0x1b20] sm:$0xff] }
 0x26d   : > { %2870 = vmatpush.msra.mxu0 %v303_v32  ;;  %2889 = vmatpush.msra.mxu1 %v473_v17  ;;  %v1493_v28 = vld [vmem:[%s6624_s28 + $0x2570] sm:$0xff]  ;;  %v1483_v10 = vld [vmem:[%s6624_s28 + $0x2520] sm:$0xff] }
 0x26e   : > { %2910 = vmatpush.msra.mxu2 %v623_v42  ;;  %2929 = vmatpush.msra.mxu3 %v793_v38  ;;  %v993_v18 = vld [vmem:[%s6624_s28 + $0x15d0] sm:$0xff]  ;;  %v983_v11 = vld [vmem:[%s6624_s28 + $0x1580] sm:$0xff] }
 0x26f   : > { %2935 = vmatpush.msrb.mxu0 %v1093_v23  ;;  %2890 = vmatpush.msra.mxu1 %v463_v26  ;;  %v1313_v9 = vld [vmem:[%s6624_s28 + $0x1fd0] sm:$0xff]  ;;  %v1303_v31 = vld [vmem:[%s6624_s28 + $0x1f80] sm:$0xff] }
 0x270   : > { %2975 = vmatpush.msrb.mxu2 %v1413_v30  ;;  %2930 = vmatpush.msra.mxu3 %v783_v27  ;;  %v1153_v58 = vld [vmem:[%s6624_s28 + $0x1ad0] sm:$0xff]  ;;  %v1143_v13 = vld [vmem:[%s6624_s28 + $0x1a80] sm:$0xff] }
 0x271   : > { %2936 = vmatpush.msrb.mxu0 %v1083_v49  ;;  %2955 = vmatpush.msrb.mxu1 %v1253_v29  ;;  %v1473_v12 = vld [vmem:[%s6624_s28 + $0x24d0] sm:$0xff]  ;;  %v1463_v15 = vld [vmem:[%s6624_s28 + $0x2480] sm:$0xff] }
 0x272   : > { %2976 = vmatpush.msrb.mxu2 %v1403_v34  ;;  %2995 = vmatpush.msrb.mxu3 %v1573_v0  ;;  %v973_v63 = vld [vmem:[%s6624_s28 + $0x1530] sm:$0xff]  ;;  %v963_v16 = vld [vmem:[%s6624_s28 + $0x14e0] sm:$0xff] }
 0x273   : > { %2937 = vmatpush.msrb.mxu0 %v1073_v25  ;;  %2956 = vmatpush.msrb.mxu1 %v1243_v53  ;;  %v1293_v21 = vld [vmem:[%s6624_s28 + $0x1f30] sm:$0xff]  ;;  %v1283_v17 = vld [vmem:[%s6624_s28 + $0x1ee0] sm:$0xff] }
 0x274   : > { %2977 = vmatpush.msrb.mxu2 %v1393_v55  ;;  %2996 = vmatpush.msrb.mxu3 %v1563_v33  ;;  %v1133_v32 = vld [vmem:[%s6624_s28 + $0x1a30] sm:$0xff]  ;;  %v1123_v30 = vld [vmem:[%s6624_s28 + $0x19e0] sm:$0xff] }
 0x275   : > { %2938 = vmatpush.msrb.mxu0 %v1063_v35  ;;  %2957 = vmatpush.msrb.mxu1 %v1233_v56  ;;  %v1453_v42 = vld [vmem:[%s6624_s28 + $0x2430] sm:$0xff]  ;;  %v1443_v29 = vld [vmem:[%s6624_s28 + $0x23e0] sm:$0xff] }
 0x276   : > { %2978 = vmatpush.msrb.mxu2 %v1383_v46  ;;  %2997 = vmatpush.msrb.mxu3 %v1553_v36  ;;  %v953_v23 = vld [vmem:[%s6624_s28 + $0x1490] sm:$0xff]  ;;  %v943_v34 = vld [vmem:[%s6624_s28 + $0x1440] sm:$0xff]  ;;  %v454_v46 = vld [vmem:[%s6624_s28 + $0x4f8] sm:$0xff] }
 0x277   : > { %2939 = vmatpush.msrb.mxu0 %v1053_v61  ;;  %2958 = vmatpush.msrb.mxu1 %v1223_v37  ;;  %v1273_v49 = vld [vmem:[%s6624_s28 + $0x1e90] sm:$0xff]  ;;  %v1263_v53 = vld [vmem:[%s6624_s28 + $0x1e40] sm:$0xff]  ;;  %v774_v36 = vld [vmem:[%s6624_s28 + $0xef8] sm:$0xff] }
 0x278   : > { %2979 = vmatpush.msrb.mxu2 %v1373_v54  ;;  %2998 = vmatpush.msrb.mxu3 %v1543_v14  ;;  %v1113_v25 = vld [vmem:[%s6624_s28 + $0x1990] sm:$0xff]  ;;  %v7976_v56 = vld [vmem:[%s6769_s6 + $0x10] sm:$0xff] }
 0x279   : > { %2940 = vmatpush.msrb.mxu0 %v1043_v59  ;;  %2959 = vmatpush.msrb.mxu1 %v1213_v39  ;;  %v1433_v33 = vld [vmem:[%s6624_s28 + $0x2390] sm:$0xff]  ;;  %v1103_v61 = vld [vmem:[%s6624_s28 + $0x1940] sm:$0xff]  ;;  %v7988_v39 = vld [vmem:[%s6769_s6 + $0x18] sm:$0xff] }
 0x27a   : > { %2980 = vmatpush.msrb.mxu2 %v1363_v40  ;;  %2999 = vmatpush.msrb.mxu3 %v1533_v19  ;;  %v7983_v54 = vld [vmem:[%s6769_s6] sm:$0xff]  ;;  %v1423_v14 = vld [vmem:[%s6624_s28 + $0x2340] sm:$0xff]  ;;  %v444_v40 = vld [vmem:[%s6624_s28 + $0x4a8] sm:$0xff] }
 0x27b   : > { %2941 = vmatpush.msrb.mxu0 %v1033_v41  ;;  %2960 = vmatpush.msrb.mxu1 %v1203_v3  ;;  %v614_v19 = vld [vmem:[%s6624_s28 + $0x9f8] sm:$0xff]  ;;  %v764_v41 = vld [vmem:[%s6624_s28 + $0xea8] sm:$0xff] }
 0x27c   : > { %2981 = vmatpush.msrb.mxu2 %v1353_v43  ;;  %3000 = vmatpush.msrb.mxu3 %v1523_v44  ;;  %v934_v3 = vld [vmem:[%s6624_s28 + $0x13f8] sm:$0xff] }
 0x27d   : > { %2942 = vmatpush.msrb.mxu0 %v1023_v50  ;;  %2961 = vmatpush.msrb.mxu1 %v1193_v51  ;;  %v7996_v44 = vld [vmem:[%s6769_s6 + $0x8] sm:$0xff]  ;;  %v604_v51 = vld [vmem:[%s6624_s28 + $0x9a8] sm:$0xff] }
 0x27e   : > { %2982 = vmatpush.msrb.mxu2 %v1343_v52  ;;  %3001 = vmatpush.msrb.mxu3 %v1513_v57  ;;  %v434_v50 = vld [vmem:[%s6624_s28 + $0x458] sm:$0xff] }
 0x27f   : > { %2943 = vmatpush.msrb.mxu0 %v1013_v60  ;;  %2962 = vmatpush.msrb.mxu1 %v1183_v62  ;;  %v754_v60 = vld [vmem:[%s6624_s28 + $0xe58] sm:$0xff]  ;;  %v924_v62 = vld [vmem:[%s6624_s28 + $0x13a8] sm:$0xff] }
 0x280   : > { %2983 = vmatpush.msrb.mxu2 %v1333_v1  ;;  %3002 = vmatpush.msrb.mxu3 %v1503_v2  ;;  %v424_v1 = vld [vmem:[%s6624_s28 + $0x408] sm:$0xff] }
 0x281   : > { %2944 = vmatpush.msrb.mxu0 %v1003_v4  ;;  %2963 = vmatpush.msrb.mxu1 %v1173_v6  ;;  %v594_v4 = vld [vmem:[%s6624_s28 + $0x958] sm:$0xff]  ;;  %v744_v6 = vld [vmem:[%s6624_s28 + $0xe08] sm:$0xff] }
 0x282   : > { %2984 = vmatpush.msrb.mxu2 %v1323_v7  ;;  %3003 = vmatpush.msrb.mxu3 %v1493_v28  ;;  %v914_v28 = vld [vmem:[%s6624_s28 + $0x1358] sm:$0xff] }
 0x283   : > { %2945 = vmatpush.msrb.mxu0 %v993_v18  ;;  %2964 = vmatpush.msrb.mxu1 %v1163_v8  ;;  %v8010_v8 = vld [vmem:[%s6769_s6 + $0x30] sm:$0xff] }
 0x284   : > { %2985 = vmatpush.msrb.mxu2 %v1313_v9  ;;  %3004 = vmatpush.msrb.mxu3 %v1483_v10  ;;  %v2552_v5 = vpop.f32.mrf.mxu0  ;;  %v414_v9 = vld [vmem:[%s6624_s28 + $0x3b8] sm:$0xff]  ;;  %v584_v10 = vld [vmem:[%s6624_s28 + $0x908] sm:$0xff] }
 0x285   : > { %2946 = vmatpush.msrb.mxu0 %v983_v11  ;;  %2965 = vmatpush.msrb.mxu1 %v1153_v58  ;;  %v734_v11 = vld [vmem:[%s6624_s28 + $0xdb8] sm:$0xff]  ;;  %v8017_v58 = vld [vmem:[%s6769_s6 + $0x20] sm:$0xff] }
 0x286   : > { %2986 = vmatpush.msrb.mxu2 %v1303_v31  ;;  %3005 = vmatpush.msrb.mxu3 %v1473_v12  ;;  %v904_v31 = vld [vmem:[%s6624_s28 + $0x1308] sm:$0xff] }
 0x287   : > { %2947 = vmatpush.msrb.mxu0 %v973_v63  ;;  %2966 = vmatpush.msrb.mxu1 %v1143_v13  ;;  %v2572_v38 = vpop.f32.mrf.mxu1  ;;  %v8022_v12 = vld [vmem:[%s6769_s6 + $0x38] sm:$0xff]  ;;  %v574_v13 = vld [vmem:[%s6624_s28 + $0x8b8] sm:$0xff] }
 0x288   : > { %2987 = vmatpush.msrb.mxu2 %v1293_v21  ;;  %3006 = vmatpush.msrb.mxu3 %v1463_v15  ;;  %v2573_v26 = vadd.f32 %v2572_v38, %v2552_v5  ;;  %v2592_v27 = vpop.f32.mrf.mxu2  ;;  %v404_v63 = vld [vmem:[%s6624_s28 + $0x368] sm:$0xff]  ;;  %v894_v21 = vld [vmem:[%s6624_s28 + $0x12b8] sm:$0xff] }
 0x289   : > { %2948 = vmatpush.msrb.mxu0 %v963_v16  ;;  %2967 = vmatpush.msrb.mxu1 %v1133_v32  ;;  %v724_v5 = vld [vmem:[%s6624_s28 + $0xd68] sm:$0xff]  ;;  %v8030_v15 = vld [vmem:[%s6769_s6 + $0x28] sm:$0xff] }
 0x28a   : > { %2988 = vmatpush.msrb.mxu2 %v1283_v17  ;;  %3007 = vmatpush.msrb.mxu3 %v1453_v42  ;;  %v2593_v0 = vadd.f32 %v2592_v27, %v2573_v26  ;;  %v394_v16 = vld [vmem:[%s6624_s28 + $0x318] sm:$0xff]  ;;  %v564_v32 = vld [vmem:[%s6624_s28 + $0x868] sm:$0xff] }
 0x28b   : > { %2949 = vmatpush.msrb.mxu0 %v953_v23  ;;  %2968 = vmatpush.msrb.mxu1 %v1123_v30  ;;  %v2612_v55 = vpop.f32.mrf.mxu3  ;;  %v714_v17 = vld [vmem:[%s6624_s28 + $0xd18] sm:$0xff]  ;;  %v884_v42 = vld [vmem:[%s6624_s28 + $0x1268] sm:$0xff] }
 0x28c   : > { %2989 = vmatpush.msrb.mxu2 %v1273_v49  ;;  %3008 = vmatpush.msrb.mxu3 %v1443_v29  ;;  %v2613_v35 = vadd.f32 %v2612_v55, %v2593_v0  ;;  %v384_v38 = vld [vmem:[%s6624_s28 + $0x2c8] sm:$0xff]  ;;  %v554_v23 = vld [vmem:[%s6624_s28 + $0x818] sm:$0xff] }
 0x28d   : > { %2911 = vmatmul.f32.vlgmr.msra.gmra.mxu2 %v7976_v56  ;;  %2950 = vmatpush.msrb.mxu0 %v943_v34  ;;  %v704_v30 = vld [vmem:[%s6624_s28 + $0xcc8] sm:$0xff]  ;;  %v874_v26 = vld [vmem:[%s6624_s28 + $0x1218] sm:$0xff] }
 0x28e   : > { %2969 = vmatpush.msrb.mxu1 %v1113_v25  ;;  %2990 = vmatpush.msrb.mxu2 %v1263_v53  ;;  %v2632_v37 = vpop.f32.mrf.mxu0  ;;  %v374_v27 = vld [vmem:[%s6624_s28 + $0x278] sm:$0xff]  ;;  %v544_v49 = vld [vmem:[%s6624_s28 + $0x7c8] sm:$0xff] }
 0x28f   : > { %3009 = vmatpush.msrb.mxu3 %v1433_v33  ;;  %2871 = vmatmul.f32.vlgmr.msra.gmra.mxu0 %v7983_v54  ;;  %v2633_v59 = vadd.f32 %v2632_v37, %v2613_v35  ;;  %v694_v29 = vld [vmem:[%s6624_s28 + $0xc78] sm:$0xff]  ;;  %v864_v34 = vld [vmem:[%s6624_s28 + $0x11c8] sm:$0xff] }
 0x290   : > { %2931 = vmatmul.f32.vlgmr.msra.gmra.mxu3 %v7988_v39  ;;  %3015 = vmatpush.msra.mxu0 %v454_v46  ;;  %v364_v0 = vld [vmem:[%s6624_s28 + $0x228] sm:$0xff]  ;;  %v534_v25 = vld [vmem:[%s6624_s28 + $0x778] sm:$0xff] }
 0x291   : > { %3055 = vmatpush.msra.mxu2 %v774_v36  ;;  %2970 = vmatpush.msrb.mxu1 %v1103_v61  ;;  %v2652_v43 = vpop.f32.mrf.mxu1  ;;  %v684_v53 = vld [vmem:[%s6624_s28 + $0xc28] sm:$0xff]  ;;  %v854_v55 = vld [vmem:[%s6624_s28 + $0x1178] sm:$0xff] }
 0x292   : > { %3010 = vmatpush.msrb.mxu3 %v1423_v14  ;;  %2891 = vmatmul.f32.vlgmr.msra.gmra.mxu1 %v7996_v44  ;;  %v2653_v52 = vadd.f32 %v2652_v43, %v2633_v59  ;;  %v2672_v57 = vpop.f32.mrf.mxu2  ;;  %v354_v33 = vld [vmem:[%s6624_s28 + $0x1d8] sm:$0xff]  ;;  %v524_v35 = vld [vmem:[%s6624_s28 + $0x728] sm:$0xff] }
 0x293   : > { %3016 = vmatpush.msra.mxu0 %v444_v40  ;;  %3035 = vmatpush.msra.mxu1 %v614_v19  ;;  %v674_v46 = vld [vmem:[%s6624_s28 + $0xbd8] sm:$0xff]  ;;  %v844_v36 = vld [vmem:[%s6624_s28 + $0x1128] sm:$0xff] }
 0x294   : > { %3056 = vmatpush.msra.mxu2 %v764_v41  ;;  %3075 = vmatpush.msra.mxu3 %v934_v3  ;;  %v2673_v2 = vadd.f32 %v2672_v57, %v2653_v52  ;;  %v344_v61 = vld [vmem:[%s6624_s28 + $0x188] sm:$0xff]  ;;  %v514_v37 = vld [vmem:[%s6624_s28 + $0x6d8] sm:$0xff] }
 0x295   : > { %3017 = vmatpush.msra.mxu0 %v434_v50  ;;  %3036 = vmatpush.msra.mxu1 %v604_v51  ;;  %v2692_v7 = vpop.f32.mrf.mxu3  ;;  %v664_v14 = vld [vmem:[%s6624_s28 + $0xb88] sm:$0xff]  ;;  %v834_v59 = vld [vmem:[%s6624_s28 + $0x10d8] sm:$0xff] }
 0x296   : > { %3057 = vmatpush.msra.mxu2 %v754_v60  ;;  %3076 = vmatpush.msra.mxu3 %v924_v62  ;;  %v8007_v18 = vadd.f32 %v2692_v7, %v2673_v2  ;;  %v334_v40 = vld [vmem:[%s6624_s28 + $0x138] sm:$0xff]  ;;  %v504_v19 = vld [vmem:[%s6624_s28 + $0x688] sm:$0xff] }
 0x297   : > { %2991 = vmatmul.f32.vlgmr.msrb.gmra.mxu2 %v8010_v8  ;;  %3018 = vmatpush.msra.mxu0 %v424_v1  ;;  %v654_v41 = vld [vmem:[%s6624_s28 + $0xb38] sm:$0xff]  ;;  %v824_v3 = vld [vmem:[%s6624_s28 + $0x1088] sm:$0xff] }
 0x298   : > { %3037 = vmatpush.msra.mxu1 %v594_v4  ;;  %3058 = vmatpush.msra.mxu2 %v744_v6  ;;  %v324_v43 = vld [vmem:[%s6624_s28 + $0xe8] sm:$0xff]  ;;  %v494_v50 = vld [vmem:[%s6624_s28 + $0x638] sm:$0xff] }
 0x299   : > { %3077 = vmatpush.msra.mxu3 %v914_v28  ;;  %2951 = vmatmul.f32.vlgmr.msrb.gmra.mxu0 %v8017_v58  ;;  %v644_v51 = vld [vmem:[%s6624_s28 + $0xae8] sm:$0xff]  ;;  %v814_v52 = vld [vmem:[%s6624_s28 + $0x1038] sm:$0xff] }
 0x29a   : > { %3011 = vmatmul.f32.vlgmr.msrb.gmra.mxu3 %v8022_v12  ;;  %3019 = vmatpush.msra.mxu0 %v414_v9  ;;  %v314_v57 = vld [vmem:[%s6624_s28 + $0x98] sm:$0xff]  ;;  %v484_v60 = vld [vmem:[%s6624_s28 + $0x5e8] sm:$0xff] }
 0x29b   : > { %3038 = vmatpush.msra.mxu1 %v584_v10  ;;  %3059 = vmatpush.msra.mxu2 %v734_v11  ;;  %v634_v62 = vld [vmem:[%s6624_s28 + $0xa98] sm:$0xff]  ;;  %v804_v1 = vld [vmem:[%s6624_s28 + $0xfe8] sm:$0xff] }
 0x29c   : > { %3078 = vmatpush.msra.mxu3 %v904_v31  ;;  %2971 = vmatmul.f32.vlgmr.msrb.gmra.mxu1 %v8030_v15  ;;  %v304_v2 = vld [vmem:[%s6624_s28 + $0x48] sm:$0xff]  ;;  %v474_v4 = vld [vmem:[%s6624_s28 + $0x598] sm:$0xff] }
 0x29d   : > { %3020 = vmatpush.msra.mxu0 %v404_v63  ;;  %3039 = vmatpush.msra.mxu1 %v574_v13  ;;  %v624_v6 = vld [vmem:[%s6624_s28 + $0xa48] sm:$0xff]  ;;  %v794_v7 = vld [vmem:[%s6624_s28 + $0xf98] sm:$0xff] }
 0x29e   : > { %3060 = vmatpush.msra.mxu2 %v724_v5  ;;  %3079 = vmatpush.msra.mxu3 %v894_v21  ;;  %v1094_v28 = vld [vmem:[%s6624_s28 + $0x18f8] sm:$0xff]  ;;  %v464_v10 = vld [vmem:[%s6624_s28 + $0x548] sm:$0xff] }
 0x29f   : > { %3021 = vmatpush.msra.mxu0 %v394_v16  ;;  %3040 = vmatpush.msra.mxu1 %v564_v32  ;;  %v1414_v9 = vld [vmem:[%s6624_s28 + $0x22f8] sm:$0xff]  ;;  %v784_v11 = vld [vmem:[%s6624_s28 + $0xf48] sm:$0xff] }
 0x2a0   : > { %3061 = vmatpush.msra.mxu2 %v714_v17  ;;  %3080 = vmatpush.msra.mxu3 %v884_v42  ;;  %v1084_v31 = vld [vmem:[%s6624_s28 + $0x18a8] sm:$0xff]  ;;  %v1254_v63 = vld [vmem:[%s6624_s28 + $0x1df8] sm:$0xff] }
 0x2a1   : > { %3022 = vmatpush.msra.mxu0 %v384_v38  ;;  %3041 = vmatpush.msra.mxu1 %v554_v23  ;;  %v1404_v13 = vld [vmem:[%s6624_s28 + $0x22a8] sm:$0xff]  ;;  %v1574_v5 = vld [vmem:[%s6624_s28 + $0x27f8] sm:$0xff] }
 0x2a2   : > { %3062 = vmatpush.msra.mxu2 %v704_v30  ;;  %3081 = vmatpush.msra.mxu3 %v874_v26  ;;  %v1074_v21 = vld [vmem:[%s6624_s28 + $0x1858] sm:$0xff]  ;;  %v1244_v16 = vld [vmem:[%s6624_s28 + $0x1da8] sm:$0xff] }
 0x2a3   : > { %3023 = vmatpush.msra.mxu0 %v374_v27  ;;  %3042 = vmatpush.msra.mxu1 %v544_v49  ;;  %v1394_v32 = vld [vmem:[%s6624_s28 + $0x2258] sm:$0xff]  ;;  %v1564_v17 = vld [vmem:[%s6624_s28 + $0x27a8] sm:$0xff] }
 0x2a4   : > { %3063 = vmatpush.msra.mxu2 %v694_v29  ;;  %3082 = vmatpush.msra.mxu3 %v864_v34  ;;  %v1064_v42 = vld [vmem:[%s6624_s28 + $0x1808] sm:$0xff]  ;;  %v1234_v38 = vld [vmem:[%s6624_s28 + $0x1d58] sm:$0xff] }
 0x2a5   : > { %3024 = vmatpush.msra.mxu0 %v364_v0  ;;  %3043 = vmatpush.msra.mxu1 %v534_v25  ;;  %v1384_v23 = vld [vmem:[%s6624_s28 + $0x2208] sm:$0xff]  ;;  %v1554_v30 = vld [vmem:[%s6624_s28 + $0x2758] sm:$0xff] }
 0x2a6   : > { %3064 = vmatpush.msra.mxu2 %v684_v53  ;;  %3083 = vmatpush.msra.mxu3 %v854_v55  ;;  %v1054_v26 = vld [vmem:[%s6624_s28 + $0x17b8] sm:$0xff]  ;;  %v1224_v27 = vld [vmem:[%s6624_s28 + $0x1d08] sm:$0xff] }
 0x2a7   : > { %3025 = vmatpush.msra.mxu0 %v354_v33  ;;  %3044 = vmatpush.msra.mxu1 %v524_v35  ;;  %v1374_v49 = vld [vmem:[%s6624_s28 + $0x21b8] sm:$0xff]  ;;  %v1544_v29 = vld [vmem:[%s6624_s28 + $0x2708] sm:$0xff] }
 0x2a8   : > { %3065 = vmatpush.msra.mxu2 %v674_v46  ;;  %3084 = vmatpush.msra.mxu3 %v844_v36  ;;  %v1044_v34 = vld [vmem:[%s6624_s28 + $0x1768] sm:$0xff]  ;;  %v1214_v0 = vld [vmem:[%s6624_s28 + $0x1cb8] sm:$0xff] }
 0x2a9   : > { %3026 = vmatpush.msra.mxu0 %v344_v61  ;;  %3045 = vmatpush.msra.mxu1 %v514_v37  ;;  %v1364_v25 = vld [vmem:[%s6624_s28 + $0x2168] sm:$0xff]  ;;  %v1534_v53 = vld [vmem:[%s6624_s28 + $0x26b8] sm:$0xff] }
 0x2aa   : > { %3066 = vmatpush.msra.mxu2 %v664_v14  ;;  %3085 = vmatpush.msra.mxu3 %v834_v59  ;;  %v1034_v55 = vld [vmem:[%s6624_s28 + $0x1718] sm:$0xff]  ;;  %v1204_v33 = vld [vmem:[%s6624_s28 + $0x1c68] sm:$0xff] }
 0x2ab   : > { %3027 = vmatpush.msra.mxu0 %v334_v40  ;;  %3046 = vmatpush.msra.mxu1 %v504_v19  ;;  %v1354_v35 = vld [vmem:[%s6624_s28 + $0x2118] sm:$0xff]  ;;  %v1524_v46 = vld [vmem:[%s6624_s28 + $0x2668] sm:$0xff] }
 0x2ac   : > { %3067 = vmatpush.msra.mxu2 %v654_v41  ;;  %3086 = vmatpush.msra.mxu3 %v824_v3  ;;  %v1024_v36 = vld [vmem:[%s6624_s28 + $0x16c8] sm:$0xff]  ;;  %v1194_v61 = vld [vmem:[%s6624_s28 + $0x1c18] sm:$0xff] }
 0x2ad   : > { %3028 = vmatpush.msra.mxu0 %v324_v43  ;;  %3047 = vmatpush.msra.mxu1 %v494_v50  ;;  %v1344_v37 = vld [vmem:[%s6624_s28 + $0x20c8] sm:$0xff]  ;;  %v1514_v14 = vld [vmem:[%s6624_s28 + $0x2618] sm:$0xff] }
 0x2ae   : > { %3068 = vmatpush.msra.mxu2 %v644_v51  ;;  %3087 = vmatpush.msra.mxu3 %v814_v52  ;;  %v1014_v59 = vld [vmem:[%s6624_s28 + $0x1678] sm:$0xff]  ;;  %v1184_v40 = vld [vmem:[%s6624_s28 + $0x1bc8] sm:$0xff] }
 0x2af   : > { %3029 = vmatpush.msra.mxu0 %v314_v57  ;;  %3048 = vmatpush.msra.mxu1 %v484_v60  ;;  %v1334_v19 = vld [vmem:[%s6624_s28 + $0x2078] sm:$0xff]  ;;  %v1504_v41 = vld [vmem:[%s6624_s28 + $0x25c8] sm:$0xff] }
 0x2b0   : > { %3069 = vmatpush.msra.mxu2 %v634_v62  ;;  %3088 = vmatpush.msra.mxu3 %v804_v1  ;;  %v1004_v3 = vld [vmem:[%s6624_s28 + $0x1628] sm:$0xff]  ;;  %v1174_v43 = vld [vmem:[%s6624_s28 + $0x1b78] sm:$0xff] }
 0x2b1   : > { %3030 = vmatpush.msra.mxu0 %v304_v2  ;;  %3049 = vmatpush.msra.mxu1 %v474_v4  ;;  %v1324_v50 = vld [vmem:[%s6624_s28 + $0x2028] sm:$0xff]  ;;  %v1494_v51 = vld [vmem:[%s6624_s28 + $0x2578] sm:$0xff] }
 0x2b2   : > { %3070 = vmatpush.msra.mxu2 %v624_v6  ;;  %3089 = vmatpush.msra.mxu3 %v794_v7  ;;  %v994_v52 = vld [vmem:[%s6624_s28 + $0x15d8] sm:$0xff]  ;;  %v1164_v57 = vld [vmem:[%s6624_s28 + $0x1b28] sm:$0xff] }
 0x2b3   : > { %3095 = vmatpush.msrb.mxu0 %v1094_v28  ;;  %3050 = vmatpush.msra.mxu1 %v464_v10  ;;  %v1314_v60 = vld [vmem:[%s6624_s28 + $0x1fd8] sm:$0xff]  ;;  %v1484_v62 = vld [vmem:[%s6624_s28 + $0x2528] sm:$0xff] }
 0x2b4   : > { %3135 = vmatpush.msrb.mxu2 %v1414_v9  ;;  %3090 = vmatpush.msra.mxu3 %v784_v11  ;;  %v984_v1 = vld [vmem:[%s6624_s28 + $0x1588] sm:$0xff]  ;;  %v1154_v2 = vld [vmem:[%s6624_s28 + $0x1ad8] sm:$0xff] }
 0x2b5   : > { %3096 = vmatpush.msrb.mxu0 %v1084_v31  ;;  %3115 = vmatpush.msrb.mxu1 %v1254_v63  ;;  %v1304_v4 = vld [vmem:[%s6624_s28 + $0x1f88] sm:$0xff]  ;;  %v1474_v6 = vld [vmem:[%s6624_s28 + $0x24d8] sm:$0xff] }
 0x2b6   : > { %3136 = vmatpush.msrb.mxu2 %v1404_v13  ;;  %3155 = vmatpush.msrb.mxu3 %v1574_v5  ;;  %v974_v28 = vld [vmem:[%s6624_s28 + $0x1538] sm:$0xff]  ;;  %v1144_v9 = vld [vmem:[%s6624_s28 + $0x1a88] sm:$0xff] }
 0x2b7   : > { %3097 = vmatpush.msrb.mxu0 %v1074_v21  ;;  %3116 = vmatpush.msrb.mxu1 %v1244_v16  ;;  %v1294_v10 = vld [vmem:[%s6624_s28 + $0x1f38] sm:$0xff]  ;;  %v1464_v11 = vld [vmem:[%s6624_s28 + $0x2488] sm:$0xff] }
 0x2b8   : > { %3137 = vmatpush.msrb.mxu2 %v1394_v32  ;;  %3156 = vmatpush.msrb.mxu3 %v1564_v17  ;;  %v1134_v63 = vld [vmem:[%s6624_s28 + $0x1a38] sm:$0xff]  ;;  %v1284_v21 = vld [vmem:[%s6624_s28 + $0x1ee8] sm:$0xff] }
 0x2b9   : > { %3098 = vmatpush.msrb.mxu0 %v1064_v42  ;;  %3117 = vmatpush.msrb.mxu1 %v1234_v38  ;;  %v1454_v16 = vld [vmem:[%s6624_s28 + $0x2438] sm:$0xff]  ;;  %v1444_v42 = vld [vmem:[%s6624_s28 + $0x23e8] sm:$0xff] }
 0x2ba   : > { %3138 = vmatpush.msrb.mxu2 %v1384_v23  ;;  %3157 = vmatpush.msrb.mxu3 %v1554_v30  ;;  %v1274_v17 = vld [vmem:[%s6624_s28 + $0x1e98] sm:$0xff]  ;;  %v944_v23 = vld [vmem:[%s6624_s28 + $0x1448] sm:$0xff] }
 0x2bb   : > { %3099 = vmatpush.msrb.mxu0 %v1054_v26  ;;  %3118 = vmatpush.msrb.mxu1 %v1224_v27  ;;  %v1114_v30 = vld [vmem:[%s6624_s28 + $0x1998] sm:$0xff] }
 0x2bc   : > { %3139 = vmatpush.msrb.mxu2 %v1374_v49  ;;  %3158 = vmatpush.msrb.mxu3 %v1544_v29  ;;  %v1434_v27 = vld [vmem:[%s6624_s28 + $0x2398] sm:$0xff]  ;;  %v1104_v29 = vld [vmem:[%s6624_s28 + $0x1948] sm:$0xff] }
 0x2bd   : > { %3100 = vmatpush.msrb.mxu0 %v1044_v34  ;;  %3119 = vmatpush.msrb.mxu1 %v1214_v0  ;;  %v1424_v34 = vld [vmem:[%s6624_s28 + $0x2348] sm:$0xff] }
 0x2be   : > { %3140 = vmatpush.msrb.mxu2 %v1364_v25  ;;  %3159 = vmatpush.msrb.mxu3 %v1534_v53 }
 0x2bf   : > { %3101 = vmatpush.msrb.mxu0 %v1034_v55  ;;  %3120 = vmatpush.msrb.mxu1 %v1204_v33 }
 0x2c0   : > { %3141 = vmatpush.msrb.mxu2 %v1354_v35  ;;  %3160 = vmatpush.msrb.mxu3 %v1524_v46 }
 0x2c1   : > { %3102 = vmatpush.msrb.mxu0 %v1024_v36  ;;  %3121 = vmatpush.msrb.mxu1 %v1194_v61 }
 0x2c2   : > { %3142 = vmatpush.msrb.mxu2 %v1344_v37  ;;  %3161 = vmatpush.msrb.mxu3 %v1514_v14 }
 0x2c3   : > { %3103 = vmatpush.msrb.mxu0 %v1014_v59  ;;  %3122 = vmatpush.msrb.mxu1 %v1184_v40 }
 0x2c4   : > { %3143 = vmatpush.msrb.mxu2 %v1334_v19  ;;  %3162 = vmatpush.msrb.mxu3 %v1504_v41 }
 0x2c5   : > { %3104 = vmatpush.msrb.mxu0 %v1004_v3  ;;  %3123 = vmatpush.msrb.mxu1 %v1174_v43 }
 0x2c6   : > { %3144 = vmatpush.msrb.mxu2 %v1324_v50  ;;  %3163 = vmatpush.msrb.mxu3 %v1494_v51 }
 0x2c7   : > { %3105 = vmatpush.msrb.mxu0 %v994_v52  ;;  %3124 = vmatpush.msrb.mxu1 %v1164_v57 }
 0x2c8   : > { %3145 = vmatpush.msrb.mxu2 %v1314_v60  ;;  %3164 = vmatpush.msrb.mxu3 %v1484_v62  ;;  %v2712_v7 = vpop.f32.mrf.mxu0 }
 0x2c9   : > { %3071 = vmatmul.f32.vlgmr.msra.gmra.mxu2 %v7976_v56  ;;  %3106 = vmatpush.msrb.mxu0 %v984_v1  ;;  %v964_v56 = vld [vmem:[%s6624_s28 + $0x14e8] sm:$0xff] }
 0x2ca   : > { %3125 = vmatpush.msrb.mxu1 %v1154_v2  ;;  %3146 = vmatpush.msrb.mxu2 %v1304_v4 }
 0x2cb   : > { %3165 = vmatpush.msrb.mxu3 %v1474_v6  ;;  %3031 = vmatmul.f32.vlgmr.msra.gmra.mxu0 %v7983_v54  ;;  %v2732_v31 = vpop.f32.mrf.mxu1  ;;  %v954_v54 = vld [vmem:[%s6624_s28 + $0x1498] sm:$0xff] }
 0x2cc   : > { %3091 = vmatmul.f32.vlgmr.msra.gmra.mxu3 %v7988_v39  ;;  %3107 = vmatpush.msrb.mxu0 %v974_v28  ;;  %v2733_v13 = vadd.f32 %v2732_v31, %v2712_v7  ;;  %v2752_v5 = vpop.f32.mrf.mxu2  ;;  %v1124_v39 = vld [vmem:[%s6624_s28 + $0x19e8] sm:$0xff] }
 0x2cd   : > { %3126 = vmatpush.msrb.mxu1 %v1144_v9  ;;  %3147 = vmatpush.msrb.mxu2 %v1294_v10 }
 0x2ce   : > { %3166 = vmatpush.msrb.mxu3 %v1464_v11  ;;  %3051 = vmatmul.f32.vlgmr.msra.gmra.mxu1 %v7996_v44  ;;  %v2753_v32 = vadd.f32 %v2752_v5, %v2733_v13  ;;  %v1264_v44 = vld [vmem:[%s6624_s28 + $0x1e48] sm:$0xff] }
 0x2cf   : > { %3108 = vmatpush.msrb.mxu0 %v964_v56  ;;  %3127 = vmatpush.msrb.mxu1 %v1134_v63  ;;  %v2772_v38 = vpop.f32.mrf.mxu3 }
 0x2d0   : > { %3148 = vmatpush.msrb.mxu2 %v1284_v21  ;;  %3167 = vmatpush.msrb.mxu3 %v1454_v16  ;;  %v2773_v26 = vadd.f32 %v2772_v38, %v2753_v32 }
 0x2d1   : > { %3109 = vmatpush.msrb.mxu0 %v954_v54  ;;  %3128 = vmatpush.msrb.mxu1 %v1124_v39 }
 0x2d2   : > { %3149 = vmatpush.msrb.mxu2 %v1274_v17  ;;  %3168 = vmatpush.msrb.mxu3 %v1444_v42  ;;  %v2792_v49 = vpop.f32.mrf.mxu0 }
 0x2d3   : > { %3110 = vmatpush.msrb.mxu0 %v944_v23  ;;  %3129 = vmatpush.msrb.mxu1 %v1114_v30  ;;  %v2793_v0 = vadd.f32 %v2792_v49, %v2773_v26 }
 0x2d4   : > { %3150 = vmatpush.msrb.mxu2 %v1264_v44  ;;  %3169 = vmatpush.msrb.mxu3 %v1434_v27 }
 0x2d5   : > { %3111 = vmatmul.f32.vlgmr.msrb.gmra.mxu0 %v8017_v58  ;;  %3151 = vmatmul.f32.vlgmr.msrb.gmra.mxu2 %v8010_v8  ;;  %v2812_v25 = vpop.f32.mrf.mxu1 }
 0x2d6   : > { %3130 = vmatpush.msrb.mxu1 %v1104_v29  ;;  %3170 = vmatpush.msrb.mxu3 %v1424_v34  ;;  %v2813_v53 = vadd.f32 %v2812_v25, %v2793_v0  ;;  %v2832_v55 = vpop.f32.mrf.mxu2 }
 0x2d7   : > { %3131 = vmatmul.f32.vlgmr.msrb.gmra.mxu1 %v8030_v15  ;;  %3171 = vmatmul.f32.vlgmr.msrb.gmra.mxu3 %v8022_v12 }
 0x2d8   : > { %v2833_v33 = vadd.f32 %v2832_v55, %v2813_v53 }
 0x2d9   : > { %v2852_v35 = vpop.f32.mrf.mxu3 }
 0x2da   : > { %v8147_v46 = vadd.f32 %v2852_v35, %v2833_v33 }
 0x30c   : > { %v2872_v36 = vpop.f32.mrf.mxu0 }
 0x30f   : > { %v2892_v61 = vpop.f32.mrf.mxu1 }
 0x310   : > { %v2893_v37 = vadd.f32 %v2892_v61, %v2872_v36  ;;  %v2912_v14 = vpop.f32.mrf.mxu2 }
 0x312   : > { %v2913_v58 = vadd.f32 %v2912_v14, %v2893_v37 }
 0x313   : > { %v2932_v59 = vpop.f32.mrf.mxu3 }
 0x314   : > { %v2933_v8 = vadd.f32 %v2932_v59, %v2913_v58 }
 0x316   : > { %v2952_v40 = vpop.f32.mrf.mxu0 }
 0x317   : > { %v2953_v19 = vadd.f32 %v2952_v40, %v2933_v8 }
 0x319   : > { %v2972_v41 = vpop.f32.mrf.mxu1 }
 0x31a   : > { %v2973_v3 = vadd.f32 %v2972_v41, %v2953_v19  ;;  %v2992_v43 = vpop.f32.mrf.mxu2 }
 0x31c   : > { %v2993_v50 = vadd.f32 %v2992_v43, %v2973_v3 }
 0x31d   : > { %v3012_v15 = vpop.f32.mrf.mxu3 }
 0x31e   : > { %v3013_v51 = vadd.f32 %v3012_v15, %v2993_v50 }
 0x348   : > { %v3032_v12 = vpop.f32.mrf.mxu0 }
 0x34b   : > { %v3052_v52 = vpop.f32.mrf.mxu1 }
 0x34c   : > { %v3053_v57 = vadd.f32 %v3052_v52, %v3032_v12  ;;  %v3072_v60 = vpop.f32.mrf.mxu2 }
 0x34e   : > { %v3073_v62 = vadd.f32 %v3072_v60, %v3053_v57 }
 0x34f   : > { %v3092_v1 = vpop.f32.mrf.mxu3 }
 0x350   : > { %v3093_v2 = vadd.f32 %v3092_v1, %v3073_v62 }
 0x352   : > { %v3112_v4 = vpop.f32.mrf.mxu0 }
 0x353   : > { %v3113_v6 = vadd.f32 %v3112_v4, %v3093_v2 }
 0x354   : > { %v3132_v7 = vpop.f32.mrf.mxu1 }
 0x355   : > { %v3133_v28 = vadd.f32 %v3132_v7, %v3113_v6 }
 0x357   : > { %3178 = sbr.rel (%p6259_p4) target bundleno = 870 (0x366), region = 56 }
 0x358   : > { %v3152_v9 = vpop.f32.mrf.mxu2 }
 0x359   : > { %v3153_v10 = vadd.f32 %v3152_v9, %v3133_v28 }
 0x35a   : > { %v3172_v11 = vpop.f32.mrf.mxu3 }
 0x35b   : > { %v3173_v31 = vadd.f32 %v3172_v11, %v3153_v10 }
 0x35c   : > { %3179 = vst [vmem:[#allocation2 + $0x30] sm:$0xff] %v7107_v48 }
 0x35d   : > { %3180 = vst [vmem:[#allocation2] sm:$0xff] %v7257_v24 }
 0x35e   : > { %3181 = vst [vmem:[#allocation2 + $0x18] sm:$0xff] %v7407_v20 }
 0x35f   : > { %3182 = vst [vmem:[#allocation2 + $0x10] sm:$0xff] %v7557_v22 }
 0x360   : > { %3183 = vst [vmem:[#allocation2 + $0x48] sm:$0xff] %v7707_v45 }
 0x361   : > { %3184 = vst [vmem:[#allocation2 + $0x28] sm:$0xff] %v7857_v47 }
 0x362   : > { %3185 = vst [vmem:[#allocation2 + $0x8] sm:$0xff] %v8007_v18 }
 0x363   : > { %3186 = vst [vmem:[#allocation2 + $0x20] sm:$0xff] %v8147_v46 }
 0x364   : > { %3187 = vst [vmem:[#allocation2 + $0x40] sm:$0xff] %v3013_v51 }
 0x365   : > { %3188 = vst [vmem:[#allocation2 + $0x38] sm:$0xff] %v3173_v31 }
 0x366 PF: > { %p6271_p4 = scmp.le.s32.totalorder %s6562_s22, 0 }
 0x368   : > { %3192 = sbr.rel (%p6271_p4) target bundleno = 890 (0x37a), region = 60 }
 0x36d   : > { %v3193_v56 = vld [vmem:[#allocation2 + $0x30] sm:$0xff]  ;;  %v3194_v63 = vld [vmem:[#allocation2] sm:$0xff]  ;;  %v3195_v13 = vld [vmem:[#allocation2 + $0x18] sm:$0xff] }
 0x36e   : > { %v3203_v5 = vadd.f32 %v3193_v56, %v7107_v48  ;;  %v3204_v21 = vadd.f32 %v3194_v63, %v7257_v24  ;;  %v3205_v16 = vadd.f32 %v3195_v13, %v7407_v20  ;;  %v3196_v54 = vld [vmem:[#allocation2 + $0x10] sm:$0xff]  ;;  %v3197_v39 = vld [vmem:[#allocation2 + $0x48] sm:$0xff]  ;;  %v3200_v23 = vld [vmem:[#allocation2 + $0x20] sm:$0xff] }
 0x36f   : > { %v3198_v32 = vld [vmem:[#allocation2 + $0x28] sm:$0xff]  ;;  %v3206_v17 = vadd.f32 %v3196_v54, %v7557_v22  ;;  %v3207_v38 = vadd.f32 %v3197_v39, %v7707_v45  ;;  %v3201_v26 = vld [vmem:[#allocation2 + $0x40] sm:$0xff]  ;;  %v3202_v24 = vld [vmem:[#allocation2 + $0x38] sm:$0xff]  ;;  %v3210_v20 = vadd.f32 %v3200_v23, %v8147_v46 }
 0x370   : > { %v3199_v42 = vld [vmem:[#allocation2 + $0x8] sm:$0xff]  ;;  %3213 = vst [vmem:[#allocation2 + $0x30] sm:$0xff] %v3203_v5  ;;  %v3208_v30 = vadd.f32 %v3198_v32, %v7857_v47  ;;  %v3211_v44 = vadd.f32 %v3201_v26, %v3013_v51  ;;  %v3212_v22 = vadd.f32 %v3202_v24, %v3173_v31 }
 0x371   : > { %3214 = vst [vmem:[#allocation2] sm:$0xff] %v3204_v21  ;;  %v3209_v48 = vadd.f32 %v3199_v42, %v8007_v18 }
 0x372   : > { %3215 = vst [vmem:[#allocation2 + $0x18] sm:$0xff] %v3205_v16 }
 0x373   : > { %3216 = vst [vmem:[#allocation2 + $0x10] sm:$0xff] %v3206_v17 }
 0x374   : > { %3217 = vst [vmem:[#allocation2 + $0x48] sm:$0xff] %v3207_v38 }
 0x375   : > { %3218 = vst [vmem:[#allocation2 + $0x28] sm:$0xff] %v3208_v30 }
 0x376   : > { %3219 = vst [vmem:[#allocation2 + $0x8] sm:$0xff] %v3209_v48 }
 0x377   : > { %3220 = vst [vmem:[#allocation2 + $0x20] sm:$0xff] %v3210_v20 }
 0x378   : > { %3221 = vst [vmem:[#allocation2 + $0x40] sm:$0xff] %v3211_v44 }
 0x379   : > { %3222 = vst [vmem:[#allocation2 + $0x38] sm:$0xff] %v3212_v22 }
 0x37a PF: > { %p6272_p5 = scmp.ne.s32.totalorder %s6562_s22, 2 }
 0x37c   : > { %3226 = sbr.rel (%p6272_p5) target bundleno = 1931 (0x78b), region = 64 }
 0x381   : > { %v3401_v45 = vld [vmem:[#allocation5 + $0x3c0] sm:$0xff] }
 0x382   : > { %v3657_v47 = vld [vmem:[#allocation5 + $0xbc0] sm:$0xff]  ;;  %4579 = vmatpush.msra.mxu0 %v3401_v45 }
 0x383   : > { %v3393_v27 = vld [vmem:[#allocation5 + $0x380] sm:$0xff]  ;;  %4619 = vmatpush.msra.mxu2 %v3657_v47 }
 0x384   : > { %v3529_v18 = vld [vmem:[#allocation5 + $0x7c0] sm:$0xff]  ;;  %4580 = vmatpush.msra.mxu0 %v3393_v27 }
 0x385   : > { %v3649_v49 = vld [vmem:[#allocation5 + $0xb80] sm:$0xff]  ;;  %4599 = vmatpush.msra.mxu1 %v3529_v18 }
 0x386   : > { %v3785_v29 = vld [vmem:[#allocation5 + $0xfc0] sm:$0xff]  ;;  %4620 = vmatpush.msra.mxu2 %v3649_v49 }
 0x387   : > { %4639 = vmatpush.msra.mxu3 %v3785_v29  ;;  %v3385_v34 = vld [vmem:[#allocation5 + $0x340] sm:$0xff] }
 0x388   : > { %v3521_v0 = vld [vmem:[#allocation5 + $0x780] sm:$0xff]  ;;  %4581 = vmatpush.msra.mxu0 %v3385_v34 }
 0x389   : > { %v3641_v25 = vld [vmem:[#allocation5 + $0xb40] sm:$0xff]  ;;  %4600 = vmatpush.msra.mxu1 %v3521_v0 }
 0x38a   : > { %v3777_v53 = vld [vmem:[#allocation5 + $0xf80] sm:$0xff]  ;;  %4621 = vmatpush.msra.mxu2 %v3641_v25 }
 0x38b   : > { %v3513_v55 = vld [vmem:[#allocation5 + $0x740] sm:$0xff]  ;;  %4640 = vmatpush.msra.mxu3 %v3777_v53 }
 0x38c   : > { %v3377_v33 = vld [vmem:[#allocation5 + $0x300] sm:$0xff]  ;;  %4601 = vmatpush.msra.mxu1 %v3513_v55 }
 0x38d   : > { %v3633_v35 = vld [vmem:[#allocation5 + $0xb00] sm:$0xff]  ;;  %4582 = vmatpush.msra.mxu0 %v3377_v33 }
 0x38e   : > { %v3769_v46 = vld [vmem:[#allocation5 + $0xf40] sm:$0xff]  ;;  %4622 = vmatpush.msra.mxu2 %v3633_v35 }
 0x38f   : > { %v3505_v36 = vld [vmem:[#allocation5 + $0x700] sm:$0xff]  ;;  %4641 = vmatpush.msra.mxu3 %v3769_v46 }
 0x390   : > { %v3761_v61 = vld [vmem:[#allocation5 + $0xf00] sm:$0xff]  ;;  %4602 = vmatpush.msra.mxu1 %v3505_v36 }
 0x391   : > { %v3369_v37 = vld [vmem:[#allocation5 + $0x2c0] sm:$0xff]  ;;  %4642 = vmatpush.msra.mxu3 %v3761_v61 }
 0x392   : > { %v3625_v14 = vld [vmem:[#allocation5 + $0xac0] sm:$0xff]  ;;  %4583 = vmatpush.msra.mxu0 %v3369_v37 }
 0x393   : > { %v3497_v58 = vld [vmem:[#allocation5 + $0x6c0] sm:$0xff]  ;;  %4623 = vmatpush.msra.mxu2 %v3625_v14 }
 0x394   : > { %v3753_v59 = vld [vmem:[#allocation5 + $0xec0] sm:$0xff]  ;;  %4603 = vmatpush.msra.mxu1 %v3497_v58 }
 0x395   : > { %v3361_v8 = vld [vmem:[#allocation5 + $0x280] sm:$0xff]  ;;  %4643 = vmatpush.msra.mxu3 %v3753_v59 }
 0x396   : > { %v3617_v40 = vld [vmem:[#allocation5 + $0xa80] sm:$0xff]  ;;  %4584 = vmatpush.msra.mxu0 %v3361_v8 }
 0x397   : > { %v3489_v19 = vld [vmem:[#allocation5 + $0x680] sm:$0xff]  ;;  %4624 = vmatpush.msra.mxu2 %v3617_v40 }
 0x398   : > { %v3745_v41 = vld [vmem:[#allocation5 + $0xe80] sm:$0xff]  ;;  %4604 = vmatpush.msra.mxu1 %v3489_v19 }
 0x399   : > { %v3353_v3 = vld [vmem:[#allocation5 + $0x240] sm:$0xff]  ;;  %4644 = vmatpush.msra.mxu3 %v3745_v41 }
 0x39a   : > { %v3609_v43 = vld [vmem:[#allocation5 + $0xa40] sm:$0xff]  ;;  %4585 = vmatpush.msra.mxu0 %v3353_v3 }
 0x39b   : > { %v3481_v50 = vld [vmem:[#allocation5 + $0x640] sm:$0xff]  ;;  %4625 = vmatpush.msra.mxu2 %v3609_v43 }
 0x39c   : > { %v3737_v15 = vld [vmem:[#allocation5 + $0xe40] sm:$0xff]  ;;  %4605 = vmatpush.msra.mxu1 %v3481_v50 }
 0x39d   : > { %v3345_v51 = vld [vmem:[#allocation5 + $0x200] sm:$0xff]  ;;  %4645 = vmatpush.msra.mxu3 %v3737_v15 }
 0x39e   : > { %v3601_v12 = vld [vmem:[#allocation5 + $0xa00] sm:$0xff]  ;;  %4586 = vmatpush.msra.mxu0 %v3345_v51 }
 0x39f   : > { %v3473_v52 = vld [vmem:[#allocation5 + $0x600] sm:$0xff]  ;;  %4626 = vmatpush.msra.mxu2 %v3601_v12 }
 0x3a0   : > { %v3729_v57 = vld [vmem:[#allocation5 + $0xe00] sm:$0xff]  ;;  %4606 = vmatpush.msra.mxu1 %v3473_v52 }
 0x3a1   : > { %v3337_v60 = vld [vmem:[#allocation5 + $0x1c0] sm:$0xff]  ;;  %4646 = vmatpush.msra.mxu3 %v3729_v57 }
 0x3a2   : > { %v3593_v62 = vld [vmem:[#allocation5 + $0x9c0] sm:$0xff]  ;;  %4587 = vmatpush.msra.mxu0 %v3337_v60 }
 0x3a3   : > { %v3465_v1 = vld [vmem:[#allocation5 + $0x5c0] sm:$0xff]  ;;  %4627 = vmatpush.msra.mxu2 %v3593_v62 }
 0x3a4   : > { %v3721_v2 = vld [vmem:[#allocation5 + $0xdc0] sm:$0xff]  ;;  %4607 = vmatpush.msra.mxu1 %v3465_v1 }
 0x3a5   : > { %v3329_v4 = vld [vmem:[#allocation5 + $0x180] sm:$0xff]  ;;  %4647 = vmatpush.msra.mxu3 %v3721_v2 }
 0x3a6   : > { %v3585_v6 = vld [vmem:[#allocation5 + $0x980] sm:$0xff]  ;;  %4588 = vmatpush.msra.mxu0 %v3329_v4 }
 0x3a7   : > { %v3457_v7 = vld [vmem:[#allocation5 + $0x580] sm:$0xff]  ;;  %4628 = vmatpush.msra.mxu2 %v3585_v6 }
 0x3a8   : > { %v3713_v28 = vld [vmem:[#allocation5 + $0xd80] sm:$0xff]  ;;  %4608 = vmatpush.msra.mxu1 %v3457_v7 }
 0x3a9   : > { %v3321_v9 = vld [vmem:[#allocation5 + $0x140] sm:$0xff]  ;;  %4648 = vmatpush.msra.mxu3 %v3713_v28 }
 0x3aa   : > { %v3577_v10 = vld [vmem:[#allocation5 + $0x940] sm:$0xff]  ;;  %4589 = vmatpush.msra.mxu0 %v3321_v9  ;;  %v8172_v9 = vld [vmem:[%s8336_s2] sm:$0xff] }
 0x3ab   : > { %v3449_v11 = vld [vmem:[#allocation5 + $0x540] sm:$0xff]  ;;  %4629 = vmatpush.msra.mxu2 %v3577_v10 }
 0x3ac   : > { %v3705_v31 = vld [vmem:[#allocation5 + $0xd40] sm:$0xff]  ;;  %4609 = vmatpush.msra.mxu1 %v3449_v11 }
 0x3ad   : > { %v3313_v56 = vld [vmem:[#allocation5 + $0x100] sm:$0xff]  ;;  %4649 = vmatpush.msra.mxu3 %v3705_v31 }
 0x3ae   : > { %v3569_v63 = vld [vmem:[#allocation5 + $0x900] sm:$0xff]  ;;  %4590 = vmatpush.msra.mxu0 %v3313_v56 }
 0x3af   : > { %v3441_v13 = vld [vmem:[#allocation5 + $0x500] sm:$0xff]  ;;  %4630 = vmatpush.msra.mxu2 %v3569_v63 }
 0x3b0   : > { %v3697_v5 = vld [vmem:[#allocation5 + $0xd00] sm:$0xff]  ;;  %4610 = vmatpush.msra.mxu1 %v3441_v13 }
 0x3b1   : > { %v3305_v21 = vld [vmem:[#allocation5 + $0xc0] sm:$0xff]  ;;  %4650 = vmatpush.msra.mxu3 %v3697_v5 }
 0x3b2   : > { %v3561_v16 = vld [vmem:[#allocation5 + $0x8c0] sm:$0xff]  ;;  %4591 = vmatpush.msra.mxu0 %v3305_v21  ;;  %v3241_v21 = vperm.slane %v8172_v9, 0 }
 0x3b3   : > { %v3433_v54 = vld [vmem:[#allocation5 + $0x4c0] sm:$0xff]  ;;  %4631 = vmatpush.msra.mxu2 %v3561_v16  ;;  %v3243_v16 = vperm.slane %v8172_v9, 2 }
 0x3b4   : > { %v3689_v39 = vld [vmem:[#allocation5 + $0xcc0] sm:$0xff]  ;;  %4611 = vmatpush.msra.mxu1 %v3433_v54 }
 0x3b5   : > { %v3297_v32 = vld [vmem:[#allocation5 + $0x80] sm:$0xff]  ;;  %4651 = vmatpush.msra.mxu3 %v3689_v39 }
 0x3b6   : > { %v3553_v17 = vld [vmem:[#allocation5 + $0x880] sm:$0xff]  ;;  %4592 = vmatpush.msra.mxu0 %v3297_v32  ;;  %v3229_v32 = vld [vmem:[#allocation2 + $0x18] sm:$0xff] }
 0x3b7   : > { %v3425_v42 = vld [vmem:[#allocation5 + $0x480] sm:$0xff]  ;;  %4632 = vmatpush.msra.mxu2 %v3553_v17 }
 0x3b8   : > { %v3681_v38 = vld [vmem:[#allocation5 + $0xc80] sm:$0xff]  ;;  %4612 = vmatpush.msra.mxu1 %v3425_v42 }
 0x3b9   : > { %v3289_v23 = vld [vmem:[#allocation5 + $0x40] sm:$0xff]  ;;  %4652 = vmatpush.msra.mxu3 %v3681_v38 }
 0x3ba   : > { %v3545_v30 = vld [vmem:[#allocation5 + $0x840] sm:$0xff]  ;;  %4593 = vmatpush.msra.mxu0 %v3289_v23 }
 0x3bb   : > { %v3417_v26 = vld [vmem:[#allocation5 + $0x440] sm:$0xff]  ;;  %4633 = vmatpush.msra.mxu2 %v3545_v30 }
 0x3bc   : > { %v3673_v48 = vld [vmem:[#allocation5 + $0xc40] sm:$0xff]  ;;  %4613 = vmatpush.msra.mxu1 %v3417_v26  ;;  %v3242_v26 = vperm.slane %v8172_v9, 1 }
 0x3bd   : > { %v3281_v24 = vld [vmem:[#allocation5] sm:$0xff]  ;;  %4653 = vmatpush.msra.mxu3 %v3673_v48  ;;  %v3244_v48 = vperm.slane %v8172_v9, 3 }
 0x3be   : > { %v3537_v20 = vld [vmem:[#allocation5 + $0x800] sm:$0xff]  ;;  %4594 = vmatpush.msra.mxu0 %v3281_v24 }
 0x3bf   : > { %v3913_v44 = vld [vmem:[#allocation5 + $0x13c0] sm:$0xff]  ;;  %4634 = vmatpush.msra.mxu2 %v3537_v20 }
 0x3c0   : > { %v4169_v22 = vld [vmem:[#allocation5 + $0x1bc0] sm:$0xff]  ;;  %4659 = vmatpush.msrb.mxu0 %v3913_v44  ;;  %v3263_v44 = vadd.f32 %v3243_v16, %v3229_v32  ;;  %v3362_v32 = vld [vmem:[#allocation5 + $0x288] sm:$0xff] }
 0x3c1   : > { %v3409_v45 = vld [vmem:[#allocation5 + $0x400] sm:$0xff]  ;;  %4699 = vmatpush.msrb.mxu2 %v4169_v22  ;;  %v3228_v22 = vld [vmem:[#allocation2] sm:$0xff] }
 0x3c2   : > { %v3665_v47 = vld [vmem:[#allocation5 + $0xc00] sm:$0xff]  ;;  %4614 = vmatpush.msra.mxu1 %v3409_v45 }
 0x3c3   : > { %v3905_v27 = vld [vmem:[#allocation5 + $0x1380] sm:$0xff]  ;;  %4654 = vmatpush.msra.mxu3 %v3665_v47 }
 0x3c4   : > { %v4041_v18 = vld [vmem:[#allocation5 + $0x17c0] sm:$0xff]  ;;  %4660 = vmatpush.msrb.mxu0 %v3905_v27 }
 0x3c5   : > { %v4161_v49 = vld [vmem:[#allocation5 + $0x1b80] sm:$0xff]  ;;  %4679 = vmatpush.msrb.mxu1 %v4041_v18 }
 0x3c6   : > { %v4297_v29 = vld [vmem:[#allocation5 + $0x1fc0] sm:$0xff]  ;;  %4700 = vmatpush.msrb.mxu2 %v4161_v49 }
 0x3c7   : > { %v3897_v34 = vld [vmem:[#allocation5 + $0x1340] sm:$0xff]  ;;  %4719 = vmatpush.msrb.mxu3 %v4297_v29 }
 0x3c8   : > { %v4033_v0 = vld [vmem:[#allocation5 + $0x1780] sm:$0xff]  ;;  %4661 = vmatpush.msrb.mxu0 %v3897_v34 }
 0x3c9   : > { %v4153_v25 = vld [vmem:[#allocation5 + $0x1b40] sm:$0xff]  ;;  %4680 = vmatpush.msrb.mxu1 %v4033_v0  ;;  %v3262_v0 = vadd.f32 %v3242_v26, %v3228_v22  ;;  %v3490_v26 = vld [vmem:[#allocation5 + $0x688] sm:$0xff] }
 0x3ca   : > { %v4289_v53 = vld [vmem:[#allocation5 + $0x1f80] sm:$0xff]  ;;  %4701 = vmatpush.msrb.mxu2 %v4153_v25 }
 0x3cb   : > { %v3889_v55 = vld [vmem:[#allocation5 + $0x1300] sm:$0xff]  ;;  %4720 = vmatpush.msrb.mxu3 %v4289_v53 }
 0x3cc   : > { %v4025_v33 = vld [vmem:[#allocation5 + $0x1740] sm:$0xff]  ;;  %4662 = vmatpush.msrb.mxu0 %v3889_v55 }
 0x3cd   : > { %v4145_v35 = vld [vmem:[#allocation5 + $0x1b00] sm:$0xff]  ;;  %4681 = vmatpush.msrb.mxu1 %v4025_v33 }
 0x3ce   : > { %v4281_v46 = vld [vmem:[#allocation5 + $0x1f40] sm:$0xff]  ;;  %4702 = vmatpush.msrb.mxu2 %v4145_v35  ;;  %v8180_v35 = vmax.f32 %v3263_v44, 0.0  ;;  %v3482_v44 = vld [vmem:[#allocation5 + $0x648] sm:$0xff] }
 0x3cf   : > { %v3881_v36 = vld [vmem:[#allocation5 + $0x12c0] sm:$0xff]  ;;  %4721 = vmatpush.msrb.mxu3 %v4281_v46 }
 0x3d0   : > { %v4017_v61 = vld [vmem:[#allocation5 + $0x1700] sm:$0xff]  ;;  %4663 = vmatpush.msrb.mxu0 %v3881_v36  ;;  %v3402_v36 = vld [vmem:[#allocation5 + $0x3c8] sm:$0xff]  ;;  %4635 = vmatmul.f32.vlgmr.msra.gmra.mxu2 %v8180_v35 }
 0x3d1   : > { %v4137_v37 = vld [vmem:[#allocation5 + $0x1ac0] sm:$0xff]  ;;  %4682 = vmatpush.msrb.mxu1 %v4017_v61  ;;  %v3247_v61 = vperm.slane %v8172_v9, 6 }
 0x3d2   : > { %v4273_v14 = vld [vmem:[#allocation5 + $0x1f00] sm:$0xff]  ;;  %4703 = vmatpush.msrb.mxu2 %v4137_v37 }
 0x3d3   : > { %v3873_v58 = vld [vmem:[#allocation5 + $0x1280] sm:$0xff]  ;;  %4722 = vmatpush.msrb.mxu3 %v4273_v14 }
 0x3d4   : > { %v4009_v59 = vld [vmem:[#allocation5 + $0x16c0] sm:$0xff]  ;;  %4664 = vmatpush.msrb.mxu0 %v3873_v58  ;;  %v8183_v58 = vmax.f32 %v3262_v0, 0.0 }
 0x3d5   : > { %v4129_v8 = vld [vmem:[#allocation5 + $0x1a80] sm:$0xff]  ;;  %4683 = vmatpush.msrb.mxu1 %v4009_v59 }
 0x3d6   : > { %v4265_v40 = vld [vmem:[#allocation5 + $0x1ec0] sm:$0xff]  ;;  %4704 = vmatpush.msrb.mxu2 %v4129_v8  ;;  %v3233_v8 = vld [vmem:[#allocation2 + $0x8] sm:$0xff]  ;;  %4615 = vmatmul.f32.vlgmr.msra.gmra.mxu1 %v8183_v58 }
 0x3d7   : > { %v3865_v19 = vld [vmem:[#allocation5 + $0x1240] sm:$0xff]  ;;  %4723 = vmatpush.msrb.mxu3 %v4265_v40  ;;  %v3245_v40 = vperm.slane %v8172_v9, 4 }
 0x3d8   : > { %v4001_v41 = vld [vmem:[#allocation5 + $0x1680] sm:$0xff]  ;;  %4665 = vmatpush.msrb.mxu0 %v3865_v19 }
 0x3d9   : > { %v4121_v3 = vld [vmem:[#allocation5 + $0x1a40] sm:$0xff]  ;;  %4684 = vmatpush.msrb.mxu1 %v4001_v41 }
 0x3da   : > { %v4257_v43 = vld [vmem:[#allocation5 + $0x1e80] sm:$0xff]  ;;  %4705 = vmatpush.msrb.mxu2 %v4121_v3  ;;  %v3231_v3 = vld [vmem:[#allocation2 + $0x48] sm:$0xff] }
 0x3db   : > { %v3857_v50 = vld [vmem:[#allocation5 + $0x1200] sm:$0xff]  ;;  %4724 = vmatpush.msrb.mxu3 %v4257_v43  ;;  %v3248_v43 = vperm.slane %v8172_v9, 7 }
 0x3dc   : > { %v3993_v15 = vld [vmem:[#allocation5 + $0x1640] sm:$0xff]  ;;  %4666 = vmatpush.msrb.mxu0 %v3857_v50  ;;  %v3394_v50 = vld [vmem:[#allocation5 + $0x388] sm:$0xff] }
 0x3dd   : > { %v4113_v51 = vld [vmem:[#allocation5 + $0x1a00] sm:$0xff]  ;;  %4685 = vmatpush.msrb.mxu1 %v3993_v15  ;;  %v3530_v15 = vld [vmem:[#allocation5 + $0x7c8] sm:$0xff] }
 0x3de   : > { %v4249_v12 = vld [vmem:[#allocation5 + $0x1e40] sm:$0xff]  ;;  %4706 = vmatpush.msrb.mxu2 %v4113_v51  ;;  %v3267_v51 = vadd.f32 %v3247_v61, %v3233_v8 }
 0x3df   : > { %v3849_v52 = vld [vmem:[#allocation5 + $0x11c0] sm:$0xff]  ;;  %4725 = vmatpush.msrb.mxu3 %v4249_v12  ;;  %v3234_v12 = vld [vmem:[#allocation2 + $0x20] sm:$0xff] }
 0x3e0   : > { %v3985_v57 = vld [vmem:[#allocation5 + $0x1600] sm:$0xff]  ;;  %4667 = vmatpush.msrb.mxu0 %v3849_v52 }
 0x3e1   : > { %v4105_v60 = vld [vmem:[#allocation5 + $0x19c0] sm:$0xff]  ;;  %4686 = vmatpush.msrb.mxu1 %v3985_v57 }
 0x3e2   : > { %v4241_v62 = vld [vmem:[#allocation5 + $0x1e00] sm:$0xff]  ;;  %4707 = vmatpush.msrb.mxu2 %v4105_v60  ;;  %v3246_v60 = vperm.slane %v8172_v9, 5 }
 0x3e3   : > { %v3841_v1 = vld [vmem:[#allocation5 + $0x1180] sm:$0xff]  ;;  %4726 = vmatpush.msrb.mxu3 %v4241_v62  ;;  %v3386_v62 = vld [vmem:[#allocation5 + $0x348] sm:$0xff] }
 0x3e4   : > { %v3977_v2 = vld [vmem:[#allocation5 + $0x15c0] sm:$0xff]  ;;  %4668 = vmatpush.msrb.mxu0 %v3841_v1  ;;  %v3522_v1 = vld [vmem:[#allocation5 + $0x788] sm:$0xff] }
 0x3e5   : > { %v4097_v4 = vld [vmem:[#allocation5 + $0x1980] sm:$0xff]  ;;  %4687 = vmatpush.msrb.mxu1 %v3977_v2  ;;  %v3265_v2 = vadd.f32 %v3245_v40, %v3231_v3  ;;  %v3306_v3 = vld [vmem:[#allocation5 + $0xc8] sm:$0xff] }
 0x3e6   : > { %v4233_v6 = vld [vmem:[#allocation5 + $0x1dc0] sm:$0xff]  ;;  %4708 = vmatpush.msrb.mxu2 %v4097_v4  ;;  %v3232_v4 = vld [vmem:[#allocation2 + $0x28] sm:$0xff] }
 0x3e7   : > { %v3833_v7 = vld [vmem:[#allocation5 + $0x1140] sm:$0xff]  ;;  %4727 = vmatpush.msrb.mxu3 %v4233_v6 }
 0x3e8   : > { %v3969_v28 = vld [vmem:[#allocation5 + $0x1580] sm:$0xff]  ;;  %4669 = vmatpush.msrb.mxu0 %v3833_v7 }
 0x3e9   : > { %v4089_v10 = vld [vmem:[#allocation5 + $0x1940] sm:$0xff]  ;;  %4688 = vmatpush.msrb.mxu1 %v3969_v28  ;;  %v3268_v28 = vadd.f32 %v3248_v43, %v3234_v12  ;;  %v3442_v43 = vld [vmem:[#allocation5 + $0x508] sm:$0xff] }
 0x3ea   : > { %v4225_v11 = vld [vmem:[#allocation5 + $0x1d80] sm:$0xff]  ;;  %4709 = vmatpush.msrb.mxu2 %v4089_v10  ;;  %v3378_v10 = vld [vmem:[#allocation5 + $0x308] sm:$0xff] }
 0x3eb   : > { %v3825_v31 = vld [vmem:[#allocation5 + $0x1100] sm:$0xff]  ;;  %4728 = vmatpush.msrb.mxu3 %v4225_v11  ;;  %v3514_v11 = vld [vmem:[#allocation5 + $0x748] sm:$0xff]  ;;  %v8198_v16 = vmax.f32 %v3268_v28, 0.0 }
 0x3ec   : > { %v3961_v56 = vld [vmem:[#allocation5 + $0x1540] sm:$0xff]  ;;  %4670 = vmatpush.msrb.mxu0 %v3825_v31  ;;  %v8194_v31 = vmax.f32 %v3267_v51, 0.0  ;;  %v3236_v12 = vld [vmem:[#allocation2 + $0x38] sm:$0xff] }
 0x3ed   : > { %v4081_v63 = vld [vmem:[#allocation5 + $0x1900] sm:$0xff]  ;;  %4689 = vmatpush.msrb.mxu1 %v3961_v56  ;;  %v3266_v56 = vadd.f32 %v3246_v60, %v3232_v4  ;;  %v3426_v4 = vld [vmem:[#allocation5 + $0x488] sm:$0xff] }
 0x3ee   : > { %v4217_v13 = vld [vmem:[#allocation5 + $0x1d40] sm:$0xff]  ;;  %4710 = vmatpush.msrb.mxu2 %v4081_v63 }
 0x3ef   : > { %v3817_v5 = vld [vmem:[#allocation5 + $0x10c0] sm:$0xff]  ;;  %4729 = vmatpush.msrb.mxu3 %v4217_v13  ;;  %v3370_v13 = vld [vmem:[#allocation5 + $0x2c8] sm:$0xff] }
 0x3f0   : > { %v3953_v54 = vld [vmem:[#allocation5 + $0x1500] sm:$0xff]  ;;  %4671 = vmatpush.msrb.mxu0 %v3817_v5  ;;  %v8196_v5 = vmax.f32 %v3265_v2, 0.0  ;;  %v3290_v2 = vld [vmem:[#allocation5 + $0x48] sm:$0xff] }
 0x3f1   : > { %v3227_v39 = vld [vmem:[#allocation2 + $0x30] sm:$0xff]  ;;  %4690 = vmatpush.msrb.mxu1 %v3953_v54 }
 0x3f2   : > { %v4073_v17 = vld [vmem:[#allocation5 + $0x18c0] sm:$0xff]  ;;  %v3261_v20 = vadd.f32 %v3241_v21, %v3227_v39  ;;  %v3506_v21 = vld [vmem:[#allocation5 + $0x708] sm:$0xff] }
 0x3f3   : > { %v4209_v42 = vld [vmem:[#allocation5 + $0x1d00] sm:$0xff]  ;;  %4711 = vmatpush.msrb.mxu2 %v4073_v17  ;;  %v8201_v17 = vmax.f32 %v3266_v56, 0.0  ;;  %v3914_v56 = vld [vmem:[#allocation5 + $0x13c8] sm:$0xff] }
 0x3f4   : > { %v3809_v38 = vld [vmem:[#allocation5 + $0x1080] sm:$0xff]  ;;  %4730 = vmatpush.msrb.mxu3 %v4209_v42  ;;  %v8178_v33 = vmax.f32 %v3261_v20, 0.0  ;;  %v3498_v42 = vld [vmem:[#allocation5 + $0x6c8] sm:$0xff] }
 0x3f5   : > { %v3945_v23 = vld [vmem:[#allocation5 + $0x14c0] sm:$0xff]  ;;  %4672 = vmatpush.msrb.mxu0 %v3809_v38  ;;  %v3346_v20 = vld [vmem:[#allocation5 + $0x208] sm:$0xff] }
 0x3f6   : > { %v4065_v30 = vld [vmem:[#allocation5 + $0x1880] sm:$0xff]  ;;  %4691 = vmatpush.msrb.mxu1 %v3945_v23  ;;  %4595 = vmatmul.f32.vlgmr.msra.gmra.mxu0 %v8178_v33 }
 0x3f7   : > { %v4201_v24 = vld [vmem:[#allocation5 + $0x1cc0] sm:$0xff]  ;;  %4712 = vmatpush.msrb.mxu2 %v4065_v30  ;;  %v3354_v30 = vld [vmem:[#allocation5 + $0x248] sm:$0xff] }
 0x3f8   : > { %v3230_v45 = vld [vmem:[#allocation2 + $0x10] sm:$0xff]  ;;  %4731 = vmatpush.msrb.mxu3 %v4201_v24 }
 0x3f9   : > { %v3801_v47 = vld [vmem:[#allocation5 + $0x1040] sm:$0xff]  ;;  %v3264_v25 = vadd.f32 %v3244_v48, %v3230_v45 }
 0x3fa   : > { %v3937_v27 = vld [vmem:[#allocation5 + $0x1480] sm:$0xff]  ;;  %4673 = vmatpush.msrb.mxu0 %v3801_v47  ;;  %v3338_v47 = vld [vmem:[#allocation5 + $0x1c8] sm:$0xff] }
 0x3fb   : > { %v4057_v18 = vld [vmem:[#allocation5 + $0x1840] sm:$0xff]  ;;  %4692 = vmatpush.msrb.mxu1 %v3937_v27  ;;  %v8185_v59 = vmax.f32 %v3264_v25, 0.0  ;;  %v3474_v27 = vld [vmem:[#allocation5 + $0x608] sm:$0xff] }
 0x3fc   : > { %v4193_v49 = vld [vmem:[#allocation5 + $0x1c80] sm:$0xff]  ;;  %4713 = vmatpush.msrb.mxu2 %v4057_v18 }
 0x3fd   : > { %v3793_v29 = vld [vmem:[#allocation5 + $0x1000] sm:$0xff]  ;;  %4732 = vmatpush.msrb.mxu3 %v4193_v49 }
 0x3fe   : > { %v3929_v34 = vld [vmem:[#allocation5 + $0x1440] sm:$0xff]  ;;  %4674 = vmatpush.msrb.mxu0 %v3793_v29  ;;  %4655 = vmatmul.f32.vlgmr.msra.gmra.mxu3 %v8185_v59  ;;  %v3330_v29 = vld [vmem:[#allocation5 + $0x188] sm:$0xff] }
 0x3ff   : > { %v4049_v53 = vld [vmem:[#allocation5 + $0x1800] sm:$0xff]  ;;  %4693 = vmatpush.msrb.mxu1 %v3929_v34  ;;  %4675 = vmatmul.f32.vlgmr.msrb.gmra.mxu0 %v8196_v5  ;;  %v3466_v34 = vld [vmem:[#allocation5 + $0x5c8] sm:$0xff] }
 0x400   : > { %v4185_v55 = vld [vmem:[#allocation5 + $0x1c40] sm:$0xff]  ;;  %4714 = vmatpush.msrb.mxu2 %v4049_v53  ;;  %v3238_v53 = vld [vmem:[%s8336_s2 + $0x8] sm:$0x3] }
 0x401   : > { %v4425_v46 = vld [vmem:[#allocation5 + $0x23c0] sm:$0xff]  ;;  %4733 = vmatpush.msrb.mxu3 %v4185_v55  ;;  %4715 = vmatmul.f32.vlgmr.msrb.gmra.mxu2 %v8194_v31  ;;  %v3322_v55 = vld [vmem:[#allocation5 + $0x148] sm:$0xff]  ;;  %v3249_v8 = vperm.slane %v3238_v53, 0 }
 0x402   : > { %v3921_v37 = vld [vmem:[#allocation5 + $0x1400] sm:$0xff]  ;;  %4739 = vmatpush.msra.mxu0 %v4425_v46  ;;  %4779 = vmatpush.msra.mxu2 %v3402_v36  ;;  %v3458_v46 = vld [vmem:[#allocation5 + $0x588] sm:$0xff] }
 0x403   : > { %v4177_v14 = vld [vmem:[#allocation5 + $0x1c00] sm:$0xff]  ;;  %4694 = vmatpush.msrb.mxu1 %v3921_v37  ;;  %v3314_v37 = vld [vmem:[#allocation5 + $0x108] sm:$0xff] }
 0x404   : > { %v4417_v19 = vld [vmem:[#allocation5 + $0x2380] sm:$0xff]  ;;  %4734 = vmatpush.msrb.mxu3 %v4177_v14  ;;  %4780 = vmatpush.msra.mxu2 %v3394_v50  ;;  %v3450_v14 = vld [vmem:[#allocation5 + $0x548] sm:$0xff]  ;;  %v3250_v50 = vperm.slane %v3238_v53, 1 }
 0x405   : > { %v4553_v41 = vld [vmem:[#allocation5 + $0x27c0] sm:$0xff]  ;;  %4740 = vmatpush.msra.mxu0 %v4417_v19  ;;  %4695 = vmatmul.f32.vlgmr.msrb.gmra.mxu1 %v8201_v17  ;;  %v3746_v53 = vld [vmem:[#allocation5 + $0xe88] sm:$0xff] }
 0x406   : > { %v4409_v52 = vld [vmem:[#allocation5 + $0x2340] sm:$0xff]  ;;  %4759 = vmatpush.msra.mxu1 %v4553_v41  ;;  %4799 = vmatpush.msra.mxu3 %v3530_v15  ;;  %v3235_v41 = vld [vmem:[#allocation2 + $0x40] sm:$0xff] }
 0x407   : > { %v4545_v57 = vld [vmem:[#allocation5 + $0x2780] sm:$0xff]  ;;  %4741 = vmatpush.msra.mxu0 %v4409_v52  ;;  %4781 = vmatpush.msra.mxu2 %v3386_v62  ;;  %v3298_v52 = vld [vmem:[#allocation5 + $0x88] sm:$0xff]  ;;  %v3269_v60 = vadd.f32 %v3249_v8, %v3235_v41 }
 0x408   : > { %v4401_v6 = vld [vmem:[#allocation5 + $0x2300] sm:$0xff]  ;;  %4760 = vmatpush.msra.mxu1 %v4545_v57  ;;  %4800 = vmatpush.msra.mxu3 %v3522_v1  ;;  %v3434_v57 = vld [vmem:[#allocation5 + $0x4c8] sm:$0xff] }
 0x409   : > { %v4537_v7 = vld [vmem:[#allocation5 + $0x2740] sm:$0xff]  ;;  %4742 = vmatpush.msra.mxu0 %v4401_v6  ;;  %4782 = vmatpush.msra.mxu2 %v3378_v10  ;;  %v3270_v6 = vadd.f32 %v3250_v50, %v3236_v12  ;;  %v3282_v10 = vld [vmem:[#allocation5 + $0x8] sm:$0xff] }
 0x40a   : > { %v4393_v9 = vld [vmem:[#allocation5 + $0x22c0] sm:$0xff]  ;;  %4761 = vmatpush.msra.mxu1 %v4537_v7  ;;  %4801 = vmatpush.msra.mxu3 %v3514_v11  ;;  %v3418_v11 = vld [vmem:[#allocation5 + $0x448] sm:$0xff] }
 0x40b   : > { %v4529_v63 = vld [vmem:[#allocation5 + $0x2700] sm:$0xff]  ;;  %4743 = vmatpush.msra.mxu0 %v4393_v9  ;;  %4783 = vmatpush.msra.mxu2 %v3370_v13  ;;  %v8209_v9 = vmax.f32 %v3269_v60, 0.0  ;;  %v3594_v8 = vld [vmem:[#allocation5 + $0x9c8] sm:$0xff] }
 0x40c   : > { %v4385_v54 = vld [vmem:[#allocation5 + $0x2280] sm:$0xff]  ;;  %4762 = vmatpush.msra.mxu1 %v4529_v63  ;;  %4802 = vmatpush.msra.mxu3 %v3506_v21  ;;  %v3658_v63 = vld [vmem:[#allocation5 + $0xbc8] sm:$0xff]  ;;  %v8211_v21 = vmax.f32 %v3270_v6, 0.0 }
 0x40d   : > { %v4521_v39 = vld [vmem:[#allocation5 + $0x26c0] sm:$0xff]  ;;  %4735 = vmatmul.f32.vlgmr.msrb.gmra.mxu3 %v8198_v16  ;;  %4744 = vmatpush.msra.mxu0 %v4385_v54  ;;  %v3410_v54 = vld [vmem:[#allocation5 + $0x408] sm:$0xff] }
 0x40e   : > { %v4377_v38 = vld [vmem:[#allocation5 + $0x2240] sm:$0xff]  ;;  %4763 = vmatpush.msra.mxu1 %v4521_v39  ;;  %4784 = vmatpush.msra.mxu2 %v3362_v32  ;;  %v3650_v39 = vld [vmem:[#allocation5 + $0xb88] sm:$0xff] }
 0x40f   : > { %v4513_v23 = vld [vmem:[#allocation5 + $0x2680] sm:$0xff]  ;;  %4803 = vmatpush.msra.mxu3 %v3498_v42  ;;  %4745 = vmatpush.msra.mxu0 %v4377_v38  ;;  %v3786_v32 = vld [vmem:[#allocation5 + $0xfc8] sm:$0xff] }
 0x410   : > { %v4369_v48 = vld [vmem:[#allocation5 + $0x2200] sm:$0xff]  ;;  %4764 = vmatpush.msra.mxu1 %v4513_v23  ;;  %4785 = vmatpush.msra.mxu2 %v3354_v30  ;;  %v3906_v42 = vld [vmem:[#allocation5 + $0x1388] sm:$0xff] }
 0x411   : > { %v4505_v24 = vld [vmem:[#allocation5 + $0x2640] sm:$0xff]  ;;  %4804 = vmatpush.msra.mxu3 %v3490_v26  ;;  %4746 = vmatpush.msra.mxu0 %v4369_v48  ;;  %v4042_v38 = vld [vmem:[#allocation5 + $0x17c8] sm:$0xff] }
 0x412   : > { %v4361_v22 = vld [vmem:[#allocation5 + $0x21c0] sm:$0xff]  ;;  %4765 = vmatpush.msra.mxu1 %v4505_v24  ;;  %4786 = vmatpush.msra.mxu2 %v3346_v20  ;;  %v3642_v23 = vld [vmem:[#allocation5 + $0xb48] sm:$0xff] }
 0x413   : > { %v4497_v45 = vld [vmem:[#allocation5 + $0x2600] sm:$0xff]  ;;  %4805 = vmatpush.msra.mxu3 %v3482_v44  ;;  %4747 = vmatpush.msra.mxu0 %v4361_v22  ;;  %v3778_v30 = vld [vmem:[#allocation5 + $0xf88] sm:$0xff] }
 0x414   : > { %v4353_v18 = vld [vmem:[#allocation5 + $0x2180] sm:$0xff]  ;;  %4766 = vmatpush.msra.mxu1 %v4497_v45  ;;  %4787 = vmatpush.msra.mxu2 %v3338_v47  ;;  %v3898_v26 = vld [vmem:[#allocation5 + $0x1348] sm:$0xff] }
 0x415   : > { %v4489_v49 = vld [vmem:[#allocation5 + $0x25c0] sm:$0xff]  ;;  %4806 = vmatpush.msra.mxu3 %v3474_v27  ;;  %4748 = vmatpush.msra.mxu0 %v4353_v18  ;;  %v4034_v48 = vld [vmem:[#allocation5 + $0x1788] sm:$0xff] }
 0x416   : > { %v4345_v0 = vld [vmem:[#allocation5 + $0x2140] sm:$0xff]  ;;  %4767 = vmatpush.msra.mxu1 %v4489_v49  ;;  %4788 = vmatpush.msra.mxu2 %v3330_v29  ;;  %v3634_v24 = vld [vmem:[#allocation5 + $0xb08] sm:$0xff] }
 0x417   : > { %v4481_v25 = vld [vmem:[#allocation5 + $0x2580] sm:$0xff]  ;;  %4807 = vmatpush.msra.mxu3 %v3466_v34  ;;  %4749 = vmatpush.msra.mxu0 %v4345_v0  ;;  %v3770_v20 = vld [vmem:[#allocation5 + $0xf48] sm:$0xff] }
 0x418   : > { %v4337_v36 = vld [vmem:[#allocation5 + $0x2100] sm:$0xff]  ;;  %4768 = vmatpush.msra.mxu1 %v4481_v25  ;;  %4789 = vmatpush.msra.mxu2 %v3322_v55  ;;  %v3890_v44 = vld [vmem:[#allocation5 + $0x1308] sm:$0xff] }
 0x419   : > { %v4473_v61 = vld [vmem:[#allocation5 + $0x2540] sm:$0xff]  ;;  %4808 = vmatpush.msra.mxu3 %v3458_v46  ;;  %4750 = vmatpush.msra.mxu0 %v4337_v36  ;;  %v4026_v22 = vld [vmem:[#allocation5 + $0x1748] sm:$0xff] }
 0x41a   : > { %v4329_v40 = vld [vmem:[#allocation5 + $0x20c0] sm:$0xff]  ;;  %4769 = vmatpush.msra.mxu1 %v4473_v61  ;;  %4790 = vmatpush.msra.mxu2 %v3314_v37  ;;  %v3626_v45 = vld [vmem:[#allocation5 + $0xac8] sm:$0xff] }
 0x41b   : > { %v4465_v19 = vld [vmem:[#allocation5 + $0x2500] sm:$0xff]  ;;  %4809 = vmatpush.msra.mxu3 %v3450_v14  ;;  %4751 = vmatpush.msra.mxu0 %v4329_v40  ;;  %v3762_v47 = vld [vmem:[#allocation5 + $0xf08] sm:$0xff] }
 0x41c   : > { %v4321_v15 = vld [vmem:[#allocation5 + $0x2080] sm:$0xff]  ;;  %4770 = vmatpush.msra.mxu1 %v4465_v19  ;;  %4791 = vmatpush.msra.mxu2 %v3306_v3  ;;  %v3882_v27 = vld [vmem:[#allocation5 + $0x12c8] sm:$0xff] }
 0x41d   : > { %v4457_v51 = vld [vmem:[#allocation5 + $0x24c0] sm:$0xff]  ;;  %4810 = vmatpush.msra.mxu3 %v3442_v43  ;;  %4752 = vmatpush.msra.mxu0 %v4321_v15  ;;  %v4018_v18 = vld [vmem:[#allocation5 + $0x1708] sm:$0xff] }
 0x41e   : > { %v4313_v62 = vld [vmem:[#allocation5 + $0x2040] sm:$0xff]  ;;  %4771 = vmatpush.msra.mxu1 %v4457_v51  ;;  %4792 = vmatpush.msra.mxu2 %v3298_v52  ;;  %v3618_v49 = vld [vmem:[#allocation5 + $0xa88] sm:$0xff] }
 0x41f   : > { %v4449_v1 = vld [vmem:[#allocation5 + $0x2480] sm:$0xff]  ;;  %4811 = vmatpush.msra.mxu3 %v3434_v57  ;;  %4753 = vmatpush.msra.mxu0 %v4313_v62  ;;  %v3754_v29 = vld [vmem:[#allocation5 + $0xec8] sm:$0xff] }
 0x420   : > { %v4305_v7 = vld [vmem:[#allocation5 + $0x2000] sm:$0xff]  ;;  %4772 = vmatpush.msra.mxu1 %v4449_v1  ;;  %4793 = vmatpush.msra.mxu2 %v3290_v2  ;;  %v3874_v34 = vld [vmem:[#allocation5 + $0x1288] sm:$0xff] }
 0x421   : > { %v4441_v28 = vld [vmem:[#allocation5 + $0x2440] sm:$0xff]  ;;  %4812 = vmatpush.msra.mxu3 %v3426_v4  ;;  %4754 = vmatpush.msra.mxu0 %v4305_v7  ;;  %v4010_v0 = vld [vmem:[#allocation5 + $0x16c8] sm:$0xff] }
 0x422   : > { %4773 = vmatpush.msra.mxu1 %v4441_v28  ;;  %v4433_v13 = vld [vmem:[#allocation5 + $0x2400] sm:$0xff]  ;;  %4794 = vmatpush.msra.mxu2 %v3282_v10  ;;  %v3610_v25 = vld [vmem:[#allocation5 + $0xa48] sm:$0xff] }
 0x423   : > { %4813 = vmatpush.msra.mxu3 %v3418_v11  ;;  %4755 = vmatmul.f32.vlgmr.msra.gmra.mxu0 %v8209_v9  ;;  %v3866_v55 = vld [vmem:[#allocation5 + $0x1248] sm:$0xff] }
 0x424   : > { %4859 = vmatpush.msrb.mxu2 %v3914_v56  ;;  %4819 = vmatpush.msrb.mxu0 %v3658_v63  ;;  %v4002_v46 = vld [vmem:[#allocation5 + $0x1688] sm:$0xff] }
 0x425   : > { %4774 = vmatpush.msra.mxu1 %v4433_v13  ;;  %4814 = vmatpush.msra.mxu3 %v3410_v54  ;;  %v3602_v36 = vld [vmem:[#allocation5 + $0xa08] sm:$0xff] }
 0x426   : > { %4775 = vmatmul.f32.vlgmr.msra.gmra.mxu1 %v8211_v21  ;;  %4820 = vmatpush.msrb.mxu0 %v3650_v39  ;;  %v3738_v61 = vld [vmem:[#allocation5 + $0xe48] sm:$0xff] }
 0x427   : > { %4839 = vmatpush.msrb.mxu1 %v3786_v32  ;;  %4860 = vmatpush.msrb.mxu2 %v3906_v42  ;;  %v3858_v37 = vld [vmem:[#allocation5 + $0x1208] sm:$0xff] }
 0x428   : > { %4879 = vmatpush.msrb.mxu3 %v4042_v38  ;;  %4821 = vmatpush.msrb.mxu0 %v3642_v23  ;;  %v3994_v14 = vld [vmem:[#allocation5 + $0x1648] sm:$0xff] }
 0x429   : > { %4840 = vmatpush.msrb.mxu1 %v3778_v30  ;;  %4861 = vmatpush.msrb.mxu2 %v3898_v26  ;;  %v3730_v40 = vld [vmem:[#allocation5 + $0xe08] sm:$0xff] }
 0x42a   : > { %4880 = vmatpush.msrb.mxu3 %v4034_v48  ;;  %4822 = vmatpush.msrb.mxu0 %v3634_v24  ;;  %v3850_v19 = vld [vmem:[#allocation5 + $0x11c8] sm:$0xff] }
 0x42b   : > { %4841 = vmatpush.msrb.mxu1 %v3770_v20  ;;  %4862 = vmatpush.msrb.mxu2 %v3890_v44  ;;  %v3986_v41 = vld [vmem:[#allocation5 + $0x1608] sm:$0xff] }
 0x42c   : > { %4881 = vmatpush.msrb.mxu3 %v4026_v22  ;;  %4823 = vmatpush.msrb.mxu0 %v3626_v45  ;;  %v3586_v3 = vld [vmem:[#allocation5 + $0x988] sm:$0xff] }
 0x42d   : > { %4842 = vmatpush.msrb.mxu1 %v3762_v47  ;;  %4863 = vmatpush.msrb.mxu2 %v3882_v27  ;;  %v3722_v43 = vld [vmem:[#allocation5 + $0xdc8] sm:$0xff] }
 0x42e   : > { %4882 = vmatpush.msrb.mxu3 %v4018_v18  ;;  %4824 = vmatpush.msrb.mxu0 %v3618_v49  ;;  %v3842_v50 = vld [vmem:[#allocation5 + $0x1188] sm:$0xff] }
 0x42f   : > { %4843 = vmatpush.msrb.mxu1 %v3754_v29  ;;  %4864 = vmatpush.msrb.mxu2 %v3874_v34  ;;  %v3978_v15 = vld [vmem:[#allocation5 + $0x15c8] sm:$0xff] }
 0x430   : > { %4883 = vmatpush.msrb.mxu3 %v4010_v0  ;;  %4825 = vmatpush.msrb.mxu0 %v3610_v25  ;;  %v3578_v51 = vld [vmem:[#allocation5 + $0x948] sm:$0xff] }
 0x431   : > { %4844 = vmatpush.msrb.mxu1 %v3746_v53  ;;  %4865 = vmatpush.msrb.mxu2 %v3866_v55  ;;  %v3714_v12 = vld [vmem:[#allocation5 + $0xd88] sm:$0xff] }
 0x432   : > { %4884 = vmatpush.msrb.mxu3 %v4002_v46  ;;  %4826 = vmatpush.msrb.mxu0 %v3602_v36  ;;  %v3834_v52 = vld [vmem:[#allocation5 + $0x1148] sm:$0xff] }
 0x433   : > { %4845 = vmatpush.msrb.mxu1 %v3738_v61  ;;  %4866 = vmatpush.msrb.mxu2 %v3858_v37  ;;  %v3970_v57 = vld [vmem:[#allocation5 + $0x1588] sm:$0xff] }
 0x434   : > { %4885 = vmatpush.msrb.mxu3 %v3994_v14  ;;  %4827 = vmatpush.msrb.mxu0 %v3594_v8  ;;  %v3570_v60 = vld [vmem:[#allocation5 + $0x908] sm:$0xff] }
 0x435   : > { %4846 = vmatpush.msrb.mxu1 %v3730_v40  ;;  %4867 = vmatpush.msrb.mxu2 %v3850_v19  ;;  %v3706_v62 = vld [vmem:[#allocation5 + $0xd48] sm:$0xff] }
 0x436   : > { %4886 = vmatpush.msrb.mxu3 %v3986_v41  ;;  %4828 = vmatpush.msrb.mxu0 %v3586_v3  ;;  %v3826_v1 = vld [vmem:[#allocation5 + $0x1108] sm:$0xff] }
 0x437   : > { %4847 = vmatpush.msrb.mxu1 %v3722_v43  ;;  %4868 = vmatpush.msrb.mxu2 %v3842_v50  ;;  %v3962_v2 = vld [vmem:[#allocation5 + $0x1548] sm:$0xff] }
 0x438   : > { %4887 = vmatpush.msrb.mxu3 %v3978_v15  ;;  %4829 = vmatpush.msrb.mxu0 %v3578_v51  ;;  %v3562_v4 = vld [vmem:[#allocation5 + $0x8c8] sm:$0xff] }
 0x439   : > { %4848 = vmatpush.msrb.mxu1 %v3714_v12  ;;  %4869 = vmatpush.msrb.mxu2 %v3834_v52  ;;  %v3698_v6 = vld [vmem:[#allocation5 + $0xd08] sm:$0xff] }
 0x43a   : > { %4888 = vmatpush.msrb.mxu3 %v3970_v57  ;;  %4830 = vmatpush.msrb.mxu0 %v3570_v60  ;;  %v3818_v7 = vld [vmem:[#allocation5 + $0x10c8] sm:$0xff] }
 0x43b   : > { %4849 = vmatpush.msrb.mxu1 %v3706_v62  ;;  %v3954_v28 = vld [vmem:[#allocation5 + $0x1508] sm:$0xff]  ;;  %4870 = vmatpush.msrb.mxu2 %v3826_v1 }
 0x43c   : > { %4889 = vmatpush.msrb.mxu3 %v3962_v2  ;;  %v3554_v10 = vld [vmem:[#allocation5 + $0x888] sm:$0xff]  ;;  %4831 = vmatpush.msrb.mxu0 %v3562_v4 }
 0x43d   : > { %v3690_v11 = vld [vmem:[#allocation5 + $0xcc8] sm:$0xff]  ;;  %4850 = vmatpush.msrb.mxu1 %v3698_v6  ;;  %4871 = vmatpush.msrb.mxu2 %v3818_v7 }
 0x43e   : > { %v3810_v56 = vld [vmem:[#allocation5 + $0x1088] sm:$0xff]  ;;  %4890 = vmatpush.msrb.mxu3 %v3954_v28  ;;  %4832 = vmatpush.msrb.mxu0 %v3554_v10 }
 0x43f   : > { %v3946_v63 = vld [vmem:[#allocation5 + $0x14c8] sm:$0xff]  ;;  %4851 = vmatpush.msrb.mxu1 %v3690_v11  ;;  %4872 = vmatpush.msrb.mxu2 %v3810_v56 }
 0x440   : > { %v3546_v13 = vld [vmem:[#allocation5 + $0x848] sm:$0xff]  ;;  %4891 = vmatpush.msrb.mxu3 %v3946_v63  ;;  %4795 = vmatmul.f32.vlgmr.msra.gmra.mxu2 %v8178_v33 }
 0x441   : > { %v3682_v54 = vld [vmem:[#allocation5 + $0xc88] sm:$0xff]  ;;  %4833 = vmatpush.msrb.mxu0 %v3546_v13  ;;  %4815 = vmatmul.f32.vlgmr.msra.gmra.mxu3 %v8183_v58 }
 0x442   : > { %v3802_v39 = vld [vmem:[#allocation5 + $0x1048] sm:$0xff]  ;;  %4852 = vmatpush.msrb.mxu1 %v3682_v54 }
 0x443   : > { %v3938_v32 = vld [vmem:[#allocation5 + $0x1488] sm:$0xff]  ;;  %4873 = vmatpush.msrb.mxu2 %v3802_v39 }
 0x444   : > { %v3538_v42 = vld [vmem:[#allocation5 + $0x808] sm:$0xff]  ;;  %4892 = vmatpush.msrb.mxu3 %v3938_v32 }
 0x445   : > { %v3674_v38 = vld [vmem:[#allocation5 + $0xc48] sm:$0xff]  ;;  %4834 = vmatpush.msrb.mxu0 %v3538_v42 }
 0x446   : > { %v3794_v23 = vld [vmem:[#allocation5 + $0x1008] sm:$0xff]  ;;  %4853 = vmatpush.msrb.mxu1 %v3674_v38  ;;  %4835 = vmatmul.f32.vlgmr.msrb.gmra.mxu0 %v8180_v35 }
 0x447   : > { %v3930_v30 = vld [vmem:[#allocation5 + $0x1448] sm:$0xff]  ;;  %4874 = vmatpush.msrb.mxu2 %v3794_v23 }
 0x448   : > { %v4170_v26 = vld [vmem:[#allocation5 + $0x1bc8] sm:$0xff]  ;;  %4893 = vmatpush.msrb.mxu3 %v3930_v30  ;;  %4875 = vmatmul.f32.vlgmr.msrb.gmra.mxu2 %v8196_v5 }
 0x449   : > { %v4426_v48 = vld [vmem:[#allocation5 + $0x23c8] sm:$0xff]  ;;  %4899 = vmatpush.msra.mxu0 %v4170_v26 }
 0x44a   : > { %v3666_v24 = vld [vmem:[#allocation5 + $0xc08] sm:$0xff]  ;;  %4939 = vmatpush.msra.mxu2 %v4426_v48 }
 0x44b   : > { %v3922_v20 = vld [vmem:[#allocation5 + $0x1408] sm:$0xff]  ;;  %4854 = vmatpush.msrb.mxu1 %v3666_v24 }
 0x44c   : > { %v4162_v44 = vld [vmem:[#allocation5 + $0x1b88] sm:$0xff]  ;;  %4894 = vmatpush.msrb.mxu3 %v3922_v20  ;;  %4855 = vmatmul.f32.vlgmr.msrb.gmra.mxu1 %v8185_v59 }
 0x44d   : > { %v4298_v22 = vld [vmem:[#allocation5 + $0x1fc8] sm:$0xff]  ;;  %4900 = vmatpush.msra.mxu0 %v4162_v44  ;;  %4895 = vmatmul.f32.vlgmr.msrb.gmra.mxu3 %v8201_v17 }
 0x44e   : > { %v4418_v45 = vld [vmem:[#allocation5 + $0x2388] sm:$0xff]  ;;  %4919 = vmatpush.msra.mxu1 %v4298_v22 }
 0x44f   : > { %v4554_v47 = vld [vmem:[#allocation5 + $0x27c8] sm:$0xff]  ;;  %4940 = vmatpush.msra.mxu2 %v4418_v45 }
 0x450   : > { %v4154_v27 = vld [vmem:[#allocation5 + $0x1b48] sm:$0xff]  ;;  %4959 = vmatpush.msra.mxu3 %v4554_v47 }
 0x451   : > { %v4290_v18 = vld [vmem:[#allocation5 + $0x1f88] sm:$0xff]  ;;  %4901 = vmatpush.msra.mxu0 %v4154_v27 }
 0x452   : > { %v4410_v49 = vld [vmem:[#allocation5 + $0x2348] sm:$0xff]  ;;  %4920 = vmatpush.msra.mxu1 %v4290_v18 }
 0x453   : > { %v4546_v29 = vld [vmem:[#allocation5 + $0x2788] sm:$0xff]  ;;  %4941 = vmatpush.msra.mxu2 %v4410_v49  ;;  %v3403_v49 = vld [vmem:[#allocation5 + $0x3d0] sm:$0xff] }
 0x454   : > { %v4146_v34 = vld [vmem:[#allocation5 + $0x1b08] sm:$0xff]  ;;  %4960 = vmatpush.msra.mxu3 %v4546_v29  ;;  %v3659_v29 = vld [vmem:[#allocation5 + $0xbd0] sm:$0xff] }
 0x455   : > { %v4282_v0 = vld [vmem:[#allocation5 + $0x1f48] sm:$0xff]  ;;  %4902 = vmatpush.msra.mxu0 %v4146_v34 }
 0x456   : > { %v4402_v25 = vld [vmem:[#allocation5 + $0x2308] sm:$0xff]  ;;  %4921 = vmatpush.msra.mxu1 %v4282_v0 }
 0x457   : > { %v4538_v53 = vld [vmem:[#allocation5 + $0x2748] sm:$0xff]  ;;  %4942 = vmatpush.msra.mxu2 %v4402_v25  ;;  %v3395_v25 = vld [vmem:[#allocation5 + $0x390] sm:$0xff] }
 0x458   : > { %v4138_v55 = vld [vmem:[#allocation5 + $0x1ac8] sm:$0xff]  ;;  %4961 = vmatpush.msra.mxu3 %v4538_v53  ;;  %v3531_v53 = vld [vmem:[#allocation5 + $0x7d0] sm:$0xff] }
 0x459   : > { %v4274_v46 = vld [vmem:[#allocation5 + $0x1f08] sm:$0xff]  ;;  %4903 = vmatpush.msra.mxu0 %v4138_v55  ;;  %v3651_v55 = vld [vmem:[#allocation5 + $0xb90] sm:$0xff] }
 0x45a   : > { %v4394_v36 = vld [vmem:[#allocation5 + $0x22c8] sm:$0xff]  ;;  %4922 = vmatpush.msra.mxu1 %v4274_v46  ;;  %v3787_v46 = vld [vmem:[#allocation5 + $0xfd0] sm:$0xff] }
 0x45b   : > { %v4530_v61 = vld [vmem:[#allocation5 + $0x2708] sm:$0xff]  ;;  %4943 = vmatpush.msra.mxu2 %v4394_v36  ;;  %v3387_v36 = vld [vmem:[#allocation5 + $0x350] sm:$0xff] }
 0x45c   : > { %v4130_v37 = vld [vmem:[#allocation5 + $0x1a88] sm:$0xff]  ;;  %4962 = vmatpush.msra.mxu3 %v4530_v61  ;;  %v3523_v61 = vld [vmem:[#allocation5 + $0x790] sm:$0xff] }
 0x45d   : > { %v4266_v14 = vld [vmem:[#allocation5 + $0x1ec8] sm:$0xff]  ;;  %4904 = vmatpush.msra.mxu0 %v4130_v37  ;;  %v3643_v37 = vld [vmem:[#allocation5 + $0xb50] sm:$0xff] }
 0x45e   : > { %v4386_v8 = vld [vmem:[#allocation5 + $0x2288] sm:$0xff]  ;;  %4923 = vmatpush.msra.mxu1 %v4266_v14  ;;  %v3779_v14 = vld [vmem:[#allocation5 + $0xf90] sm:$0xff] }
 0x45f   : > { %v4522_v40 = vld [vmem:[#allocation5 + $0x26c8] sm:$0xff]  ;;  %4944 = vmatpush.msra.mxu2 %v4386_v8  ;;  %v3379_v8 = vld [vmem:[#allocation5 + $0x310] sm:$0xff] }
 0x460   : > { %v4122_v19 = vld [vmem:[#allocation5 + $0x1a48] sm:$0xff]  ;;  %4963 = vmatpush.msra.mxu3 %v4522_v40  ;;  %v3515_v40 = vld [vmem:[#allocation5 + $0x750] sm:$0xff] }
 0x461   : > { %v4258_v41 = vld [vmem:[#allocation5 + $0x1e88] sm:$0xff]  ;;  %4905 = vmatpush.msra.mxu0 %v4122_v19  ;;  %v3635_v19 = vld [vmem:[#allocation5 + $0xb10] sm:$0xff] }
 0x462   : > { %v4378_v3 = vld [vmem:[#allocation5 + $0x2248] sm:$0xff]  ;;  %4924 = vmatpush.msra.mxu1 %v4258_v41  ;;  %v3771_v41 = vld [vmem:[#allocation5 + $0xf50] sm:$0xff] }
 0x463   : > { %v4514_v43 = vld [vmem:[#allocation5 + $0x2688] sm:$0xff]  ;;  %4945 = vmatpush.msra.mxu2 %v4378_v3  ;;  %v3371_v3 = vld [vmem:[#allocation5 + $0x2d0] sm:$0xff] }
 0x464   : > { %v4114_v50 = vld [vmem:[#allocation5 + $0x1a08] sm:$0xff]  ;;  %4964 = vmatpush.msra.mxu3 %v4514_v43  ;;  %v3507_v43 = vld [vmem:[#allocation5 + $0x710] sm:$0xff] }
 0x465   : > { %v4250_v15 = vld [vmem:[#allocation5 + $0x1e48] sm:$0xff]  ;;  %4906 = vmatpush.msra.mxu0 %v4114_v50  ;;  %v3627_v50 = vld [vmem:[#allocation5 + $0xad0] sm:$0xff] }
 0x466   : > { %v4370_v51 = vld [vmem:[#allocation5 + $0x2208] sm:$0xff]  ;;  %4925 = vmatpush.msra.mxu1 %v4250_v15  ;;  %v3763_v15 = vld [vmem:[#allocation5 + $0xf10] sm:$0xff] }
 0x467   : > { %v4506_v12 = vld [vmem:[#allocation5 + $0x2648] sm:$0xff]  ;;  %4946 = vmatpush.msra.mxu2 %v4370_v51  ;;  %v3363_v51 = vld [vmem:[#allocation5 + $0x290] sm:$0xff] }
 0x468   : > { %v4106_v52 = vld [vmem:[#allocation5 + $0x19c8] sm:$0xff]  ;;  %4965 = vmatpush.msra.mxu3 %v4506_v12  ;;  %v3499_v12 = vld [vmem:[#allocation5 + $0x6d0] sm:$0xff] }
 0x469   : > { %v4242_v57 = vld [vmem:[#allocation5 + $0x1e08] sm:$0xff]  ;;  %4907 = vmatpush.msra.mxu0 %v4106_v52  ;;  %v3619_v52 = vld [vmem:[#allocation5 + $0xa90] sm:$0xff] }
 0x46a   : > { %v4362_v60 = vld [vmem:[#allocation5 + $0x21c8] sm:$0xff]  ;;  %4926 = vmatpush.msra.mxu1 %v4242_v57  ;;  %v3755_v57 = vld [vmem:[#allocation5 + $0xed0] sm:$0xff] }
 0x46b   : > { %v4498_v62 = vld [vmem:[#allocation5 + $0x2608] sm:$0xff]  ;;  %4947 = vmatpush.msra.mxu2 %v4362_v60  ;;  %v3355_v60 = vld [vmem:[#allocation5 + $0x250] sm:$0xff] }
 0x46c   : > { %v4098_v1 = vld [vmem:[#allocation5 + $0x1988] sm:$0xff]  ;;  %4966 = vmatpush.msra.mxu3 %v4498_v62  ;;  %v3491_v62 = vld [vmem:[#allocation5 + $0x690] sm:$0xff] }
 0x46d   : > { %v4234_v2 = vld [vmem:[#allocation5 + $0x1dc8] sm:$0xff]  ;;  %4908 = vmatpush.msra.mxu0 %v4098_v1  ;;  %v3611_v1 = vld [vmem:[#allocation5 + $0xa50] sm:$0xff] }
 0x46e   : > { %v4354_v4 = vld [vmem:[#allocation5 + $0x2188] sm:$0xff]  ;;  %4927 = vmatpush.msra.mxu1 %v4234_v2  ;;  %v3747_v2 = vld [vmem:[#allocation5 + $0xe90] sm:$0xff] }
 0x46f   : > { %v4490_v6 = vld [vmem:[#allocation5 + $0x25c8] sm:$0xff]  ;;  %4948 = vmatpush.msra.mxu2 %v4354_v4  ;;  %v3347_v4 = vld [vmem:[#allocation5 + $0x210] sm:$0xff] }
 0x470   : > { %v4090_v7 = vld [vmem:[#allocation5 + $0x1948] sm:$0xff]  ;;  %4967 = vmatpush.msra.mxu3 %v4490_v6  ;;  %v3483_v6 = vld [vmem:[#allocation5 + $0x650] sm:$0xff] }
 0x471   : > { %v4226_v28 = vld [vmem:[#allocation5 + $0x1d88] sm:$0xff]  ;;  %4909 = vmatpush.msra.mxu0 %v4090_v7  ;;  %v3603_v7 = vld [vmem:[#allocation5 + $0xa10] sm:$0xff] }
 0x472   : > { %v4346_v10 = vld [vmem:[#allocation5 + $0x2148] sm:$0xff]  ;;  %4928 = vmatpush.msra.mxu1 %v4226_v28  ;;  %v3739_v28 = vld [vmem:[#allocation5 + $0xe50] sm:$0xff] }
 0x473   : > { %v4482_v11 = vld [vmem:[#allocation5 + $0x2588] sm:$0xff]  ;;  %4949 = vmatpush.msra.mxu2 %v4346_v10  ;;  %v3339_v10 = vld [vmem:[#allocation5 + $0x1d0] sm:$0xff] }
 0x474   : > { %v4082_v56 = vld [vmem:[#allocation5 + $0x1908] sm:$0xff]  ;;  %4968 = vmatpush.msra.mxu3 %v4482_v11  ;;  %v3475_v11 = vld [vmem:[#allocation5 + $0x610] sm:$0xff] }
 0x475   : > { %v4218_v63 = vld [vmem:[#allocation5 + $0x1d48] sm:$0xff]  ;;  %4910 = vmatpush.msra.mxu0 %v4082_v56  ;;  %v3595_v56 = vld [vmem:[#allocation5 + $0x9d0] sm:$0xff] }
 0x476   : > { %v4338_v13 = vld [vmem:[#allocation5 + $0x2108] sm:$0xff]  ;;  %4929 = vmatpush.msra.mxu1 %v4218_v63  ;;  %v3731_v63 = vld [vmem:[#allocation5 + $0xe10] sm:$0xff] }
 0x477   : > { %v4474_v54 = vld [vmem:[#allocation5 + $0x2548] sm:$0xff]  ;;  %4950 = vmatpush.msra.mxu2 %v4338_v13  ;;  %v3331_v13 = vld [vmem:[#allocation5 + $0x190] sm:$0xff] }
 0x478   : > { %v4074_v39 = vld [vmem:[#allocation5 + $0x18c8] sm:$0xff]  ;;  %4969 = vmatpush.msra.mxu3 %v4474_v54  ;;  %v3467_v54 = vld [vmem:[#allocation5 + $0x5d0] sm:$0xff] }
 0x479   : > { %v4210_v32 = vld [vmem:[#allocation5 + $0x1d08] sm:$0xff]  ;;  %4911 = vmatpush.msra.mxu0 %v4074_v39  ;;  %v3587_v39 = vld [vmem:[#allocation5 + $0x990] sm:$0xff] }
 0x47a   : > { %v4330_v42 = vld [vmem:[#allocation5 + $0x20c8] sm:$0xff]  ;;  %4930 = vmatpush.msra.mxu1 %v4210_v32  ;;  %v3723_v32 = vld [vmem:[#allocation5 + $0xdd0] sm:$0xff] }
 0x47b   : > { %v4466_v38 = vld [vmem:[#allocation5 + $0x2508] sm:$0xff]  ;;  %4951 = vmatpush.msra.mxu2 %v4330_v42  ;;  %v3323_v42 = vld [vmem:[#allocation5 + $0x150] sm:$0xff] }
 0x47c   : > { %v4066_v23 = vld [vmem:[#allocation5 + $0x1888] sm:$0xff]  ;;  %4970 = vmatpush.msra.mxu3 %v4466_v38  ;;  %v3459_v38 = vld [vmem:[#allocation5 + $0x590] sm:$0xff] }
 0x47d   : > { %v4202_v30 = vld [vmem:[#allocation5 + $0x1cc8] sm:$0xff]  ;;  %4912 = vmatpush.msra.mxu0 %v4066_v23  ;;  %v3579_v23 = vld [vmem:[#allocation5 + $0x950] sm:$0xff] }
 0x47e   : > { %v4322_v26 = vld [vmem:[#allocation5 + $0x2088] sm:$0xff]  ;;  %4931 = vmatpush.msra.mxu1 %v4202_v30  ;;  %v3715_v30 = vld [vmem:[#allocation5 + $0xd90] sm:$0xff] }
 0x47f   : > { %v4458_v48 = vld [vmem:[#allocation5 + $0x24c8] sm:$0xff]  ;;  %4952 = vmatpush.msra.mxu2 %v4322_v26  ;;  %v3315_v26 = vld [vmem:[#allocation5 + $0x110] sm:$0xff] }
 0x480   : > { %v4058_v24 = vld [vmem:[#allocation5 + $0x1848] sm:$0xff]  ;;  %4971 = vmatpush.msra.mxu3 %v4458_v48  ;;  %v3451_v48 = vld [vmem:[#allocation5 + $0x550] sm:$0xff] }
 0x481   : > { %v4194_v20 = vld [vmem:[#allocation5 + $0x1c88] sm:$0xff]  ;;  %4913 = vmatpush.msra.mxu0 %v4058_v24  ;;  %v8225_v24 = vld [vmem:[#allocation7] sm:$0xff] }
 0x482   : > { %v4314_v44 = vld [vmem:[#allocation5 + $0x2048] sm:$0xff]  ;;  %4932 = vmatpush.msra.mxu1 %v4194_v20  ;;  %v3571_v20 = vld [vmem:[#allocation5 + $0x910] sm:$0xff] }
 0x483   : > { %v4450_v22 = vld [vmem:[#allocation5 + $0x2488] sm:$0xff]  ;;  %4953 = vmatpush.msra.mxu2 %v4314_v44  ;;  %v3707_v44 = vld [vmem:[#allocation5 + $0xd50] sm:$0xff] }
 0x484   : > { %v4050_v45 = vld [vmem:[#allocation5 + $0x1808] sm:$0xff]  ;;  %4972 = vmatpush.msra.mxu3 %v4450_v22  ;;  %v3307_v22 = vld [vmem:[#allocation5 + $0xd0] sm:$0xff] }
 0x485   : > { %v4186_v47 = vld [vmem:[#allocation5 + $0x1c48] sm:$0xff]  ;;  %4914 = vmatpush.msra.mxu0 %v4050_v45  ;;  %v3443_v45 = vld [vmem:[#allocation5 + $0x510] sm:$0xff] }
 0x486   : > { %v4306_v27 = vld [vmem:[#allocation5 + $0x2008] sm:$0xff]  ;;  %4933 = vmatpush.msra.mxu1 %v4186_v47  ;;  %4915 = vmatmul.f32.vlgmr.msra.gmra.mxu0 %v8194_v31  ;;  %v3563_v47 = vld [vmem:[#allocation5 + $0x8d0] sm:$0xff] }
 0x487   : > { %v4442_v18 = vld [vmem:[#allocation5 + $0x2448] sm:$0xff]  ;;  %4954 = vmatpush.msra.mxu2 %v4306_v27  ;;  %4979 = vmatpush.msrb.mxu0 %v3403_v49  ;;  %v3699_v27 = vld [vmem:[#allocation5 + $0xd10] sm:$0xff] }
 0x488   : > { %4973 = vmatpush.msra.mxu3 %v4442_v18  ;;  %v4178_v34 = vld [vmem:[#allocation5 + $0x1c08] sm:$0xff]  ;;  %4955 = vmatmul.f32.vlgmr.msra.gmra.mxu2 %v8209_v9  ;;  %v4563_v18 = vperm.slane %v8225_v24, 0  ;;  %v3299_v49 = vld [vmem:[#allocation5 + $0x90] sm:$0xff] }
 0x489   : > { %v4434_v0 = vld [vmem:[#allocation5 + $0x2408] sm:$0xff]  ;;  %5019 = vmatpush.msrb.mxu2 %v3659_v29  ;;  %4934 = vmatpush.msra.mxu1 %v4178_v34  ;;  %v3435_v29 = vld [vmem:[#allocation5 + $0x4d0] sm:$0xff]  ;;  %v4596_v34 = vpop.f32.mrf.mxu0 }
 0x48a   : > { %4974 = vmatpush.msra.mxu3 %v4434_v0  ;;  %4935 = vmatmul.f32.vlgmr.msra.gmra.mxu1 %v8198_v16  ;;  %v3555_v0 = vld [vmem:[#allocation5 + $0x890] sm:$0xff] }
 0x48b   : > { %4975 = vmatmul.f32.vlgmr.msra.gmra.mxu3 %v8211_v21  ;;  %4980 = vmatpush.msrb.mxu0 %v3395_v25  ;;  %v3691_v25 = vld [vmem:[#allocation5 + $0xcd0] sm:$0xff] }
 0x48c   : > { %4999 = vmatpush.msrb.mxu1 %v3531_v53  ;;  %5020 = vmatpush.msrb.mxu2 %v3651_v55  ;;  %v3291_v53 = vld [vmem:[#allocation5 + $0x50] sm:$0xff] }
 0x48d   : > { %5039 = vmatpush.msrb.mxu3 %v3787_v46  ;;  %4981 = vmatpush.msrb.mxu0 %v3387_v36  ;;  %v3427_v55 = vld [vmem:[#allocation5 + $0x490] sm:$0xff] }
 0x48e   : > { %5000 = vmatpush.msrb.mxu1 %v3523_v61  ;;  %5021 = vmatpush.msrb.mxu2 %v3643_v37  ;;  %v3547_v46 = vld [vmem:[#allocation5 + $0x850] sm:$0xff]  ;;  %v4597_v61 = vadd.f32 %v4596_v34, %v4563_v18 }
 0x48f   : > { %5040 = vmatpush.msrb.mxu3 %v3779_v14  ;;  %4982 = vmatpush.msrb.mxu0 %v3379_v8  ;;  %v3683_v36 = vld [vmem:[#allocation5 + $0xc90] sm:$0xff]  ;;  %v4616_v8 = vpop.f32.mrf.mxu1 }
 0x490   : > { %5001 = vmatpush.msrb.mxu1 %v3515_v40  ;;  %5022 = vmatpush.msrb.mxu2 %v3635_v19  ;;  %v3283_v37 = vld [vmem:[#allocation5 + $0x10] sm:$0xff] }
 0x491   : > { %5041 = vmatpush.msrb.mxu3 %v3771_v41  ;;  %4983 = vmatpush.msrb.mxu0 %v3371_v3  ;;  %v3419_v14 = vld [vmem:[#allocation5 + $0x450] sm:$0xff] }
 0x492   : > { %5002 = vmatpush.msrb.mxu1 %v3507_v43  ;;  %5023 = vmatpush.msrb.mxu2 %v3627_v50  ;;  %v3539_v40 = vld [vmem:[#allocation5 + $0x810] sm:$0xff] }
 0x493   : > { %5042 = vmatpush.msrb.mxu3 %v3763_v15  ;;  %4984 = vmatpush.msrb.mxu0 %v3363_v51  ;;  %v3675_v19 = vld [vmem:[#allocation5 + $0xc50] sm:$0xff]  ;;  %v4617_v15 = vadd.f32 %v4616_v8, %v4597_v61 }
 0x494   : > { %5003 = vmatpush.msrb.mxu1 %v3499_v12  ;;  %5024 = vmatpush.msrb.mxu2 %v3619_v52  ;;  %v3915_v41 = vld [vmem:[#allocation5 + $0x13d0] sm:$0xff]  ;;  %v4636_v52 = vpop.f32.mrf.mxu2 }
 0x495   : > { %5043 = vmatpush.msrb.mxu3 %v3755_v57  ;;  %4985 = vmatpush.msrb.mxu0 %v3355_v60  ;;  %v4171_v3 = vld [vmem:[#allocation5 + $0x1bd0] sm:$0xff] }
 0x496   : > { %5004 = vmatpush.msrb.mxu1 %v3491_v62  ;;  %5025 = vmatpush.msrb.mxu2 %v3611_v1  ;;  %v3411_v43 = vld [vmem:[#allocation5 + $0x410] sm:$0xff] }
 0x497   : > { %5044 = vmatpush.msrb.mxu3 %v3747_v2  ;;  %4986 = vmatpush.msrb.mxu0 %v3347_v4  ;;  %v3667_v50 = vld [vmem:[#allocation5 + $0xc10] sm:$0xff] }
 0x498   : > { %5005 = vmatpush.msrb.mxu1 %v3483_v6  ;;  %5026 = vmatpush.msrb.mxu2 %v3603_v7  ;;  %v3907_v51 = vld [vmem:[#allocation5 + $0x1390] sm:$0xff]  ;;  %v4637_v6 = vadd.f32 %v4636_v52, %v4617_v15 }
 0x499   : > { %5045 = vmatpush.msrb.mxu3 %v3739_v28  ;;  %4987 = vmatpush.msrb.mxu0 %v3339_v10  ;;  %v4043_v12 = vld [vmem:[#allocation5 + $0x17d0] sm:$0xff]  ;;  %v4656_v10 = vpop.f32.mrf.mxu3 }
 0x49a   : > { %5006 = vmatpush.msrb.mxu1 %v3475_v11  ;;  %5027 = vmatpush.msrb.mxu2 %v3595_v56  ;;  %v4163_v57 = vld [vmem:[#allocation5 + $0x1b90] sm:$0xff] }
 0x49b   : > { %5046 = vmatpush.msrb.mxu3 %v3731_v63  ;;  %4988 = vmatpush.msrb.mxu0 %v3331_v13  ;;  %v4299_v60 = vld [vmem:[#allocation5 + $0x1fd0] sm:$0xff] }
 0x49c   : > { %5007 = vmatpush.msrb.mxu1 %v3467_v54  ;;  %5028 = vmatpush.msrb.mxu2 %v3587_v39  ;;  %v3899_v62 = vld [vmem:[#allocation5 + $0x1350] sm:$0xff] }
 0x49d   : > { %5047 = vmatpush.msrb.mxu3 %v3723_v32  ;;  %4989 = vmatpush.msrb.mxu0 %v3323_v42  ;;  %v4035_v1 = vld [vmem:[#allocation5 + $0x1790] sm:$0xff]  ;;  %v4657_v32 = vadd.f32 %v4656_v10, %v4637_v6 }
 0x49e   : > { %5008 = vmatpush.msrb.mxu1 %v3459_v38  ;;  %5029 = vmatpush.msrb.mxu2 %v3579_v23  ;;  %v4155_v2 = vld [vmem:[#allocation5 + $0x1b50] sm:$0xff]  ;;  %v4676_v23 = vpop.f32.mrf.mxu0 }
 0x49f   : > { %5048 = vmatpush.msrb.mxu3 %v3715_v30  ;;  %4990 = vmatpush.msrb.mxu0 %v3315_v26  ;;  %v4291_v4 = vld [vmem:[#allocation5 + $0x1f90] sm:$0xff] }
 0x4a0   : > { %5009 = vmatpush.msrb.mxu1 %v3451_v48  ;;  %5030 = vmatpush.msrb.mxu2 %v3571_v20  ;;  %v3891_v7 = vld [vmem:[#allocation5 + $0x1310] sm:$0xff] }
 0x4a1   : > { %5049 = vmatpush.msrb.mxu3 %v3707_v44  ;;  %4991 = vmatpush.msrb.mxu0 %v3307_v22  ;;  %v4027_v28 = vld [vmem:[#allocation5 + $0x1750] sm:$0xff]  ;;  %v4677_v44 = vadd.f32 %v4676_v23, %v4657_v32 }
 0x4a2   : > { %5010 = vmatpush.msrb.mxu1 %v3443_v45  ;;  %5031 = vmatpush.msrb.mxu2 %v3563_v47  ;;  %v4147_v11 = vld [vmem:[#allocation5 + $0x1b10] sm:$0xff]  ;;  %v4696_v47 = vpop.f32.mrf.mxu1 }
 0x4a3   : > { %5050 = vmatpush.msrb.mxu3 %v3699_v27  ;;  %4992 = vmatpush.msrb.mxu0 %v3299_v49  ;;  %v4283_v56 = vld [vmem:[#allocation5 + $0x1f50] sm:$0xff] }
 0x4a4   : > { %5011 = vmatpush.msrb.mxu1 %v3435_v29  ;;  %5032 = vmatpush.msrb.mxu2 %v3555_v0  ;;  %v3883_v63 = vld [vmem:[#allocation5 + $0x12d0] sm:$0xff] }
 0x4a5   : > { %5051 = vmatpush.msrb.mxu3 %v3691_v25  ;;  %4993 = vmatpush.msrb.mxu0 %v3291_v53  ;;  %v4019_v13 = vld [vmem:[#allocation5 + $0x1710] sm:$0xff]  ;;  %v4697_v25 = vadd.f32 %v4696_v47, %v4677_v44  ;;  %v3532_v47 = vld [vmem:[#allocation5 + $0x7d8] sm:$0xff] }
 0x4a6   : > { %5012 = vmatpush.msrb.mxu1 %v3427_v55  ;;  %5033 = vmatpush.msrb.mxu2 %v3547_v46  ;;  %v4139_v54 = vld [vmem:[#allocation5 + $0x1ad0] sm:$0xff]  ;;  %v4716_v46 = vpop.f32.mrf.mxu2  ;;  %v4756_v6 = vpop.f32.mrf.mxu0 }
 0x4a7   : > { %5052 = vmatpush.msrb.mxu3 %v3683_v36  ;;  %4994 = vmatpush.msrb.mxu0 %v3283_v37  ;;  %v4275_v39 = vld [vmem:[#allocation5 + $0x1f10] sm:$0xff] }
 0x4a8   : > { %5013 = vmatpush.msrb.mxu1 %v3419_v14  ;;  %5034 = vmatpush.msrb.mxu2 %v3539_v40  ;;  %v3875_v42 = vld [vmem:[#allocation5 + $0x1290] sm:$0xff] }
 0x4a9   : > { %5053 = vmatpush.msrb.mxu3 %v3675_v19  ;;  %5059 = vmatpush.msra.mxu0 %v3915_v41  ;;  %v4011_v38 = vld [vmem:[#allocation5 + $0x16d0] sm:$0xff]  ;;  %v4717_v19 = vadd.f32 %v4716_v46, %v4697_v25  ;;  %v3380_v25 = vld [vmem:[#allocation5 + $0x318] sm:$0xff] }
 0x4aa   : > { %5099 = vmatpush.msra.mxu2 %v4171_v3  ;;  %5014 = vmatpush.msrb.mxu1 %v3411_v43  ;;  %v4131_v30 = vld [vmem:[#allocation5 + $0x1a90] sm:$0xff]  ;;  %v4736_v43 = vpop.f32.mrf.mxu3 }
 0x4ab   : > { %5054 = vmatpush.msrb.mxu3 %v3667_v50  ;;  %5060 = vmatpush.msra.mxu0 %v3907_v51  ;;  %v4267_v26 = vld [vmem:[#allocation5 + $0x1ed0] sm:$0xff] }
 0x4ac   : > { %5079 = vmatpush.msra.mxu1 %v4043_v12  ;;  %5100 = vmatpush.msra.mxu2 %v4163_v57  ;;  %v3867_v48 = vld [vmem:[#allocation5 + $0x1250] sm:$0xff] }
 0x4ad   : > { %5119 = vmatpush.msra.mxu3 %v4299_v60  ;;  %5061 = vmatpush.msra.mxu0 %v3899_v62  ;;  %v4003_v20 = vld [vmem:[#allocation5 + $0x1690] sm:$0xff]  ;;  %v4737_v60 = vadd.f32 %v4736_v43, %v4717_v19  ;;  %v3492_v43 = vld [vmem:[#allocation5 + $0x698] sm:$0xff] }
 0x4ae   : > { %5080 = vmatpush.msra.mxu1 %v4035_v1  ;;  %5101 = vmatpush.msra.mxu2 %v4155_v2  ;;  %v4123_v22 = vld [vmem:[#allocation5 + $0x1a50] sm:$0xff] }
 0x4af   : > { %5120 = vmatpush.msra.mxu3 %v4291_v4  ;;  %5062 = vmatpush.msra.mxu0 %v3891_v7  ;;  %v4259_v45 = vld [vmem:[#allocation5 + $0x1e90] sm:$0xff]  ;;  %v4757_v10 = vadd.f32 %v4756_v6, %v4737_v60  ;;  %v3340_v60 = vld [vmem:[#allocation5 + $0x1d8] sm:$0xff] }
 0x4b0   : > { %5081 = vmatpush.msra.mxu1 %v4027_v28  ;;  %5102 = vmatpush.msra.mxu2 %v4147_v11  ;;  %v3859_v27 = vld [vmem:[#allocation5 + $0x1210] sm:$0xff]  ;;  %v3468_v6 = vld [vmem:[#allocation5 + $0x5d8] sm:$0xff] }
 0x4b1   : > { %5121 = vmatpush.msra.mxu3 %v4283_v56  ;;  %5063 = vmatpush.msra.mxu0 %v3883_v63  ;;  %v3995_v18 = vld [vmem:[#allocation5 + $0x1650] sm:$0xff]  ;;  %v4776_v63 = vpop.f32.mrf.mxu1 }
 0x4b2   : > { %5082 = vmatpush.msra.mxu1 %v4019_v13  ;;  %5103 = vmatpush.msra.mxu2 %v4139_v54  ;;  %v4115_v49 = vld [vmem:[#allocation5 + $0x1a10] sm:$0xff] }
 0x4b3   : > { %5122 = vmatpush.msra.mxu3 %v4275_v39  ;;  %5064 = vmatpush.msra.mxu0 %v3875_v42  ;;  %v4251_v29 = vld [vmem:[#allocation5 + $0x1e50] sm:$0xff]  ;;  %v4777_v39 = vadd.f32 %v4776_v63, %v4757_v10  ;;  %v3324_v10 = vld [vmem:[#allocation5 + $0x158] sm:$0xff] }
 0x4b4   : > { %5083 = vmatpush.msra.mxu1 %v4011_v38  ;;  %5104 = vmatpush.msra.mxu2 %v4131_v30  ;;  %v3851_v34 = vld [vmem:[#allocation5 + $0x11d0] sm:$0xff] }
 0x4b5   : > { %5123 = vmatpush.msra.mxu3 %v4267_v26  ;;  %5065 = vmatpush.msra.mxu0 %v3867_v48  ;;  %v3987_v0 = vld [vmem:[#allocation5 + $0x1610] sm:$0xff]  ;;  %6179 = vst [vmem:[%s8339_s5] sm:$0xff] %v4777_v39  ;;  %v3404_v26 = vld [vmem:[#allocation5 + $0x3d8] sm:$0xff] }
 0x4b6   : > { %5084 = vmatpush.msra.mxu1 %v4003_v20  ;;  %5105 = vmatpush.msra.mxu2 %v4123_v22  ;;  %v4107_v53 = vld [vmem:[#allocation5 + $0x19d0] sm:$0xff] }
 0x4b7   : > { %5124 = vmatpush.msra.mxu3 %v4259_v45  ;;  %5066 = vmatpush.msra.mxu0 %v3859_v27  ;;  %v4243_v55 = vld [vmem:[#allocation5 + $0x1e10] sm:$0xff]  ;;  %v3396_v45 = vld [vmem:[#allocation5 + $0x398] sm:$0xff] }
 0x4b8   : > { %5085 = vmatpush.msra.mxu1 %v3995_v18  ;;  %5106 = vmatpush.msra.mxu2 %v4115_v49  ;;  %v3843_v36 = vld [vmem:[#allocation5 + $0x1190] sm:$0xff]  ;;  %v3388_v49 = vld [vmem:[#allocation5 + $0x358] sm:$0xff] }
 0x4b9   : > { %5125 = vmatpush.msra.mxu3 %v4251_v29  ;;  %v3979_v61 = vld [vmem:[#allocation5 + $0x15d0] sm:$0xff]  ;;  %5067 = vmatpush.msra.mxu0 %v3851_v34  ;;  %v3524_v29 = vld [vmem:[#allocation5 + $0x798] sm:$0xff] }
 0x4ba   : > { %5086 = vmatpush.msra.mxu1 %v3987_v0  ;;  %v4099_v37 = vld [vmem:[#allocation5 + $0x1990] sm:$0xff]  ;;  %5107 = vmatpush.msra.mxu2 %v4107_v53  ;;  %v3516_v53 = vld [vmem:[#allocation5 + $0x758] sm:$0xff] }
 0x4bb   : > { %v4235_v14 = vld [vmem:[#allocation5 + $0x1dd0] sm:$0xff]  ;;  %5126 = vmatpush.msra.mxu3 %v4243_v55  ;;  %5068 = vmatpush.msra.mxu0 %v3843_v36  ;;  %v3372_v36 = vld [vmem:[#allocation5 + $0x2d8] sm:$0xff] }
 0x4bc   : > { %v3835_v8 = vld [vmem:[#allocation5 + $0x1150] sm:$0xff]  ;;  %5087 = vmatpush.msra.mxu1 %v3979_v61  ;;  %5108 = vmatpush.msra.mxu2 %v4099_v37  ;;  %v3508_v61 = vld [vmem:[#allocation5 + $0x718] sm:$0xff] }
 0x4bd   : > { %v3971_v40 = vld [vmem:[#allocation5 + $0x1590] sm:$0xff]  ;;  %5127 = vmatpush.msra.mxu3 %v4235_v14  ;;  %5069 = vmatpush.msra.mxu0 %v3835_v8  ;;  %v3364_v8 = vld [vmem:[#allocation5 + $0x298] sm:$0xff] }
 0x4be   : > { %v4091_v41 = vld [vmem:[#allocation5 + $0x1950] sm:$0xff]  ;;  %5088 = vmatpush.msra.mxu1 %v3971_v40  ;;  %4995 = vmatmul.f32.vlgmr.msrb.gmra.mxu0 %v8178_v33  ;;  %v3500_v40 = vld [vmem:[#allocation5 + $0x6d8] sm:$0xff] }
 0x4bf   : > { %v4227_v3 = vld [vmem:[#allocation5 + $0x1d90] sm:$0xff]  ;;  %5109 = vmatpush.msra.mxu2 %v4091_v41  ;;  %5015 = vmatmul.f32.vlgmr.msrb.gmra.mxu1 %v8183_v58 }
 0x4c0   : > { %v3827_v50 = vld [vmem:[#allocation5 + $0x1110] sm:$0xff]  ;;  %5128 = vmatpush.msra.mxu3 %v4227_v3  ;;  %5035 = vmatmul.f32.vlgmr.msrb.gmra.mxu2 %v8180_v35  ;;  %v3356_v3 = vld [vmem:[#allocation5 + $0x258] sm:$0xff] }
 0x4c1   : > { %v3963_v15 = vld [vmem:[#allocation5 + $0x1550] sm:$0xff]  ;;  %5070 = vmatpush.msra.mxu0 %v3827_v50  ;;  %5055 = vmatmul.f32.vlgmr.msrb.gmra.mxu3 %v8185_v59 }
 0x4c2   : > { %v4083_v51 = vld [vmem:[#allocation5 + $0x1910] sm:$0xff]  ;;  %5089 = vmatpush.msra.mxu1 %v3963_v15 }
 0x4c3   : > { %v4219_v12 = vld [vmem:[#allocation5 + $0x1d50] sm:$0xff]  ;;  %5110 = vmatpush.msra.mxu2 %v4083_v51  ;;  %v3348_v51 = vld [vmem:[#allocation5 + $0x218] sm:$0xff] }
 0x4c4   : > { %v3819_v52 = vld [vmem:[#allocation5 + $0x10d0] sm:$0xff]  ;;  %5129 = vmatpush.msra.mxu3 %v4219_v12  ;;  %v3484_v12 = vld [vmem:[#allocation5 + $0x658] sm:$0xff] }
 0x4c5   : > { %v3955_v57 = vld [vmem:[#allocation5 + $0x1510] sm:$0xff]  ;;  %5071 = vmatpush.msra.mxu0 %v3819_v52 }
 0x4c6   : > { %v4075_v62 = vld [vmem:[#allocation5 + $0x18d0] sm:$0xff]  ;;  %5090 = vmatpush.msra.mxu1 %v3955_v57 }
 0x4c7   : > { %v4211_v1 = vld [vmem:[#allocation5 + $0x1d10] sm:$0xff]  ;;  %5111 = vmatpush.msra.mxu2 %v4075_v62  ;;  %v3476_v62 = vld [vmem:[#allocation5 + $0x618] sm:$0xff] }
 0x4c8   : > { %v3811_v2 = vld [vmem:[#allocation5 + $0x1090] sm:$0xff]  ;;  %5130 = vmatpush.msra.mxu3 %v4211_v1 }
 0x4c9   : > { %v3947_v4 = vld [vmem:[#allocation5 + $0x14d0] sm:$0xff]  ;;  %5072 = vmatpush.msra.mxu0 %v3811_v2 }
 0x4ca   : > { %v4067_v7 = vld [vmem:[#allocation5 + $0x1890] sm:$0xff]  ;;  %5091 = vmatpush.msra.mxu1 %v3947_v4  ;;  %v3332_v4 = vld [vmem:[#allocation5 + $0x198] sm:$0xff] }
 0x4cb   : > { %v4203_v28 = vld [vmem:[#allocation5 + $0x1cd0] sm:$0xff]  ;;  %5112 = vmatpush.msra.mxu2 %v4067_v7 }
 0x4cc   : > { %v3803_v11 = vld [vmem:[#allocation5 + $0x1050] sm:$0xff]  ;;  %5131 = vmatpush.msra.mxu3 %v4203_v28 }
 0x4cd   : > { %v3939_v56 = vld [vmem:[#allocation5 + $0x1490] sm:$0xff]  ;;  %5073 = vmatpush.msra.mxu0 %v3803_v11  ;;  %v3460_v11 = vld [vmem:[#allocation5 + $0x598] sm:$0xff] }
 0x4ce   : > { %v4059_v13 = vld [vmem:[#allocation5 + $0x1850] sm:$0xff]  ;;  %5092 = vmatpush.msra.mxu1 %v3939_v56 }
 0x4cf   : > { %v4195_v54 = vld [vmem:[#allocation5 + $0x1c90] sm:$0xff]  ;;  %5113 = vmatpush.msra.mxu2 %v4059_v13  ;;  %v3316_v13 = vld [vmem:[#allocation5 + $0x118] sm:$0xff] }
 0x4d0   : > { %v3795_v32 = vld [vmem:[#allocation5 + $0x1010] sm:$0xff]  ;;  %5132 = vmatpush.msra.mxu3 %v4195_v54  ;;  %v3452_v54 = vld [vmem:[#allocation5 + $0x558] sm:$0xff] }
 0x4d1   : > { %v3931_v42 = vld [vmem:[#allocation5 + $0x1450] sm:$0xff]  ;;  %5074 = vmatpush.msra.mxu0 %v3795_v32 }
 0x4d2   : > { %v4051_v38 = vld [vmem:[#allocation5 + $0x1810] sm:$0xff]  ;;  %5093 = vmatpush.msra.mxu1 %v3931_v42  ;;  %5075 = vmatmul.f32.vlgmr.msra.gmra.mxu0 %v8196_v5  ;;  %v3308_v42 = vld [vmem:[#allocation5 + $0xd8] sm:$0xff] }
 0x4d3   : > { %v4187_v23 = vld [vmem:[#allocation5 + $0x1c50] sm:$0xff]  ;;  %5114 = vmatpush.msra.mxu2 %v4051_v38  ;;  %v3444_v38 = vld [vmem:[#allocation5 + $0x518] sm:$0xff] }
 0x4d4   : > { %v4427_v30 = vld [vmem:[#allocation5 + $0x23d0] sm:$0xff]  ;;  %5133 = vmatpush.msra.mxu3 %v4187_v23  ;;  %5115 = vmatmul.f32.vlgmr.msra.gmra.mxu2 %v8194_v31 }
 0x4d5   : > { %v3923_v48 = vld [vmem:[#allocation5 + $0x1410] sm:$0xff]  ;;  %5139 = vmatpush.msrb.mxu0 %v4427_v30  ;;  %5179 = vmatpush.msrb.mxu2 %v3404_v26  ;;  %v3300_v26 = vld [vmem:[#allocation5 + $0x98] sm:$0xff] }
 0x4d6   : > { %v4179_v20 = vld [vmem:[#allocation5 + $0x1c10] sm:$0xff]  ;;  %5094 = vmatpush.msra.mxu1 %v3923_v48  ;;  %v3436_v48 = vld [vmem:[#allocation5 + $0x4d8] sm:$0xff] }
 0x4d7   : > { %v4419_v44 = vld [vmem:[#allocation5 + $0x2390] sm:$0xff]  ;;  %5134 = vmatpush.msra.mxu3 %v4179_v20  ;;  %5180 = vmatpush.msrb.mxu2 %v3396_v45  ;;  %v3428_v45 = vld [vmem:[#allocation5 + $0x498] sm:$0xff] }
 0x4d8   : > { %v4555_v22 = vld [vmem:[#allocation5 + $0x27d0] sm:$0xff]  ;;  %5140 = vmatpush.msrb.mxu0 %v4419_v44  ;;  %5135 = vmatmul.f32.vlgmr.msra.gmra.mxu3 %v8198_v16 }
 0x4d9   : > { %v4411_v27 = vld [vmem:[#allocation5 + $0x2350] sm:$0xff]  ;;  %5159 = vmatpush.msrb.mxu1 %v4555_v22  ;;  %5199 = vmatpush.msrb.mxu3 %v3532_v47  ;;  %v3292_v22 = vld [vmem:[#allocation5 + $0x58] sm:$0xff] }
 0x4da   : > { %v4547_v18 = vld [vmem:[#allocation5 + $0x2790] sm:$0xff]  ;;  %5141 = vmatpush.msrb.mxu0 %v4411_v27  ;;  %5181 = vmatpush.msrb.mxu2 %v3388_v49  ;;  %v3420_v49 = vld [vmem:[#allocation5 + $0x458] sm:$0xff] }
 0x4db   : > { %v4403_v34 = vld [vmem:[#allocation5 + $0x2310] sm:$0xff]  ;;  %5160 = vmatpush.msrb.mxu1 %v4547_v18  ;;  %5200 = vmatpush.msrb.mxu3 %v3524_v29  ;;  %v3284_v18 = vld [vmem:[#allocation5 + $0x18] sm:$0xff] }
 0x4dc   : > { %v4539_v0 = vld [vmem:[#allocation5 + $0x2750] sm:$0xff]  ;;  %5142 = vmatpush.msrb.mxu0 %v4403_v34  ;;  %5182 = vmatpush.msrb.mxu2 %v3380_v25  ;;  %v3916_v29 = vld [vmem:[#allocation5 + $0x13d8] sm:$0xff]  ;;  %v4564_v25 = vperm.slane %v8225_v24, 1 }
 0x4dd   : > { %v4395_v55 = vld [vmem:[#allocation5 + $0x22d0] sm:$0xff]  ;;  %5161 = vmatpush.msrb.mxu1 %v4539_v0  ;;  %5201 = vmatpush.msrb.mxu3 %v3516_v53  ;;  %v3660_v34 = vld [vmem:[#allocation5 + $0xbd8] sm:$0xff] }
 0x4de   : > { %v4531_v46 = vld [vmem:[#allocation5 + $0x2710] sm:$0xff]  ;;  %5143 = vmatpush.msrb.mxu0 %v4395_v55  ;;  %5183 = vmatpush.msrb.mxu2 %v3372_v36  ;;  %v3412_v53 = vld [vmem:[#allocation5 + $0x418] sm:$0xff]  ;;  %v4796_v55 = vpop.f32.mrf.mxu2 }
 0x4df   : > { %v4387_v37 = vld [vmem:[#allocation5 + $0x2290] sm:$0xff]  ;;  %5162 = vmatpush.msrb.mxu1 %v4531_v46  ;;  %5202 = vmatpush.msrb.mxu3 %v3508_v61  ;;  %v3652_v46 = vld [vmem:[#allocation5 + $0xb98] sm:$0xff] }
 0x4e0   : > { %v4523_v14 = vld [vmem:[#allocation5 + $0x26d0] sm:$0xff]  ;;  %5144 = vmatpush.msrb.mxu0 %v4387_v37  ;;  %5184 = vmatpush.msrb.mxu2 %v3364_v8  ;;  %v3788_v36 = vld [vmem:[#allocation5 + $0xfd8] sm:$0xff] }
 0x4e1   : > { %v4379_v19 = vld [vmem:[#allocation5 + $0x2250] sm:$0xff]  ;;  %5163 = vmatpush.msrb.mxu1 %v4523_v14  ;;  %5203 = vmatpush.msrb.mxu3 %v3500_v40  ;;  %v3908_v61 = vld [vmem:[#allocation5 + $0x1398] sm:$0xff]  ;;  %v4797_v40 = vadd.f32 %v4796_v55, %v4564_v25 }
 0x4e2   : > { %v4515_v41 = vld [vmem:[#allocation5 + $0x2690] sm:$0xff]  ;;  %5095 = vmatmul.f32.vlgmr.msra.gmra.mxu1 %v8201_v17  ;;  %5145 = vmatpush.msrb.mxu0 %v4379_v19  ;;  %v4044_v37 = vld [vmem:[#allocation5 + $0x17d8] sm:$0xff] }
 0x4e3   : > { %v4371_v50 = vld [vmem:[#allocation5 + $0x2210] sm:$0xff]  ;;  %5164 = vmatpush.msrb.mxu1 %v4515_v41  ;;  %5185 = vmatpush.msrb.mxu2 %v3356_v3  ;;  %v3644_v14 = vld [vmem:[#allocation5 + $0xb58] sm:$0xff]  ;;  %v4816_v41 = vpop.f32.mrf.mxu3 }
 0x4e4   : > { %v4507_v15 = vld [vmem:[#allocation5 + $0x2650] sm:$0xff]  ;;  %5204 = vmatpush.msrb.mxu3 %v3492_v43  ;;  %5146 = vmatpush.msrb.mxu0 %v4371_v50  ;;  %v3780_v8 = vld [vmem:[#allocation5 + $0xf98] sm:$0xff] }
 0x4e5   : > { %v4363_v52 = vld [vmem:[#allocation5 + $0x21d0] sm:$0xff]  ;;  %5165 = vmatpush.msrb.mxu1 %v4507_v15  ;;  %5186 = vmatpush.msrb.mxu2 %v3348_v51  ;;  %v3900_v24 = vld [vmem:[#allocation5 + $0x1358] sm:$0xff] }
 0x4e6   : > { %v4499_v57 = vld [vmem:[#allocation5 + $0x2610] sm:$0xff]  ;;  %5205 = vmatpush.msrb.mxu3 %v3484_v12  ;;  %5147 = vmatpush.msrb.mxu0 %v4363_v52  ;;  %v4036_v19 = vld [vmem:[#allocation5 + $0x1798] sm:$0xff]  ;;  %v4817_v52 = vadd.f32 %v4816_v41, %v4797_v40 }
 0x4e7   : > { %v4355_v1 = vld [vmem:[#allocation5 + $0x2190] sm:$0xff]  ;;  %5166 = vmatpush.msrb.mxu1 %v4499_v57  ;;  %5187 = vmatpush.msrb.mxu2 %v3340_v60  ;;  %v3636_v3 = vld [vmem:[#allocation5 + $0xb18] sm:$0xff] }
 0x4e8   : > { %v4491_v2 = vld [vmem:[#allocation5 + $0x25d0] sm:$0xff]  ;;  %5206 = vmatpush.msrb.mxu3 %v3476_v62  ;;  %5148 = vmatpush.msrb.mxu0 %v4355_v1  ;;  %v3772_v43 = vld [vmem:[#allocation5 + $0xf58] sm:$0xff]  ;;  %v4836_v62 = vpop.f32.mrf.mxu0 }
 0x4e9   : > { %v4347_v7 = vld [vmem:[#allocation5 + $0x2150] sm:$0xff]  ;;  %5167 = vmatpush.msrb.mxu1 %v4491_v2  ;;  %5188 = vmatpush.msrb.mxu2 %v3332_v4  ;;  %v3892_v50 = vld [vmem:[#allocation5 + $0x1318] sm:$0xff] }
 0x4ea   : > { %v4483_v28 = vld [vmem:[#allocation5 + $0x2590] sm:$0xff]  ;;  %5207 = vmatpush.msrb.mxu3 %v3468_v6  ;;  %5149 = vmatpush.msrb.mxu0 %v4347_v7  ;;  %v4028_v15 = vld [vmem:[#allocation5 + $0x1758] sm:$0xff]  ;;  %v4837_v7 = vadd.f32 %v4836_v62, %v4817_v52 }
 0x4eb   : > { %v4339_v56 = vld [vmem:[#allocation5 + $0x2110] sm:$0xff]  ;;  %5168 = vmatpush.msrb.mxu1 %v4483_v28  ;;  %5189 = vmatpush.msrb.mxu2 %v3324_v10  ;;  %v3628_v51 = vld [vmem:[#allocation5 + $0xad8] sm:$0xff] }
 0x4ec   : > { %v4475_v63 = vld [vmem:[#allocation5 + $0x2550] sm:$0xff]  ;;  %5208 = vmatpush.msrb.mxu3 %v3460_v11  ;;  %5150 = vmatpush.msrb.mxu0 %v4339_v56  ;;  %v3764_v12 = vld [vmem:[#allocation5 + $0xf18] sm:$0xff] }
 0x4ed   : > { %v4331_v39 = vld [vmem:[#allocation5 + $0x20d0] sm:$0xff]  ;;  %5169 = vmatpush.msrb.mxu1 %v4475_v63  ;;  %5190 = vmatpush.msrb.mxu2 %v3316_v13  ;;  %v3884_v57 = vld [vmem:[#allocation5 + $0x12d8] sm:$0xff]  ;;  %v4856_v63 = vpop.f32.mrf.mxu1 }
 0x4ee   : > { %v4467_v32 = vld [vmem:[#allocation5 + $0x2510] sm:$0xff]  ;;  %5209 = vmatpush.msrb.mxu3 %v3452_v54  ;;  %5151 = vmatpush.msrb.mxu0 %v4331_v39  ;;  %v4020_v60 = vld [vmem:[#allocation5 + $0x1718] sm:$0xff] }
 0x4ef   : > { %v4323_v23 = vld [vmem:[#allocation5 + $0x2090] sm:$0xff]  ;;  %5170 = vmatpush.msrb.mxu1 %v4467_v32  ;;  %5191 = vmatpush.msrb.mxu2 %v3308_v42  ;;  %v3620_v1 = vld [vmem:[#allocation5 + $0xa98] sm:$0xff]  ;;  %v4857_v42 = vadd.f32 %v4856_v63, %v4837_v7 }
 0x4f0   : > { %v4459_v30 = vld [vmem:[#allocation5 + $0x24d0] sm:$0xff]  ;;  %5210 = vmatpush.msrb.mxu3 %v3444_v38  ;;  %5152 = vmatpush.msrb.mxu0 %v4323_v23  ;;  %v3756_v2 = vld [vmem:[#allocation5 + $0xed8] sm:$0xff] }
 0x4f1   : > { %v4315_v20 = vld [vmem:[#allocation5 + $0x2050] sm:$0xff]  ;;  %5171 = vmatpush.msrb.mxu1 %v4459_v30  ;;  %5192 = vmatpush.msrb.mxu2 %v3300_v26  ;;  %v3876_v4 = vld [vmem:[#allocation5 + $0x1298] sm:$0xff]  ;;  %v4876_v30 = vpop.f32.mrf.mxu2 }
 0x4f2   : > { %v4451_v44 = vld [vmem:[#allocation5 + $0x2490] sm:$0xff]  ;;  %5211 = vmatpush.msrb.mxu3 %v3436_v48  ;;  %5153 = vmatpush.msrb.mxu0 %v4315_v20  ;;  %v4012_v6 = vld [vmem:[#allocation5 + $0x16d8] sm:$0xff] }
 0x4f3   : > { %v4307_v47 = vld [vmem:[#allocation5 + $0x2010] sm:$0xff]  ;;  %5172 = vmatpush.msrb.mxu1 %v4451_v44  ;;  %5193 = vmatpush.msrb.mxu2 %v3292_v22  ;;  %v3612_v28 = vld [vmem:[#allocation5 + $0xa58] sm:$0xff] }
 0x4f4   : > { %v4443_v27 = vld [vmem:[#allocation5 + $0x2450] sm:$0xff]  ;;  %5212 = vmatpush.msrb.mxu3 %v3428_v45  ;;  %5154 = vmatpush.msrb.mxu0 %v4307_v47  ;;  %v3748_v10 = vld [vmem:[#allocation5 + $0xe98] sm:$0xff]  ;;  %v4877_v47 = vadd.f32 %v4876_v30, %v4857_v42 }
 0x4f5   : > { %5173 = vmatpush.msrb.mxu1 %v4443_v27  ;;  %v4435_v0 = vld [vmem:[#allocation5 + $0x2410] sm:$0xff]  ;;  %5194 = vmatpush.msrb.mxu2 %v3284_v18  ;;  %v3868_v11 = vld [vmem:[#allocation5 + $0x1258] sm:$0xff] }
 0x4f6   : > { %5213 = vmatpush.msrb.mxu3 %v3420_v49  ;;  %5155 = vmatmul.f32.vlgmr.msrb.gmra.mxu0 %v8209_v9  ;;  %v4004_v56 = vld [vmem:[#allocation5 + $0x1698] sm:$0xff]  ;;  %v4896_v49 = vpop.f32.mrf.mxu3 }
 0x4f7   : > { %5259 = vmatpush.msra.mxu2 %v3916_v29  ;;  %5219 = vmatpush.msra.mxu0 %v3660_v34  ;;  %v3604_v13 = vld [vmem:[#allocation5 + $0xa18] sm:$0xff] }
 0x4f8   : > { %5174 = vmatpush.msrb.mxu1 %v4435_v0  ;;  %5214 = vmatpush.msrb.mxu3 %v3412_v53  ;;  %v3740_v54 = vld [vmem:[#allocation5 + $0xe58] sm:$0xff] }
 0x4f9   : > { %5175 = vmatmul.f32.vlgmr.msrb.gmra.mxu1 %v8211_v21  ;;  %5220 = vmatpush.msra.mxu0 %v3652_v46  ;;  %v3860_v39 = vld [vmem:[#allocation5 + $0x1218] sm:$0xff]  ;;  %v4897_v46 = vadd.f32 %v4896_v49, %v4877_v47 }
 0x4fa   : > { %5239 = vmatpush.msra.mxu1 %v3788_v36  ;;  %5260 = vmatpush.msra.mxu2 %v3908_v61  ;;  %v3996_v32 = vld [vmem:[#allocation5 + $0x1658] sm:$0xff] }
 0x4fb   : > { %5279 = vmatpush.msra.mxu3 %v4044_v37  ;;  %5221 = vmatpush.msra.mxu0 %v3644_v14  ;;  %v3596_v38 = vld [vmem:[#allocation5 + $0x9d8] sm:$0xff] }
 0x4fc   : > { %5240 = vmatpush.msra.mxu1 %v3780_v8  ;;  %5261 = vmatpush.msra.mxu2 %v3900_v24  ;;  %v3732_v23 = vld [vmem:[#allocation5 + $0xe18] sm:$0xff] }
 0x4fd   : > { %5280 = vmatpush.msra.mxu3 %v4036_v19  ;;  %5222 = vmatpush.msra.mxu0 %v3636_v3  ;;  %v3852_v26 = vld [vmem:[#allocation5 + $0x11d8] sm:$0xff] }
 0x4fe   : > { %5241 = vmatpush.msra.mxu1 %v3772_v43  ;;  %5262 = vmatpush.msra.mxu2 %v3892_v50  ;;  %v3988_v48 = vld [vmem:[#allocation5 + $0x1618] sm:$0xff] }
 0x4ff   : > { %5281 = vmatpush.msra.mxu3 %v4028_v15  ;;  %5223 = vmatpush.msra.mxu0 %v3628_v51  ;;  %v3588_v20 = vld [vmem:[#allocation5 + $0x998] sm:$0xff] }
 0x500   : > { %5242 = vmatpush.msra.mxu1 %v3764_v12  ;;  %5263 = vmatpush.msra.mxu2 %v3884_v57  ;;  %v3724_v44 = vld [vmem:[#allocation5 + $0xdd8] sm:$0xff] }
 0x501   : > { %5282 = vmatpush.msra.mxu3 %v4020_v60  ;;  %5224 = vmatpush.msra.mxu0 %v3620_v1  ;;  %v3844_v22 = vld [vmem:[#allocation5 + $0x1198] sm:$0xff] }
 0x502   : > { %5243 = vmatpush.msra.mxu1 %v3756_v2  ;;  %5264 = vmatpush.msra.mxu2 %v3876_v4  ;;  %v3980_v45 = vld [vmem:[#allocation5 + $0x15d8] sm:$0xff] }
 0x503   : > { %5283 = vmatpush.msra.mxu3 %v4012_v6  ;;  %5225 = vmatpush.msra.mxu0 %v3612_v28  ;;  %v3580_v27 = vld [vmem:[#allocation5 + $0x958] sm:$0xff]  ;;  %v4916_v8 = vpop.f32.mrf.mxu0 }
 0x504   : > { %5244 = vmatpush.msra.mxu1 %v3748_v10  ;;  %5265 = vmatpush.msra.mxu2 %v3868_v11  ;;  %v3716_v18 = vld [vmem:[#allocation5 + $0xd98] sm:$0xff]  ;;  %v4917_v19 = vadd.f32 %v4916_v8, %v4897_v46 }
 0x505   : > { %5284 = vmatpush.msra.mxu3 %v4004_v56  ;;  %5226 = vmatpush.msra.mxu0 %v3604_v13  ;;  %v3836_v29 = vld [vmem:[#allocation5 + $0x1158] sm:$0xff] }
 0x506   : > { %5245 = vmatpush.msra.mxu1 %v3740_v54  ;;  %5266 = vmatpush.msra.mxu2 %v3860_v39  ;;  %v3972_v34 = vld [vmem:[#allocation5 + $0x1598] sm:$0xff] }
 0x507   : > { %5285 = vmatpush.msra.mxu3 %v3996_v32  ;;  %5227 = vmatpush.msra.mxu0 %v3596_v38  ;;  %v3572_v0 = vld [vmem:[#allocation5 + $0x918] sm:$0xff]  ;;  %v4936_v15 = vpop.f32.mrf.mxu1 }
 0x508   : > { %5246 = vmatpush.msra.mxu1 %v3732_v23  ;;  %5267 = vmatpush.msra.mxu2 %v3852_v26  ;;  %v3708_v25 = vld [vmem:[#allocation5 + $0xd58] sm:$0xff]  ;;  %v4937_v60 = vadd.f32 %v4936_v15, %v4917_v19 }
 0x509   : > { %5286 = vmatpush.msra.mxu3 %v3988_v48  ;;  %5228 = vmatpush.msra.mxu0 %v3588_v20  ;;  %v3828_v53 = vld [vmem:[#allocation5 + $0x1118] sm:$0xff] }
 0x50a   : > { %5247 = vmatpush.msra.mxu1 %v3724_v44  ;;  %5268 = vmatpush.msra.mxu2 %v3844_v22  ;;  %v3964_v55 = vld [vmem:[#allocation5 + $0x1558] sm:$0xff] }
 0x50b   : > { %5287 = vmatpush.msra.mxu3 %v3980_v45  ;;  %5229 = vmatpush.msra.mxu0 %v3580_v27  ;;  %v3564_v36 = vld [vmem:[#allocation5 + $0x8d8] sm:$0xff]  ;;  %v4956_v2 = vpop.f32.mrf.mxu2 }
 0x50c   : > { %5248 = vmatpush.msra.mxu1 %v3716_v18  ;;  %5269 = vmatpush.msra.mxu2 %v3836_v29  ;;  %v3700_v61 = vld [vmem:[#allocation5 + $0xd18] sm:$0xff]  ;;  %v4957_v6 = vadd.f32 %v4956_v2, %v4937_v60 }
 0x50d   : > { %5288 = vmatpush.msra.mxu3 %v3972_v34  ;;  %5230 = vmatpush.msra.mxu0 %v3572_v0  ;;  %v3820_v37 = vld [vmem:[#allocation5 + $0x10d8] sm:$0xff] }
 0x50e   : > { %5249 = vmatpush.msra.mxu1 %v3708_v25  ;;  %v3956_v14 = vld [vmem:[#allocation5 + $0x1518] sm:$0xff]  ;;  %5270 = vmatpush.msra.mxu2 %v3828_v53  ;;  %v4976_v56 = vpop.f32.mrf.mxu3 }
 0x50f   : > { %5289 = vmatpush.msra.mxu3 %v3964_v55  ;;  %v3556_v40 = vld [vmem:[#allocation5 + $0x898] sm:$0xff]  ;;  %5231 = vmatpush.msra.mxu0 %v3564_v36  ;;  %v4977_v13 = vadd.f32 %v4976_v56, %v4957_v6 }
 0x510   : > { %v3692_v24 = vld [vmem:[#allocation5 + $0xcd8] sm:$0xff]  ;;  %5250 = vmatpush.msra.mxu1 %v3700_v61  ;;  %5271 = vmatpush.msra.mxu2 %v3820_v37 }
 0x511   : > { %v3812_v41 = vld [vmem:[#allocation5 + $0x1098] sm:$0xff]  ;;  %5290 = vmatpush.msra.mxu3 %v3956_v14  ;;  %5232 = vmatpush.msra.mxu0 %v3556_v40  ;;  %6180 = vst [vmem:[%s8339_s5 + $0x8] sm:$0xff] %v4977_v13 }
 0x512   : > { %v3948_v3 = vld [vmem:[#allocation5 + $0x14d8] sm:$0xff]  ;;  %5251 = vmatpush.msra.mxu1 %v3692_v24  ;;  %5272 = vmatpush.msra.mxu2 %v3812_v41 }
 0x513   : > { %v3548_v43 = vld [vmem:[#allocation5 + $0x858] sm:$0xff]  ;;  %5291 = vmatpush.msra.mxu3 %v3948_v3  ;;  %5195 = vmatmul.f32.vlgmr.msrb.gmra.mxu2 %v8178_v33 }
 0x514   : > { %v3684_v50 = vld [vmem:[#allocation5 + $0xc98] sm:$0xff]  ;;  %5233 = vmatpush.msra.mxu0 %v3548_v43  ;;  %5215 = vmatmul.f32.vlgmr.msrb.gmra.mxu3 %v8183_v58 }
 0x515   : > { %v3804_v51 = vld [vmem:[#allocation5 + $0x1058] sm:$0xff]  ;;  %5252 = vmatpush.msra.mxu1 %v3684_v50 }
 0x516   : > { %v3940_v12 = vld [vmem:[#allocation5 + $0x1498] sm:$0xff]  ;;  %5273 = vmatpush.msra.mxu2 %v3804_v51 }
 0x517   : > { %v3540_v52 = vld [vmem:[#allocation5 + $0x818] sm:$0xff]  ;;  %5292 = vmatpush.msra.mxu3 %v3940_v12 }
 0x518   : > { %v3676_v57 = vld [vmem:[#allocation5 + $0xc58] sm:$0xff]  ;;  %5234 = vmatpush.msra.mxu0 %v3540_v52 }
 0x519   : > { %v3796_v62 = vld [vmem:[#allocation5 + $0x1018] sm:$0xff]  ;;  %5253 = vmatpush.msra.mxu1 %v3676_v57  ;;  %5235 = vmatmul.f32.vlgmr.msra.gmra.mxu0 %v8180_v35 }
 0x51a   : > { %v3932_v1 = vld [vmem:[#allocation5 + $0x1458] sm:$0xff]  ;;  %5274 = vmatpush.msra.mxu2 %v3796_v62 }
 0x51b   : > { %v4172_v4 = vld [vmem:[#allocation5 + $0x1bd8] sm:$0xff]  ;;  %5293 = vmatpush.msra.mxu3 %v3932_v1  ;;  %5275 = vmatmul.f32.vlgmr.msra.gmra.mxu2 %v8196_v5 }
 0x51c   : > { %v4428_v7 = vld [vmem:[#allocation5 + $0x23d8] sm:$0xff]  ;;  %5299 = vmatpush.msrb.mxu0 %v4172_v4 }
 0x51d   : > { %v3668_v28 = vld [vmem:[#allocation5 + $0xc18] sm:$0xff]  ;;  %5339 = vmatpush.msrb.mxu2 %v4428_v7 }
 0x51e   : > { %v3924_v10 = vld [vmem:[#allocation5 + $0x1418] sm:$0xff]  ;;  %5254 = vmatpush.msra.mxu1 %v3668_v28 }
 0x51f   : > { %v4164_v11 = vld [vmem:[#allocation5 + $0x1b98] sm:$0xff]  ;;  %5294 = vmatpush.msra.mxu3 %v3924_v10  ;;  %5255 = vmatmul.f32.vlgmr.msra.gmra.mxu1 %v8185_v59 }
 0x520   : > { %v4300_v63 = vld [vmem:[#allocation5 + $0x1fd8] sm:$0xff]  ;;  %5300 = vmatpush.msrb.mxu0 %v4164_v11  ;;  %5295 = vmatmul.f32.vlgmr.msra.gmra.mxu3 %v8201_v17 }
 0x521   : > { %v4420_v54 = vld [vmem:[#allocation5 + $0x2398] sm:$0xff]  ;;  %5319 = vmatpush.msrb.mxu1 %v4300_v63 }
 0x522   : > { %v4556_v39 = vld [vmem:[#allocation5 + $0x27d8] sm:$0xff]  ;;  %5340 = vmatpush.msrb.mxu2 %v4420_v54 }
 0x523   : > { %v4156_v32 = vld [vmem:[#allocation5 + $0x1b58] sm:$0xff]  ;;  %5359 = vmatpush.msrb.mxu3 %v4556_v39 }
 0x524   : > { %v4292_v42 = vld [vmem:[#allocation5 + $0x1f98] sm:$0xff]  ;;  %5301 = vmatpush.msrb.mxu0 %v4156_v32 }
 0x525   : > { %v4412_v38 = vld [vmem:[#allocation5 + $0x2358] sm:$0xff]  ;;  %5320 = vmatpush.msrb.mxu1 %v4292_v42 }
 0x526   : > { %v4548_v23 = vld [vmem:[#allocation5 + $0x2798] sm:$0xff]  ;;  %5341 = vmatpush.msrb.mxu2 %v4412_v38  ;;  %v3405_v38 = vld [vmem:[#allocation5 + $0x3e0] sm:$0xff] }
 0x527   : > { %v4148_v30 = vld [vmem:[#allocation5 + $0x1b18] sm:$0xff]  ;;  %5360 = vmatpush.msrb.mxu3 %v4548_v23  ;;  %v3661_v23 = vld [vmem:[#allocation5 + $0xbe0] sm:$0xff] }
 0x528   : > { %v4284_v26 = vld [vmem:[#allocation5 + $0x1f58] sm:$0xff]  ;;  %5302 = vmatpush.msrb.mxu0 %v4148_v30 }
 0x529   : > { %v4404_v48 = vld [vmem:[#allocation5 + $0x2318] sm:$0xff]  ;;  %5321 = vmatpush.msrb.mxu1 %v4284_v26 }
 0x52a   : > { %v4540_v20 = vld [vmem:[#allocation5 + $0x2758] sm:$0xff]  ;;  %5342 = vmatpush.msrb.mxu2 %v4404_v48  ;;  %v3397_v48 = vld [vmem:[#allocation5 + $0x3a0] sm:$0xff] }
 0x52b   : > { %v4140_v44 = vld [vmem:[#allocation5 + $0x1ad8] sm:$0xff]  ;;  %5361 = vmatpush.msrb.mxu3 %v4540_v20  ;;  %v3533_v20 = vld [vmem:[#allocation5 + $0x7e0] sm:$0xff] }
 0x52c   : > { %v4276_v22 = vld [vmem:[#allocation5 + $0x1f18] sm:$0xff]  ;;  %5303 = vmatpush.msrb.mxu0 %v4140_v44  ;;  %v3653_v44 = vld [vmem:[#allocation5 + $0xba0] sm:$0xff] }
 0x52d   : > { %v4396_v45 = vld [vmem:[#allocation5 + $0x22d8] sm:$0xff]  ;;  %5322 = vmatpush.msrb.mxu1 %v4276_v22  ;;  %v3789_v22 = vld [vmem:[#allocation5 + $0xfe0] sm:$0xff] }
 0x52e   : > { %v4532_v47 = vld [vmem:[#allocation5 + $0x2718] sm:$0xff]  ;;  %5343 = vmatpush.msrb.mxu2 %v4396_v45  ;;  %v3389_v45 = vld [vmem:[#allocation5 + $0x360] sm:$0xff] }
 0x52f   : > { %v4132_v27 = vld [vmem:[#allocation5 + $0x1a98] sm:$0xff]  ;;  %5362 = vmatpush.msrb.mxu3 %v4532_v47  ;;  %v3525_v47 = vld [vmem:[#allocation5 + $0x7a0] sm:$0xff] }
 0x530   : > { %v4268_v18 = vld [vmem:[#allocation5 + $0x1ed8] sm:$0xff]  ;;  %5304 = vmatpush.msrb.mxu0 %v4132_v27  ;;  %v3645_v27 = vld [vmem:[#allocation5 + $0xb60] sm:$0xff] }
 0x531   : > { %v4388_v49 = vld [vmem:[#allocation5 + $0x2298] sm:$0xff]  ;;  %5323 = vmatpush.msrb.mxu1 %v4268_v18  ;;  %v3781_v18 = vld [vmem:[#allocation5 + $0xfa0] sm:$0xff] }
 0x532   : > { %v4524_v29 = vld [vmem:[#allocation5 + $0x26d8] sm:$0xff]  ;;  %5344 = vmatpush.msrb.mxu2 %v4388_v49  ;;  %v3381_v49 = vld [vmem:[#allocation5 + $0x320] sm:$0xff] }
 0x533   : > { %v4124_v34 = vld [vmem:[#allocation5 + $0x1a58] sm:$0xff]  ;;  %5363 = vmatpush.msrb.mxu3 %v4524_v29  ;;  %v3517_v29 = vld [vmem:[#allocation5 + $0x760] sm:$0xff] }
 0x534   : > { %v4260_v0 = vld [vmem:[#allocation5 + $0x1e98] sm:$0xff]  ;;  %5305 = vmatpush.msrb.mxu0 %v4124_v34  ;;  %v3637_v34 = vld [vmem:[#allocation5 + $0xb20] sm:$0xff] }
 0x535   : > { %v4380_v25 = vld [vmem:[#allocation5 + $0x2258] sm:$0xff]  ;;  %5324 = vmatpush.msrb.mxu1 %v4260_v0  ;;  %v3773_v0 = vld [vmem:[#allocation5 + $0xf60] sm:$0xff] }
 0x536   : > { %v4516_v53 = vld [vmem:[#allocation5 + $0x2698] sm:$0xff]  ;;  %5345 = vmatpush.msrb.mxu2 %v4380_v25  ;;  %v3373_v25 = vld [vmem:[#allocation5 + $0x2e0] sm:$0xff] }
 0x537   : > { %v4116_v55 = vld [vmem:[#allocation5 + $0x1a18] sm:$0xff]  ;;  %5364 = vmatpush.msrb.mxu3 %v4516_v53  ;;  %v3509_v53 = vld [vmem:[#allocation5 + $0x720] sm:$0xff] }
 0x538   : > { %v4252_v46 = vld [vmem:[#allocation5 + $0x1e58] sm:$0xff]  ;;  %5306 = vmatpush.msrb.mxu0 %v4116_v55  ;;  %v3629_v55 = vld [vmem:[#allocation5 + $0xae0] sm:$0xff] }
 0x539   : > { %v4372_v36 = vld [vmem:[#allocation5 + $0x2218] sm:$0xff]  ;;  %5325 = vmatpush.msrb.mxu1 %v4252_v46  ;;  %v3765_v46 = vld [vmem:[#allocation5 + $0xf20] sm:$0xff] }
 0x53a   : > { %v4508_v61 = vld [vmem:[#allocation5 + $0x2658] sm:$0xff]  ;;  %5346 = vmatpush.msrb.mxu2 %v4372_v36  ;;  %v3365_v36 = vld [vmem:[#allocation5 + $0x2a0] sm:$0xff] }
 0x53b   : > { %v4108_v37 = vld [vmem:[#allocation5 + $0x19d8] sm:$0xff]  ;;  %5365 = vmatpush.msrb.mxu3 %v4508_v61  ;;  %v3501_v61 = vld [vmem:[#allocation5 + $0x6e0] sm:$0xff] }
 0x53c   : > { %v4244_v14 = vld [vmem:[#allocation5 + $0x1e18] sm:$0xff]  ;;  %5307 = vmatpush.msrb.mxu0 %v4108_v37  ;;  %v3621_v37 = vld [vmem:[#allocation5 + $0xaa0] sm:$0xff] }
 0x53d   : > { %v4364_v8 = vld [vmem:[#allocation5 + $0x21d8] sm:$0xff]  ;;  %5326 = vmatpush.msrb.mxu1 %v4244_v14  ;;  %v3757_v14 = vld [vmem:[#allocation5 + $0xee0] sm:$0xff] }
 0x53e   : > { %v4500_v40 = vld [vmem:[#allocation5 + $0x2618] sm:$0xff]  ;;  %5347 = vmatpush.msrb.mxu2 %v4364_v8  ;;  %v3357_v8 = vld [vmem:[#allocation5 + $0x260] sm:$0xff] }
 0x53f   : > { %v4100_v24 = vld [vmem:[#allocation5 + $0x1998] sm:$0xff]  ;;  %5366 = vmatpush.msrb.mxu3 %v4500_v40  ;;  %v3493_v40 = vld [vmem:[#allocation5 + $0x6a0] sm:$0xff] }
 0x540   : > { %v4236_v19 = vld [vmem:[#allocation5 + $0x1dd8] sm:$0xff]  ;;  %5308 = vmatpush.msrb.mxu0 %v4100_v24  ;;  %v3613_v24 = vld [vmem:[#allocation5 + $0xa60] sm:$0xff] }
 0x541   : > { %v4356_v41 = vld [vmem:[#allocation5 + $0x2198] sm:$0xff]  ;;  %5327 = vmatpush.msrb.mxu1 %v4236_v19  ;;  %v3749_v19 = vld [vmem:[#allocation5 + $0xea0] sm:$0xff] }
 0x542   : > { %v4492_v3 = vld [vmem:[#allocation5 + $0x25d8] sm:$0xff]  ;;  %5348 = vmatpush.msrb.mxu2 %v4356_v41  ;;  %v3349_v41 = vld [vmem:[#allocation5 + $0x220] sm:$0xff] }
 0x543   : > { %v4092_v43 = vld [vmem:[#allocation5 + $0x1958] sm:$0xff]  ;;  %5367 = vmatpush.msrb.mxu3 %v4492_v3  ;;  %v3485_v3 = vld [vmem:[#allocation5 + $0x660] sm:$0xff] }
 0x544   : > { %v4228_v50 = vld [vmem:[#allocation5 + $0x1d98] sm:$0xff]  ;;  %5309 = vmatpush.msrb.mxu0 %v4092_v43  ;;  %v3605_v43 = vld [vmem:[#allocation5 + $0xa20] sm:$0xff] }
 0x545   : > { %v4348_v15 = vld [vmem:[#allocation5 + $0x2158] sm:$0xff]  ;;  %5328 = vmatpush.msrb.mxu1 %v4228_v50  ;;  %v3741_v50 = vld [vmem:[#allocation5 + $0xe60] sm:$0xff] }
 0x546   : > { %v4484_v51 = vld [vmem:[#allocation5 + $0x2598] sm:$0xff]  ;;  %5349 = vmatpush.msrb.mxu2 %v4348_v15  ;;  %v3341_v15 = vld [vmem:[#allocation5 + $0x1e0] sm:$0xff] }
 0x547   : > { %v4084_v12 = vld [vmem:[#allocation5 + $0x1918] sm:$0xff]  ;;  %5368 = vmatpush.msrb.mxu3 %v4484_v51  ;;  %v3477_v51 = vld [vmem:[#allocation5 + $0x620] sm:$0xff] }
 0x548   : > { %v4220_v52 = vld [vmem:[#allocation5 + $0x1d58] sm:$0xff]  ;;  %5310 = vmatpush.msrb.mxu0 %v4084_v12  ;;  %v3597_v12 = vld [vmem:[#allocation5 + $0x9e0] sm:$0xff] }
 0x549   : > { %v4340_v57 = vld [vmem:[#allocation5 + $0x2118] sm:$0xff]  ;;  %5329 = vmatpush.msrb.mxu1 %v4220_v52  ;;  %v3733_v52 = vld [vmem:[#allocation5 + $0xe20] sm:$0xff] }
 0x54a   : > { %v4476_v60 = vld [vmem:[#allocation5 + $0x2558] sm:$0xff]  ;;  %5350 = vmatpush.msrb.mxu2 %v4340_v57  ;;  %v3333_v57 = vld [vmem:[#allocation5 + $0x1a0] sm:$0xff] }
 0x54b   : > { %v4076_v62 = vld [vmem:[#allocation5 + $0x18d8] sm:$0xff]  ;;  %5369 = vmatpush.msrb.mxu3 %v4476_v60  ;;  %v3469_v60 = vld [vmem:[#allocation5 + $0x5e0] sm:$0xff] }
 0x54c   : > { %v4212_v1 = vld [vmem:[#allocation5 + $0x1d18] sm:$0xff]  ;;  %5311 = vmatpush.msrb.mxu0 %v4076_v62  ;;  %v3589_v62 = vld [vmem:[#allocation5 + $0x9a0] sm:$0xff] }
 0x54d   : > { %v4332_v2 = vld [vmem:[#allocation5 + $0x20d8] sm:$0xff]  ;;  %5330 = vmatpush.msrb.mxu1 %v4212_v1  ;;  %v3725_v1 = vld [vmem:[#allocation5 + $0xde0] sm:$0xff] }
 0x54e   : > { %v4468_v4 = vld [vmem:[#allocation5 + $0x2518] sm:$0xff]  ;;  %5351 = vmatpush.msrb.mxu2 %v4332_v2  ;;  %v3325_v2 = vld [vmem:[#allocation5 + $0x160] sm:$0xff] }
 0x54f   : > { %v4068_v6 = vld [vmem:[#allocation5 + $0x1898] sm:$0xff]  ;;  %5370 = vmatpush.msrb.mxu3 %v4468_v4  ;;  %v3461_v4 = vld [vmem:[#allocation5 + $0x5a0] sm:$0xff] }
 0x550   : > { %v4204_v7 = vld [vmem:[#allocation5 + $0x1cd8] sm:$0xff]  ;;  %5312 = vmatpush.msrb.mxu0 %v4068_v6  ;;  %v3581_v6 = vld [vmem:[#allocation5 + $0x960] sm:$0xff] }
 0x551   : > { %v4324_v28 = vld [vmem:[#allocation5 + $0x2098] sm:$0xff]  ;;  %5331 = vmatpush.msrb.mxu1 %v4204_v7  ;;  %v3717_v7 = vld [vmem:[#allocation5 + $0xda0] sm:$0xff] }
 0x552   : > { %v4460_v10 = vld [vmem:[#allocation5 + $0x24d8] sm:$0xff]  ;;  %5352 = vmatpush.msrb.mxu2 %v4324_v28  ;;  %v3317_v28 = vld [vmem:[#allocation5 + $0x120] sm:$0xff] }
 0x553   : > { %v4060_v11 = vld [vmem:[#allocation5 + $0x1858] sm:$0xff]  ;;  %5371 = vmatpush.msrb.mxu3 %v4460_v10  ;;  %v3453_v10 = vld [vmem:[#allocation5 + $0x560] sm:$0xff] }
 0x554   : > { %v4196_v56 = vld [vmem:[#allocation5 + $0x1c98] sm:$0xff]  ;;  %5313 = vmatpush.msrb.mxu0 %v4060_v11  ;;  %v3573_v11 = vld [vmem:[#allocation5 + $0x920] sm:$0xff] }
 0x555   : > { %v4316_v63 = vld [vmem:[#allocation5 + $0x2058] sm:$0xff]  ;;  %5332 = vmatpush.msrb.mxu1 %v4196_v56  ;;  %v3709_v56 = vld [vmem:[#allocation5 + $0xd60] sm:$0xff] }
 0x556   : > { %v4452_v13 = vld [vmem:[#allocation5 + $0x2498] sm:$0xff]  ;;  %5353 = vmatpush.msrb.mxu2 %v4316_v63  ;;  %v3309_v63 = vld [vmem:[#allocation5 + $0xe0] sm:$0xff] }
 0x557   : > { %v4052_v54 = vld [vmem:[#allocation5 + $0x1818] sm:$0xff]  ;;  %5372 = vmatpush.msrb.mxu3 %v4452_v13  ;;  %v3445_v13 = vld [vmem:[#allocation5 + $0x520] sm:$0xff] }
 0x558   : > { %v4188_v39 = vld [vmem:[#allocation5 + $0x1c58] sm:$0xff]  ;;  %5314 = vmatpush.msrb.mxu0 %v4052_v54  ;;  %v3565_v54 = vld [vmem:[#allocation5 + $0x8e0] sm:$0xff] }
 0x559   : > { %v4308_v32 = vld [vmem:[#allocation5 + $0x2018] sm:$0xff]  ;;  %5333 = vmatpush.msrb.mxu1 %v4188_v39  ;;  %5315 = vmatmul.f32.vlgmr.msrb.gmra.mxu0 %v8194_v31  ;;  %v3701_v39 = vld [vmem:[#allocation5 + $0xd20] sm:$0xff] }
 0x55a   : > { %v4444_v42 = vld [vmem:[#allocation5 + $0x2458] sm:$0xff]  ;;  %5354 = vmatpush.msrb.mxu2 %v4308_v32  ;;  %5379 = vmatpush.msra.mxu0 %v3405_v38  ;;  %v8255_v32 = vld [vmem:[#allocation7] sm:$0xff] }
 0x55b   : > { %5373 = vmatpush.msrb.mxu3 %v4444_v42  ;;  %v4180_v30 = vld [vmem:[#allocation5 + $0x1c18] sm:$0xff]  ;;  %5355 = vmatmul.f32.vlgmr.msrb.gmra.mxu2 %v8209_v9  ;;  %v4565_v42 = vperm.slane %v8255_v32, 2  ;;  %v3301_v38 = vld [vmem:[#allocation5 + $0xa0] sm:$0xff] }
 0x55c   : > { %v4436_v26 = vld [vmem:[#allocation5 + $0x2418] sm:$0xff]  ;;  %5419 = vmatpush.msra.mxu2 %v3661_v23  ;;  %5334 = vmatpush.msrb.mxu1 %v4180_v30  ;;  %v3437_v23 = vld [vmem:[#allocation5 + $0x4e0] sm:$0xff]  ;;  %v4996_v30 = vpop.f32.mrf.mxu0 }
 0x55d   : > { %5374 = vmatpush.msrb.mxu3 %v4436_v26  ;;  %5335 = vmatmul.f32.vlgmr.msrb.gmra.mxu1 %v8198_v16  ;;  %v3557_v26 = vld [vmem:[#allocation5 + $0x8a0] sm:$0xff] }
 0x55e   : > { %5375 = vmatmul.f32.vlgmr.msrb.gmra.mxu3 %v8211_v21  ;;  %5380 = vmatpush.msra.mxu0 %v3397_v48  ;;  %v3693_v48 = vld [vmem:[#allocation5 + $0xce0] sm:$0xff] }
 0x55f   : > { %5399 = vmatpush.msra.mxu1 %v3533_v20  ;;  %5420 = vmatpush.msra.mxu2 %v3653_v44  ;;  %v3293_v20 = vld [vmem:[#allocation5 + $0x60] sm:$0xff] }
 0x560   : > { %5439 = vmatpush.msra.mxu3 %v3789_v22  ;;  %5381 = vmatpush.msra.mxu0 %v3389_v45  ;;  %v3429_v44 = vld [vmem:[#allocation5 + $0x4a0] sm:$0xff] }
 0x561   : > { %5400 = vmatpush.msra.mxu1 %v3525_v47  ;;  %5421 = vmatpush.msra.mxu2 %v3645_v27  ;;  %v3549_v22 = vld [vmem:[#allocation5 + $0x860] sm:$0xff]  ;;  %v4997_v47 = vadd.f32 %v4996_v30, %v4565_v42 }
 0x562   : > { %5440 = vmatpush.msra.mxu3 %v3781_v18  ;;  %5382 = vmatpush.msra.mxu0 %v3381_v49  ;;  %v3685_v45 = vld [vmem:[#allocation5 + $0xca0] sm:$0xff]  ;;  %v5016_v49 = vpop.f32.mrf.mxu1 }
 0x563   : > { %5401 = vmatpush.msra.mxu1 %v3517_v29  ;;  %5422 = vmatpush.msra.mxu2 %v3637_v34  ;;  %v3285_v27 = vld [vmem:[#allocation5 + $0x20] sm:$0xff] }
 0x564   : > { %5441 = vmatpush.msra.mxu3 %v3773_v0  ;;  %5383 = vmatpush.msra.mxu0 %v3373_v25  ;;  %v3421_v18 = vld [vmem:[#allocation5 + $0x460] sm:$0xff] }
 0x565   : > { %5402 = vmatpush.msra.mxu1 %v3509_v53  ;;  %5423 = vmatpush.msra.mxu2 %v3629_v55  ;;  %v3541_v29 = vld [vmem:[#allocation5 + $0x820] sm:$0xff] }
 0x566   : > { %5442 = vmatpush.msra.mxu3 %v3765_v46  ;;  %5384 = vmatpush.msra.mxu0 %v3365_v36  ;;  %v3677_v34 = vld [vmem:[#allocation5 + $0xc60] sm:$0xff]  ;;  %v5017_v46 = vadd.f32 %v5016_v49, %v4997_v47 }
 0x567   : > { %5403 = vmatpush.msra.mxu1 %v3501_v61  ;;  %5424 = vmatpush.msra.mxu2 %v3621_v37  ;;  %v3917_v0 = vld [vmem:[#allocation5 + $0x13e0] sm:$0xff]  ;;  %v5036_v37 = vpop.f32.mrf.mxu2 }
 0x568   : > { %5443 = vmatpush.msra.mxu3 %v3757_v14  ;;  %5385 = vmatpush.msra.mxu0 %v3357_v8  ;;  %v4173_v25 = vld [vmem:[#allocation5 + $0x1be0] sm:$0xff] }
 0x569   : > { %5404 = vmatpush.msra.mxu1 %v3493_v40  ;;  %5425 = vmatpush.msra.mxu2 %v3613_v24  ;;  %v3413_v53 = vld [vmem:[#allocation5 + $0x420] sm:$0xff] }
 0x56a   : > { %5444 = vmatpush.msra.mxu3 %v3749_v19  ;;  %5386 = vmatpush.msra.mxu0 %v3349_v41  ;;  %v3669_v55 = vld [vmem:[#allocation5 + $0xc20] sm:$0xff] }
 0x56b   : > { %5405 = vmatpush.msra.mxu1 %v3485_v3  ;;  %5426 = vmatpush.msra.mxu2 %v3605_v43  ;;  %v3909_v36 = vld [vmem:[#allocation5 + $0x13a0] sm:$0xff]  ;;  %v5037_v3 = vadd.f32 %v5036_v37, %v5017_v46 }
 0x56c   : > { %5445 = vmatpush.msra.mxu3 %v3741_v50  ;;  %5387 = vmatpush.msra.mxu0 %v3341_v15  ;;  %v4045_v61 = vld [vmem:[#allocation5 + $0x17e0] sm:$0xff]  ;;  %v5056_v15 = vpop.f32.mrf.mxu3 }
 0x56d   : > { %5406 = vmatpush.msra.mxu1 %v3477_v51  ;;  %5427 = vmatpush.msra.mxu2 %v3597_v12  ;;  %v4165_v14 = vld [vmem:[#allocation5 + $0x1ba0] sm:$0xff] }
 0x56e   : > { %5446 = vmatpush.msra.mxu3 %v3733_v52  ;;  %5388 = vmatpush.msra.mxu0 %v3333_v57  ;;  %v4301_v8 = vld [vmem:[#allocation5 + $0x1fe0] sm:$0xff] }
 0x56f   : > { %5407 = vmatpush.msra.mxu1 %v3469_v60  ;;  %5428 = vmatpush.msra.mxu2 %v3589_v62  ;;  %v3901_v40 = vld [vmem:[#allocation5 + $0x1360] sm:$0xff] }
 0x570   : > { %5447 = vmatpush.msra.mxu3 %v3725_v1  ;;  %5389 = vmatpush.msra.mxu0 %v3325_v2  ;;  %v4037_v24 = vld [vmem:[#allocation5 + $0x17a0] sm:$0xff]  ;;  %v5057_v1 = vadd.f32 %v5056_v15, %v5037_v3 }
 0x571   : > { %5408 = vmatpush.msra.mxu1 %v3461_v4  ;;  %5429 = vmatpush.msra.mxu2 %v3581_v6  ;;  %v4157_v19 = vld [vmem:[#allocation5 + $0x1b60] sm:$0xff]  ;;  %v5076_v6 = vpop.f32.mrf.mxu0 }
 0x572   : > { %5448 = vmatpush.msra.mxu3 %v3717_v7  ;;  %5390 = vmatpush.msra.mxu0 %v3317_v28  ;;  %v4293_v41 = vld [vmem:[#allocation5 + $0x1fa0] sm:$0xff] }
 0x573   : > { %5409 = vmatpush.msra.mxu1 %v3453_v10  ;;  %5430 = vmatpush.msra.mxu2 %v3573_v11  ;;  %v3893_v43 = vld [vmem:[#allocation5 + $0x1320] sm:$0xff] }
 0x574   : > { %5449 = vmatpush.msra.mxu3 %v3709_v56  ;;  %5391 = vmatpush.msra.mxu0 %v3309_v63  ;;  %v4029_v50 = vld [vmem:[#allocation5 + $0x1760] sm:$0xff]  ;;  %v5077_v56 = vadd.f32 %v5076_v6, %v5057_v1 }
 0x575   : > { %5410 = vmatpush.msra.mxu1 %v3445_v13  ;;  %5431 = vmatpush.msra.mxu2 %v3565_v54  ;;  %v4149_v51 = vld [vmem:[#allocation5 + $0x1b20] sm:$0xff]  ;;  %v5096_v54 = vpop.f32.mrf.mxu1 }
 0x576   : > { %5450 = vmatpush.msra.mxu3 %v3701_v39  ;;  %5392 = vmatpush.msra.mxu0 %v3301_v38  ;;  %v4285_v12 = vld [vmem:[#allocation5 + $0x1f60] sm:$0xff] }
 0x577   : > { %5411 = vmatpush.msra.mxu1 %v3437_v23  ;;  %5432 = vmatpush.msra.mxu2 %v3557_v26  ;;  %v3885_v52 = vld [vmem:[#allocation5 + $0x12e0] sm:$0xff] }
 0x578   : > { %5451 = vmatpush.msra.mxu3 %v3693_v48  ;;  %5393 = vmatpush.msra.mxu0 %v3293_v20  ;;  %v4021_v57 = vld [vmem:[#allocation5 + $0x1720] sm:$0xff]  ;;  %v5097_v48 = vadd.f32 %v5096_v54, %v5077_v56  ;;  %v3534_v54 = vld [vmem:[#allocation5 + $0x7e8] sm:$0xff] }
 0x579   : > { %5412 = vmatpush.msra.mxu1 %v3429_v44  ;;  %5433 = vmatpush.msra.mxu2 %v3549_v22  ;;  %v4141_v60 = vld [vmem:[#allocation5 + $0x1ae0] sm:$0xff]  ;;  %v5116_v22 = vpop.f32.mrf.mxu2  ;;  %v5156_v3 = vpop.f32.mrf.mxu0 }
 0x57a   : > { %5452 = vmatpush.msra.mxu3 %v3685_v45  ;;  %5394 = vmatpush.msra.mxu0 %v3285_v27  ;;  %v4277_v62 = vld [vmem:[#allocation5 + $0x1f20] sm:$0xff] }
 0x57b   : > { %5413 = vmatpush.msra.mxu1 %v3421_v18  ;;  %5434 = vmatpush.msra.mxu2 %v3541_v29  ;;  %v3877_v2 = vld [vmem:[#allocation5 + $0x12a0] sm:$0xff] }
 0x57c   : > { %5453 = vmatpush.msra.mxu3 %v3677_v34  ;;  %5459 = vmatpush.msrb.mxu0 %v3917_v0  ;;  %v4013_v4 = vld [vmem:[#allocation5 + $0x16e0] sm:$0xff]  ;;  %v5117_v34 = vadd.f32 %v5116_v22, %v5097_v48  ;;  %v3382_v48 = vld [vmem:[#allocation5 + $0x328] sm:$0xff] }
 0x57d   : > { %5499 = vmatpush.msrb.mxu2 %v4173_v25  ;;  %5414 = vmatpush.msra.mxu1 %v3413_v53  ;;  %v4133_v7 = vld [vmem:[#allocation5 + $0x1aa0] sm:$0xff]  ;;  %v5136_v53 = vpop.f32.mrf.mxu3 }
 0x57e   : > { %5454 = vmatpush.msra.mxu3 %v3669_v55  ;;  %5460 = vmatpush.msrb.mxu0 %v3909_v36  ;;  %v4269_v28 = vld [vmem:[#allocation5 + $0x1ee0] sm:$0xff] }
 0x57f   : > { %5479 = vmatpush.msrb.mxu1 %v4045_v61  ;;  %5500 = vmatpush.msrb.mxu2 %v4165_v14  ;;  %v3869_v10 = vld [vmem:[#allocation5 + $0x1260] sm:$0xff] }
 0x580   : > { %5519 = vmatpush.msrb.mxu3 %v4301_v8  ;;  %5461 = vmatpush.msrb.mxu0 %v3901_v40  ;;  %v4005_v11 = vld [vmem:[#allocation5 + $0x16a0] sm:$0xff]  ;;  %v5137_v8 = vadd.f32 %v5136_v53, %v5117_v34  ;;  %v3494_v53 = vld [vmem:[#allocation5 + $0x6a8] sm:$0xff] }
 0x581   : > { %5480 = vmatpush.msrb.mxu1 %v4037_v24  ;;  %5501 = vmatpush.msrb.mxu2 %v4157_v19  ;;  %v4125_v63 = vld [vmem:[#allocation5 + $0x1a60] sm:$0xff] }
 0x582   : > { %5520 = vmatpush.msrb.mxu3 %v4293_v41  ;;  %5462 = vmatpush.msrb.mxu0 %v3893_v43  ;;  %v4261_v13 = vld [vmem:[#allocation5 + $0x1ea0] sm:$0xff]  ;;  %v5157_v15 = vadd.f32 %v5156_v3, %v5137_v8  ;;  %v3342_v8 = vld [vmem:[#allocation5 + $0x1e8] sm:$0xff] }
 0x583   : > { %5481 = vmatpush.msrb.mxu1 %v4029_v50  ;;  %5502 = vmatpush.msrb.mxu2 %v4149_v51  ;;  %v3861_v39 = vld [vmem:[#allocation5 + $0x1220] sm:$0xff]  ;;  %v3470_v3 = vld [vmem:[#allocation5 + $0x5e8] sm:$0xff] }
 0x584   : > { %5521 = vmatpush.msrb.mxu3 %v4285_v12  ;;  %5463 = vmatpush.msrb.mxu0 %v3885_v52  ;;  %v3997_v42 = vld [vmem:[#allocation5 + $0x1660] sm:$0xff]  ;;  %v5176_v52 = vpop.f32.mrf.mxu1 }
 0x585   : > { %5482 = vmatpush.msrb.mxu1 %v4021_v57  ;;  %5503 = vmatpush.msrb.mxu2 %v4141_v60  ;;  %v4117_v38 = vld [vmem:[#allocation5 + $0x1a20] sm:$0xff] }
 0x586   : > { %5522 = vmatpush.msrb.mxu3 %v4277_v62  ;;  %5464 = vmatpush.msrb.mxu0 %v3877_v2  ;;  %v4253_v23 = vld [vmem:[#allocation5 + $0x1e60] sm:$0xff]  ;;  %v5177_v62 = vadd.f32 %v5176_v52, %v5157_v15  ;;  %v3326_v15 = vld [vmem:[#allocation5 + $0x168] sm:$0xff] }
 0x587   : > { %5483 = vmatpush.msrb.mxu1 %v4013_v4  ;;  %5504 = vmatpush.msrb.mxu2 %v4133_v7  ;;  %v3853_v30 = vld [vmem:[#allocation5 + $0x11e0] sm:$0xff] }
 0x588   : > { %5523 = vmatpush.msrb.mxu3 %v4269_v28  ;;  %5465 = vmatpush.msrb.mxu0 %v3869_v10  ;;  %v3989_v26 = vld [vmem:[#allocation5 + $0x1620] sm:$0xff]  ;;  %6181 = vst [vmem:[%s8339_s5 + $0x10] sm:$0xff] %v5177_v62  ;;  %v3406_v28 = vld [vmem:[#allocation5 + $0x3e8] sm:$0xff] }
 0x589   : > { %5484 = vmatpush.msrb.mxu1 %v4005_v11  ;;  %5505 = vmatpush.msrb.mxu2 %v4125_v63  ;;  %v4109_v20 = vld [vmem:[#allocation5 + $0x19e0] sm:$0xff] }
 0x58a   : > { %5524 = vmatpush.msrb.mxu3 %v4261_v13  ;;  %5466 = vmatpush.msrb.mxu0 %v3861_v39  ;;  %v4245_v44 = vld [vmem:[#allocation5 + $0x1e20] sm:$0xff]  ;;  %v3398_v13 = vld [vmem:[#allocation5 + $0x3a8] sm:$0xff] }
 0x58b   : > { %5485 = vmatpush.msrb.mxu1 %v3997_v42  ;;  %5506 = vmatpush.msrb.mxu2 %v4117_v38  ;;  %v3845_v45 = vld [vmem:[#allocation5 + $0x11a0] sm:$0xff]  ;;  %v3390_v38 = vld [vmem:[#allocation5 + $0x368] sm:$0xff] }
 0x58c   : > { %5525 = vmatpush.msrb.mxu3 %v4253_v23  ;;  %v3981_v47 = vld [vmem:[#allocation5 + $0x15e0] sm:$0xff]  ;;  %5467 = vmatpush.msrb.mxu0 %v3853_v30  ;;  %v3526_v23 = vld [vmem:[#allocation5 + $0x7a8] sm:$0xff] }
 0x58d   : > { %5486 = vmatpush.msrb.mxu1 %v3989_v26  ;;  %v4101_v27 = vld [vmem:[#allocation5 + $0x19a0] sm:$0xff]  ;;  %5507 = vmatpush.msrb.mxu2 %v4109_v20  ;;  %v3518_v20 = vld [vmem:[#allocation5 + $0x768] sm:$0xff] }
 0x58e   : > { %v4237_v18 = vld [vmem:[#allocation5 + $0x1de0] sm:$0xff]  ;;  %5526 = vmatpush.msrb.mxu3 %v4245_v44  ;;  %5468 = vmatpush.msrb.mxu0 %v3845_v45  ;;  %v3374_v45 = vld [vmem:[#allocation5 + $0x2e8] sm:$0xff] }
 0x58f   : > { %v3837_v49 = vld [vmem:[#allocation5 + $0x1160] sm:$0xff]  ;;  %5487 = vmatpush.msrb.mxu1 %v3981_v47  ;;  %5508 = vmatpush.msrb.mxu2 %v4101_v27  ;;  %v3510_v47 = vld [vmem:[#allocation5 + $0x728] sm:$0xff] }
 0x590   : > { %v3973_v29 = vld [vmem:[#allocation5 + $0x15a0] sm:$0xff]  ;;  %5527 = vmatpush.msrb.mxu3 %v4237_v18  ;;  %5469 = vmatpush.msrb.mxu0 %v3837_v49  ;;  %v3366_v49 = vld [vmem:[#allocation5 + $0x2a8] sm:$0xff] }
 0x591   : > { %v4093_v0 = vld [vmem:[#allocation5 + $0x1960] sm:$0xff]  ;;  %5488 = vmatpush.msrb.mxu1 %v3973_v29  ;;  %5395 = vmatmul.f32.vlgmr.msra.gmra.mxu0 %v8178_v33  ;;  %v3502_v29 = vld [vmem:[#allocation5 + $0x6e8] sm:$0xff] }
 0x592   : > { %v4229_v25 = vld [vmem:[#allocation5 + $0x1da0] sm:$0xff]  ;;  %5509 = vmatpush.msrb.mxu2 %v4093_v0  ;;  %5415 = vmatmul.f32.vlgmr.msra.gmra.mxu1 %v8183_v58 }
 0x593   : > { %v3829_v55 = vld [vmem:[#allocation5 + $0x1120] sm:$0xff]  ;;  %5528 = vmatpush.msrb.mxu3 %v4229_v25  ;;  %5435 = vmatmul.f32.vlgmr.msra.gmra.mxu2 %v8180_v35  ;;  %v3358_v25 = vld [vmem:[#allocation5 + $0x268] sm:$0xff] }
 0x594   : > { %v3965_v46 = vld [vmem:[#allocation5 + $0x1560] sm:$0xff]  ;;  %5470 = vmatpush.msrb.mxu0 %v3829_v55  ;;  %5455 = vmatmul.f32.vlgmr.msra.gmra.mxu3 %v8185_v59 }
 0x595   : > { %v4085_v36 = vld [vmem:[#allocation5 + $0x1920] sm:$0xff]  ;;  %5489 = vmatpush.msrb.mxu1 %v3965_v46 }
 0x596   : > { %v4221_v61 = vld [vmem:[#allocation5 + $0x1d60] sm:$0xff]  ;;  %5510 = vmatpush.msrb.mxu2 %v4085_v36  ;;  %v3350_v36 = vld [vmem:[#allocation5 + $0x228] sm:$0xff] }
 0x597   : > { %v3821_v37 = vld [vmem:[#allocation5 + $0x10e0] sm:$0xff]  ;;  %5529 = vmatpush.msrb.mxu3 %v4221_v61  ;;  %v3486_v61 = vld [vmem:[#allocation5 + $0x668] sm:$0xff] }
 0x598   : > { %v3957_v14 = vld [vmem:[#allocation5 + $0x1520] sm:$0xff]  ;;  %5471 = vmatpush.msrb.mxu0 %v3821_v37 }
 0x599   : > { %v4077_v40 = vld [vmem:[#allocation5 + $0x18e0] sm:$0xff]  ;;  %5490 = vmatpush.msrb.mxu1 %v3957_v14 }
 0x59a   : > { %v4213_v24 = vld [vmem:[#allocation5 + $0x1d20] sm:$0xff]  ;;  %5511 = vmatpush.msrb.mxu2 %v4077_v40  ;;  %v3478_v40 = vld [vmem:[#allocation5 + $0x628] sm:$0xff] }
 0x59b   : > { %v3813_v19 = vld [vmem:[#allocation5 + $0x10a0] sm:$0xff]  ;;  %5530 = vmatpush.msrb.mxu3 %v4213_v24 }
 0x59c   : > { %v3949_v41 = vld [vmem:[#allocation5 + $0x14e0] sm:$0xff]  ;;  %5472 = vmatpush.msrb.mxu0 %v3813_v19 }
 0x59d   : > { %v4069_v43 = vld [vmem:[#allocation5 + $0x18a0] sm:$0xff]  ;;  %5491 = vmatpush.msrb.mxu1 %v3949_v41  ;;  %v3334_v41 = vld [vmem:[#allocation5 + $0x1a8] sm:$0xff] }
 0x59e   : > { %v4205_v50 = vld [vmem:[#allocation5 + $0x1ce0] sm:$0xff]  ;;  %5512 = vmatpush.msrb.mxu2 %v4069_v43 }
 0x59f   : > { %v3805_v51 = vld [vmem:[#allocation5 + $0x1060] sm:$0xff]  ;;  %5531 = vmatpush.msrb.mxu3 %v4205_v50 }
 0x5a0   : > { %v3941_v12 = vld [vmem:[#allocation5 + $0x14a0] sm:$0xff]  ;;  %5473 = vmatpush.msrb.mxu0 %v3805_v51  ;;  %v3462_v51 = vld [vmem:[#allocation5 + $0x5a8] sm:$0xff] }
 0x5a1   : > { %v4061_v57 = vld [vmem:[#allocation5 + $0x1860] sm:$0xff]  ;;  %5492 = vmatpush.msrb.mxu1 %v3941_v12 }
 0x5a2   : > { %v4197_v60 = vld [vmem:[#allocation5 + $0x1ca0] sm:$0xff]  ;;  %5513 = vmatpush.msrb.mxu2 %v4061_v57  ;;  %v3318_v57 = vld [vmem:[#allocation5 + $0x128] sm:$0xff] }
 0x5a3   : > { %v3797_v1 = vld [vmem:[#allocation5 + $0x1020] sm:$0xff]  ;;  %5532 = vmatpush.msrb.mxu3 %v4197_v60  ;;  %v3454_v60 = vld [vmem:[#allocation5 + $0x568] sm:$0xff] }
 0x5a4   : > { %v3933_v2 = vld [vmem:[#allocation5 + $0x1460] sm:$0xff]  ;;  %5474 = vmatpush.msrb.mxu0 %v3797_v1 }
 0x5a5   : > { %v4053_v4 = vld [vmem:[#allocation5 + $0x1820] sm:$0xff]  ;;  %5493 = vmatpush.msrb.mxu1 %v3933_v2  ;;  %5475 = vmatmul.f32.vlgmr.msrb.gmra.mxu0 %v8196_v5  ;;  %v3310_v2 = vld [vmem:[#allocation5 + $0xe8] sm:$0xff] }
 0x5a6   : > { %v4189_v6 = vld [vmem:[#allocation5 + $0x1c60] sm:$0xff]  ;;  %5514 = vmatpush.msrb.mxu2 %v4053_v4  ;;  %v3446_v4 = vld [vmem:[#allocation5 + $0x528] sm:$0xff] }
 0x5a7   : > { %v4429_v7 = vld [vmem:[#allocation5 + $0x23e0] sm:$0xff]  ;;  %5533 = vmatpush.msrb.mxu3 %v4189_v6  ;;  %5515 = vmatmul.f32.vlgmr.msrb.gmra.mxu2 %v8194_v31 }
 0x5a8   : > { %v3925_v10 = vld [vmem:[#allocation5 + $0x1420] sm:$0xff]  ;;  %5539 = vmatpush.msra.mxu0 %v4429_v7  ;;  %5579 = vmatpush.msra.mxu2 %v3406_v28  ;;  %v3302_v28 = vld [vmem:[#allocation5 + $0xa8] sm:$0xff] }
 0x5a9   : > { %v4181_v11 = vld [vmem:[#allocation5 + $0x1c20] sm:$0xff]  ;;  %5494 = vmatpush.msrb.mxu1 %v3925_v10  ;;  %v3438_v10 = vld [vmem:[#allocation5 + $0x4e8] sm:$0xff] }
 0x5aa   : > { %v4421_v56 = vld [vmem:[#allocation5 + $0x23a0] sm:$0xff]  ;;  %5534 = vmatpush.msrb.mxu3 %v4181_v11  ;;  %5580 = vmatpush.msra.mxu2 %v3398_v13  ;;  %v3430_v13 = vld [vmem:[#allocation5 + $0x4a8] sm:$0xff] }
 0x5ab   : > { %v4557_v63 = vld [vmem:[#allocation5 + $0x27e0] sm:$0xff]  ;;  %5540 = vmatpush.msra.mxu0 %v4421_v56  ;;  %5535 = vmatmul.f32.vlgmr.msrb.gmra.mxu3 %v8198_v16 }
 0x5ac   : > { %v4413_v39 = vld [vmem:[#allocation5 + $0x2360] sm:$0xff]  ;;  %5559 = vmatpush.msra.mxu1 %v4557_v63  ;;  %5599 = vmatpush.msra.mxu3 %v3534_v54  ;;  %v3294_v63 = vld [vmem:[#allocation5 + $0x68] sm:$0xff] }
 0x5ad   : > { %v4549_v42 = vld [vmem:[#allocation5 + $0x27a0] sm:$0xff]  ;;  %5541 = vmatpush.msra.mxu0 %v4413_v39  ;;  %5581 = vmatpush.msra.mxu2 %v3390_v38  ;;  %v3422_v38 = vld [vmem:[#allocation5 + $0x468] sm:$0xff] }
 0x5ae   : > { %v4405_v30 = vld [vmem:[#allocation5 + $0x2320] sm:$0xff]  ;;  %5560 = vmatpush.msra.mxu1 %v4549_v42  ;;  %5600 = vmatpush.msra.mxu3 %v3526_v23  ;;  %v3286_v42 = vld [vmem:[#allocation5 + $0x28] sm:$0xff] }
 0x5af   : > { %v4541_v26 = vld [vmem:[#allocation5 + $0x2760] sm:$0xff]  ;;  %5542 = vmatpush.msra.mxu0 %v4405_v30  ;;  %5582 = vmatpush.msra.mxu2 %v3382_v48  ;;  %v3918_v23 = vld [vmem:[#allocation5 + $0x13e8] sm:$0xff]  ;;  %v4566_v48 = vperm.slane %v8255_v32, 3 }
 0x5b0   : > { %v4397_v44 = vld [vmem:[#allocation5 + $0x22e0] sm:$0xff]  ;;  %5561 = vmatpush.msra.mxu1 %v4541_v26  ;;  %5601 = vmatpush.msra.mxu3 %v3518_v20  ;;  %v3662_v30 = vld [vmem:[#allocation5 + $0xbe8] sm:$0xff] }
 0x5b1   : > { %v4533_v22 = vld [vmem:[#allocation5 + $0x2720] sm:$0xff]  ;;  %5543 = vmatpush.msra.mxu0 %v4397_v44  ;;  %5583 = vmatpush.msra.mxu2 %v3374_v45  ;;  %v3414_v20 = vld [vmem:[#allocation5 + $0x428] sm:$0xff]  ;;  %v5196_v44 = vpop.f32.mrf.mxu2 }
 0x5b2   : > { %v4389_v27 = vld [vmem:[#allocation5 + $0x22a0] sm:$0xff]  ;;  %5562 = vmatpush.msra.mxu1 %v4533_v22  ;;  %5602 = vmatpush.msra.mxu3 %v3510_v47  ;;  %v3654_v22 = vld [vmem:[#allocation5 + $0xba8] sm:$0xff] }
 0x5b3   : > { %v4525_v18 = vld [vmem:[#allocation5 + $0x26e0] sm:$0xff]  ;;  %5544 = vmatpush.msra.mxu0 %v4389_v27  ;;  %5584 = vmatpush.msra.mxu2 %v3366_v49  ;;  %v3790_v45 = vld [vmem:[#allocation5 + $0xfe8] sm:$0xff] }
 0x5b4   : > { %v4381_v34 = vld [vmem:[#allocation5 + $0x2260] sm:$0xff]  ;;  %5563 = vmatpush.msra.mxu1 %v4525_v18  ;;  %5603 = vmatpush.msra.mxu3 %v3502_v29  ;;  %v3910_v47 = vld [vmem:[#allocation5 + $0x13a8] sm:$0xff]  ;;  %v5197_v29 = vadd.f32 %v5196_v44, %v4566_v48 }
 0x5b5   : > { %v4517_v0 = vld [vmem:[#allocation5 + $0x26a0] sm:$0xff]  ;;  %5495 = vmatmul.f32.vlgmr.msrb.gmra.mxu1 %v8201_v17  ;;  %5545 = vmatpush.msra.mxu0 %v4381_v34  ;;  %v4046_v27 = vld [vmem:[#allocation5 + $0x17e8] sm:$0xff] }
 0x5b6   : > { %v4373_v55 = vld [vmem:[#allocation5 + $0x2220] sm:$0xff]  ;;  %5564 = vmatpush.msra.mxu1 %v4517_v0  ;;  %5585 = vmatpush.msra.mxu2 %v3358_v25  ;;  %v3646_v18 = vld [vmem:[#allocation5 + $0xb68] sm:$0xff]  ;;  %v5216_v0 = vpop.f32.mrf.mxu3 }
 0x5b7   : > { %v4509_v46 = vld [vmem:[#allocation5 + $0x2660] sm:$0xff]  ;;  %5604 = vmatpush.msra.mxu3 %v3494_v53  ;;  %5546 = vmatpush.msra.mxu0 %v4373_v55  ;;  %v3782_v49 = vld [vmem:[#allocation5 + $0xfa8] sm:$0xff] }
 0x5b8   : > { %v4365_v37 = vld [vmem:[#allocation5 + $0x21e0] sm:$0xff]  ;;  %5565 = vmatpush.msra.mxu1 %v4509_v46  ;;  %5586 = vmatpush.msra.mxu2 %v3350_v36  ;;  %v3902_v32 = vld [vmem:[#allocation5 + $0x1368] sm:$0xff] }
 0x5b9   : > { %v4501_v14 = vld [vmem:[#allocation5 + $0x2620] sm:$0xff]  ;;  %5605 = vmatpush.msra.mxu3 %v3486_v61  ;;  %5547 = vmatpush.msra.mxu0 %v4365_v37  ;;  %v4038_v34 = vld [vmem:[#allocation5 + $0x17a8] sm:$0xff]  ;;  %v5217_v37 = vadd.f32 %v5216_v0, %v5197_v29 }
 0x5ba   : > { %v4357_v24 = vld [vmem:[#allocation5 + $0x21a0] sm:$0xff]  ;;  %5566 = vmatpush.msra.mxu1 %v4501_v14  ;;  %5587 = vmatpush.msra.mxu2 %v3342_v8  ;;  %v3638_v25 = vld [vmem:[#allocation5 + $0xb28] sm:$0xff] }
 0x5bb   : > { %v4493_v19 = vld [vmem:[#allocation5 + $0x25e0] sm:$0xff]  ;;  %5606 = vmatpush.msra.mxu3 %v3478_v40  ;;  %5548 = vmatpush.msra.mxu0 %v4357_v24  ;;  %v3774_v53 = vld [vmem:[#allocation5 + $0xf68] sm:$0xff]  ;;  %v5236_v40 = vpop.f32.mrf.mxu0 }
 0x5bc   : > { %v4349_v43 = vld [vmem:[#allocation5 + $0x2160] sm:$0xff]  ;;  %5567 = vmatpush.msra.mxu1 %v4493_v19  ;;  %5588 = vmatpush.msra.mxu2 %v3334_v41  ;;  %v3894_v55 = vld [vmem:[#allocation5 + $0x1328] sm:$0xff] }
 0x5bd   : > { %v4485_v50 = vld [vmem:[#allocation5 + $0x25a0] sm:$0xff]  ;;  %5607 = vmatpush.msra.mxu3 %v3470_v3  ;;  %5549 = vmatpush.msra.mxu0 %v4349_v43  ;;  %v4030_v46 = vld [vmem:[#allocation5 + $0x1768] sm:$0xff]  ;;  %v5237_v43 = vadd.f32 %v5236_v40, %v5217_v37 }
 0x5be   : > { %v4341_v12 = vld [vmem:[#allocation5 + $0x2120] sm:$0xff]  ;;  %5568 = vmatpush.msra.mxu1 %v4485_v50  ;;  %5589 = vmatpush.msra.mxu2 %v3326_v15  ;;  %v3630_v36 = vld [vmem:[#allocation5 + $0xae8] sm:$0xff] }
 0x5bf   : > { %v4477_v52 = vld [vmem:[#allocation5 + $0x2560] sm:$0xff]  ;;  %5608 = vmatpush.msra.mxu3 %v3462_v51  ;;  %5550 = vmatpush.msra.mxu0 %v4341_v12  ;;  %v3766_v61 = vld [vmem:[#allocation5 + $0xf28] sm:$0xff] }
 0x5c0   : > { %v4333_v62 = vld [vmem:[#allocation5 + $0x20e0] sm:$0xff]  ;;  %5569 = vmatpush.msra.mxu1 %v4477_v52  ;;  %5590 = vmatpush.msra.mxu2 %v3318_v57  ;;  %v3886_v14 = vld [vmem:[#allocation5 + $0x12e8] sm:$0xff]  ;;  %v5256_v52 = vpop.f32.mrf.mxu1 }
 0x5c1   : > { %v4469_v1 = vld [vmem:[#allocation5 + $0x2520] sm:$0xff]  ;;  %5609 = vmatpush.msra.mxu3 %v3454_v60  ;;  %5551 = vmatpush.msra.mxu0 %v4333_v62  ;;  %v4022_v8 = vld [vmem:[#allocation5 + $0x1728] sm:$0xff] }
 0x5c2   : > { %v4325_v6 = vld [vmem:[#allocation5 + $0x20a0] sm:$0xff]  ;;  %5570 = vmatpush.msra.mxu1 %v4469_v1  ;;  %5591 = vmatpush.msra.mxu2 %v3310_v2  ;;  %v3622_v24 = vld [vmem:[#allocation5 + $0xaa8] sm:$0xff]  ;;  %v5257_v2 = vadd.f32 %v5256_v52, %v5237_v43 }
 0x5c3   : > { %v4461_v7 = vld [vmem:[#allocation5 + $0x24e0] sm:$0xff]  ;;  %5610 = vmatpush.msra.mxu3 %v3446_v4  ;;  %5552 = vmatpush.msra.mxu0 %v4325_v6  ;;  %v3758_v19 = vld [vmem:[#allocation5 + $0xee8] sm:$0xff] }
 0x5c4   : > { %v4317_v11 = vld [vmem:[#allocation5 + $0x2060] sm:$0xff]  ;;  %5571 = vmatpush.msra.mxu1 %v4461_v7  ;;  %5592 = vmatpush.msra.mxu2 %v3302_v28  ;;  %v3878_v41 = vld [vmem:[#allocation5 + $0x12a8] sm:$0xff]  ;;  %v5276_v7 = vpop.f32.mrf.mxu2 }
 0x5c5   : > { %v4453_v56 = vld [vmem:[#allocation5 + $0x24a0] sm:$0xff]  ;;  %5611 = vmatpush.msra.mxu3 %v3438_v10  ;;  %5553 = vmatpush.msra.mxu0 %v4317_v11  ;;  %v4014_v3 = vld [vmem:[#allocation5 + $0x16e8] sm:$0xff] }
 0x5c6   : > { %v4309_v54 = vld [vmem:[#allocation5 + $0x2020] sm:$0xff]  ;;  %5572 = vmatpush.msra.mxu1 %v4453_v56  ;;  %5593 = vmatpush.msra.mxu2 %v3294_v63  ;;  %v3614_v50 = vld [vmem:[#allocation5 + $0xa68] sm:$0xff] }
 0x5c7   : > { %v4445_v39 = vld [vmem:[#allocation5 + $0x2460] sm:$0xff]  ;;  %5612 = vmatpush.msra.mxu3 %v3430_v13  ;;  %5554 = vmatpush.msra.mxu0 %v4309_v54  ;;  %v3750_v15 = vld [vmem:[#allocation5 + $0xea8] sm:$0xff]  ;;  %v5277_v54 = vadd.f32 %v5276_v7, %v5257_v2 }
 0x5c8   : > { %5573 = vmatpush.msra.mxu1 %v4445_v39  ;;  %v4437_v26 = vld [vmem:[#allocation5 + $0x2420] sm:$0xff]  ;;  %5594 = vmatpush.msra.mxu2 %v3286_v42  ;;  %v3870_v51 = vld [vmem:[#allocation5 + $0x1268] sm:$0xff] }
 0x5c9   : > { %5613 = vmatpush.msra.mxu3 %v3422_v38  ;;  %5555 = vmatmul.f32.vlgmr.msra.gmra.mxu0 %v8209_v9  ;;  %v4006_v12 = vld [vmem:[#allocation5 + $0x16a8] sm:$0xff]  ;;  %v5296_v38 = vpop.f32.mrf.mxu3 }
 0x5ca   : > { %5659 = vmatpush.msrb.mxu2 %v3918_v23  ;;  %5619 = vmatpush.msrb.mxu0 %v3662_v30  ;;  %v3606_v57 = vld [vmem:[#allocation5 + $0xa28] sm:$0xff] }
 0x5cb   : > { %5574 = vmatpush.msra.mxu1 %v4437_v26  ;;  %5614 = vmatpush.msra.mxu3 %v3414_v20  ;;  %v3742_v60 = vld [vmem:[#allocation5 + $0xe68] sm:$0xff] }
 0x5cc   : > { %5575 = vmatmul.f32.vlgmr.msra.gmra.mxu1 %v8211_v21  ;;  %5620 = vmatpush.msrb.mxu0 %v3654_v22  ;;  %v3862_v62 = vld [vmem:[#allocation5 + $0x1228] sm:$0xff]  ;;  %v5297_v22 = vadd.f32 %v5296_v38, %v5277_v54 }
 0x5cd   : > { %5639 = vmatpush.msrb.mxu1 %v3790_v45  ;;  %5660 = vmatpush.msrb.mxu2 %v3910_v47  ;;  %v3998_v1 = vld [vmem:[#allocation5 + $0x1668] sm:$0xff] }
 0x5ce   : > { %5679 = vmatpush.msrb.mxu3 %v4046_v27  ;;  %5621 = vmatpush.msrb.mxu0 %v3646_v18  ;;  %v3598_v4 = vld [vmem:[#allocation5 + $0x9e8] sm:$0xff] }
 0x5cf   : > { %5640 = vmatpush.msrb.mxu1 %v3782_v49  ;;  %5661 = vmatpush.msrb.mxu2 %v3902_v32  ;;  %v3734_v6 = vld [vmem:[#allocation5 + $0xe28] sm:$0xff] }
 0x5d0   : > { %5680 = vmatpush.msrb.mxu3 %v4038_v34  ;;  %5622 = vmatpush.msrb.mxu0 %v3638_v25  ;;  %v3854_v28 = vld [vmem:[#allocation5 + $0x11e8] sm:$0xff] }
 0x5d1   : > { %5641 = vmatpush.msrb.mxu1 %v3774_v53  ;;  %5662 = vmatpush.msrb.mxu2 %v3894_v55  ;;  %v3990_v10 = vld [vmem:[#allocation5 + $0x1628] sm:$0xff] }
 0x5d2   : > { %5681 = vmatpush.msrb.mxu3 %v4030_v46  ;;  %5623 = vmatpush.msrb.mxu0 %v3630_v36  ;;  %v3590_v11 = vld [vmem:[#allocation5 + $0x9a8] sm:$0xff] }
 0x5d3   : > { %5642 = vmatpush.msrb.mxu1 %v3766_v61  ;;  %5663 = vmatpush.msrb.mxu2 %v3886_v14  ;;  %v3726_v56 = vld [vmem:[#allocation5 + $0xde8] sm:$0xff] }
 0x5d4   : > { %5682 = vmatpush.msrb.mxu3 %v4022_v8  ;;  %5624 = vmatpush.msrb.mxu0 %v3622_v24  ;;  %v3846_v63 = vld [vmem:[#allocation5 + $0x11a8] sm:$0xff] }
 0x5d5   : > { %5643 = vmatpush.msrb.mxu1 %v3758_v19  ;;  %5664 = vmatpush.msrb.mxu2 %v3878_v41  ;;  %v3982_v13 = vld [vmem:[#allocation5 + $0x15e8] sm:$0xff] }
 0x5d6   : > { %5683 = vmatpush.msrb.mxu3 %v4014_v3  ;;  %5625 = vmatpush.msrb.mxu0 %v3614_v50  ;;  %v3582_v39 = vld [vmem:[#allocation5 + $0x968] sm:$0xff]  ;;  %v5316_v49 = vpop.f32.mrf.mxu0 }
 0x5d7   : > { %5644 = vmatpush.msrb.mxu1 %v3750_v15  ;;  %5665 = vmatpush.msrb.mxu2 %v3870_v51  ;;  %v3718_v42 = vld [vmem:[#allocation5 + $0xda8] sm:$0xff]  ;;  %v5317_v34 = vadd.f32 %v5316_v49, %v5297_v22 }
 0x5d8   : > { %5684 = vmatpush.msrb.mxu3 %v4006_v12  ;;  %5626 = vmatpush.msrb.mxu0 %v3606_v57  ;;  %v3838_v23 = vld [vmem:[#allocation5 + $0x1168] sm:$0xff] }
 0x5d9   : > { %5645 = vmatpush.msrb.mxu1 %v3742_v60  ;;  %5666 = vmatpush.msrb.mxu2 %v3862_v62  ;;  %v3974_v30 = vld [vmem:[#allocation5 + $0x15a8] sm:$0xff] }
 0x5da   : > { %5685 = vmatpush.msrb.mxu3 %v3998_v1  ;;  %5627 = vmatpush.msrb.mxu0 %v3598_v4  ;;  %v3574_v26 = vld [vmem:[#allocation5 + $0x928] sm:$0xff]  ;;  %v5336_v46 = vpop.f32.mrf.mxu1 }
 0x5db   : > { %5646 = vmatpush.msrb.mxu1 %v3734_v6  ;;  %5667 = vmatpush.msrb.mxu2 %v3854_v28  ;;  %v3710_v48 = vld [vmem:[#allocation5 + $0xd68] sm:$0xff]  ;;  %v5337_v8 = vadd.f32 %v5336_v46, %v5317_v34 }
 0x5dc   : > { %5686 = vmatpush.msrb.mxu3 %v3990_v10  ;;  %5628 = vmatpush.msrb.mxu0 %v3590_v11  ;;  %v3830_v20 = vld [vmem:[#allocation5 + $0x1128] sm:$0xff] }
 0x5dd   : > { %5647 = vmatpush.msrb.mxu1 %v3726_v56  ;;  %5668 = vmatpush.msrb.mxu2 %v3846_v63  ;;  %v3966_v44 = vld [vmem:[#allocation5 + $0x1568] sm:$0xff] }
 0x5de   : > { %5687 = vmatpush.msrb.mxu3 %v3982_v13  ;;  %5629 = vmatpush.msrb.mxu0 %v3582_v39  ;;  %v3566_v45 = vld [vmem:[#allocation5 + $0x8e8] sm:$0xff]  ;;  %v5356_v19 = vpop.f32.mrf.mxu2 }
 0x5df   : > { %5648 = vmatpush.msrb.mxu1 %v3718_v42  ;;  %5669 = vmatpush.msrb.mxu2 %v3838_v23  ;;  %v3702_v47 = vld [vmem:[#allocation5 + $0xd28] sm:$0xff]  ;;  %v5357_v3 = vadd.f32 %v5356_v19, %v5337_v8 }
 0x5e0   : > { %5688 = vmatpush.msrb.mxu3 %v3974_v30  ;;  %5630 = vmatpush.msrb.mxu0 %v3574_v26  ;;  %v3822_v27 = vld [vmem:[#allocation5 + $0x10e8] sm:$0xff] }
 0x5e1   : > { %5649 = vmatpush.msrb.mxu1 %v3710_v48  ;;  %v3958_v18 = vld [vmem:[#allocation5 + $0x1528] sm:$0xff]  ;;  %5670 = vmatpush.msrb.mxu2 %v3830_v20  ;;  %v5376_v12 = vpop.f32.mrf.mxu3 }
 0x5e2   : > { %5689 = vmatpush.msrb.mxu3 %v3966_v44  ;;  %v3558_v29 = vld [vmem:[#allocation5 + $0x8a8] sm:$0xff]  ;;  %5631 = vmatpush.msrb.mxu0 %v3566_v45  ;;  %v5377_v57 = vadd.f32 %v5376_v12, %v5357_v3 }
 0x5e3   : > { %v3694_v32 = vld [vmem:[#allocation5 + $0xce8] sm:$0xff]  ;;  %5650 = vmatpush.msrb.mxu1 %v3702_v47  ;;  %5671 = vmatpush.msrb.mxu2 %v3822_v27 }
 0x5e4   : > { %v3814_v0 = vld [vmem:[#allocation5 + $0x10a8] sm:$0xff]  ;;  %5690 = vmatpush.msrb.mxu3 %v3958_v18  ;;  %5632 = vmatpush.msrb.mxu0 %v3558_v29  ;;  %6182 = vst [vmem:[%s8339_s5 + $0x18] sm:$0xff] %v5377_v57 }
 0x5e5   : > { %v3950_v25 = vld [vmem:[#allocation5 + $0x14e8] sm:$0xff]  ;;  %5651 = vmatpush.msrb.mxu1 %v3694_v32  ;;  %5672 = vmatpush.msrb.mxu2 %v3814_v0 }
 0x5e6   : > { %v3550_v53 = vld [vmem:[#allocation5 + $0x868] sm:$0xff]  ;;  %5691 = vmatpush.msrb.mxu3 %v3950_v25  ;;  %5595 = vmatmul.f32.vlgmr.msra.gmra.mxu2 %v8178_v33 }
 0x5e7   : > { %v3686_v55 = vld [vmem:[#allocation5 + $0xca8] sm:$0xff]  ;;  %5633 = vmatpush.msrb.mxu0 %v3550_v53  ;;  %5615 = vmatmul.f32.vlgmr.msra.gmra.mxu3 %v8183_v58 }
 0x5e8   : > { %v3806_v36 = vld [vmem:[#allocation5 + $0x1068] sm:$0xff]  ;;  %5652 = vmatpush.msrb.mxu1 %v3686_v55 }
 0x5e9   : > { %v3942_v61 = vld [vmem:[#allocation5 + $0x14a8] sm:$0xff]  ;;  %5673 = vmatpush.msrb.mxu2 %v3806_v36 }
 0x5ea   : > { %v3542_v37 = vld [vmem:[#allocation5 + $0x828] sm:$0xff]  ;;  %5692 = vmatpush.msrb.mxu3 %v3942_v61 }
 0x5eb   : > { %v3678_v14 = vld [vmem:[#allocation5 + $0xc68] sm:$0xff]  ;;  %5634 = vmatpush.msrb.mxu0 %v3542_v37 }
 0x5ec   : > { %v3798_v40 = vld [vmem:[#allocation5 + $0x1028] sm:$0xff]  ;;  %5653 = vmatpush.msrb.mxu1 %v3678_v14  ;;  %5635 = vmatmul.f32.vlgmr.msrb.gmra.mxu0 %v8180_v35 }
 0x5ed   : > { %v3934_v24 = vld [vmem:[#allocation5 + $0x1468] sm:$0xff]  ;;  %5674 = vmatpush.msrb.mxu2 %v3798_v40 }
 0x5ee   : > { %v4174_v41 = vld [vmem:[#allocation5 + $0x1be8] sm:$0xff]  ;;  %5693 = vmatpush.msrb.mxu3 %v3934_v24  ;;  %5675 = vmatmul.f32.vlgmr.msrb.gmra.mxu2 %v8196_v5 }
 0x5ef   : > { %v4430_v43 = vld [vmem:[#allocation5 + $0x23e8] sm:$0xff]  ;;  %5699 = vmatpush.msra.mxu0 %v4174_v41 }
 0x5f0   : > { %v3670_v50 = vld [vmem:[#allocation5 + $0xc28] sm:$0xff]  ;;  %5739 = vmatpush.msra.mxu2 %v4430_v43 }
 0x5f1   : > { %v3926_v15 = vld [vmem:[#allocation5 + $0x1428] sm:$0xff]  ;;  %5654 = vmatpush.msrb.mxu1 %v3670_v50 }
 0x5f2   : > { %v4166_v51 = vld [vmem:[#allocation5 + $0x1ba8] sm:$0xff]  ;;  %5694 = vmatpush.msrb.mxu3 %v3926_v15  ;;  %5655 = vmatmul.f32.vlgmr.msrb.gmra.mxu1 %v8185_v59 }
 0x5f3   : > { %v4302_v52 = vld [vmem:[#allocation5 + $0x1fe8] sm:$0xff]  ;;  %5700 = vmatpush.msra.mxu0 %v4166_v51  ;;  %5695 = vmatmul.f32.vlgmr.msrb.gmra.mxu3 %v8201_v17 }
 0x5f4   : > { %v4422_v60 = vld [vmem:[#allocation5 + $0x23a8] sm:$0xff]  ;;  %5719 = vmatpush.msra.mxu1 %v4302_v52 }
 0x5f5   : > { %v4558_v62 = vld [vmem:[#allocation5 + $0x27e8] sm:$0xff]  ;;  %5740 = vmatpush.msra.mxu2 %v4422_v60 }
 0x5f6   : > { %v4158_v1 = vld [vmem:[#allocation5 + $0x1b68] sm:$0xff]  ;;  %5759 = vmatpush.msra.mxu3 %v4558_v62 }
 0x5f7   : > { %v4294_v2 = vld [vmem:[#allocation5 + $0x1fa8] sm:$0xff]  ;;  %5701 = vmatpush.msra.mxu0 %v4158_v1 }
 0x5f8   : > { %v4414_v4 = vld [vmem:[#allocation5 + $0x2368] sm:$0xff]  ;;  %5720 = vmatpush.msra.mxu1 %v4294_v2 }
 0x5f9   : > { %v4550_v6 = vld [vmem:[#allocation5 + $0x27a8] sm:$0xff]  ;;  %5741 = vmatpush.msra.mxu2 %v4414_v4  ;;  %v3407_v4 = vld [vmem:[#allocation5 + $0x3f0] sm:$0xff] }
 0x5fa   : > { %v4150_v7 = vld [vmem:[#allocation5 + $0x1b28] sm:$0xff]  ;;  %5760 = vmatpush.msra.mxu3 %v4550_v6  ;;  %v3663_v6 = vld [vmem:[#allocation5 + $0xbf0] sm:$0xff] }
 0x5fb   : > { %v4286_v28 = vld [vmem:[#allocation5 + $0x1f68] sm:$0xff]  ;;  %5702 = vmatpush.msra.mxu0 %v4150_v7 }
 0x5fc   : > { %v4406_v10 = vld [vmem:[#allocation5 + $0x2328] sm:$0xff]  ;;  %5721 = vmatpush.msra.mxu1 %v4286_v28 }
 0x5fd   : > { %v4542_v11 = vld [vmem:[#allocation5 + $0x2768] sm:$0xff]  ;;  %5742 = vmatpush.msra.mxu2 %v4406_v10  ;;  %v3399_v10 = vld [vmem:[#allocation5 + $0x3b0] sm:$0xff] }
 0x5fe   : > { %v4142_v56 = vld [vmem:[#allocation5 + $0x1ae8] sm:$0xff]  ;;  %5761 = vmatpush.msra.mxu3 %v4542_v11  ;;  %v3535_v11 = vld [vmem:[#allocation5 + $0x7f0] sm:$0xff] }
 0x5ff   : > { %v4278_v63 = vld [vmem:[#allocation5 + $0x1f28] sm:$0xff]  ;;  %5703 = vmatpush.msra.mxu0 %v4142_v56  ;;  %v3655_v56 = vld [vmem:[#allocation5 + $0xbb0] sm:$0xff] }
 0x600   : > { %v4398_v13 = vld [vmem:[#allocation5 + $0x22e8] sm:$0xff]  ;;  %5722 = vmatpush.msra.mxu1 %v4278_v63  ;;  %v3791_v63 = vld [vmem:[#allocation5 + $0xff0] sm:$0xff] }
 0x601   : > { %v4534_v54 = vld [vmem:[#allocation5 + $0x2728] sm:$0xff]  ;;  %5743 = vmatpush.msra.mxu2 %v4398_v13  ;;  %v3391_v13 = vld [vmem:[#allocation5 + $0x370] sm:$0xff] }
 0x602   : > { %v4134_v39 = vld [vmem:[#allocation5 + $0x1aa8] sm:$0xff]  ;;  %5762 = vmatpush.msra.mxu3 %v4534_v54  ;;  %v3527_v54 = vld [vmem:[#allocation5 + $0x7b0] sm:$0xff] }
 0x603   : > { %v4270_v42 = vld [vmem:[#allocation5 + $0x1ee8] sm:$0xff]  ;;  %5704 = vmatpush.msra.mxu0 %v4134_v39  ;;  %v3647_v39 = vld [vmem:[#allocation5 + $0xb70] sm:$0xff] }
 0x604   : > { %v4390_v38 = vld [vmem:[#allocation5 + $0x22a8] sm:$0xff]  ;;  %5723 = vmatpush.msra.mxu1 %v4270_v42  ;;  %v3783_v42 = vld [vmem:[#allocation5 + $0xfb0] sm:$0xff] }
 0x605   : > { %v4526_v23 = vld [vmem:[#allocation5 + $0x26e8] sm:$0xff]  ;;  %5744 = vmatpush.msra.mxu2 %v4390_v38  ;;  %v3383_v38 = vld [vmem:[#allocation5 + $0x330] sm:$0xff] }
 0x606   : > { %v4126_v30 = vld [vmem:[#allocation5 + $0x1a68] sm:$0xff]  ;;  %5763 = vmatpush.msra.mxu3 %v4526_v23  ;;  %v3519_v23 = vld [vmem:[#allocation5 + $0x770] sm:$0xff] }
 0x607   : > { %v4262_v26 = vld [vmem:[#allocation5 + $0x1ea8] sm:$0xff]  ;;  %5705 = vmatpush.msra.mxu0 %v4126_v30  ;;  %v3639_v30 = vld [vmem:[#allocation5 + $0xb30] sm:$0xff] }
 0x608   : > { %v4382_v48 = vld [vmem:[#allocation5 + $0x2268] sm:$0xff]  ;;  %5724 = vmatpush.msra.mxu1 %v4262_v26  ;;  %v3775_v26 = vld [vmem:[#allocation5 + $0xf70] sm:$0xff] }
 0x609   : > { %v4518_v20 = vld [vmem:[#allocation5 + $0x26a8] sm:$0xff]  ;;  %5745 = vmatpush.msra.mxu2 %v4382_v48  ;;  %v3375_v48 = vld [vmem:[#allocation5 + $0x2f0] sm:$0xff] }
 0x60a   : > { %v4118_v44 = vld [vmem:[#allocation5 + $0x1a28] sm:$0xff]  ;;  %5764 = vmatpush.msra.mxu3 %v4518_v20  ;;  %v3511_v20 = vld [vmem:[#allocation5 + $0x730] sm:$0xff] }
 0x60b   : > { %v4254_v22 = vld [vmem:[#allocation5 + $0x1e68] sm:$0xff]  ;;  %5706 = vmatpush.msra.mxu0 %v4118_v44  ;;  %v3631_v44 = vld [vmem:[#allocation5 + $0xaf0] sm:$0xff] }
 0x60c   : > { %v4374_v45 = vld [vmem:[#allocation5 + $0x2228] sm:$0xff]  ;;  %5725 = vmatpush.msra.mxu1 %v4254_v22  ;;  %v3767_v22 = vld [vmem:[#allocation5 + $0xf30] sm:$0xff] }
 0x60d   : > { %v4510_v47 = vld [vmem:[#allocation5 + $0x2668] sm:$0xff]  ;;  %5746 = vmatpush.msra.mxu2 %v4374_v45  ;;  %v3367_v45 = vld [vmem:[#allocation5 + $0x2b0] sm:$0xff] }
 0x60e   : > { %v4110_v27 = vld [vmem:[#allocation5 + $0x19e8] sm:$0xff]  ;;  %5765 = vmatpush.msra.mxu3 %v4510_v47  ;;  %v3503_v47 = vld [vmem:[#allocation5 + $0x6f0] sm:$0xff] }
 0x60f   : > { %v4246_v18 = vld [vmem:[#allocation5 + $0x1e28] sm:$0xff]  ;;  %5707 = vmatpush.msra.mxu0 %v4110_v27  ;;  %v3623_v27 = vld [vmem:[#allocation5 + $0xab0] sm:$0xff] }
 0x610   : > { %v4366_v49 = vld [vmem:[#allocation5 + $0x21e8] sm:$0xff]  ;;  %5726 = vmatpush.msra.mxu1 %v4246_v18  ;;  %v3759_v18 = vld [vmem:[#allocation5 + $0xef0] sm:$0xff] }
 0x611   : > { %v4502_v29 = vld [vmem:[#allocation5 + $0x2628] sm:$0xff]  ;;  %5747 = vmatpush.msra.mxu2 %v4366_v49  ;;  %v3359_v49 = vld [vmem:[#allocation5 + $0x270] sm:$0xff] }
 0x612   : > { %v4102_v32 = vld [vmem:[#allocation5 + $0x19a8] sm:$0xff]  ;;  %5766 = vmatpush.msra.mxu3 %v4502_v29  ;;  %v3495_v29 = vld [vmem:[#allocation5 + $0x6b0] sm:$0xff] }
 0x613   : > { %v4238_v34 = vld [vmem:[#allocation5 + $0x1de8] sm:$0xff]  ;;  %5708 = vmatpush.msra.mxu0 %v4102_v32  ;;  %v3615_v32 = vld [vmem:[#allocation5 + $0xa70] sm:$0xff] }
 0x614   : > { %v4358_v0 = vld [vmem:[#allocation5 + $0x21a8] sm:$0xff]  ;;  %5727 = vmatpush.msra.mxu1 %v4238_v34  ;;  %v3751_v34 = vld [vmem:[#allocation5 + $0xeb0] sm:$0xff] }
 0x615   : > { %v4494_v25 = vld [vmem:[#allocation5 + $0x25e8] sm:$0xff]  ;;  %5748 = vmatpush.msra.mxu2 %v4358_v0  ;;  %v3351_v0 = vld [vmem:[#allocation5 + $0x230] sm:$0xff] }
 0x616   : > { %v4094_v53 = vld [vmem:[#allocation5 + $0x1968] sm:$0xff]  ;;  %5767 = vmatpush.msra.mxu3 %v4494_v25  ;;  %v3487_v25 = vld [vmem:[#allocation5 + $0x670] sm:$0xff] }
 0x617   : > { %v4230_v55 = vld [vmem:[#allocation5 + $0x1da8] sm:$0xff]  ;;  %5709 = vmatpush.msra.mxu0 %v4094_v53  ;;  %v3607_v53 = vld [vmem:[#allocation5 + $0xa30] sm:$0xff] }
 0x618   : > { %v4350_v46 = vld [vmem:[#allocation5 + $0x2168] sm:$0xff]  ;;  %5728 = vmatpush.msra.mxu1 %v4230_v55  ;;  %v3743_v55 = vld [vmem:[#allocation5 + $0xe70] sm:$0xff] }
 0x619   : > { %v4486_v36 = vld [vmem:[#allocation5 + $0x25a8] sm:$0xff]  ;;  %5749 = vmatpush.msra.mxu2 %v4350_v46  ;;  %v3343_v46 = vld [vmem:[#allocation5 + $0x1f0] sm:$0xff] }
 0x61a   : > { %v4086_v61 = vld [vmem:[#allocation5 + $0x1928] sm:$0xff]  ;;  %5768 = vmatpush.msra.mxu3 %v4486_v36  ;;  %v3479_v36 = vld [vmem:[#allocation5 + $0x630] sm:$0xff] }
 0x61b   : > { %v4222_v37 = vld [vmem:[#allocation5 + $0x1d68] sm:$0xff]  ;;  %5710 = vmatpush.msra.mxu0 %v4086_v61  ;;  %v3599_v61 = vld [vmem:[#allocation5 + $0x9f0] sm:$0xff] }
 0x61c   : > { %v4342_v14 = vld [vmem:[#allocation5 + $0x2128] sm:$0xff]  ;;  %5729 = vmatpush.msra.mxu1 %v4222_v37  ;;  %v3735_v37 = vld [vmem:[#allocation5 + $0xe30] sm:$0xff] }
 0x61d   : > { %v4478_v8 = vld [vmem:[#allocation5 + $0x2568] sm:$0xff]  ;;  %5750 = vmatpush.msra.mxu2 %v4342_v14  ;;  %v3335_v14 = vld [vmem:[#allocation5 + $0x1b0] sm:$0xff] }
 0x61e   : > { %v4078_v40 = vld [vmem:[#allocation5 + $0x18e8] sm:$0xff]  ;;  %5769 = vmatpush.msra.mxu3 %v4478_v8  ;;  %v3471_v8 = vld [vmem:[#allocation5 + $0x5f0] sm:$0xff] }
 0x61f   : > { %v4214_v24 = vld [vmem:[#allocation5 + $0x1d28] sm:$0xff]  ;;  %5711 = vmatpush.msra.mxu0 %v4078_v40  ;;  %v3591_v40 = vld [vmem:[#allocation5 + $0x9b0] sm:$0xff] }
 0x620   : > { %v4334_v19 = vld [vmem:[#allocation5 + $0x20e8] sm:$0xff]  ;;  %5730 = vmatpush.msra.mxu1 %v4214_v24  ;;  %v3727_v24 = vld [vmem:[#allocation5 + $0xdf0] sm:$0xff] }
 0x621   : > { %v4470_v41 = vld [vmem:[#allocation5 + $0x2528] sm:$0xff]  ;;  %5751 = vmatpush.msra.mxu2 %v4334_v19  ;;  %v3327_v19 = vld [vmem:[#allocation5 + $0x170] sm:$0xff] }
 0x622   : > { %v4070_v3 = vld [vmem:[#allocation5 + $0x18a8] sm:$0xff]  ;;  %5770 = vmatpush.msra.mxu3 %v4470_v41  ;;  %v3463_v41 = vld [vmem:[#allocation5 + $0x5b0] sm:$0xff] }
 0x623   : > { %v4206_v43 = vld [vmem:[#allocation5 + $0x1ce8] sm:$0xff]  ;;  %5712 = vmatpush.msra.mxu0 %v4070_v3  ;;  %v3583_v3 = vld [vmem:[#allocation5 + $0x970] sm:$0xff] }
 0x624   : > { %v4326_v50 = vld [vmem:[#allocation5 + $0x20a8] sm:$0xff]  ;;  %5731 = vmatpush.msra.mxu1 %v4206_v43  ;;  %v3719_v43 = vld [vmem:[#allocation5 + $0xdb0] sm:$0xff] }
 0x625   : > { %v4462_v15 = vld [vmem:[#allocation5 + $0x24e8] sm:$0xff]  ;;  %5752 = vmatpush.msra.mxu2 %v4326_v50  ;;  %v3319_v50 = vld [vmem:[#allocation5 + $0x130] sm:$0xff] }
 0x626   : > { %v4062_v51 = vld [vmem:[#allocation5 + $0x1868] sm:$0xff]  ;;  %5771 = vmatpush.msra.mxu3 %v4462_v15  ;;  %v3455_v15 = vld [vmem:[#allocation5 + $0x570] sm:$0xff] }
 0x627   : > { %v4198_v12 = vld [vmem:[#allocation5 + $0x1ca8] sm:$0xff]  ;;  %5713 = vmatpush.msra.mxu0 %v4062_v51  ;;  %v3575_v51 = vld [vmem:[#allocation5 + $0x930] sm:$0xff] }
 0x628   : > { %v4318_v52 = vld [vmem:[#allocation5 + $0x2068] sm:$0xff]  ;;  %5732 = vmatpush.msra.mxu1 %v4198_v12  ;;  %v3711_v12 = vld [vmem:[#allocation5 + $0xd70] sm:$0xff] }
 0x629   : > { %v4454_v57 = vld [vmem:[#allocation5 + $0x24a8] sm:$0xff]  ;;  %5753 = vmatpush.msra.mxu2 %v4318_v52  ;;  %v3311_v52 = vld [vmem:[#allocation5 + $0xf0] sm:$0xff] }
 0x62a   : > { %v4054_v60 = vld [vmem:[#allocation5 + $0x1828] sm:$0xff]  ;;  %5772 = vmatpush.msra.mxu3 %v4454_v57  ;;  %v3447_v57 = vld [vmem:[#allocation5 + $0x530] sm:$0xff] }
 0x62b   : > { %v4190_v62 = vld [vmem:[#allocation5 + $0x1c68] sm:$0xff]  ;;  %5714 = vmatpush.msra.mxu0 %v4054_v60  ;;  %v3567_v60 = vld [vmem:[#allocation5 + $0x8f0] sm:$0xff] }
 0x62c   : > { %v4310_v1 = vld [vmem:[#allocation5 + $0x2028] sm:$0xff]  ;;  %5733 = vmatpush.msra.mxu1 %v4190_v62  ;;  %5715 = vmatmul.f32.vlgmr.msra.gmra.mxu0 %v8194_v31  ;;  %v3703_v62 = vld [vmem:[#allocation5 + $0xd30] sm:$0xff] }
 0x62d   : > { %v4446_v2 = vld [vmem:[#allocation5 + $0x2468] sm:$0xff]  ;;  %5754 = vmatpush.msra.mxu2 %v4310_v1  ;;  %5779 = vmatpush.msrb.mxu0 %v3407_v4  ;;  %v8285_v1 = vld [vmem:[#allocation7] sm:$0xff]  ;;  %v3303_v4 = vld [vmem:[#allocation5 + $0xb0] sm:$0xff] }
 0x62e   : > { %5773 = vmatpush.msra.mxu3 %v4446_v2  ;;  %v4182_v7 = vld [vmem:[#allocation5 + $0x1c28] sm:$0xff]  ;;  %5755 = vmatmul.f32.vlgmr.msra.gmra.mxu2 %v8209_v9  ;;  %v4567_v2 = vperm.slane %v8285_v1, 4 }
 0x62f   : > { %v4438_v28 = vld [vmem:[#allocation5 + $0x2428] sm:$0xff]  ;;  %5819 = vmatpush.msrb.mxu2 %v3663_v6  ;;  %5734 = vmatpush.msra.mxu1 %v4182_v7  ;;  %v3439_v6 = vld [vmem:[#allocation5 + $0x4f0] sm:$0xff]  ;;  %v5396_v7 = vpop.f32.mrf.mxu0 }
 0x630   : > { %5774 = vmatpush.msra.mxu3 %v4438_v28  ;;  %5735 = vmatmul.f32.vlgmr.msra.gmra.mxu1 %v8198_v16  ;;  %v3559_v28 = vld [vmem:[#allocation5 + $0x8b0] sm:$0xff] }
 0x631   : > { %5775 = vmatmul.f32.vlgmr.msra.gmra.mxu3 %v8211_v21  ;;  %5780 = vmatpush.msrb.mxu0 %v3399_v10  ;;  %v3695_v10 = vld [vmem:[#allocation5 + $0xcf0] sm:$0xff] }
 0x632   : > { %5799 = vmatpush.msrb.mxu1 %v3535_v11  ;;  %5820 = vmatpush.msrb.mxu2 %v3655_v56  ;;  %v3295_v11 = vld [vmem:[#allocation5 + $0x70] sm:$0xff] }
 0x633   : > { %5839 = vmatpush.msrb.mxu3 %v3791_v63  ;;  %5781 = vmatpush.msrb.mxu0 %v3391_v13  ;;  %v3431_v56 = vld [vmem:[#allocation5 + $0x4b0] sm:$0xff] }
 0x634   : > { %5800 = vmatpush.msrb.mxu1 %v3527_v54  ;;  %5821 = vmatpush.msrb.mxu2 %v3647_v39  ;;  %v3551_v63 = vld [vmem:[#allocation5 + $0x870] sm:$0xff]  ;;  %v5397_v54 = vadd.f32 %v5396_v7, %v4567_v2 }
 0x635   : > { %5840 = vmatpush.msrb.mxu3 %v3783_v42  ;;  %5782 = vmatpush.msrb.mxu0 %v3383_v38  ;;  %v3687_v13 = vld [vmem:[#allocation5 + $0xcb0] sm:$0xff]  ;;  %v5416_v38 = vpop.f32.mrf.mxu1 }
 0x636   : > { %5801 = vmatpush.msrb.mxu1 %v3519_v23  ;;  %5822 = vmatpush.msrb.mxu2 %v3639_v30  ;;  %v3287_v39 = vld [vmem:[#allocation5 + $0x30] sm:$0xff] }
 0x637   : > { %5841 = vmatpush.msrb.mxu3 %v3775_v26  ;;  %5783 = vmatpush.msrb.mxu0 %v3375_v48  ;;  %v3423_v42 = vld [vmem:[#allocation5 + $0x470] sm:$0xff] }
 0x638   : > { %5802 = vmatpush.msrb.mxu1 %v3511_v20  ;;  %5823 = vmatpush.msrb.mxu2 %v3631_v44  ;;  %v3543_v23 = vld [vmem:[#allocation5 + $0x830] sm:$0xff] }
 0x639   : > { %5842 = vmatpush.msrb.mxu3 %v3767_v22  ;;  %5784 = vmatpush.msrb.mxu0 %v3367_v45  ;;  %v3679_v30 = vld [vmem:[#allocation5 + $0xc70] sm:$0xff]  ;;  %v5417_v22 = vadd.f32 %v5416_v38, %v5397_v54 }
 0x63a   : > { %5803 = vmatpush.msrb.mxu1 %v3503_v47  ;;  %5824 = vmatpush.msrb.mxu2 %v3623_v27  ;;  %v3919_v26 = vld [vmem:[#allocation5 + $0x13f0] sm:$0xff]  ;;  %v5436_v27 = vpop.f32.mrf.mxu2 }
 0x63b   : > { %5843 = vmatpush.msrb.mxu3 %v3759_v18  ;;  %5785 = vmatpush.msrb.mxu0 %v3359_v49  ;;  %v4175_v48 = vld [vmem:[#allocation5 + $0x1bf0] sm:$0xff] }
 0x63c   : > { %5804 = vmatpush.msrb.mxu1 %v3495_v29  ;;  %5825 = vmatpush.msrb.mxu2 %v3615_v32  ;;  %v3415_v20 = vld [vmem:[#allocation5 + $0x430] sm:$0xff] }
 0x63d   : > { %5844 = vmatpush.msrb.mxu3 %v3751_v34  ;;  %5786 = vmatpush.msrb.mxu0 %v3351_v0  ;;  %v3671_v44 = vld [vmem:[#allocation5 + $0xc30] sm:$0xff] }
 0x63e   : > { %5805 = vmatpush.msrb.mxu1 %v3487_v25  ;;  %5826 = vmatpush.msrb.mxu2 %v3607_v53  ;;  %v3911_v45 = vld [vmem:[#allocation5 + $0x13b0] sm:$0xff]  ;;  %v5437_v25 = vadd.f32 %v5436_v27, %v5417_v22 }
 0x63f   : > { %5845 = vmatpush.msrb.mxu3 %v3743_v55  ;;  %5787 = vmatpush.msrb.mxu0 %v3343_v46  ;;  %v4047_v47 = vld [vmem:[#allocation5 + $0x17f0] sm:$0xff]  ;;  %v5456_v46 = vpop.f32.mrf.mxu3 }
 0x640   : > { %5806 = vmatpush.msrb.mxu1 %v3479_v36  ;;  %5827 = vmatpush.msrb.mxu2 %v3599_v61  ;;  %v4167_v18 = vld [vmem:[#allocation5 + $0x1bb0] sm:$0xff] }
 0x641   : > { %5846 = vmatpush.msrb.mxu3 %v3735_v37  ;;  %5788 = vmatpush.msrb.mxu0 %v3335_v14  ;;  %v4303_v49 = vld [vmem:[#allocation5 + $0x1ff0] sm:$0xff] }
 0x642   : > { %5807 = vmatpush.msrb.mxu1 %v3471_v8  ;;  %5828 = vmatpush.msrb.mxu2 %v3591_v40  ;;  %v3903_v29 = vld [vmem:[#allocation5 + $0x1370] sm:$0xff] }
 0x643   : > { %5847 = vmatpush.msrb.mxu3 %v3727_v24  ;;  %5789 = vmatpush.msrb.mxu0 %v3327_v19  ;;  %v4039_v32 = vld [vmem:[#allocation5 + $0x17b0] sm:$0xff]  ;;  %v5457_v24 = vadd.f32 %v5456_v46, %v5437_v25 }
 0x644   : > { %5808 = vmatpush.msrb.mxu1 %v3463_v41  ;;  %5829 = vmatpush.msrb.mxu2 %v3583_v3  ;;  %v4159_v34 = vld [vmem:[#allocation5 + $0x1b70] sm:$0xff]  ;;  %v5476_v3 = vpop.f32.mrf.mxu0 }
 0x645   : > { %5848 = vmatpush.msrb.mxu3 %v3719_v43  ;;  %5790 = vmatpush.msrb.mxu0 %v3319_v50  ;;  %v4295_v0 = vld [vmem:[#allocation5 + $0x1fb0] sm:$0xff] }
 0x646   : > { %5809 = vmatpush.msrb.mxu1 %v3455_v15  ;;  %5830 = vmatpush.msrb.mxu2 %v3575_v51  ;;  %v3895_v53 = vld [vmem:[#allocation5 + $0x1330] sm:$0xff] }
 0x647   : > { %5849 = vmatpush.msrb.mxu3 %v3711_v12  ;;  %5791 = vmatpush.msrb.mxu0 %v3311_v52  ;;  %v4031_v55 = vld [vmem:[#allocation5 + $0x1770] sm:$0xff]  ;;  %v5477_v12 = vadd.f32 %v5476_v3, %v5457_v24 }
 0x648   : > { %5810 = vmatpush.msrb.mxu1 %v3447_v57  ;;  %5831 = vmatpush.msrb.mxu2 %v3567_v60  ;;  %v4151_v36 = vld [vmem:[#allocation5 + $0x1b30] sm:$0xff]  ;;  %v5496_v60 = vpop.f32.mrf.mxu1 }
 0x649   : > { %5850 = vmatpush.msrb.mxu3 %v3703_v62  ;;  %5792 = vmatpush.msrb.mxu0 %v3303_v4  ;;  %v4287_v61 = vld [vmem:[#allocation5 + $0x1f70] sm:$0xff] }
 0x64a   : > { %5811 = vmatpush.msrb.mxu1 %v3439_v6  ;;  %5832 = vmatpush.msrb.mxu2 %v3559_v28  ;;  %v3887_v37 = vld [vmem:[#allocation5 + $0x12f0] sm:$0xff] }
 0x64b   : > { %5851 = vmatpush.msrb.mxu3 %v3695_v10  ;;  %5793 = vmatpush.msrb.mxu0 %v3295_v11  ;;  %v4023_v14 = vld [vmem:[#allocation5 + $0x1730] sm:$0xff]  ;;  %v5497_v10 = vadd.f32 %v5496_v60, %v5477_v12  ;;  %v3536_v60 = vld [vmem:[#allocation5 + $0x7f8] sm:$0xff] }
 0x64c   : > { %5812 = vmatpush.msrb.mxu1 %v3431_v56  ;;  %5833 = vmatpush.msrb.mxu2 %v3551_v63  ;;  %v4143_v8 = vld [vmem:[#allocation5 + $0x1af0] sm:$0xff]  ;;  %v5516_v63 = vpop.f32.mrf.mxu2  ;;  %v5556_v25 = vpop.f32.mrf.mxu0 }
 0x64d   : > { %5852 = vmatpush.msrb.mxu3 %v3687_v13  ;;  %5794 = vmatpush.msrb.mxu0 %v3287_v39  ;;  %v4279_v40 = vld [vmem:[#allocation5 + $0x1f30] sm:$0xff] }
 0x64e   : > { %5813 = vmatpush.msrb.mxu1 %v3423_v42  ;;  %5834 = vmatpush.msrb.mxu2 %v3543_v23  ;;  %v3879_v19 = vld [vmem:[#allocation5 + $0x12b0] sm:$0xff] }
 0x64f   : > { %5853 = vmatpush.msrb.mxu3 %v3679_v30  ;;  %5859 = vmatpush.msra.mxu0 %v3919_v26  ;;  %v4015_v41 = vld [vmem:[#allocation5 + $0x16f0] sm:$0xff]  ;;  %v5517_v30 = vadd.f32 %v5516_v63, %v5497_v10  ;;  %v3384_v10 = vld [vmem:[#allocation5 + $0x338] sm:$0xff] }
 0x650   : > { %5899 = vmatpush.msra.mxu2 %v4175_v48  ;;  %5814 = vmatpush.msrb.mxu1 %v3415_v20  ;;  %v4135_v43 = vld [vmem:[#allocation5 + $0x1ab0] sm:$0xff]  ;;  %v5536_v20 = vpop.f32.mrf.mxu3 }
 0x651   : > { %5854 = vmatpush.msrb.mxu3 %v3671_v44  ;;  %5860 = vmatpush.msra.mxu0 %v3911_v45  ;;  %v4271_v50 = vld [vmem:[#allocation5 + $0x1ef0] sm:$0xff] }
 0x652   : > { %5879 = vmatpush.msra.mxu1 %v4047_v47  ;;  %5900 = vmatpush.msra.mxu2 %v4167_v18  ;;  %v3871_v15 = vld [vmem:[#allocation5 + $0x1270] sm:$0xff] }
 0x653   : > { %5919 = vmatpush.msra.mxu3 %v4303_v49  ;;  %5861 = vmatpush.msra.mxu0 %v3903_v29  ;;  %v4007_v51 = vld [vmem:[#allocation5 + $0x16b0] sm:$0xff]  ;;  %v5537_v49 = vadd.f32 %v5536_v20, %v5517_v30  ;;  %v3496_v20 = vld [vmem:[#allocation5 + $0x6b8] sm:$0xff] }
 0x654   : > { %5880 = vmatpush.msra.mxu1 %v4039_v32  ;;  %5901 = vmatpush.msra.mxu2 %v4159_v34  ;;  %v4127_v52 = vld [vmem:[#allocation5 + $0x1a70] sm:$0xff] }
 0x655   : > { %5920 = vmatpush.msra.mxu3 %v4295_v0  ;;  %5862 = vmatpush.msra.mxu0 %v3895_v53  ;;  %v4263_v57 = vld [vmem:[#allocation5 + $0x1eb0] sm:$0xff]  ;;  %v5557_v46 = vadd.f32 %v5556_v25, %v5537_v49  ;;  %v3344_v49 = vld [vmem:[#allocation5 + $0x1f8] sm:$0xff] }
 0x656   : > { %5881 = vmatpush.msra.mxu1 %v4031_v55  ;;  %5902 = vmatpush.msra.mxu2 %v4151_v36  ;;  %v3863_v62 = vld [vmem:[#allocation5 + $0x1230] sm:$0xff]  ;;  %v3472_v25 = vld [vmem:[#allocation5 + $0x5f8] sm:$0xff] }
 0x657   : > { %5921 = vmatpush.msra.mxu3 %v4287_v61  ;;  %5863 = vmatpush.msra.mxu0 %v3887_v37  ;;  %v3999_v2 = vld [vmem:[#allocation5 + $0x1670] sm:$0xff]  ;;  %v5576_v37 = vpop.f32.mrf.mxu1 }
 0x658   : > { %5882 = vmatpush.msra.mxu1 %v4023_v14  ;;  %5903 = vmatpush.msra.mxu2 %v4143_v8  ;;  %v4119_v4 = vld [vmem:[#allocation5 + $0x1a30] sm:$0xff] }
 0x659   : > { %5922 = vmatpush.msra.mxu3 %v4279_v40  ;;  %5864 = vmatpush.msra.mxu0 %v3879_v19  ;;  %v4255_v6 = vld [vmem:[#allocation5 + $0x1e70] sm:$0xff]  ;;  %v5577_v40 = vadd.f32 %v5576_v37, %v5557_v46  ;;  %v3328_v46 = vld [vmem:[#allocation5 + $0x178] sm:$0xff] }
 0x65a   : > { %5883 = vmatpush.msra.mxu1 %v4015_v41  ;;  %5904 = vmatpush.msra.mxu2 %v4135_v43  ;;  %v3855_v7 = vld [vmem:[#allocation5 + $0x11f0] sm:$0xff] }
 0x65b   : > { %5923 = vmatpush.msra.mxu3 %v4271_v50  ;;  %5865 = vmatpush.msra.mxu0 %v3871_v15  ;;  %v3991_v28 = vld [vmem:[#allocation5 + $0x1630] sm:$0xff]  ;;  %6183 = vst [vmem:[%s8339_s5 + $0x20] sm:$0xff] %v5577_v40  ;;  %v3408_v50 = vld [vmem:[#allocation5 + $0x3f8] sm:$0xff] }
 0x65c   : > { %5884 = vmatpush.msra.mxu1 %v4007_v51  ;;  %5905 = vmatpush.msra.mxu2 %v4127_v52  ;;  %v4111_v11 = vld [vmem:[#allocation5 + $0x19f0] sm:$0xff] }
 0x65d   : > { %5924 = vmatpush.msra.mxu3 %v4263_v57  ;;  %5866 = vmatpush.msra.mxu0 %v3863_v62  ;;  %v4247_v56 = vld [vmem:[#allocation5 + $0x1e30] sm:$0xff]  ;;  %v3400_v57 = vld [vmem:[#allocation5 + $0x3b8] sm:$0xff] }
 0x65e   : > { %5885 = vmatpush.msra.mxu1 %v3999_v2  ;;  %5906 = vmatpush.msra.mxu2 %v4119_v4  ;;  %v3847_v13 = vld [vmem:[#allocation5 + $0x11b0] sm:$0xff]  ;;  %v3392_v4 = vld [vmem:[#allocation5 + $0x378] sm:$0xff] }
 0x65f   : > { %5925 = vmatpush.msra.mxu3 %v4255_v6  ;;  %v3983_v54 = vld [vmem:[#allocation5 + $0x15f0] sm:$0xff]  ;;  %5867 = vmatpush.msra.mxu0 %v3855_v7  ;;  %v3528_v6 = vld [vmem:[#allocation5 + $0x7b8] sm:$0xff] }
 0x660   : > { %5886 = vmatpush.msra.mxu1 %v3991_v28  ;;  %v4103_v39 = vld [vmem:[#allocation5 + $0x19b0] sm:$0xff]  ;;  %5907 = vmatpush.msra.mxu2 %v4111_v11  ;;  %v3520_v11 = vld [vmem:[#allocation5 + $0x778] sm:$0xff] }
 0x661   : > { %v4239_v42 = vld [vmem:[#allocation5 + $0x1df0] sm:$0xff]  ;;  %5926 = vmatpush.msra.mxu3 %v4247_v56  ;;  %5868 = vmatpush.msra.mxu0 %v3847_v13  ;;  %v3376_v13 = vld [vmem:[#allocation5 + $0x2f8] sm:$0xff] }
 0x662   : > { %v3839_v38 = vld [vmem:[#allocation5 + $0x1170] sm:$0xff]  ;;  %5887 = vmatpush.msra.mxu1 %v3983_v54  ;;  %5908 = vmatpush.msra.mxu2 %v4103_v39  ;;  %v3512_v54 = vld [vmem:[#allocation5 + $0x738] sm:$0xff] }
 0x663   : > { %v3975_v23 = vld [vmem:[#allocation5 + $0x15b0] sm:$0xff]  ;;  %5927 = vmatpush.msra.mxu3 %v4239_v42  ;;  %5869 = vmatpush.msra.mxu0 %v3839_v38  ;;  %v3368_v38 = vld [vmem:[#allocation5 + $0x2b8] sm:$0xff] }
 0x664   : > { %v4095_v26 = vld [vmem:[#allocation5 + $0x1970] sm:$0xff]  ;;  %5888 = vmatpush.msra.mxu1 %v3975_v23  ;;  %5795 = vmatmul.f32.vlgmr.msrb.gmra.mxu0 %v8178_v33  ;;  %v3504_v23 = vld [vmem:[#allocation5 + $0x6f8] sm:$0xff] }
 0x665   : > { %v4231_v48 = vld [vmem:[#allocation5 + $0x1db0] sm:$0xff]  ;;  %5909 = vmatpush.msra.mxu2 %v4095_v26  ;;  %5815 = vmatmul.f32.vlgmr.msrb.gmra.mxu1 %v8183_v58 }
 0x666   : > { %v3831_v44 = vld [vmem:[#allocation5 + $0x1130] sm:$0xff]  ;;  %5928 = vmatpush.msra.mxu3 %v4231_v48  ;;  %5835 = vmatmul.f32.vlgmr.msrb.gmra.mxu2 %v8180_v35  ;;  %v3360_v48 = vld [vmem:[#allocation5 + $0x278] sm:$0xff] }
 0x667   : > { %v3967_v22 = vld [vmem:[#allocation5 + $0x1570] sm:$0xff]  ;;  %5870 = vmatpush.msra.mxu0 %v3831_v44  ;;  %5855 = vmatmul.f32.vlgmr.msrb.gmra.mxu3 %v8185_v59 }
 0x668   : > { %v4087_v45 = vld [vmem:[#allocation5 + $0x1930] sm:$0xff]  ;;  %5889 = vmatpush.msra.mxu1 %v3967_v22 }
 0x669   : > { %v4223_v47 = vld [vmem:[#allocation5 + $0x1d70] sm:$0xff]  ;;  %5910 = vmatpush.msra.mxu2 %v4087_v45  ;;  %v3352_v45 = vld [vmem:[#allocation5 + $0x238] sm:$0xff] }
 0x66a   : > { %v3823_v27 = vld [vmem:[#allocation5 + $0x10f0] sm:$0xff]  ;;  %5929 = vmatpush.msra.mxu3 %v4223_v47  ;;  %v3488_v47 = vld [vmem:[#allocation5 + $0x678] sm:$0xff] }
 0x66b   : > { %v3959_v18 = vld [vmem:[#allocation5 + $0x1530] sm:$0xff]  ;;  %5871 = vmatpush.msra.mxu0 %v3823_v27 }
 0x66c   : > { %v4079_v29 = vld [vmem:[#allocation5 + $0x18f0] sm:$0xff]  ;;  %5890 = vmatpush.msra.mxu1 %v3959_v18 }
 0x66d   : > { %v4215_v32 = vld [vmem:[#allocation5 + $0x1d30] sm:$0xff]  ;;  %5911 = vmatpush.msra.mxu2 %v4079_v29  ;;  %v3480_v29 = vld [vmem:[#allocation5 + $0x638] sm:$0xff] }
 0x66e   : > { %v3815_v34 = vld [vmem:[#allocation5 + $0x10b0] sm:$0xff]  ;;  %5930 = vmatpush.msra.mxu3 %v4215_v32 }
 0x66f   : > { %v3951_v0 = vld [vmem:[#allocation5 + $0x14f0] sm:$0xff]  ;;  %5872 = vmatpush.msra.mxu0 %v3815_v34 }
 0x670   : > { %v4071_v53 = vld [vmem:[#allocation5 + $0x18b0] sm:$0xff]  ;;  %5891 = vmatpush.msra.mxu1 %v3951_v0  ;;  %v3336_v0 = vld [vmem:[#allocation5 + $0x1b8] sm:$0xff] }
 0x671   : > { %v4207_v55 = vld [vmem:[#allocation5 + $0x1cf0] sm:$0xff]  ;;  %5912 = vmatpush.msra.mxu2 %v4071_v53 }
 0x672   : > { %v3807_v36 = vld [vmem:[#allocation5 + $0x1070] sm:$0xff]  ;;  %5931 = vmatpush.msra.mxu3 %v4207_v55 }
 0x673   : > { %v3943_v61 = vld [vmem:[#allocation5 + $0x14b0] sm:$0xff]  ;;  %5873 = vmatpush.msra.mxu0 %v3807_v36  ;;  %v3464_v36 = vld [vmem:[#allocation5 + $0x5b8] sm:$0xff] }
 0x674   : > { %v4063_v14 = vld [vmem:[#allocation5 + $0x1870] sm:$0xff]  ;;  %5892 = vmatpush.msra.mxu1 %v3943_v61 }
 0x675   : > { %v4199_v8 = vld [vmem:[#allocation5 + $0x1cb0] sm:$0xff]  ;;  %5913 = vmatpush.msra.mxu2 %v4063_v14  ;;  %v3320_v14 = vld [vmem:[#allocation5 + $0x138] sm:$0xff] }
 0x676   : > { %v3799_v24 = vld [vmem:[#allocation5 + $0x1030] sm:$0xff]  ;;  %5932 = vmatpush.msra.mxu3 %v4199_v8  ;;  %v3456_v8 = vld [vmem:[#allocation5 + $0x578] sm:$0xff] }
 0x677   : > { %v3935_v19 = vld [vmem:[#allocation5 + $0x1470] sm:$0xff]  ;;  %5874 = vmatpush.msra.mxu0 %v3799_v24 }
 0x678   : > { %v4055_v41 = vld [vmem:[#allocation5 + $0x1830] sm:$0xff]  ;;  %5893 = vmatpush.msra.mxu1 %v3935_v19  ;;  %5875 = vmatmul.f32.vlgmr.msra.gmra.mxu0 %v8196_v5  ;;  %v3312_v19 = vld [vmem:[#allocation5 + $0xf8] sm:$0xff] }
 0x679   : > { %v4191_v3 = vld [vmem:[#allocation5 + $0x1c70] sm:$0xff]  ;;  %5914 = vmatpush.msra.mxu2 %v4055_v41  ;;  %v3448_v41 = vld [vmem:[#allocation5 + $0x538] sm:$0xff] }
 0x67a   : > { %v4431_v43 = vld [vmem:[#allocation5 + $0x23f0] sm:$0xff]  ;;  %5933 = vmatpush.msra.mxu3 %v4191_v3  ;;  %5915 = vmatmul.f32.vlgmr.msra.gmra.mxu2 %v8194_v31 }
 0x67b   : > { %v3927_v15 = vld [vmem:[#allocation5 + $0x1430] sm:$0xff]  ;;  %5939 = vmatpush.msrb.mxu0 %v4431_v43  ;;  %5979 = vmatpush.msrb.mxu2 %v3408_v50  ;;  %v3304_v50 = vld [vmem:[#allocation5 + $0xb8] sm:$0xff] }
 0x67c   : > { %v4183_v51 = vld [vmem:[#allocation5 + $0x1c30] sm:$0xff]  ;;  %5894 = vmatpush.msra.mxu1 %v3927_v15  ;;  %v3440_v15 = vld [vmem:[#allocation5 + $0x4f8] sm:$0xff] }
 0x67d   : > { %v4423_v12 = vld [vmem:[#allocation5 + $0x23b0] sm:$0xff]  ;;  %5934 = vmatpush.msra.mxu3 %v4183_v51  ;;  %5980 = vmatpush.msrb.mxu2 %v3400_v57  ;;  %v3432_v57 = vld [vmem:[#allocation5 + $0x4b8] sm:$0xff] }
 0x67e   : > { %v4559_v52 = vld [vmem:[#allocation5 + $0x27f0] sm:$0xff]  ;;  %5940 = vmatpush.msrb.mxu0 %v4423_v12  ;;  %5935 = vmatmul.f32.vlgmr.msra.gmra.mxu3 %v8198_v16 }
 0x67f   : > { %v4415_v62 = vld [vmem:[#allocation5 + $0x2370] sm:$0xff]  ;;  %5959 = vmatpush.msrb.mxu1 %v4559_v52  ;;  %5999 = vmatpush.msrb.mxu3 %v3536_v60  ;;  %v3296_v52 = vld [vmem:[#allocation5 + $0x78] sm:$0xff] }
 0x680   : > { %v4551_v2 = vld [vmem:[#allocation5 + $0x27b0] sm:$0xff]  ;;  %5941 = vmatpush.msrb.mxu0 %v4415_v62  ;;  %5981 = vmatpush.msrb.mxu2 %v3392_v4  ;;  %v3424_v4 = vld [vmem:[#allocation5 + $0x478] sm:$0xff] }
 0x681   : > { %v4407_v7 = vld [vmem:[#allocation5 + $0x2330] sm:$0xff]  ;;  %5960 = vmatpush.msrb.mxu1 %v4551_v2  ;;  %6000 = vmatpush.msrb.mxu3 %v3528_v6  ;;  %v3288_v2 = vld [vmem:[#allocation5 + $0x38] sm:$0xff] }
 0x682   : > { %v4543_v28 = vld [vmem:[#allocation5 + $0x2770] sm:$0xff]  ;;  %5942 = vmatpush.msrb.mxu0 %v4407_v7  ;;  %5982 = vmatpush.msrb.mxu2 %v3384_v10  ;;  %v3920_v6 = vld [vmem:[#allocation5 + $0x13f8] sm:$0xff]  ;;  %v4568_v10 = vperm.slane %v8285_v1, 5 }
 0x683   : > { %v4399_v56 = vld [vmem:[#allocation5 + $0x22f0] sm:$0xff]  ;;  %5961 = vmatpush.msrb.mxu1 %v4543_v28  ;;  %6001 = vmatpush.msrb.mxu3 %v3520_v11  ;;  %v3664_v7 = vld [vmem:[#allocation5 + $0xbf8] sm:$0xff] }
 0x684   : > { %v4535_v63 = vld [vmem:[#allocation5 + $0x2730] sm:$0xff]  ;;  %5943 = vmatpush.msrb.mxu0 %v4399_v56  ;;  %5983 = vmatpush.msrb.mxu2 %v3376_v13  ;;  %v3416_v11 = vld [vmem:[#allocation5 + $0x438] sm:$0xff]  ;;  %v5596_v56 = vpop.f32.mrf.mxu2 }
 0x685   : > { %v4391_v39 = vld [vmem:[#allocation5 + $0x22b0] sm:$0xff]  ;;  %5962 = vmatpush.msrb.mxu1 %v4535_v63  ;;  %6002 = vmatpush.msrb.mxu3 %v3512_v54  ;;  %v3656_v63 = vld [vmem:[#allocation5 + $0xbb8] sm:$0xff] }
 0x686   : > { %v4527_v42 = vld [vmem:[#allocation5 + $0x26f0] sm:$0xff]  ;;  %5944 = vmatpush.msrb.mxu0 %v4391_v39  ;;  %5984 = vmatpush.msrb.mxu2 %v3368_v38  ;;  %v3792_v13 = vld [vmem:[#allocation5 + $0xff8] sm:$0xff] }
 0x687   : > { %v4383_v30 = vld [vmem:[#allocation5 + $0x2270] sm:$0xff]  ;;  %5963 = vmatpush.msrb.mxu1 %v4527_v42  ;;  %6003 = vmatpush.msrb.mxu3 %v3504_v23  ;;  %v3912_v54 = vld [vmem:[#allocation5 + $0x13b8] sm:$0xff]  ;;  %v5597_v23 = vadd.f32 %v5596_v56, %v4568_v10 }
 0x688   : > { %v4519_v26 = vld [vmem:[#allocation5 + $0x26b0] sm:$0xff]  ;;  %5895 = vmatmul.f32.vlgmr.msra.gmra.mxu1 %v8201_v17  ;;  %5945 = vmatpush.msrb.mxu0 %v4383_v30  ;;  %v4048_v39 = vld [vmem:[#allocation5 + $0x17f8] sm:$0xff] }
 0x689   : > { %v4375_v44 = vld [vmem:[#allocation5 + $0x2230] sm:$0xff]  ;;  %5964 = vmatpush.msrb.mxu1 %v4519_v26  ;;  %5985 = vmatpush.msrb.mxu2 %v3360_v48  ;;  %v3648_v42 = vld [vmem:[#allocation5 + $0xb78] sm:$0xff]  ;;  %v5616_v26 = vpop.f32.mrf.mxu3 }
 0x68a   : > { %v4511_v22 = vld [vmem:[#allocation5 + $0x2670] sm:$0xff]  ;;  %6004 = vmatpush.msrb.mxu3 %v3496_v20  ;;  %5946 = vmatpush.msrb.mxu0 %v4375_v44  ;;  %v3784_v38 = vld [vmem:[#allocation5 + $0xfb8] sm:$0xff] }
 0x68b   : > { %v4367_v27 = vld [vmem:[#allocation5 + $0x21f0] sm:$0xff]  ;;  %5965 = vmatpush.msrb.mxu1 %v4511_v22  ;;  %5986 = vmatpush.msrb.mxu2 %v3352_v45  ;;  %v3904_v1 = vld [vmem:[#allocation5 + $0x1378] sm:$0xff] }
 0x68c   : > { %v4503_v18 = vld [vmem:[#allocation5 + $0x2630] sm:$0xff]  ;;  %6005 = vmatpush.msrb.mxu3 %v3488_v47  ;;  %5947 = vmatpush.msrb.mxu0 %v4367_v27  ;;  %v4040_v30 = vld [vmem:[#allocation5 + $0x17b8] sm:$0xff]  ;;  %v5617_v27 = vadd.f32 %v5616_v26, %v5597_v23 }
 0x68d   : > { %v4359_v32 = vld [vmem:[#allocation5 + $0x21b0] sm:$0xff]  ;;  %5966 = vmatpush.msrb.mxu1 %v4503_v18  ;;  %5987 = vmatpush.msrb.mxu2 %v3344_v49  ;;  %v3640_v48 = vld [vmem:[#allocation5 + $0xb38] sm:$0xff] }
 0x68e   : > { %v4495_v34 = vld [vmem:[#allocation5 + $0x25f0] sm:$0xff]  ;;  %6006 = vmatpush.msrb.mxu3 %v3480_v29  ;;  %5948 = vmatpush.msrb.mxu0 %v4359_v32  ;;  %v3776_v20 = vld [vmem:[#allocation5 + $0xf78] sm:$0xff]  ;;  %v5636_v29 = vpop.f32.mrf.mxu0 }
 0x68f   : > { %v4351_v53 = vld [vmem:[#allocation5 + $0x2170] sm:$0xff]  ;;  %5967 = vmatpush.msrb.mxu1 %v4495_v34  ;;  %5988 = vmatpush.msrb.mxu2 %v3336_v0  ;;  %v3896_v44 = vld [vmem:[#allocation5 + $0x1338] sm:$0xff] }
 0x690   : > { %v4487_v55 = vld [vmem:[#allocation5 + $0x25b0] sm:$0xff]  ;;  %6007 = vmatpush.msrb.mxu3 %v3472_v25  ;;  %5949 = vmatpush.msrb.mxu0 %v4351_v53  ;;  %v4032_v22 = vld [vmem:[#allocation5 + $0x1778] sm:$0xff]  ;;  %v5637_v53 = vadd.f32 %v5636_v29, %v5617_v27 }
 0x691   : > { %v4343_v61 = vld [vmem:[#allocation5 + $0x2130] sm:$0xff]  ;;  %5968 = vmatpush.msrb.mxu1 %v4487_v55  ;;  %5989 = vmatpush.msrb.mxu2 %v3328_v46  ;;  %v3632_v45 = vld [vmem:[#allocation5 + $0xaf8] sm:$0xff] }
 0x692   : > { %v4479_v37 = vld [vmem:[#allocation5 + $0x2570] sm:$0xff]  ;;  %6008 = vmatpush.msrb.mxu3 %v3464_v36  ;;  %5950 = vmatpush.msrb.mxu0 %v4343_v61  ;;  %v3768_v47 = vld [vmem:[#allocation5 + $0xf38] sm:$0xff] }
 0x693   : > { %v4335_v40 = vld [vmem:[#allocation5 + $0x20f0] sm:$0xff]  ;;  %5969 = vmatpush.msrb.mxu1 %v4479_v37  ;;  %5990 = vmatpush.msrb.mxu2 %v3320_v14  ;;  %v3888_v18 = vld [vmem:[#allocation5 + $0x12f8] sm:$0xff]  ;;  %v5656_v37 = vpop.f32.mrf.mxu1 }
 0x694   : > { %v4471_v24 = vld [vmem:[#allocation5 + $0x2530] sm:$0xff]  ;;  %6009 = vmatpush.msrb.mxu3 %v3456_v8  ;;  %5951 = vmatpush.msrb.mxu0 %v4335_v40  ;;  %v4024_v49 = vld [vmem:[#allocation5 + $0x1738] sm:$0xff] }
 0x695   : > { %v4327_v3 = vld [vmem:[#allocation5 + $0x20b0] sm:$0xff]  ;;  %5970 = vmatpush.msrb.mxu1 %v4471_v24  ;;  %5991 = vmatpush.msrb.mxu2 %v3312_v19  ;;  %v3624_v32 = vld [vmem:[#allocation5 + $0xab8] sm:$0xff]  ;;  %v5657_v19 = vadd.f32 %v5656_v37, %v5637_v53 }
 0x696   : > { %v4463_v43 = vld [vmem:[#allocation5 + $0x24f0] sm:$0xff]  ;;  %6010 = vmatpush.msrb.mxu3 %v3448_v41  ;;  %5952 = vmatpush.msrb.mxu0 %v4327_v3  ;;  %v3760_v34 = vld [vmem:[#allocation5 + $0xef8] sm:$0xff] }
 0x697   : > { %v4319_v51 = vld [vmem:[#allocation5 + $0x2070] sm:$0xff]  ;;  %5971 = vmatpush.msrb.mxu1 %v4463_v43  ;;  %5992 = vmatpush.msrb.mxu2 %v3304_v50  ;;  %v3880_v0 = vld [vmem:[#allocation5 + $0x12b8] sm:$0xff]  ;;  %v5676_v43 = vpop.f32.mrf.mxu2 }
 0x698   : > { %v4455_v12 = vld [vmem:[#allocation5 + $0x24b0] sm:$0xff]  ;;  %6011 = vmatpush.msrb.mxu3 %v3440_v15  ;;  %5953 = vmatpush.msrb.mxu0 %v4319_v51  ;;  %v4016_v25 = vld [vmem:[#allocation5 + $0x16f8] sm:$0xff] }
 0x699   : > { %v4311_v60 = vld [vmem:[#allocation5 + $0x2030] sm:$0xff]  ;;  %5972 = vmatpush.msrb.mxu1 %v4455_v12  ;;  %5993 = vmatpush.msrb.mxu2 %v3296_v52  ;;  %v3616_v55 = vld [vmem:[#allocation5 + $0xa78] sm:$0xff] }
 0x69a   : > { %v4447_v62 = vld [vmem:[#allocation5 + $0x2470] sm:$0xff]  ;;  %6012 = vmatpush.msrb.mxu3 %v3432_v57  ;;  %5954 = vmatpush.msrb.mxu0 %v4311_v60  ;;  %v3752_v46 = vld [vmem:[#allocation5 + $0xeb8] sm:$0xff]  ;;  %v5677_v60 = vadd.f32 %v5676_v43, %v5657_v19 }
 0x69b   : > { %5973 = vmatpush.msrb.mxu1 %v4447_v62  ;;  %v4439_v28 = vld [vmem:[#allocation5 + $0x2430] sm:$0xff]  ;;  %5994 = vmatpush.msrb.mxu2 %v3288_v2  ;;  %v3872_v36 = vld [vmem:[#allocation5 + $0x1278] sm:$0xff] }
 0x69c   : > { %6013 = vmatpush.msrb.mxu3 %v3424_v4  ;;  %5955 = vmatmul.f32.vlgmr.msrb.gmra.mxu0 %v8209_v9  ;;  %v4008_v61 = vld [vmem:[#allocation5 + $0x16b8] sm:$0xff]  ;;  %v5696_v4 = vpop.f32.mrf.mxu3 }
 0x69d   : > { %6059 = vmatpush.msra.mxu2 %v3920_v6  ;;  %6019 = vmatpush.msra.mxu0 %v3664_v7  ;;  %v3608_v14 = vld [vmem:[#allocation5 + $0xa38] sm:$0xff] }
 0x69e   : > { %5974 = vmatpush.msrb.mxu1 %v4439_v28  ;;  %6014 = vmatpush.msrb.mxu3 %v3416_v11  ;;  %v3744_v8 = vld [vmem:[#allocation5 + $0xe78] sm:$0xff] }
 0x69f   : > { %5975 = vmatmul.f32.vlgmr.msrb.gmra.mxu1 %v8211_v21  ;;  %6020 = vmatpush.msra.mxu0 %v3656_v63  ;;  %v3864_v40 = vld [vmem:[#allocation5 + $0x1238] sm:$0xff]  ;;  %v5697_v63 = vadd.f32 %v5696_v4, %v5677_v60 }
 0x6a0   : > { %6039 = vmatpush.msra.mxu1 %v3792_v13  ;;  %6060 = vmatpush.msra.mxu2 %v3912_v54  ;;  %v4000_v24 = vld [vmem:[#allocation5 + $0x1678] sm:$0xff] }
 0x6a1   : > { %6079 = vmatpush.msra.mxu3 %v4048_v39  ;;  %6021 = vmatpush.msra.mxu0 %v3648_v42  ;;  %v3600_v41 = vld [vmem:[#allocation5 + $0x9f8] sm:$0xff] }
 0x6a2   : > { %6040 = vmatpush.msra.mxu1 %v3784_v38  ;;  %6061 = vmatpush.msra.mxu2 %v3904_v1  ;;  %v3736_v3 = vld [vmem:[#allocation5 + $0xe38] sm:$0xff] }
 0x6a3   : > { %6080 = vmatpush.msra.mxu3 %v4040_v30  ;;  %6022 = vmatpush.msra.mxu0 %v3640_v48  ;;  %v3856_v50 = vld [vmem:[#allocation5 + $0x11f8] sm:$0xff] }
 0x6a4   : > { %6041 = vmatpush.msra.mxu1 %v3776_v20  ;;  %6062 = vmatpush.msra.mxu2 %v3896_v44  ;;  %v3992_v15 = vld [vmem:[#allocation5 + $0x1638] sm:$0xff] }
 0x6a5   : > { %6081 = vmatpush.msra.mxu3 %v4032_v22  ;;  %6023 = vmatpush.msra.mxu0 %v3632_v45  ;;  %v3592_v51 = vld [vmem:[#allocation5 + $0x9b8] sm:$0xff] }
 0x6a6   : > { %6042 = vmatpush.msra.mxu1 %v3768_v47  ;;  %6063 = vmatpush.msra.mxu2 %v3888_v18  ;;  %v3728_v12 = vld [vmem:[#allocation5 + $0xdf8] sm:$0xff] }
 0x6a7   : > { %6082 = vmatpush.msra.mxu3 %v4024_v49  ;;  %6024 = vmatpush.msra.mxu0 %v3624_v32  ;;  %v3848_v52 = vld [vmem:[#allocation5 + $0x11b8] sm:$0xff] }
 0x6a8   : > { %6043 = vmatpush.msra.mxu1 %v3760_v34  ;;  %6064 = vmatpush.msra.mxu2 %v3880_v0  ;;  %v3984_v57 = vld [vmem:[#allocation5 + $0x15f8] sm:$0xff] }
 0x6a9   : > { %6083 = vmatpush.msra.mxu3 %v4016_v25  ;;  %6025 = vmatpush.msra.mxu0 %v3616_v55  ;;  %v3584_v62 = vld [vmem:[#allocation5 + $0x978] sm:$0xff]  ;;  %v5716_v38 = vpop.f32.mrf.mxu0 }
 0x6aa   : > { %6044 = vmatpush.msra.mxu1 %v3752_v46  ;;  %6065 = vmatpush.msra.mxu2 %v3872_v36  ;;  %v3720_v2 = vld [vmem:[#allocation5 + $0xdb8] sm:$0xff]  ;;  %v5717_v30 = vadd.f32 %v5716_v38, %v5697_v63 }
 0x6ab   : > { %6084 = vmatpush.msra.mxu3 %v4008_v61  ;;  %6026 = vmatpush.msra.mxu0 %v3608_v14  ;;  %v3840_v6 = vld [vmem:[#allocation5 + $0x1178] sm:$0xff] }
 0x6ac   : > { %6045 = vmatpush.msra.mxu1 %v3744_v8  ;;  %6066 = vmatpush.msra.mxu2 %v3864_v40  ;;  %v3976_v7 = vld [vmem:[#allocation5 + $0x15b8] sm:$0xff] }
 0x6ad   : > { %6085 = vmatpush.msra.mxu3 %v4000_v24  ;;  %6027 = vmatpush.msra.mxu0 %v3600_v41  ;;  %v3576_v28 = vld [vmem:[#allocation5 + $0x938] sm:$0xff]  ;;  %v5736_v22 = vpop.f32.mrf.mxu1 }
 0x6ae   : > { %6046 = vmatpush.msra.mxu1 %v3736_v3  ;;  %6067 = vmatpush.msra.mxu2 %v3856_v50  ;;  %v3712_v10 = vld [vmem:[#allocation5 + $0xd78] sm:$0xff]  ;;  %v5737_v49 = vadd.f32 %v5736_v22, %v5717_v30 }
 0x6af   : > { %6086 = vmatpush.msra.mxu3 %v3992_v15  ;;  %6028 = vmatpush.msra.mxu0 %v3592_v51  ;;  %v3832_v11 = vld [vmem:[#allocation5 + $0x1138] sm:$0xff] }
 0x6b0   : > { %6047 = vmatpush.msra.mxu1 %v3728_v12  ;;  %6068 = vmatpush.msra.mxu2 %v3848_v52  ;;  %v3968_v56 = vld [vmem:[#allocation5 + $0x1578] sm:$0xff] }
 0x6b1   : > { %6087 = vmatpush.msra.mxu3 %v3984_v57  ;;  %6029 = vmatpush.msra.mxu0 %v3584_v62  ;;  %v3568_v13 = vld [vmem:[#allocation5 + $0x8f8] sm:$0xff]  ;;  %v5756_v34 = vpop.f32.mrf.mxu2 }
 0x6b2   : > { %6048 = vmatpush.msra.mxu1 %v3720_v2  ;;  %6069 = vmatpush.msra.mxu2 %v3840_v6  ;;  %v3704_v54 = vld [vmem:[#allocation5 + $0xd38] sm:$0xff]  ;;  %v5757_v25 = vadd.f32 %v5756_v34, %v5737_v49 }
 0x6b3   : > { %6088 = vmatpush.msra.mxu3 %v3976_v7  ;;  %6030 = vmatpush.msra.mxu0 %v3576_v28  ;;  %v3824_v39 = vld [vmem:[#allocation5 + $0x10f8] sm:$0xff] }
 0x6b4   : > { %6049 = vmatpush.msra.mxu1 %v3712_v10  ;;  %v3960_v42 = vld [vmem:[#allocation5 + $0x1538] sm:$0xff]  ;;  %6070 = vmatpush.msra.mxu2 %v3832_v11  ;;  %v5776_v61 = vpop.f32.mrf.mxu3 }
 0x6b5   : > { %6089 = vmatpush.msra.mxu3 %v3968_v56  ;;  %v3560_v23 = vld [vmem:[#allocation5 + $0x8b8] sm:$0xff]  ;;  %6031 = vmatpush.msra.mxu0 %v3568_v13  ;;  %v5777_v14 = vadd.f32 %v5776_v61, %v5757_v25 }
 0x6b6   : > { %v3696_v1 = vld [vmem:[#allocation5 + $0xcf8] sm:$0xff]  ;;  %6050 = vmatpush.msra.mxu1 %v3704_v54  ;;  %6071 = vmatpush.msra.mxu2 %v3824_v39 }
 0x6b7   : > { %v3816_v26 = vld [vmem:[#allocation5 + $0x10b8] sm:$0xff]  ;;  %6090 = vmatpush.msra.mxu3 %v3960_v42  ;;  %6032 = vmatpush.msra.mxu0 %v3560_v23  ;;  %6184 = vst [vmem:[%s8339_s5 + $0x28] sm:$0xff] %v5777_v14 }
 0x6b8   : > { %v3952_v48 = vld [vmem:[#allocation5 + $0x14f8] sm:$0xff]  ;;  %6051 = vmatpush.msra.mxu1 %v3696_v1  ;;  %6072 = vmatpush.msra.mxu2 %v3816_v26 }
 0x6b9   : > { %v3552_v20 = vld [vmem:[#allocation5 + $0x878] sm:$0xff]  ;;  %6091 = vmatpush.msra.mxu3 %v3952_v48  ;;  %5995 = vmatmul.f32.vlgmr.msrb.gmra.mxu2 %v8178_v33 }
 0x6ba   : > { %v3688_v44 = vld [vmem:[#allocation5 + $0xcb8] sm:$0xff]  ;;  %6033 = vmatpush.msra.mxu0 %v3552_v20  ;;  %6015 = vmatmul.f32.vlgmr.msrb.gmra.mxu3 %v8183_v58 }
 0x6bb   : > { %v3808_v45 = vld [vmem:[#allocation5 + $0x1078] sm:$0xff]  ;;  %6052 = vmatpush.msra.mxu1 %v3688_v44 }
 0x6bc   : > { %v3944_v47 = vld [vmem:[#allocation5 + $0x14b8] sm:$0xff]  ;;  %6073 = vmatpush.msra.mxu2 %v3808_v45 }
 0x6bd   : > { %v3544_v27 = vld [vmem:[#allocation5 + $0x838] sm:$0xff]  ;;  %6092 = vmatpush.msra.mxu3 %v3944_v47 }
 0x6be   : > { %v3680_v18 = vld [vmem:[#allocation5 + $0xc78] sm:$0xff]  ;;  %6034 = vmatpush.msra.mxu0 %v3544_v27 }
 0x6bf   : > { %v3800_v29 = vld [vmem:[#allocation5 + $0x1038] sm:$0xff]  ;;  %6053 = vmatpush.msra.mxu1 %v3680_v18  ;;  %6035 = vmatmul.f32.vlgmr.msra.gmra.mxu0 %v8180_v35 }
 0x6c0   : > { %v3936_v32 = vld [vmem:[#allocation5 + $0x1478] sm:$0xff]  ;;  %6074 = vmatpush.msra.mxu2 %v3800_v29 }
 0x6c1   : > { %v4176_v0 = vld [vmem:[#allocation5 + $0x1bf8] sm:$0xff]  ;;  %6093 = vmatpush.msra.mxu3 %v3936_v32  ;;  %6075 = vmatmul.f32.vlgmr.msra.gmra.mxu2 %v8196_v5 }
 0x6c2   : > { %v4432_v53 = vld [vmem:[#allocation5 + $0x23f8] sm:$0xff]  ;;  %6099 = vmatpush.msrb.mxu0 %v4176_v0 }
 0x6c3   : > { %v3672_v55 = vld [vmem:[#allocation5 + $0xc38] sm:$0xff]  ;;  %6139 = vmatpush.msrb.mxu2 %v4432_v53 }
 0x6c4   : > { %v3928_v46 = vld [vmem:[#allocation5 + $0x1438] sm:$0xff]  ;;  %6054 = vmatpush.msra.mxu1 %v3672_v55 }
 0x6c5   : > { %v4168_v36 = vld [vmem:[#allocation5 + $0x1bb8] sm:$0xff]  ;;  %6094 = vmatpush.msra.mxu3 %v3928_v46  ;;  %6055 = vmatmul.f32.vlgmr.msra.gmra.mxu1 %v8185_v59 }
 0x6c6   : > { %v4304_v37 = vld [vmem:[#allocation5 + $0x1ff8] sm:$0xff]  ;;  %6100 = vmatpush.msrb.mxu0 %v4168_v36  ;;  %6095 = vmatmul.f32.vlgmr.msra.gmra.mxu3 %v8201_v17 }
 0x6c7   : > { %v4424_v8 = vld [vmem:[#allocation5 + $0x23b8] sm:$0xff]  ;;  %6119 = vmatpush.msrb.mxu1 %v4304_v37 }
 0x6c8   : > { %v4560_v40 = vld [vmem:[#allocation5 + $0x27f8] sm:$0xff]  ;;  %6140 = vmatpush.msrb.mxu2 %v4424_v8  ;;  %v6376_v8 = vld [vmem:[#allocation7] sm:$0xff] }
 0x6c9   : > { %v4160_v24 = vld [vmem:[#allocation5 + $0x1b78] sm:$0xff]  ;;  %6159 = vmatpush.msrb.mxu3 %v4560_v40  ;;  %v4569_v40 = vperm.slane %v6376_v8, 6 }
 0x6ca   : > { %v4296_v19 = vld [vmem:[#allocation5 + $0x1fb8] sm:$0xff]  ;;  %6101 = vmatpush.msrb.mxu0 %v4160_v24 }
 0x6cb   : > { %v4416_v41 = vld [vmem:[#allocation5 + $0x2378] sm:$0xff]  ;;  %6120 = vmatpush.msrb.mxu1 %v4296_v19 }
 0x6cc   : > { %v4552_v33 = vld [vmem:[#allocation5 + $0x27b8] sm:$0xff]  ;;  %6141 = vmatpush.msrb.mxu2 %v4416_v41 }
 0x6cd   : > { %v4152_v3 = vld [vmem:[#allocation5 + $0x1b38] sm:$0xff]  ;;  %6160 = vmatpush.msrb.mxu3 %v4552_v33 }
 0x6ce   : > { %v4288_v43 = vld [vmem:[#allocation5 + $0x1f78] sm:$0xff]  ;;  %6102 = vmatpush.msrb.mxu0 %v4152_v3 }
 0x6cf   : > { %v4408_v50 = vld [vmem:[#allocation5 + $0x2338] sm:$0xff]  ;;  %6121 = vmatpush.msrb.mxu1 %v4288_v43 }
 0x6d0   : > { %v4544_v15 = vld [vmem:[#allocation5 + $0x2778] sm:$0xff]  ;;  %6142 = vmatpush.msrb.mxu2 %v4408_v50 }
 0x6d1   : > { %v4144_v51 = vld [vmem:[#allocation5 + $0x1af8] sm:$0xff]  ;;  %6161 = vmatpush.msrb.mxu3 %v4544_v15 }
 0x6d2   : > { %v4280_v12 = vld [vmem:[#allocation5 + $0x1f38] sm:$0xff]  ;;  %6103 = vmatpush.msrb.mxu0 %v4144_v51 }
 0x6d3   : > { %v4400_v52 = vld [vmem:[#allocation5 + $0x22f8] sm:$0xff]  ;;  %6122 = vmatpush.msrb.mxu1 %v4280_v12 }
 0x6d4   : > { %v4536_v58 = vld [vmem:[#allocation5 + $0x2738] sm:$0xff]  ;;  %6143 = vmatpush.msrb.mxu2 %v4400_v52 }
 0x6d5   : > { %v4136_v57 = vld [vmem:[#allocation5 + $0x1ab8] sm:$0xff]  ;;  %6162 = vmatpush.msrb.mxu3 %v4536_v58 }
 0x6d6   : > { %v4272_v60 = vld [vmem:[#allocation5 + $0x1ef8] sm:$0xff]  ;;  %6104 = vmatpush.msrb.mxu0 %v4136_v57 }
 0x6d7   : > { %v4392_v62 = vld [vmem:[#allocation5 + $0x22b8] sm:$0xff]  ;;  %6123 = vmatpush.msrb.mxu1 %v4272_v60 }
 0x6d8   : > { %v4528_v2 = vld [vmem:[#allocation5 + $0x26f8] sm:$0xff]  ;;  %6144 = vmatpush.msrb.mxu2 %v4392_v62 }
 0x6d9   : > { %v4128_v4 = vld [vmem:[#allocation5 + $0x1a78] sm:$0xff]  ;;  %6163 = vmatpush.msrb.mxu3 %v4528_v2 }
 0x6da   : > { %v4264_v6 = vld [vmem:[#allocation5 + $0x1eb8] sm:$0xff]  ;;  %6105 = vmatpush.msrb.mxu0 %v4128_v4  ;;  %v4570_v4 = vperm.slane %v6376_v8, 7 }
 0x6db   : > { %v4384_v7 = vld [vmem:[#allocation5 + $0x2278] sm:$0xff]  ;;  %6124 = vmatpush.msrb.mxu1 %v4264_v6 }
 0x6dc   : > { %v4520_v28 = vld [vmem:[#allocation5 + $0x26b8] sm:$0xff]  ;;  %6145 = vmatpush.msrb.mxu2 %v4384_v7 }
 0x6dd   : > { %v4120_v5 = vld [vmem:[#allocation5 + $0x1a38] sm:$0xff]  ;;  %6164 = vmatpush.msrb.mxu3 %v4520_v28 }
 0x6de   : > { %v4256_v10 = vld [vmem:[#allocation5 + $0x1e78] sm:$0xff]  ;;  %6106 = vmatpush.msrb.mxu0 %v4120_v5 }
 0x6df   : > { %v4376_v11 = vld [vmem:[#allocation5 + $0x2238] sm:$0xff]  ;;  %6125 = vmatpush.msrb.mxu1 %v4256_v10 }
 0x6e0   : > { %v4512_v56 = vld [vmem:[#allocation5 + $0x2678] sm:$0xff]  ;;  %6146 = vmatpush.msrb.mxu2 %v4376_v11 }
 0x6e1   : > { %v4112_v35 = vld [vmem:[#allocation5 + $0x19f8] sm:$0xff]  ;;  %6165 = vmatpush.msrb.mxu3 %v4512_v56  ;;  %v5796_v24 = vpop.f32.mrf.mxu0 }
 0x6e2   : > { %v4248_v17 = vld [vmem:[#allocation5 + $0x1e38] sm:$0xff]  ;;  %6107 = vmatpush.msrb.mxu0 %v4112_v35  ;;  %v5797_v19 = vadd.f32 %v5796_v24, %v4569_v40  ;;  %v5816_v41 = vpop.f32.mrf.mxu1 }
 0x6e3   : > { %v4368_v63 = vld [vmem:[#allocation5 + $0x21f8] sm:$0xff]  ;;  %6126 = vmatpush.msrb.mxu1 %v4248_v17 }
 0x6e4   : > { %v4504_v13 = vld [vmem:[#allocation5 + $0x2638] sm:$0xff]  ;;  %6147 = vmatpush.msrb.mxu2 %v4368_v63  ;;  %v5817_v33 = vadd.f32 %v5816_v41, %v5797_v19 }
 0x6e5   : > { %v4104_v54 = vld [vmem:[#allocation5 + $0x19b8] sm:$0xff]  ;;  %6166 = vmatpush.msrb.mxu3 %v4504_v13 }
 0x6e6   : > { %v4240_v39 = vld [vmem:[#allocation5 + $0x1df8] sm:$0xff]  ;;  %6108 = vmatpush.msrb.mxu0 %v4104_v54 }
 0x6e7   : > { %v4360_v59 = vld [vmem:[#allocation5 + $0x21b8] sm:$0xff]  ;;  %6127 = vmatpush.msrb.mxu1 %v4240_v39 }
 0x6e8   : > { %v4496_v42 = vld [vmem:[#allocation5 + $0x25f8] sm:$0xff]  ;;  %6148 = vmatpush.msrb.mxu2 %v4360_v59 }
 0x6e9   : > { %v4096_v38 = vld [vmem:[#allocation5 + $0x1978] sm:$0xff]  ;;  %6167 = vmatpush.msrb.mxu3 %v4496_v42  ;;  %v5836_v3 = vpop.f32.mrf.mxu2 }
 0x6ea   : > { %v4232_v23 = vld [vmem:[#allocation5 + $0x1db8] sm:$0xff]  ;;  %6109 = vmatpush.msrb.mxu0 %v4096_v38  ;;  %v5837_v43 = vadd.f32 %v5836_v3, %v5817_v33  ;;  %v5856_v50 = vpop.f32.mrf.mxu3 }
 0x6eb   : > { %v4352_v1 = vld [vmem:[#allocation5 + $0x2178] sm:$0xff]  ;;  %6128 = vmatpush.msrb.mxu1 %v4232_v23 }
 0x6ec   : > { %v4488_v30 = vld [vmem:[#allocation5 + $0x25b8] sm:$0xff]  ;;  %6149 = vmatpush.msrb.mxu2 %v4352_v1  ;;  %v5857_v15 = vadd.f32 %v5856_v50, %v5837_v43 }
 0x6ed   : > { %v4088_v26 = vld [vmem:[#allocation5 + $0x1938] sm:$0xff]  ;;  %6168 = vmatpush.msrb.mxu3 %v4488_v30 }
 0x6ee   : > { %v4224_v48 = vld [vmem:[#allocation5 + $0x1d78] sm:$0xff]  ;;  %6110 = vmatpush.msrb.mxu0 %v4088_v26 }
 0x6ef   : > { %v4344_v20 = vld [vmem:[#allocation5 + $0x2138] sm:$0xff]  ;;  %6129 = vmatpush.msrb.mxu1 %v4224_v48 }
 0x6f0   : > { %v4480_v44 = vld [vmem:[#allocation5 + $0x2578] sm:$0xff]  ;;  %6150 = vmatpush.msrb.mxu2 %v4344_v20 }
 0x6f1   : > { %v4080_v22 = vld [vmem:[#allocation5 + $0x18f8] sm:$0xff]  ;;  %6169 = vmatpush.msrb.mxu3 %v4480_v44 }
 0x6f2   : > { %v4216_v45 = vld [vmem:[#allocation5 + $0x1d38] sm:$0xff]  ;;  %6111 = vmatpush.msrb.mxu0 %v4080_v22 }
 0x6f3   : > { %v4336_v47 = vld [vmem:[#allocation5 + $0x20f8] sm:$0xff]  ;;  %6130 = vmatpush.msrb.mxu1 %v4216_v45 }
 0x6f4   : > { %v4472_v27 = vld [vmem:[#allocation5 + $0x2538] sm:$0xff]  ;;  %6151 = vmatpush.msrb.mxu2 %v4336_v47 }
 0x6f5   : > { %v4072_v18 = vld [vmem:[#allocation5 + $0x18b8] sm:$0xff]  ;;  %6170 = vmatpush.msrb.mxu3 %v4472_v27  ;;  %v5876_v51 = vpop.f32.mrf.mxu0 }
 0x6f6   : > { %v4208_v49 = vld [vmem:[#allocation5 + $0x1cf8] sm:$0xff]  ;;  %6112 = vmatpush.msrb.mxu0 %v4072_v18 }
 0x6f7   : > { %v4328_v29 = vld [vmem:[#allocation5 + $0x20b8] sm:$0xff]  ;;  %6131 = vmatpush.msrb.mxu1 %v4208_v49 }
 0x6f8   : > { %v4464_v32 = vld [vmem:[#allocation5 + $0x24f8] sm:$0xff]  ;;  %6152 = vmatpush.msrb.mxu2 %v4328_v29 }
 0x6f9   : > { %v4064_v34 = vld [vmem:[#allocation5 + $0x1878] sm:$0xff]  ;;  %6171 = vmatpush.msrb.mxu3 %v4464_v32 }
 0x6fa   : > { %v4200_v0 = vld [vmem:[#allocation5 + $0x1cb8] sm:$0xff]  ;;  %6113 = vmatpush.msrb.mxu0 %v4064_v34 }
 0x6fb   : > { %v4320_v25 = vld [vmem:[#allocation5 + $0x2078] sm:$0xff]  ;;  %6132 = vmatpush.msrb.mxu1 %v4200_v0 }
 0x6fc   : > { %v4456_v53 = vld [vmem:[#allocation5 + $0x24b8] sm:$0xff]  ;;  %6153 = vmatpush.msrb.mxu2 %v4320_v25 }
 0x6fd   : > { %v4056_v55 = vld [vmem:[#allocation5 + $0x1838] sm:$0xff]  ;;  %6172 = vmatpush.msrb.mxu3 %v4456_v53  ;;  %v5916_v52 = vpop.f32.mrf.mxu2 }
 0x6fe   : > { %v4192_v46 = vld [vmem:[#allocation5 + $0x1c78] sm:$0xff]  ;;  %6114 = vmatpush.msrb.mxu0 %v4056_v55 }
 0x6ff   : > { %v4312_v36 = vld [vmem:[#allocation5 + $0x2038] sm:$0xff]  ;;  %6133 = vmatpush.msrb.mxu1 %v4192_v46  ;;  %6115 = vmatmul.f32.vlgmr.msrb.gmra.mxu0 %v8194_v31  ;;  %v5877_v31 = vadd.f32 %v5876_v51, %v5857_v15 }
 0x700   : > { %v4448_v61 = vld [vmem:[#allocation5 + $0x2478] sm:$0xff]  ;;  %6154 = vmatpush.msrb.mxu2 %v4312_v36 }
 0x701   : > { %v4184_v37 = vld [vmem:[#allocation5 + $0x1c38] sm:$0xff]  ;;  %6173 = vmatpush.msrb.mxu3 %v4448_v61  ;;  %6155 = vmatmul.f32.vlgmr.msrb.gmra.mxu2 %v8209_v9  ;;  %v5936_v57 = vpop.f32.mrf.mxu3 }
 0x702   : > { %v4440_v14 = vld [vmem:[#allocation5 + $0x2438] sm:$0xff]  ;;  %6134 = vmatpush.msrb.mxu1 %v4184_v37 }
 0x703   : > { %6174 = vmatpush.msrb.mxu3 %v4440_v14  ;;  %6135 = vmatmul.f32.vlgmr.msrb.gmra.mxu1 %v8198_v16 }
 0x704   : > { %6175 = vmatmul.f32.vlgmr.msrb.gmra.mxu3 %v8211_v21 }
 0x705   : > { %v5896_v12 = vpop.f32.mrf.mxu1 }
 0x706   : > { %v5897_v9 = vadd.f32 %v5896_v12, %v5877_v31 }
 0x708   : > { %v5917_v58 = vadd.f32 %v5916_v52, %v5897_v9 }
 0x70a   : > { %v5937_v16 = vadd.f32 %v5936_v57, %v5917_v58 }
 0x719   : > { %v5956_v60 = vpop.f32.mrf.mxu0 }
 0x71a   : > { %v5957_v21 = vadd.f32 %v5956_v60, %v5937_v16 }
 0x71c   : > { %v5976_v62 = vpop.f32.mrf.mxu1 }
 0x71d   : > { %v5977_v2 = vadd.f32 %v5976_v62, %v5957_v21 }
 0x71f   : > { %6185 = vst [vmem:[%s8339_s5 + $0x30] sm:$0xff] %v5977_v2 }
 0x73c   : > { %v5996_v6 = vpop.f32.mrf.mxu2  ;;  %v6036_v10 = vpop.f32.mrf.mxu0 }
 0x73d   : > { %v5997_v7 = vadd.f32 %v5996_v6, %v4570_v4  ;;  %v6016_v28 = vpop.f32.mrf.mxu3 }
 0x73f   : > { %v6017_v5 = vadd.f32 %v6016_v28, %v5997_v7 }
 0x741   : > { %v6037_v11 = vadd.f32 %v6036_v10, %v6017_v5 }
 0x742   : > { %v6056_v56 = vpop.f32.mrf.mxu1 }
 0x743   : > { %v6057_v35 = vadd.f32 %v6056_v56, %v6037_v11 }
 0x744   : > { %v6076_v17 = vpop.f32.mrf.mxu2 }
 0x745   : > { %v6077_v63 = vadd.f32 %v6076_v17, %v6057_v35 }
 0x749   : > { %v6096_v13 = vpop.f32.mrf.mxu3 }
 0x74a   : > { %v6097_v54 = vadd.f32 %v6096_v13, %v6077_v63 }
 0x77c   : > { %v6116_v39 = vpop.f32.mrf.mxu0 }
 0x77d   : > { %v6117_v59 = vadd.f32 %v6116_v39, %v6097_v54 }
 0x780   : > { %v6136_v42 = vpop.f32.mrf.mxu1 }
 0x781   : > { %v6137_v38 = vadd.f32 %v6136_v42, %v6117_v59 }
 0x784   : > { %v6156_v23 = vpop.f32.mrf.mxu2 }
 0x785   : > { %v6157_v1 = vadd.f32 %v6156_v23, %v6137_v38 }
 0x787   : > { %v6176_v30 = vpop.f32.mrf.mxu3 }
 0x788   : > { %v6177_v26 = vadd.f32 %v6176_v30, %v6157_v1 }
 0x78a   : > { %6186 = vst [vmem:[%s8339_s5 + $0x38] sm:$0xff] %v6177_v26 }
 0x78b PF: > { %p16_p6 = scmp.ge.s32.totalorder %s6590_s12, 5   ;;  %s8344_s18 = smov %s6497_s19 }
 0x78c   : > { %s8345_s19 = smov %s6501_s20  ;;  %s8346_s20 = smov %s6601_s16 }
 0x78d   : > { %s8347_s21 = smov %s6590_s12  ;;  %18 = sbr.rel (!%p16_p6) target bundleno = 4 (0x4), region = 99 }
 0x792   :  { %6198 = vsyncpa [#allocation4], 1 }
 0x793   :  { %6200 = vsyncpa [#allocation4 + $0x1], 1 }
 0x794   :  { %6201 = vsyncpa [#allocation6], 1 }

</bundles_post_ra>
